<compile_context>
chip_gen: v7x
topology: tpu7x:2x2x1
jax: 0.10.0
libtpu: 0.0.40
codegen_flags: <defaults>
</compile_context>

<pallas_src>
import functools

import jax
import jax.numpy as jnp
from jax.experimental import pallas as pl
from jax.experimental.pallas import tpu as pltpu

HP = 128  # per-gate lane padding: each gate (r, z, n) occupies one full lane tile


def _round_up(x, m):
    return (x + m - 1) // m * m


# ----------------------------------------------------------------------------
# Fused Pallas kernel: all layers, both directions, whole sequence.
# ----------------------------------------------------------------------------
def _make_fused_bigru_kernel(T, BP, num_layers):
    G3 = 3 * HP  # padded gate block width per direction

    def kernel(*refs):
        x_ref, len_ref = refs[0], refs[1]
        layer_refs = refs[2:2 + 5 * num_layers]
        out_ref = refs[2 + 5 * num_layers]   # [T*BP, 2*HP] f32 (fwd | bwd lanes)
        gi_ref = refs[3 + 5 * num_layers]    # [T*BP, 2*G3] f32 scratch
        y_ref = refs[4 + 5 * num_layers]     # [T*BP, 2*HP] f32 scratch (layer i/o)

        len_col = len_ref[...]               # [BP, 1] int32 (loaded once)

        for layer in range(num_layers):
            (wih_ref, bi_ref, whh_ref, bhnf_ref, bhnb_ref) = \
                layer_refs[5 * layer:5 * layer + 5]

            # ---- hoisted input projection: all timesteps, both directions ----
            # bf16 x bf16 on the MXU, f32 accumulation; r/z biases pre-folded.
            xin = x_ref[...] if layer == 0 else y_ref[...].astype(jnp.bfloat16)
            gi_ref[...] = (jnp.dot(xin, wih_ref[...],
                                   preferred_element_type=jnp.float32)
                           + bi_ref[...])

            dest = out_ref if layer == num_layers - 1 else y_ref
            bhn_f = jnp.broadcast_to(bhnf_ref[...], (BP, HP))   # hoisted broadcasts
            bhn_b = jnp.broadcast_to(bhnb_ref[...], (BP, HP))
            h_cat = jnp.zeros((BP, 2 * HP), jnp.float32)        # [h_fwd | h_bwd]

            # ---- fully unrolled time loop; fwd & bwd share one matmul --------
            for i in range(T):
                tf = i
                tb = T - 1 - i

                # Single block-diagonal recurrent matmul for BOTH directions.
                # W_cat has zero rows for padded lanes, so full-lane h is exact.
                gh = jnp.dot(h_cat.astype(jnp.bfloat16), whh_ref[...],
                             preferred_element_type=jnp.float32)   # [BP, 2*G3]

                gi_f = gi_ref[tf * BP:(tf + 1) * BP, 0:G3]         # tile-aligned
                gi_b = gi_ref[tb * BP:(tb + 1) * BP, G3:2 * G3]    # tile-aligned
                h_f = h_cat[:, 0:HP]
                h_b = h_cat[:, HP:2 * HP]
                m_f = len_col > tf
                m_b = len_col > tb

                # forward / backward gate math interleaved (EUP work of one
                # direction overlaps the other's dependencies).
                r_f = jax.nn.sigmoid(gi_f[:, 0:HP] + gh[:, 0:HP])
                r_b = jax.nn.sigmoid(gi_b[:, 0:HP] + gh[:, G3:G3 + HP])
                z_f = jax.nn.sigmoid(gi_f[:, HP:2 * HP] + gh[:, HP:2 * HP])
                z_b = jax.nn.sigmoid(gi_b[:, HP:2 * HP] + gh[:, G3 + HP:G3 + 2 * HP])
                n_f = jnp.tanh(gi_f[:, 2 * HP:3 * HP]
                               + r_f * (gh[:, 2 * HP:3 * HP] + bhn_f))
                n_b = jnp.tanh(gi_b[:, 2 * HP:3 * HP]
                               + r_b * (gh[:, G3 + 2 * HP:G3 + 3 * HP] + bhn_b))

                hn_f = n_f + z_f * (h_f - n_f)       # == (1 - z) * n + z * h
                hn_b = n_b + z_b * (h_b - n_b)
                h_f_next = jnp.where(m_f, hn_f, h_f)  # freeze past true length
                h_b_next = jnp.where(m_b, hn_b, h_b)

                # Full 128-lane, 8-sublane (unmasked) stores; lanes >= H are
                # provably zero so the wrapper's compaction slice is exact.
                dest[tf * BP:(tf + 1) * BP, 0:HP] = jnp.where(m_f, hn_f, 0.0)
                dest[tb * BP:(tb + 1) * BP, HP:2 * HP] = jnp.where(m_b, hn_b, 0.0)

                h_cat = jnp.concatenate([h_f_next, h_b_next], axis=-1)

    return kernel


# ----------------------------------------------------------------------------
# Wrapper: one pallas_call; only trivial pad/reshape/slice glue outside.
# ----------------------------------------------------------------------------
@functools.partial(jax.jit, static_argnames=("hidden_size",))
def inner_path_forward(prepped, seq, edge_id, *, hidden_size):
    """seq: [B, T, seq_dim] f32, edge_id (segmentId): [B, T, 1] int.
       Returns the new path embedding [B, T, 2*hidden] (pad_packed, batch_first)."""
    B, T, D = seq.shape
    H = hidden_size
    num_layers = len(prepped)
    G3 = 3 * HP
    BP = _round_up(B, 8)     # sublane-tile aligned batch
    DP = _round_up(D, 128)   # lane-tile aligned layer-0 feature dim

    lengths = jnp.count_nonzero(edge_id[..., 0], axis=1).astype(jnp.int32)   # [B]
    len_col = jnp.zeros((BP, 1), jnp.int32).at[0:B, 0].set(lengths)          # [BP,1]

    # time-major flattened rows: row = t*BP + b ; padded batch rows have len 0.
    x_pad = jnp.zeros((BP, T, DP), jnp.float32).at[0:B, :, 0:D].set(
        seq.astype(jnp.float32))
    x2d = jnp.transpose(x_pad, (1, 0, 2)).reshape(T * BP, DP).astype(jnp.bfloat16)

    flat_inputs = [x2d, len_col]
    for p in prepped:
        flat_inputs += [p["wih_cat"], p["bi_cat"], p["whh_cat"],
                        p["bhn_f"], p["bhn_b"]]

    # Explicit VMEM budget (review): working set + generous headroom.
    in_bytes = sum(int(a.size) * a.dtype.itemsize for a in flat_inputs)
    scratch_bytes = (T * BP * 2 * G3) * 4 + (T * BP * 2 * HP) * 4
    out_bytes = (T * BP * 2 * HP) * 4
    vmem_limit = int(max(2 * (in_bytes + scratch_bytes + out_bytes) + (4 << 20),
                         16 << 20))

    vmem = pl.BlockSpec(memory_space=pltpu.MemorySpace.VMEM)
    out2d = pl.pallas_call(
        _make_fused_bigru_kernel(T, BP, num_layers),
        out_shape=jax.ShapeDtypeStruct((T * BP, 2 * HP), jnp.float32),
        in_specs=[vmem] * len(flat_inputs),
        out_specs=vmem,
        scratch_shapes=[pltpu.VMEM((T * BP, 2 * G3), jnp.float32),  # gi scratch
                        pltpu.VMEM((T * BP, 2 * HP), jnp.float32)], # layer output
        compiler_params=pltpu.CompilerParams(vmem_limit_bytes=vmem_limit),
    )(*flat_inputs)

    # Compaction done in XLA (lane-dense kernel stores, per review).
    out3 = jnp.transpose(out2d.reshape(T, BP, 2 * HP), (1, 0, 2))[0:B]  # [B,T,2*HP]
    return jnp.concatenate([out3[..., 0:H], out3[..., HP:HP + H]], axis=-1)


# ----------------------------------------------------------------------------
# Parameters: PyTorch-layout raw params + conversion to the fused/padded layout.
# ----------------------------------------------------------------------------
def init_raw_params(key, seq_dim, hidden_size, num_layers):
    """PyTorch nn.GRU shaped params: w_ih [3H, D_in], w_hh [3H, H], b_* [3H]."""
    params = []
    scale = 1.0 / float(hidden_size) ** 0.5
    for layer in range(num_layers):
        d_in = seq_dim if layer == 0 else 2 * hidden_size
        lp = {}
        for tag in ("f", "b"):
            key, k1, k2, k3, k4 = jax.random.split(key, 5)
            lp[f"w_ih_{tag}"] = jax.random.uniform(
                k1, (3 * hidden_size, d_in), jnp.float32, -scale, scale)
            lp[f"w_hh_{tag}"] = jax.random.uniform(
                k2, (3 * hidden_size, hidden_size), jnp.float32, -scale, scale)
            lp[f"b_ih_{tag}"] = jax.random.uniform(
                k3, (3 * hidden_size,), jnp.float32, -scale, scale)
            lp[f"b_hh_{tag}"] = jax.random.uniform(
                k4, (3 * hidden_size,), jnp.float32, -scale, scale)
        params.append(lp)
    return params


def prepare_params(raw_params, hidden_size):
    """Convert to kernel layout:
       * each gate padded to HP=128 lanes (zero pad rows/cols),
       * fwd|bwd W_ih concatenated on lanes -> [D_pad, 2*3*HP],
       * fwd/bwd W_hh as one block-diagonal [2*HP, 2*3*HP] (zero padded rows),
       * r/z biases pre-summed (b_ir+b_hr, b_iz+b_hz); b_hn kept separate,
       * weights pre-cast to bf16 (matmul inputs are bf16, f32 accumulation)."""
    H = hidden_size
    G3 = 3 * HP
    prepped = []
    for layer, lp in enumerate(raw_params):
        d_in_raw = lp["w_ih_f"].shape[1]
        d_pad = _round_up(d_in_raw, 128) if layer == 0 else 2 * HP
        wih = jnp.zeros((d_pad, 2 * G3), jnp.float32)
        whh = jnp.zeros((2 * HP, 2 * G3), jnp.float32)
        bi = jnp.zeros((1, 2 * G3), jnp.float32)
        bhn = {}
        for d, tag in enumerate(("f", "b")):
            w_ih, w_hh = lp[f"w_ih_{tag}"], lp[f"w_hh_{tag}"]
            b_ih, b_hh = lp[f"b_ih_{tag}"], lp[f"b_hh_{tag}"]
            col0 = d * G3
            for g in range(3):
                wg = w_ih[g * H:(g + 1) * H, :]     # [H, d_in_raw]
                hg = w_hh[g * H:(g + 1) * H, :]     # [H, H]
                cs = col0 + g * HP
                if layer == 0:
                    wih = wih.at[0:d_in_raw, cs:cs + H].set(wg.T)
                else:
                    # layer>=1 input is [fwd 0:H | bwd H:2H]; in the kernel's y
                    # layout fwd sits at rows 0:H, bwd at rows HP:HP+H.
                    wih = wih.at[0:H, cs:cs + H].set(wg[:, 0:H].T)
                    wih = wih.at[HP:HP + H, cs:cs + H].set(wg[:, H:2 * H].T)
                whh = whh.at[d * HP:d * HP + H, cs:cs + H].set(hg.T)
            bi = bi.at[0, col0 + 0 * HP:col0 + 0 * HP + H].set(b_ih[0:H] + b_hh[0:H])
            bi = bi.at[0, col0 + 1 * HP:col0 + 1 * HP + H].set(
                b_ih[H:2 * H] + b_hh[H:2 * H])
            bi = bi.at[0, col0 + 2 * HP:col0 + 2 * HP + H].set(b_ih[2 * H:3 * H])
            bhn[tag] = jnp.zeros((1, HP), jnp.float32).at[0, 0:H].set(
                b_hh[2 * H:3 * H])
        prepped.append({
            "wih_cat": wih.astype(jnp.bfloat16),   # [D_pad, 2*G3]
            "bi_cat": bi,                          # [1, 2*G3] f32
            "whh_cat": whh.astype(jnp.bfloat16),   # [2*HP, 2*G3] block-diagonal
            "bhn_f": bhn["f"],                     # [1, HP] f32
            "bhn_b": bhn["b"],                     # [1, HP] f32
        })
    return prepped


# ----------------------------------------------------------------------------
# Pure-JAX reference (pack_padded / pad_packed semantics) for validation.
# ----------------------------------------------------------------------------
def gru_reference(raw_params, seq, lengths):
    B, T, _ = seq.shape
    hi = jax.lax.Precision.HIGHEST
    x = seq
    for lp in raw_params:
        outs = []
        for tag, rev in (("f", False), ("b", True)):
            w_ih, w_hh = lp[f"w_ih_{tag}"], lp[f"w_hh_{tag}"]
            b_ih, b_hh = lp[f"b_ih_{tag}"], lp[f"b_hh_{tag}"]
            H = w_hh.shape[1]
            h = jnp.zeros((B, H), jnp.float32)
            out = jnp.zeros((B, T, H), jnp.float32)
            order = range(T - 1, -1, -1) if rev else range(T)
            for t in order:
                gi = jnp.dot(x[:, t, :], w_ih.T, precision=hi) + b_ih
                gh = jnp.dot(h, w_hh.T, precision=hi) + b_hh
                r = jax.nn.sigmoid(gi[:, :H] + gh[:, :H])
                z = jax.nn.sigmoid(gi[:, H:2 * H] + gh[:, H:2 * H])
                n = jnp.tanh(gi[:, 2 * H:] + r * gh[:, 2 * H:])
                h_new = (1.0 - z) * n + z * h
                m = (lengths > t)[:, None]
                out = out.at[:, t, :].set(jnp.where(m, h_new, 0.0))
                h = jnp.where(m, h_new, h)
            outs.append(out)
        x = jnp.concatenate(outs, axis=-1)
    return x


if __name__ == "__main__":
    # Small shapes implied by the module: seq_dim=16, hidden=32, 2 layers,
    # batch of 4 paths, seq_max_len=8.
    seq_dim, hidden_size, num_layers, seq_max_len = 16, 32, 2, 8
    B = 4

    key = jax.random.PRNGKey(0)
    k_param, k_seq = jax.random.split(key)
    raw_params = init_raw_params(k_param, seq_dim, hidden_size, num_layers)
    prepped = prepare_params(raw_params, hidden_size)

    seq = jax.random.normal(k_seq, (B, seq_max_len, seq_dim), jnp.float32)

    # segmentId: nonzero for the valid prefix of each path (lengths 8, 5, 3, 1).
    lengths = jnp.array([8, 5, 3, 1], dtype=jnp.int32)
    valid = (jnp.arange(seq_max_len)[None, :] < lengths[:, None]).astype(jnp.int32)
    edge_id = (valid * (jnp.arange(seq_max_len)[None, :] + 1))[..., None]  # [B, T, 1]

    out = inner_path_forward(prepped, seq, edge_id, hidden_size=hidden_size)
    out = jax.block_until_ready(out)

    assert out.shape == (B, seq_max_len, 2 * hidden_size)

    # positions beyond each sequence length must be exactly zero (pad_packed)
    pad_mask = (jnp.arange(seq_max_len)[None, :] >= lengths[:, None])[..., None]
    assert float(jnp.max(jnp.abs(jnp.where(pad_mask, out, 0.0)))) == 0.0

    # match the pure-JAX f32 reference GRU.  Tolerance is loose because the
    # kernel uses bf16 weights/activations on the MXU (f32 accumulation), per
    # the performance review.
    ref = gru_reference(raw_params, seq, lengths)
    max_err = float(jnp.max(jnp.abs(out - ref)))
    assert max_err < 5e-2, f"max abs error vs reference = {max_err}"

    print("KERNEL_OK")
</pallas_src>

<mosaic_0001>
module attributes {stable_mosaic.version = 11 : i64} {
  func.func @kernel(%arg0: memref<64x128xbf16, #tpu.memory_space<vmem>>, %arg1: memref<8x1xi32, #tpu.memory_space<vmem>>, %arg2: memref<128x768xbf16, #tpu.memory_space<vmem>>, %arg3: memref<1x768xf32, #tpu.memory_space<vmem>>, %arg4: memref<256x768xbf16, #tpu.memory_space<vmem>>, %arg5: memref<1x128xf32, #tpu.memory_space<vmem>>, %arg6: memref<1x128xf32, #tpu.memory_space<vmem>>, %arg7: memref<256x768xbf16, #tpu.memory_space<vmem>>, %arg8: memref<1x768xf32, #tpu.memory_space<vmem>>, %arg9: memref<256x768xbf16, #tpu.memory_space<vmem>>, %arg10: memref<1x128xf32, #tpu.memory_space<vmem>>, %arg11: memref<1x128xf32, #tpu.memory_space<vmem>>, %arg12: memref<64x256xf32, #tpu.memory_space<vmem>>, %arg13: memref<64x768xf32, #tpu.memory_space<vmem>>, %arg14: memref<64x256xf32, #tpu.memory_space<vmem>>) attributes {dimension_semantics = [], scalar_prefetch = 0 : i64, scratch_operands = 2 : i64, tpu.core_type = #tpu.core_type<tc>} {
    %c0 = arith.constant 0 : index
    %c0_0 = arith.constant 0 : index
    %0 = vector.load %arg1[%c0, %c0_0] : memref<8x1xi32, #tpu.memory_space<vmem>>, vector<8x1xi32>
    %c0_1 = arith.constant 0 : index
    %c0_2 = arith.constant 0 : index
    %1 = vector.load %arg0[%c0_1, %c0_2] : memref<64x128xbf16, #tpu.memory_space<vmem>>, vector<64x128xbf16>
    %c0_3 = arith.constant 0 : index
    %c0_4 = arith.constant 0 : index
    %2 = vector.load %arg2[%c0_3, %c0_4] : memref<128x768xbf16, #tpu.memory_space<vmem>>, vector<128x768xbf16>
    %cst = arith.constant dense<0.000000e+00> : vector<64x768xf32>
    %3 = tpu.matmul %1, %2, %cst {dimension_numbers = #tpu.dot_dimension_numbers<[1], [0], [0], [1], [0, 0, 1, 1], [], []>} : vector<64x128xbf16>, vector<128x768xbf16>, vector<64x768xf32> -> vector<64x768xf32>
    %c0_5 = arith.constant 0 : index
    %c0_6 = arith.constant 0 : index
    %4 = vector.load %arg3[%c0_5, %c0_6] : memref<1x768xf32, #tpu.memory_space<vmem>>, vector<1x768xf32>
    %5 = vector.broadcast %4 : vector<1x768xf32> to vector<64x768xf32>
    %6 = arith.addf %3, %5 : vector<64x768xf32>
    %c0_7 = arith.constant 0 : index
    %c0_8 = arith.constant 0 : index
    %7 = vector.load %arg13[%c0_7, %c0_8] : memref<64x768xf32, #tpu.memory_space<vmem>>, vector<64x768xf32>
    tpu.vector_store %arg13[%c0_7, %c0_8], %6 {strides = array<i32>} : memref<64x768xf32, #tpu.memory_space<vmem>>, vector<64x768xf32>,
    %c0_9 = arith.constant 0 : index
    %c0_10 = arith.constant 0 : index
    %8 = vector.load %arg5[%c0_9, %c0_10] : memref<1x128xf32, #tpu.memory_space<vmem>>, vector<1x128xf32>
    %9 = vector.shape_cast %8 : vector<1x128xf32> to vector<1x128xf32>
    %10 = vector.broadcast %9 : vector<1x128xf32> to vector<8x128xf32>
    %c0_11 = arith.constant 0 : index
    %c0_12 = arith.constant 0 : index
    %11 = vector.load %arg6[%c0_11, %c0_12] : memref<1x128xf32, #tpu.memory_space<vmem>>, vector<1x128xf32>
    %12 = vector.shape_cast %11 : vector<1x128xf32> to vector<1x128xf32>
    %13 = vector.broadcast %12 : vector<1x128xf32> to vector<8x128xf32>
    %cst_13 = arith.constant 0.000000e+00 : f32
    %14 = vector.broadcast %cst_13 : f32 to vector<8x256xf32>
    %15 = arith.truncf %14 : vector<8x256xf32> to vector<8x256xbf16>
    %c0_14 = arith.constant 0 : index
    %c0_15 = arith.constant 0 : index
    %16 = vector.load %arg4[%c0_14, %c0_15] : memref<256x768xbf16, #tpu.memory_space<vmem>>, vector<256x768xbf16>
    %cst_16 = arith.constant dense<0.000000e+00> : vector<8x768xf32>
    %17 = tpu.matmul %15, %16, %cst_16 {dimension_numbers = #tpu.dot_dimension_numbers<[1], [0], [0], [1], [0, 0, 1, 1], [], []>} : vector<8x256xbf16>, vector<256x768xbf16>, vector<8x768xf32> -> vector<8x768xf32>
    %c0_17 = arith.constant 0 : index
    %c0_18 = arith.constant 0 : index
    %18 = vector.load %arg13[%c0_17, %c0_18] : memref<64x768xf32, #tpu.memory_space<vmem>>, vector<8x384xf32>
    %c56 = arith.constant 56 : index
    %c384 = arith.constant 384 : index
    %19 = vector.load %arg13[%c56, %c384] : memref<64x768xf32, #tpu.memory_space<vmem>>, vector<8x384xf32>
    %20 = vector.extract_strided_slice %14 {offsets = [0, 0], sizes = [8, 128], strides = [1, 1]} : vector<8x256xf32> to vector<8x128xf32>
    %21 = vector.extract_strided_slice %14 {offsets = [0, 128], sizes = [8, 128], strides = [1, 1]} : vector<8x256xf32> to vector<8x128xf32>
    %c0_i32 = arith.constant 0 : i32
    %22 = vector.broadcast %c0_i32 : i32 to vector<8x1xi32>
    %23 = arith.cmpi sgt, %0, %22 : vector<8x1xi32>
    %c7_i32 = arith.constant 7 : i32
    %24 = vector.broadcast %c7_i32 : i32 to vector<8x1xi32>
    %25 = arith.cmpi sgt, %0, %24 : vector<8x1xi32>
    %26 = vector.extract_strided_slice %18 {offsets = [0, 0], sizes = [8, 128], strides = [1, 1]} : vector<8x384xf32> to vector<8x128xf32>
    %27 = vector.extract_strided_slice %17 {offsets = [0, 0], sizes = [8, 128], strides = [1, 1]} : vector<8x768xf32> to vector<8x128xf32>
    %28 = arith.addf %26, %27 : vector<8x128xf32>
    %29 = arith.negf %28 : vector<8x128xf32>
    %30 = math.exp %29 : vector<8x128xf32>
    %cst_19 = arith.constant 1.000000e+00 : f32
    %31 = vector.broadcast %cst_19 : f32 to vector<8x128xf32>
    %32 = arith.addf %31, %30 : vector<8x128xf32>
    %33 = arith.divf %31, %32 : vector<8x128xf32>
    %34 = vector.extract_strided_slice %19 {offsets = [0, 0], sizes = [8, 128], strides = [1, 1]} : vector<8x384xf32> to vector<8x128xf32>
    %35 = vector.extract_strided_slice %17 {offsets = [0, 384], sizes = [8, 128], strides = [1, 1]} : vector<8x768xf32> to vector<8x128xf32>
    %36 = arith.addf %34, %35 : vector<8x128xf32>
    %37 = arith.negf %36 : vector<8x128xf32>
    %38 = math.exp %37 : vector<8x128xf32>
    %cst_20 = arith.constant 1.000000e+00 : f32
    %39 = vector.broadcast %cst_20 : f32 to vector<8x128xf32>
    %40 = arith.addf %39, %38 : vector<8x128xf32>
    %41 = arith.divf %39, %40 : vector<8x128xf32>
    %42 = vector.extract_strided_slice %18 {offsets = [0, 128], sizes = [8, 128], strides = [1, 1]} : vector<8x384xf32> to vector<8x128xf32>
    %43 = vector.extract_strided_slice %17 {offsets = [0, 128], sizes = [8, 128], strides = [1, 1]} : vector<8x768xf32> to vector<8x128xf32>
    %44 = arith.addf %42, %43 : vector<8x128xf32>
    %45 = arith.negf %44 : vector<8x128xf32>
    %46 = math.exp %45 : vector<8x128xf32>
    %cst_21 = arith.constant 1.000000e+00 : f32
    %47 = vector.broadcast %cst_21 : f32 to vector<8x128xf32>
    %48 = arith.addf %47, %46 : vector<8x128xf32>
    %49 = arith.divf %47, %48 : vector<8x128xf32>
    %50 = vector.extract_strided_slice %19 {offsets = [0, 128], sizes = [8, 128], strides = [1, 1]} : vector<8x384xf32> to vector<8x128xf32>
    %51 = vector.extract_strided_slice %17 {offsets = [0, 512], sizes = [8, 128], strides = [1, 1]} : vector<8x768xf32> to vector<8x128xf32>
    %52 = arith.addf %50, %51 : vector<8x128xf32>
    %53 = arith.negf %52 : vector<8x128xf32>
    %54 = math.exp %53 : vector<8x128xf32>
    %cst_22 = arith.constant 1.000000e+00 : f32
    %55 = vector.broadcast %cst_22 : f32 to vector<8x128xf32>
    %56 = arith.addf %55, %54 : vector<8x128xf32>
    %57 = arith.divf %55, %56 : vector<8x128xf32>
    %58 = vector.extract_strided_slice %18 {offsets = [0, 256], sizes = [8, 128], strides = [1, 1]} : vector<8x384xf32> to vector<8x128xf32>
    %59 = vector.extract_strided_slice %17 {offsets = [0, 256], sizes = [8, 128], strides = [1, 1]} : vector<8x768xf32> to vector<8x128xf32>
    %60 = arith.addf %59, %10 : vector<8x128xf32>
    %61 = arith.mulf %33, %60 : vector<8x128xf32>
    %62 = arith.addf %58, %61 : vector<8x128xf32>
    %63 = math.tanh %62 : vector<8x128xf32>
    %64 = vector.extract_strided_slice %19 {offsets = [0, 256], sizes = [8, 128], strides = [1, 1]} : vector<8x384xf32> to vector<8x128xf32>
    %65 = vector.extract_strided_slice %17 {offsets = [0, 640], sizes = [8, 128], strides = [1, 1]} : vector<8x768xf32> to vector<8x128xf32>
    %66 = arith.addf %65, %13 : vector<8x128xf32>
    %67 = arith.mulf %41, %66 : vector<8x128xf32>
    %68 = arith.addf %64, %67 : vector<8x128xf32>
    %69 = math.tanh %68 : vector<8x128xf32>
    %70 = arith.subf %20, %63 : vector<8x128xf32>
    %71 = arith.mulf %49, %70 : vector<8x128xf32>
    %72 = arith.addf %63, %71 : vector<8x128xf32>
    %73 = arith.subf %21, %69 : vector<8x128xf32>
    %74 = arith.mulf %57, %73 : vector<8x128xf32>
    %75 = arith.addf %69, %74 : vector<8x128xf32>
    %76 = vector.shape_cast %23 : vector<8x1xi1> to vector<8x1xi1>
    %77 = vector.broadcast %76 : vector<8x1xi1> to vector<8x128xi1>
    %78 = arith.select %77, %72, %20 : vector<8x128xi1>, vector<8x128xf32>
    %79 = vector.shape_cast %25 : vector<8x1xi1> to vector<8x1xi1>
    %80 = vector.broadcast %79 : vector<8x1xi1> to vector<8x128xi1>
    %81 = arith.select %80, %75, %21 : vector<8x128xi1>, vector<8x128xf32>
    %cst_23 = arith.constant 0.000000e+00 : f32
    %82 = vector.shape_cast %23 : vector<8x1xi1> to vector<8x1xi1>
    %83 = vector.broadcast %82 : vector<8x1xi1> to vector<8x128xi1>
    %84 = vector.broadcast %cst_23 : f32 to vector<8x128xf32>
    %85 = arith.select %83, %72, %84 : vector<8x128xi1>, vector<8x128xf32>
    %c0_24 = arith.constant 0 : index
    %c0_25 = arith.constant 0 : index
    %86 = vector.load %arg14[%c0_24, %c0_25] : memref<64x256xf32, #tpu.memory_space<vmem>>, vector<8x128xf32>
    tpu.vector_store %arg14[%c0_24, %c0_25], %85 {strides = array<i32>} : memref<64x256xf32, #tpu.memory_space<vmem>>, vector<8x128xf32>,
    %cst_26 = arith.constant 0.000000e+00 : f32
    %87 = vector.shape_cast %25 : vector<8x1xi1> to vector<8x1xi1>
    %88 = vector.broadcast %87 : vector<8x1xi1> to vector<8x128xi1>
    %89 = vector.broadcast %cst_26 : f32 to vector<8x128xf32>
    %90 = arith.select %88, %75, %89 : vector<8x128xi1>, vector<8x128xf32>
    %c56_27 = arith.constant 56 : index
    %c128 = arith.constant 128 : index
    %91 = vector.load %arg14[%c56_27, %c128] : memref<64x256xf32, #tpu.memory_space<vmem>>, vector<8x128xf32>
    tpu.vector_store %arg14[%c56_27, %c128], %90 {strides = array<i32>} : memref<64x256xf32, #tpu.memory_space<vmem>>, vector<8x128xf32>,
    %92 = tpu.concatenate %78, %81 in 1 : vector<8x128xf32>, vector<8x128xf32> -> vector<8x256xf32>
    %93 = arith.truncf %92 : vector<8x256xf32> to vector<8x256xbf16>
    %c0_28 = arith.constant 0 : index
    %c0_29 = arith.constant 0 : index
    %94 = vector.load %arg4[%c0_28, %c0_29] : memref<256x768xbf16, #tpu.memory_space<vmem>>, vector<256x768xbf16>
    %cst_30 = arith.constant dense<0.000000e+00> : vector<8x768xf32>
    %95 = tpu.matmul %93, %94, %cst_30 {dimension_numbers = #tpu.dot_dimension_numbers<[1], [0], [0], [1], [0, 0, 1, 1], [], []>} : vector<8x256xbf16>, vector<256x768xbf16>, vector<8x768xf32> -> vector<8x768xf32>
    %c8 = arith.constant 8 : index
    %c0_31 = arith.constant 0 : index
    %96 = vector.load %arg13[%c8, %c0_31] : memref<64x768xf32, #tpu.memory_space<vmem>>, vector<8x384xf32>
    %c48 = arith.constant 48 : index
    %c384_32 = arith.constant 384 : index
    %97 = vector.load %arg13[%c48, %c384_32] : memref<64x768xf32, #tpu.memory_space<vmem>>, vector<8x384xf32>
    %98 = vector.extract_strided_slice %92 {offsets = [0, 0], sizes = [8, 128], strides = [1, 1]} : vector<8x256xf32> to vector<8x128xf32>
    %99 = vector.extract_strided_slice %92 {offsets = [0, 128], sizes = [8, 128], strides = [1, 1]} : vector<8x256xf32> to vector<8x128xf32>
    %c1_i32 = arith.constant 1 : i32
    %100 = vector.broadcast %c1_i32 : i32 to vector<8x1xi32>
    %101 = arith.cmpi sgt, %0, %100 : vector<8x1xi32>
    %c6_i32 = arith.constant 6 : i32
    %102 = vector.broadcast %c6_i32 : i32 to vector<8x1xi32>
    %103 = arith.cmpi sgt, %0, %102 : vector<8x1xi32>
    %104 = vector.extract_strided_slice %96 {offsets = [0, 0], sizes = [8, 128], strides = [1, 1]} : vector<8x384xf32> to vector<8x128xf32>
    %105 = vector.extract_strided_slice %95 {offsets = [0, 0], sizes = [8, 128], strides = [1, 1]} : vector<8x768xf32> to vector<8x128xf32>
    %106 = arith.addf %104, %105 : vector<8x128xf32>
    %107 = arith.negf %106 : vector<8x128xf32>
    %108 = math.exp %107 : vector<8x128xf32>
    %cst_33 = arith.constant 1.000000e+00 : f32
    %109 = vector.broadcast %cst_33 : f32 to vector<8x128xf32>
    %110 = arith.addf %109, %108 : vector<8x128xf32>
    %111 = arith.divf %109, %110 : vector<8x128xf32>
    %112 = vector.extract_strided_slice %97 {offsets = [0, 0], sizes = [8, 128], strides = [1, 1]} : vector<8x384xf32> to vector<8x128xf32>
    %113 = vector.extract_strided_slice %95 {offsets = [0, 384], sizes = [8, 128], strides = [1, 1]} : vector<8x768xf32> to vector<8x128xf32>
    %114 = arith.addf %112, %113 : vector<8x128xf32>
    %115 = arith.negf %114 : vector<8x128xf32>
    %116 = math.exp %115 : vector<8x128xf32>
    %cst_34 = arith.constant 1.000000e+00 : f32
    %117 = vector.broadcast %cst_34 : f32 to vector<8x128xf32>
    %118 = arith.addf %117, %116 : vector<8x128xf32>
    %119 = arith.divf %117, %118 : vector<8x128xf32>
    %120 = vector.extract_strided_slice %96 {offsets = [0, 128], sizes = [8, 128], strides = [1, 1]} : vector<8x384xf32> to vector<8x128xf32>
    %121 = vector.extract_strided_slice %95 {offsets = [0, 128], sizes = [8, 128], strides = [1, 1]} : vector<8x768xf32> to vector<8x128xf32>
    %122 = arith.addf %120, %121 : vector<8x128xf32>
    %123 = arith.negf %122 : vector<8x128xf32>
    %124 = math.exp %123 : vector<8x128xf32>
    %cst_35 = arith.constant 1.000000e+00 : f32
    %125 = vector.broadcast %cst_35 : f32 to vector<8x128xf32>
    %126 = arith.addf %125, %124 : vector<8x128xf32>
    %127 = arith.divf %125, %126 : vector<8x128xf32>
    %128 = vector.extract_strided_slice %97 {offsets = [0, 128], sizes = [8, 128], strides = [1, 1]} : vector<8x384xf32> to vector<8x128xf32>
    %129 = vector.extract_strided_slice %95 {offsets = [0, 512], sizes = [8, 128], strides = [1, 1]} : vector<8x768xf32> to vector<8x128xf32>
    %130 = arith.addf %128, %129 : vector<8x128xf32>
    %131 = arith.negf %130 : vector<8x128xf32>
    %132 = math.exp %131 : vector<8x128xf32>
    %cst_36 = arith.constant 1.000000e+00 : f32
    %133 = vector.broadcast %cst_36 : f32 to vector<8x128xf32>
    %134 = arith.addf %133, %132 : vector<8x128xf32>
    %135 = arith.divf %133, %134 : vector<8x128xf32>
    %136 = vector.extract_strided_slice %96 {offsets = [0, 256], sizes = [8, 128], strides = [1, 1]} : vector<8x384xf32> to vector<8x128xf32>
    %137 = vector.extract_strided_slice %95 {offsets = [0, 256], sizes = [8, 128], strides = [1, 1]} : vector<8x768xf32> to vector<8x128xf32>
    %138 = arith.addf %137, %10 : vector<8x128xf32>
    %139 = arith.mulf %111, %138 : vector<8x128xf32>
    %140 = arith.addf %136, %139 : vector<8x128xf32>
    %141 = math.tanh %140 : vector<8x128xf32>
    %142 = vector.extract_strided_slice %97 {offsets = [0, 256], sizes = [8, 128], strides = [1, 1]} : vector<8x384xf32> to vector<8x128xf32>
    %143 = vector.extract_strided_slice %95 {offsets = [0, 640], sizes = [8, 128], strides = [1, 1]} : vector<8x768xf32> to vector<8x128xf32>
    %144 = arith.addf %143, %13 : vector<8x128xf32>
    %145 = arith.mulf %119, %144 : vector<8x128xf32>
    %146 = arith.addf %142, %145 : vector<8x128xf32>
    %147 = math.tanh %146 : vector<8x128xf32>
    %148 = arith.subf %98, %141 : vector<8x128xf32>
    %149 = arith.mulf %127, %148 : vector<8x128xf32>
    %150 = arith.addf %141, %149 : vector<8x128xf32>
    %151 = arith.subf %99, %147 : vector<8x128xf32>
    %152 = arith.mulf %135, %151 : vector<8x128xf32>
    %153 = arith.addf %147, %152 : vector<8x128xf32>
    %154 = vector.shape_cast %101 : vector<8x1xi1> to vector<8x1xi1>
    %155 = vector.broadcast %154 : vector<8x1xi1> to vector<8x128xi1>
    %156 = arith.select %155, %150, %98 : vector<8x128xi1>, vector<8x128xf32>
    %157 = vector.shape_cast %103 : vector<8x1xi1> to vector<8x1xi1>
    %158 = vector.broadcast %157 : vector<8x1xi1> to vector<8x128xi1>
    %159 = arith.select %158, %153, %99 : vector<8x128xi1>, vector<8x128xf32>
    %cst_37 = arith.constant 0.000000e+00 : f32
    %160 = vector.shape_cast %101 : vector<8x1xi1> to vector<8x1xi1>
    %161 = vector.broadcast %160 : vector<8x1xi1> to vector<8x128xi1>
    %162 = vector.broadcast %cst_37 : f32 to vector<8x128xf32>
    %163 = arith.select %161, %150, %162 : vector<8x128xi1>, vector<8x128xf32>
    %c8_38 = arith.constant 8 : index
    %c0_39 = arith.constant 0 : index
    %164 = vector.load %arg14[%c8_38, %c0_39] : memref<64x256xf32, #tpu.memory_space<vmem>>, vector<8x128xf32>
    tpu.vector_store %arg14[%c8_38, %c0_39], %163 {strides = array<i32>} : memref<64x256xf32, #tpu.memory_space<vmem>>, vector<8x128xf32>,
    %cst_40 = arith.constant 0.000000e+00 : f32
    %165 = vector.shape_cast %103 : vector<8x1xi1> to vector<8x1xi1>
    %166 = vector.broadcast %165 : vector<8x1xi1> to vector<8x128xi1>
    %167 = vector.broadcast %cst_40 : f32 to vector<8x128xf32>
    %168 = arith.select %166, %153, %167 : vector<8x128xi1>, vector<8x128xf32>
    %c48_41 = arith.constant 48 : index
    %c128_42 = arith.constant 128 : index
    %169 = vector.load %arg14[%c48_41, %c128_42] : memref<64x256xf32, #tpu.memory_space<vmem>>, vector<8x128xf32>
    tpu.vector_store %arg14[%c48_41, %c128_42], %168 {strides = array<i32>} : memref<64x256xf32, #tpu.memory_space<vmem>>, vector<8x128xf32>,
    %170 = tpu.concatenate %156, %159 in 1 : vector<8x128xf32>, vector<8x128xf32> -> vector<8x256xf32>
    %171 = arith.truncf %170 : vector<8x256xf32> to vector<8x256xbf16>
    %c0_43 = arith.constant 0 : index
    %c0_44 = arith.constant 0 : index
    %172 = vector.load %arg4[%c0_43, %c0_44] : memref<256x768xbf16, #tpu.memory_space<vmem>>, vector<256x768xbf16>
    %cst_45 = arith.constant dense<0.000000e+00> : vector<8x768xf32>
    %173 = tpu.matmul %171, %172, %cst_45 {dimension_numbers = #tpu.dot_dimension_numbers<[1], [0], [0], [1], [0, 0, 1, 1], [], []>} : vector<8x256xbf16>, vector<256x768xbf16>, vector<8x768xf32> -> vector<8x768xf32>
    %c16 = arith.constant 16 : index
    %c0_46 = arith.constant 0 : index
    %174 = vector.load %arg13[%c16, %c0_46] : memref<64x768xf32, #tpu.memory_space<vmem>>, vector<8x384xf32>
    %c40 = arith.constant 40 : index
    %c384_47 = arith.constant 384 : index
    %175 = vector.load %arg13[%c40, %c384_47] : memref<64x768xf32, #tpu.memory_space<vmem>>, vector<8x384xf32>
    %176 = vector.extract_strided_slice %170 {offsets = [0, 0], sizes = [8, 128], strides = [1, 1]} : vector<8x256xf32> to vector<8x128xf32>
    %177 = vector.extract_strided_slice %170 {offsets = [0, 128], sizes = [8, 128], strides = [1, 1]} : vector<8x256xf32> to vector<8x128xf32>
    %c2_i32 = arith.constant 2 : i32
    %178 = vector.broadcast %c2_i32 : i32 to vector<8x1xi32>
    %179 = arith.cmpi sgt, %0, %178 : vector<8x1xi32>
    %c5_i32 = arith.constant 5 : i32
    %180 = vector.broadcast %c5_i32 : i32 to vector<8x1xi32>
    %181 = arith.cmpi sgt, %0, %180 : vector<8x1xi32>
    %182 = vector.extract_strided_slice %174 {offsets = [0, 0], sizes = [8, 128], strides = [1, 1]} : vector<8x384xf32> to vector<8x128xf32>
    %183 = vector.extract_strided_slice %173 {offsets = [0, 0], sizes = [8, 128], strides = [1, 1]} : vector<8x768xf32> to vector<8x128xf32>
    %184 = arith.addf %182, %183 : vector<8x128xf32>
    %185 = arith.negf %184 : vector<8x128xf32>
    %186 = math.exp %185 : vector<8x128xf32>
    %cst_48 = arith.constant 1.000000e+00 : f32
    %187 = vector.broadcast %cst_48 : f32 to vector<8x128xf32>
    %188 = arith.addf %187, %186 : vector<8x128xf32>
    %189 = arith.divf %187, %188 : vector<8x128xf32>
    %190 = vector.extract_strided_slice %175 {offsets = [0, 0], sizes = [8, 128], strides = [1, 1]} : vector<8x384xf32> to vector<8x128xf32>
    %191 = vector.extract_strided_slice %173 {offsets = [0, 384], sizes = [8, 128], strides = [1, 1]} : vector<8x768xf32> to vector<8x128xf32>
    %192 = arith.addf %190, %191 : vector<8x128xf32>
    %193 = arith.negf %192 : vector<8x128xf32>
    %194 = math.exp %193 : vector<8x128xf32>
    %cst_49 = arith.constant 1.000000e+00 : f32
    %195 = vector.broadcast %cst_49 : f32 to vector<8x128xf32>
    %196 = arith.addf %195, %194 : vector<8x128xf32>
    %197 = arith.divf %195, %196 : vector<8x128xf32>
    %198 = vector.extract_strided_slice %174 {offsets = [0, 128], sizes = [8, 128], strides = [1, 1]} : vector<8x384xf32> to vector<8x128xf32>
    %199 = vector.extract_strided_slice %173 {offsets = [0, 128], sizes = [8, 128], strides = [1, 1]} : vector<8x768xf32> to vector<8x128xf32>
    %200 = arith.addf %198, %199 : vector<8x128xf32>
    %201 = arith.negf %200 : vector<8x128xf32>
    %202 = math.exp %201 : vector<8x128xf32>
    %cst_50 = arith.constant 1.000000e+00 : f32
    %203 = vector.broadcast %cst_50 : f32 to vector<8x128xf32>
    %204 = arith.addf %203, %202 : vector<8x128xf32>
    %205 = arith.divf %203, %204 : vector<8x128xf32>
    %206 = vector.extract_strided_slice %175 {offsets = [0, 128], sizes = [8, 128], strides = [1, 1]} : vector<8x384xf32> to vector<8x128xf32>
    %207 = vector.extract_strided_slice %173 {offsets = [0, 512], sizes = [8, 128], strides = [1, 1]} : vector<8x768xf32> to vector<8x128xf32>
    %208 = arith.addf %206, %207 : vector<8x128xf32>
    %209 = arith.negf %208 : vector<8x128xf32>
    %210 = math.exp %209 : vector<8x128xf32>
    %cst_51 = arith.constant 1.000000e+00 : f32
    %211 = vector.broadcast %cst_51 : f32 to vector<8x128xf32>
    %212 = arith.addf %211, %210 : vector<8x128xf32>
    %213 = arith.divf %211, %212 : vector<8x128xf32>
    %214 = vector.extract_strided_slice %174 {offsets = [0, 256], sizes = [8, 128], strides = [1, 1]} : vector<8x384xf32> to vector<8x128xf32>
    %215 = vector.extract_strided_slice %173 {offsets = [0, 256], sizes = [8, 128], strides = [1, 1]} : vector<8x768xf32> to vector<8x128xf32>
    %216 = arith.addf %215, %10 : vector<8x128xf32>
    %217 = arith.mulf %189, %216 : vector<8x128xf32>
    %218 = arith.addf %214, %217 : vector<8x128xf32>
    %219 = math.tanh %218 : vector<8x128xf32>
    %220 = vector.extract_strided_slice %175 {offsets = [0, 256], sizes = [8, 128], strides = [1, 1]} : vector<8x384xf32> to vector<8x128xf32>
    %221 = vector.extract_strided_slice %173 {offsets = [0, 640], sizes = [8, 128], strides = [1, 1]} : vector<8x768xf32> to vector<8x128xf32>
    %222 = arith.addf %221, %13 : vector<8x128xf32>
    %223 = arith.mulf %197, %222 : vector<8x128xf32>
    %224 = arith.addf %220, %223 : vector<8x128xf32>
    %225 = math.tanh %224 : vector<8x128xf32>
    %226 = arith.subf %176, %219 : vector<8x128xf32>
    %227 = arith.mulf %205, %226 : vector<8x128xf32>
    %228 = arith.addf %219, %227 : vector<8x128xf32>
    %229 = arith.subf %177, %225 : vector<8x128xf32>
    %230 = arith.mulf %213, %229 : vector<8x128xf32>
    %231 = arith.addf %225, %230 : vector<8x128xf32>
    %232 = vector.shape_cast %179 : vector<8x1xi1> to vector<8x1xi1>
    %233 = vector.broadcast %232 : vector<8x1xi1> to vector<8x128xi1>
    %234 = arith.select %233, %228, %176 : vector<8x128xi1>, vector<8x128xf32>
    %235 = vector.shape_cast %181 : vector<8x1xi1> to vector<8x1xi1>
    %236 = vector.broadcast %235 : vector<8x1xi1> to vector<8x128xi1>
    %237 = arith.select %236, %231, %177 : vector<8x128xi1>, vector<8x128xf32>
    %cst_52 = arith.constant 0.000000e+00 : f32
    %238 = vector.shape_cast %179 : vector<8x1xi1> to vector<8x1xi1>
    %239 = vector.broadcast %238 : vector<8x1xi1> to vector<8x128xi1>
    %240 = vector.broadcast %cst_52 : f32 to vector<8x128xf32>
    %241 = arith.select %239, %228, %240 : vector<8x128xi1>, vector<8x128xf32>
    %c16_53 = arith.constant 16 : index
    %c0_54 = arith.constant 0 : index
    %242 = vector.load %arg14[%c16_53, %c0_54] : memref<64x256xf32, #tpu.memory_space<vmem>>, vector<8x128xf32>
    tpu.vector_store %arg14[%c16_53, %c0_54], %241 {strides = array<i32>} : memref<64x256xf32, #tpu.memory_space<vmem>>, vector<8x128xf32>,
    %cst_55 = arith.constant 0.000000e+00 : f32
    %243 = vector.shape_cast %181 : vector<8x1xi1> to vector<8x1xi1>
    %244 = vector.broadcast %243 : vector<8x1xi1> to vector<8x128xi1>
    %245 = vector.broadcast %cst_55 : f32 to vector<8x128xf32>
    %246 = arith.select %244, %231, %245 : vector<8x128xi1>, vector<8x128xf32>
    %c40_56 = arith.constant 40 : index
    %c128_57 = arith.constant 128 : index
    %247 = vector.load %arg14[%c40_56, %c128_57] : memref<64x256xf32, #tpu.memory_space<vmem>>, vector<8x128xf32>
    tpu.vector_store %arg14[%c40_56, %c128_57], %246 {strides = array<i32>} : memref<64x256xf32, #tpu.memory_space<vmem>>, vector<8x128xf32>,
    %248 = tpu.concatenate %234, %237 in 1 : vector<8x128xf32>, vector<8x128xf32> -> vector<8x256xf32>
    %249 = arith.truncf %248 : vector<8x256xf32> to vector<8x256xbf16>
    %c0_58 = arith.constant 0 : index
    %c0_59 = arith.constant 0 : index
    %250 = vector.load %arg4[%c0_58, %c0_59] : memref<256x768xbf16, #tpu.memory_space<vmem>>, vector<256x768xbf16>
    %cst_60 = arith.constant dense<0.000000e+00> : vector<8x768xf32>
    %251 = tpu.matmul %249, %250, %cst_60 {dimension_numbers = #tpu.dot_dimension_numbers<[1], [0], [0], [1], [0, 0, 1, 1], [], []>} : vector<8x256xbf16>, vector<256x768xbf16>, vector<8x768xf32> -> vector<8x768xf32>
    %c24 = arith.constant 24 : index
    %c0_61 = arith.constant 0 : index
    %252 = vector.load %arg13[%c24, %c0_61] : memref<64x768xf32, #tpu.memory_space<vmem>>, vector<8x384xf32>
    %c32 = arith.constant 32 : index
    %c384_62 = arith.constant 384 : index
    %253 = vector.load %arg13[%c32, %c384_62] : memref<64x768xf32, #tpu.memory_space<vmem>>, vector<8x384xf32>
    %254 = vector.extract_strided_slice %248 {offsets = [0, 0], sizes = [8, 128], strides = [1, 1]} : vector<8x256xf32> to vector<8x128xf32>
    %255 = vector.extract_strided_slice %248 {offsets = [0, 128], sizes = [8, 128], strides = [1, 1]} : vector<8x256xf32> to vector<8x128xf32>
    %c3_i32 = arith.constant 3 : i32
    %256 = vector.broadcast %c3_i32 : i32 to vector<8x1xi32>
    %257 = arith.cmpi sgt, %0, %256 : vector<8x1xi32>
    %c4_i32 = arith.constant 4 : i32
    %258 = vector.broadcast %c4_i32 : i32 to vector<8x1xi32>
    %259 = arith.cmpi sgt, %0, %258 : vector<8x1xi32>
    %260 = vector.extract_strided_slice %252 {offsets = [0, 0], sizes = [8, 128], strides = [1, 1]} : vector<8x384xf32> to vector<8x128xf32>
    %261 = vector.extract_strided_slice %251 {offsets = [0, 0], sizes = [8, 128], strides = [1, 1]} : vector<8x768xf32> to vector<8x128xf32>
    %262 = arith.addf %260, %261 : vector<8x128xf32>
    %263 = arith.negf %262 : vector<8x128xf32>
    %264 = math.exp %263 : vector<8x128xf32>
    %cst_63 = arith.constant 1.000000e+00 : f32
    %265 = vector.broadcast %cst_63 : f32 to vector<8x128xf32>
    %266 = arith.addf %265, %264 : vector<8x128xf32>
    %267 = arith.divf %265, %266 : vector<8x128xf32>
    %268 = vector.extract_strided_slice %253 {offsets = [0, 0], sizes = [8, 128], strides = [1, 1]} : vector<8x384xf32> to vector<8x128xf32>
    %269 = vector.extract_strided_slice %251 {offsets = [0, 384], sizes = [8, 128], strides = [1, 1]} : vector<8x768xf32> to vector<8x128xf32>
    %270 = arith.addf %268, %269 : vector<8x128xf32>
    %271 = arith.negf %270 : vector<8x128xf32>
    %272 = math.exp %271 : vector<8x128xf32>
    %cst_64 = arith.constant 1.000000e+00 : f32
    %273 = vector.broadcast %cst_64 : f32 to vector<8x128xf32>
    %274 = arith.addf %273, %272 : vector<8x128xf32>
    %275 = arith.divf %273, %274 : vector<8x128xf32>
    %276 = vector.extract_strided_slice %252 {offsets = [0, 128], sizes = [8, 128], strides = [1, 1]} : vector<8x384xf32> to vector<8x128xf32>
    %277 = vector.extract_strided_slice %251 {offsets = [0, 128], sizes = [8, 128], strides = [1, 1]} : vector<8x768xf32> to vector<8x128xf32>
    %278 = arith.addf %276, %277 : vector<8x128xf32>
    %279 = arith.negf %278 : vector<8x128xf32>
    %280 = math.exp %279 : vector<8x128xf32>
    %cst_65 = arith.constant 1.000000e+00 : f32
    %281 = vector.broadcast %cst_65 : f32 to vector<8x128xf32>
    %282 = arith.addf %281, %280 : vector<8x128xf32>
    %283 = arith.divf %281, %282 : vector<8x128xf32>
    %284 = vector.extract_strided_slice %253 {offsets = [0, 128], sizes = [8, 128], strides = [1, 1]} : vector<8x384xf32> to vector<8x128xf32>
    %285 = vector.extract_strided_slice %251 {offsets = [0, 512], sizes = [8, 128], strides = [1, 1]} : vector<8x768xf32> to vector<8x128xf32>
    %286 = arith.addf %284, %285 : vector<8x128xf32>
    %287 = arith.negf %286 : vector<8x128xf32>
    %288 = math.exp %287 : vector<8x128xf32>
    %cst_66 = arith.constant 1.000000e+00 : f32
    %289 = vector.broadcast %cst_66 : f32 to vector<8x128xf32>
    %290 = arith.addf %289, %288 : vector<8x128xf32>
    %291 = arith.divf %289, %290 : vector<8x128xf32>
    %292 = vector.extract_strided_slice %252 {offsets = [0, 256], sizes = [8, 128], strides = [1, 1]} : vector<8x384xf32> to vector<8x128xf32>
    %293 = vector.extract_strided_slice %251 {offsets = [0, 256], sizes = [8, 128], strides = [1, 1]} : vector<8x768xf32> to vector<8x128xf32>
    %294 = arith.addf %293, %10 : vector<8x128xf32>
    %295 = arith.mulf %267, %294 : vector<8x128xf32>
    %296 = arith.addf %292, %295 : vector<8x128xf32>
    %297 = math.tanh %296 : vector<8x128xf32>
    %298 = vector.extract_strided_slice %253 {offsets = [0, 256], sizes = [8, 128], strides = [1, 1]} : vector<8x384xf32> to vector<8x128xf32>
    %299 = vector.extract_strided_slice %251 {offsets = [0, 640], sizes = [8, 128], strides = [1, 1]} : vector<8x768xf32> to vector<8x128xf32>
    %300 = arith.addf %299, %13 : vector<8x128xf32>
    %301 = arith.mulf %275, %300 : vector<8x128xf32>
    %302 = arith.addf %298, %301 : vector<8x128xf32>
    %303 = math.tanh %302 : vector<8x128xf32>
    %304 = arith.subf %254, %297 : vector<8x128xf32>
    %305 = arith.mulf %283, %304 : vector<8x128xf32>
    %306 = arith.addf %297, %305 : vector<8x128xf32>
    %307 = arith.subf %255, %303 : vector<8x128xf32>
    %308 = arith.mulf %291, %307 : vector<8x128xf32>
    %309 = arith.addf %303, %308 : vector<8x128xf32>
    %310 = vector.shape_cast %257 : vector<8x1xi1> to vector<8x1xi1>
    %311 = vector.broadcast %310 : vector<8x1xi1> to vector<8x128xi1>
    %312 = arith.select %311, %306, %254 : vector<8x128xi1>, vector<8x128xf32>
    %313 = vector.shape_cast %259 : vector<8x1xi1> to vector<8x1xi1>
    %314 = vector.broadcast %313 : vector<8x1xi1> to vector<8x128xi1>
    %315 = arith.select %314, %309, %255 : vector<8x128xi1>, vector<8x128xf32>
    %cst_67 = arith.constant 0.000000e+00 : f32
    %316 = vector.shape_cast %257 : vector<8x1xi1> to vector<8x1xi1>
    %317 = vector.broadcast %316 : vector<8x1xi1> to vector<8x128xi1>
    %318 = vector.broadcast %cst_67 : f32 to vector<8x128xf32>
    %319 = arith.select %317, %306, %318 : vector<8x128xi1>, vector<8x128xf32>
    %c24_68 = arith.constant 24 : index
    %c0_69 = arith.constant 0 : index
    %320 = vector.load %arg14[%c24_68, %c0_69] : memref<64x256xf32, #tpu.memory_space<vmem>>, vector<8x128xf32>
    tpu.vector_store %arg14[%c24_68, %c0_69], %319 {strides = array<i32>} : memref<64x256xf32, #tpu.memory_space<vmem>>, vector<8x128xf32>,
    %cst_70 = arith.constant 0.000000e+00 : f32
    %321 = vector.shape_cast %259 : vector<8x1xi1> to vector<8x1xi1>
    %322 = vector.broadcast %321 : vector<8x1xi1> to vector<8x128xi1>
    %323 = vector.broadcast %cst_70 : f32 to vector<8x128xf32>
    %324 = arith.select %322, %309, %323 : vector<8x128xi1>, vector<8x128xf32>
    %c32_71 = arith.constant 32 : index
    %c128_72 = arith.constant 128 : index
    %325 = vector.load %arg14[%c32_71, %c128_72] : memref<64x256xf32, #tpu.memory_space<vmem>>, vector<8x128xf32>
    tpu.vector_store %arg14[%c32_71, %c128_72], %324 {strides = array<i32>} : memref<64x256xf32, #tpu.memory_space<vmem>>, vector<8x128xf32>,
    %326 = tpu.concatenate %312, %315 in 1 : vector<8x128xf32>, vector<8x128xf32> -> vector<8x256xf32>
    %327 = arith.truncf %326 : vector<8x256xf32> to vector<8x256xbf16>
    %c0_73 = arith.constant 0 : index
    %c0_74 = arith.constant 0 : index
    %328 = vector.load %arg4[%c0_73, %c0_74] : memref<256x768xbf16, #tpu.memory_space<vmem>>, vector<256x768xbf16>
    %cst_75 = arith.constant dense<0.000000e+00> : vector<8x768xf32>
    %329 = tpu.matmul %327, %328, %cst_75 {dimension_numbers = #tpu.dot_dimension_numbers<[1], [0], [0], [1], [0, 0, 1, 1], [], []>} : vector<8x256xbf16>, vector<256x768xbf16>, vector<8x768xf32> -> vector<8x768xf32>
    %c32_76 = arith.constant 32 : index
    %c0_77 = arith.constant 0 : index
    %330 = vector.load %arg13[%c32_76, %c0_77] : memref<64x768xf32, #tpu.memory_space<vmem>>, vector<8x384xf32>
    %c24_78 = arith.constant 24 : index
    %c384_79 = arith.constant 384 : index
    %331 = vector.load %arg13[%c24_78, %c384_79] : memref<64x768xf32, #tpu.memory_space<vmem>>, vector<8x384xf32>
    %332 = vector.extract_strided_slice %326 {offsets = [0, 0], sizes = [8, 128], strides = [1, 1]} : vector<8x256xf32> to vector<8x128xf32>
    %333 = vector.extract_strided_slice %326 {offsets = [0, 128], sizes = [8, 128], strides = [1, 1]} : vector<8x256xf32> to vector<8x128xf32>
    %c4_i32_80 = arith.constant 4 : i32
    %334 = vector.broadcast %c4_i32_80 : i32 to vector<8x1xi32>
    %335 = arith.cmpi sgt, %0, %334 : vector<8x1xi32>
    %c3_i32_81 = arith.constant 3 : i32
    %336 = vector.broadcast %c3_i32_81 : i32 to vector<8x1xi32>
    %337 = arith.cmpi sgt, %0, %336 : vector<8x1xi32>
    %338 = vector.extract_strided_slice %330 {offsets = [0, 0], sizes = [8, 128], strides = [1, 1]} : vector<8x384xf32> to vector<8x128xf32>
    %339 = vector.extract_strided_slice %329 {offsets = [0, 0], sizes = [8, 128], strides = [1, 1]} : vector<8x768xf32> to vector<8x128xf32>
    %340 = arith.addf %338, %339 : vector<8x128xf32>
    %341 = arith.negf %340 : vector<8x128xf32>
    %342 = math.exp %341 : vector<8x128xf32>
    %cst_82 = arith.constant 1.000000e+00 : f32
    %343 = vector.broadcast %cst_82 : f32 to vector<8x128xf32>
    %344 = arith.addf %343, %342 : vector<8x128xf32>
    %345 = arith.divf %343, %344 : vector<8x128xf32>
    %346 = vector.extract_strided_slice %331 {offsets = [0, 0], sizes = [8, 128], strides = [1, 1]} : vector<8x384xf32> to vector<8x128xf32>
    %347 = vector.extract_strided_slice %329 {offsets = [0, 384], sizes = [8, 128], strides = [1, 1]} : vector<8x768xf32> to vector<8x128xf32>
    %348 = arith.addf %346, %347 : vector<8x128xf32>
    %349 = arith.negf %348 : vector<8x128xf32>
    %350 = math.exp %349 : vector<8x128xf32>
    %cst_83 = arith.constant 1.000000e+00 : f32
    %351 = vector.broadcast %cst_83 : f32 to vector<8x128xf32>
    %352 = arith.addf %351, %350 : vector<8x128xf32>
    %353 = arith.divf %351, %352 : vector<8x128xf32>
    %354 = vector.extract_strided_slice %330 {offsets = [0, 128], sizes = [8, 128], strides = [1, 1]} : vector<8x384xf32> to vector<8x128xf32>
    %355 = vector.extract_strided_slice %329 {offsets = [0, 128], sizes = [8, 128], strides = [1, 1]} : vector<8x768xf32> to vector<8x128xf32>
    %356 = arith.addf %354, %355 : vector<8x128xf32>
    %357 = arith.negf %356 : vector<8x128xf32>
    %358 = math.exp %357 : vector<8x128xf32>
    %cst_84 = arith.constant 1.000000e+00 : f32
    %359 = vector.broadcast %cst_84 : f32 to vector<8x128xf32>
    %360 = arith.addf %359, %358 : vector<8x128xf32>
    %361 = arith.divf %359, %360 : vector<8x128xf32>
    %362 = vector.extract_strided_slice %331 {offsets = [0, 128], sizes = [8, 128], strides = [1, 1]} : vector<8x384xf32> to vector<8x128xf32>
    %363 = vector.extract_strided_slice %329 {offsets = [0, 512], sizes = [8, 128], strides = [1, 1]} : vector<8x768xf32> to vector<8x128xf32>
    %364 = arith.addf %362, %363 : vector<8x128xf32>
    %365 = arith.negf %364 : vector<8x128xf32>
    %366 = math.exp %365 : vector<8x128xf32>
    %cst_85 = arith.constant 1.000000e+00 : f32
    %367 = vector.broadcast %cst_85 : f32 to vector<8x128xf32>
    %368 = arith.addf %367, %366 : vector<8x128xf32>
    %369 = arith.divf %367, %368 : vector<8x128xf32>
    %370 = vector.extract_strided_slice %330 {offsets = [0, 256], sizes = [8, 128], strides = [1, 1]} : vector<8x384xf32> to vector<8x128xf32>
    %371 = vector.extract_strided_slice %329 {offsets = [0, 256], sizes = [8, 128], strides = [1, 1]} : vector<8x768xf32> to vector<8x128xf32>
    %372 = arith.addf %371, %10 : vector<8x128xf32>
    %373 = arith.mulf %345, %372 : vector<8x128xf32>
    %374 = arith.addf %370, %373 : vector<8x128xf32>
    %375 = math.tanh %374 : vector<8x128xf32>
    %376 = vector.extract_strided_slice %331 {offsets = [0, 256], sizes = [8, 128], strides = [1, 1]} : vector<8x384xf32> to vector<8x128xf32>
    %377 = vector.extract_strided_slice %329 {offsets = [0, 640], sizes = [8, 128], strides = [1, 1]} : vector<8x768xf32> to vector<8x128xf32>
    %378 = arith.addf %377, %13 : vector<8x128xf32>
    %379 = arith.mulf %353, %378 : vector<8x128xf32>
    %380 = arith.addf %376, %379 : vector<8x128xf32>
    %381 = math.tanh %380 : vector<8x128xf32>
    %382 = arith.subf %332, %375 : vector<8x128xf32>
    %383 = arith.mulf %361, %382 : vector<8x128xf32>
    %384 = arith.addf %375, %383 : vector<8x128xf32>
    %385 = arith.subf %333, %381 : vector<8x128xf32>
    %386 = arith.mulf %369, %385 : vector<8x128xf32>
    %387 = arith.addf %381, %386 : vector<8x128xf32>
    %388 = vector.shape_cast %335 : vector<8x1xi1> to vector<8x1xi1>
    %389 = vector.broadcast %388 : vector<8x1xi1> to vector<8x128xi1>
    %390 = arith.select %389, %384, %332 : vector<8x128xi1>, vector<8x128xf32>
    %391 = vector.shape_cast %337 : vector<8x1xi1> to vector<8x1xi1>
    %392 = vector.broadcast %391 : vector<8x1xi1> to vector<8x128xi1>
    %393 = arith.select %392, %387, %333 : vector<8x128xi1>, vector<8x128xf32>
    %cst_86 = arith.constant 0.000000e+00 : f32
    %394 = vector.shape_cast %335 : vector<8x1xi1> to vector<8x1xi1>
    %395 = vector.broadcast %394 : vector<8x1xi1> to vector<8x128xi1>
    %396 = vector.broadcast %cst_86 : f32 to vector<8x128xf32>
    %397 = arith.select %395, %384, %396 : vector<8x128xi1>, vector<8x128xf32>
    %c32_87 = arith.constant 32 : index
    %c0_88 = arith.constant 0 : index
    %398 = vector.load %arg14[%c32_87, %c0_88] : memref<64x256xf32, #tpu.memory_space<vmem>>, vector<8x128xf32>
    tpu.vector_store %arg14[%c32_87, %c0_88], %397 {strides = array<i32>} : memref<64x256xf32, #tpu.memory_space<vmem>>, vector<8x128xf32>,
    %cst_89 = arith.constant 0.000000e+00 : f32
    %399 = vector.shape_cast %337 : vector<8x1xi1> to vector<8x1xi1>
    %400 = vector.broadcast %399 : vector<8x1xi1> to vector<8x128xi1>
    %401 = vector.broadcast %cst_89 : f32 to vector<8x128xf32>
    %402 = arith.select %400, %387, %401 : vector<8x128xi1>, vector<8x128xf32>
    %c24_90 = arith.constant 24 : index
    %c128_91 = arith.constant 128 : index
    %403 = vector.load %arg14[%c24_90, %c128_91] : memref<64x256xf32, #tpu.memory_space<vmem>>, vector<8x128xf32>
    tpu.vector_store %arg14[%c24_90, %c128_91], %402 {strides = array<i32>} : memref<64x256xf32, #tpu.memory_space<vmem>>, vector<8x128xf32>,
    %404 = tpu.concatenate %390, %393 in 1 : vector<8x128xf32>, vector<8x128xf32> -> vector<8x256xf32>
    %405 = arith.truncf %404 : vector<8x256xf32> to vector<8x256xbf16>
    %c0_92 = arith.constant 0 : index
    %c0_93 = arith.constant 0 : index
    %406 = vector.load %arg4[%c0_92, %c0_93] : memref<256x768xbf16, #tpu.memory_space<vmem>>, vector<256x768xbf16>
    %cst_94 = arith.constant dense<0.000000e+00> : vector<8x768xf32>
    %407 = tpu.matmul %405, %406, %cst_94 {dimension_numbers = #tpu.dot_dimension_numbers<[1], [0], [0], [1], [0, 0, 1, 1], [], []>} : vector<8x256xbf16>, vector<256x768xbf16>, vector<8x768xf32> -> vector<8x768xf32>
    %c40_95 = arith.constant 40 : index
    %c0_96 = arith.constant 0 : index
    %408 = vector.load %arg13[%c40_95, %c0_96] : memref<64x768xf32, #tpu.memory_space<vmem>>, vector<8x384xf32>
    %c16_97 = arith.constant 16 : index
    %c384_98 = arith.constant 384 : index
    %409 = vector.load %arg13[%c16_97, %c384_98] : memref<64x768xf32, #tpu.memory_space<vmem>>, vector<8x384xf32>
    %410 = vector.extract_strided_slice %404 {offsets = [0, 0], sizes = [8, 128], strides = [1, 1]} : vector<8x256xf32> to vector<8x128xf32>
    %411 = vector.extract_strided_slice %404 {offsets = [0, 128], sizes = [8, 128], strides = [1, 1]} : vector<8x256xf32> to vector<8x128xf32>
    %c5_i32_99 = arith.constant 5 : i32
    %412 = vector.broadcast %c5_i32_99 : i32 to vector<8x1xi32>
    %413 = arith.cmpi sgt, %0, %412 : vector<8x1xi32>
    %c2_i32_100 = arith.constant 2 : i32
    %414 = vector.broadcast %c2_i32_100 : i32 to vector<8x1xi32>
    %415 = arith.cmpi sgt, %0, %414 : vector<8x1xi32>
    %416 = vector.extract_strided_slice %408 {offsets = [0, 0], sizes = [8, 128], strides = [1, 1]} : vector<8x384xf32> to vector<8x128xf32>
    %417 = vector.extract_strided_slice %407 {offsets = [0, 0], sizes = [8, 128], strides = [1, 1]} : vector<8x768xf32> to vector<8x128xf32>
    %418 = arith.addf %416, %417 : vector<8x128xf32>
    %419 = arith.negf %418 : vector<8x128xf32>
    %420 = math.exp %419 : vector<8x128xf32>
    %cst_101 = arith.constant 1.000000e+00 : f32
    %421 = vector.broadcast %cst_101 : f32 to vector<8x128xf32>
    %422 = arith.addf %421, %420 : vector<8x128xf32>
    %423 = arith.divf %421, %422 : vector<8x128xf32>
    %424 = vector.extract_strided_slice %409 {offsets = [0, 0], sizes = [8, 128], strides = [1, 1]} : vector<8x384xf32> to vector<8x128xf32>
    %425 = vector.extract_strided_slice %407 {offsets = [0, 384], sizes = [8, 128], strides = [1, 1]} : vector<8x768xf32> to vector<8x128xf32>
    %426 = arith.addf %424, %425 : vector<8x128xf32>
    %427 = arith.negf %426 : vector<8x128xf32>
    %428 = math.exp %427 : vector<8x128xf32>
    %cst_102 = arith.constant 1.000000e+00 : f32
    %429 = vector.broadcast %cst_102 : f32 to vector<8x128xf32>
    %430 = arith.addf %429, %428 : vector<8x128xf32>
    %431 = arith.divf %429, %430 : vector<8x128xf32>
    %432 = vector.extract_strided_slice %408 {offsets = [0, 128], sizes = [8, 128], strides = [1, 1]} : vector<8x384xf32> to vector<8x128xf32>
    %433 = vector.extract_strided_slice %407 {offsets = [0, 128], sizes = [8, 128], strides = [1, 1]} : vector<8x768xf32> to vector<8x128xf32>
    %434 = arith.addf %432, %433 : vector<8x128xf32>
    %435 = arith.negf %434 : vector<8x128xf32>
    %436 = math.exp %435 : vector<8x128xf32>
    %cst_103 = arith.constant 1.000000e+00 : f32
    %437 = vector.broadcast %cst_103 : f32 to vector<8x128xf32>
    %438 = arith.addf %437, %436 : vector<8x128xf32>
    %439 = arith.divf %437, %438 : vector<8x128xf32>
    %440 = vector.extract_strided_slice %409 {offsets = [0, 128], sizes = [8, 128], strides = [1, 1]} : vector<8x384xf32> to vector<8x128xf32>
    %441 = vector.extract_strided_slice %407 {offsets = [0, 512], sizes = [8, 128], strides = [1, 1]} : vector<8x768xf32> to vector<8x128xf32>
    %442 = arith.addf %440, %441 : vector<8x128xf32>
    %443 = arith.negf %442 : vector<8x128xf32>
    %444 = math.exp %443 : vector<8x128xf32>
    %cst_104 = arith.constant 1.000000e+00 : f32
    %445 = vector.broadcast %cst_104 : f32 to vector<8x128xf32>
    %446 = arith.addf %445, %444 : vector<8x128xf32>
    %447 = arith.divf %445, %446 : vector<8x128xf32>
    %448 = vector.extract_strided_slice %408 {offsets = [0, 256], sizes = [8, 128], strides = [1, 1]} : vector<8x384xf32> to vector<8x128xf32>
    %449 = vector.extract_strided_slice %407 {offsets = [0, 256], sizes = [8, 128], strides = [1, 1]} : vector<8x768xf32> to vector<8x128xf32>
    %450 = arith.addf %449, %10 : vector<8x128xf32>
    %451 = arith.mulf %423, %450 : vector<8x128xf32>
    %452 = arith.addf %448, %451 : vector<8x128xf32>
    %453 = math.tanh %452 : vector<8x128xf32>
    %454 = vector.extract_strided_slice %409 {offsets = [0, 256], sizes = [8, 128], strides = [1, 1]} : vector<8x384xf32> to vector<8x128xf32>
    %455 = vector.extract_strided_slice %407 {offsets = [0, 640], sizes = [8, 128], strides = [1, 1]} : vector<8x768xf32> to vector<8x128xf32>
    %456 = arith.addf %455, %13 : vector<8x128xf32>
    %457 = arith.mulf %431, %456 : vector<8x128xf32>
    %458 = arith.addf %454, %457 : vector<8x128xf32>
    %459 = math.tanh %458 : vector<8x128xf32>
    %460 = arith.subf %410, %453 : vector<8x128xf32>
    %461 = arith.mulf %439, %460 : vector<8x128xf32>
    %462 = arith.addf %453, %461 : vector<8x128xf32>
    %463 = arith.subf %411, %459 : vector<8x128xf32>
    %464 = arith.mulf %447, %463 : vector<8x128xf32>
    %465 = arith.addf %459, %464 : vector<8x128xf32>
    %466 = vector.shape_cast %413 : vector<8x1xi1> to vector<8x1xi1>
    %467 = vector.broadcast %466 : vector<8x1xi1> to vector<8x128xi1>
    %468 = arith.select %467, %462, %410 : vector<8x128xi1>, vector<8x128xf32>
    %469 = vector.shape_cast %415 : vector<8x1xi1> to vector<8x1xi1>
    %470 = vector.broadcast %469 : vector<8x1xi1> to vector<8x128xi1>
    %471 = arith.select %470, %465, %411 : vector<8x128xi1>, vector<8x128xf32>
    %cst_105 = arith.constant 0.000000e+00 : f32
    %472 = vector.shape_cast %413 : vector<8x1xi1> to vector<8x1xi1>
    %473 = vector.broadcast %472 : vector<8x1xi1> to vector<8x128xi1>
    %474 = vector.broadcast %cst_105 : f32 to vector<8x128xf32>
    %475 = arith.select %473, %462, %474 : vector<8x128xi1>, vector<8x128xf32>
    %c40_106 = arith.constant 40 : index
    %c0_107 = arith.constant 0 : index
    %476 = vector.load %arg14[%c40_106, %c0_107] : memref<64x256xf32, #tpu.memory_space<vmem>>, vector<8x128xf32>
    tpu.vector_store %arg14[%c40_106, %c0_107], %475 {strides = array<i32>} : memref<64x256xf32, #tpu.memory_space<vmem>>, vector<8x128xf32>,
    %cst_108 = arith.constant 0.000000e+00 : f32
    %477 = vector.shape_cast %415 : vector<8x1xi1> to vector<8x1xi1>
    %478 = vector.broadcast %477 : vector<8x1xi1> to vector<8x128xi1>
    %479 = vector.broadcast %cst_108 : f32 to vector<8x128xf32>
    %480 = arith.select %478, %465, %479 : vector<8x128xi1>, vector<8x128xf32>
    %c16_109 = arith.constant 16 : index
    %c128_110 = arith.constant 128 : index
    %481 = vector.load %arg14[%c16_109, %c128_110] : memref<64x256xf32, #tpu.memory_space<vmem>>, vector<8x128xf32>
    tpu.vector_store %arg14[%c16_109, %c128_110], %480 {strides = array<i32>} : memref<64x256xf32, #tpu.memory_space<vmem>>, vector<8x128xf32>,
    %482 = tpu.concatenate %468, %471 in 1 : vector<8x128xf32>, vector<8x128xf32> -> vector<8x256xf32>
    %483 = arith.truncf %482 : vector<8x256xf32> to vector<8x256xbf16>
    %c0_111 = arith.constant 0 : index
    %c0_112 = arith.constant 0 : index
    %484 = vector.load %arg4[%c0_111, %c0_112] : memref<256x768xbf16, #tpu.memory_space<vmem>>, vector<256x768xbf16>
    %cst_113 = arith.constant dense<0.000000e+00> : vector<8x768xf32>
    %485 = tpu.matmul %483, %484, %cst_113 {dimension_numbers = #tpu.dot_dimension_numbers<[1], [0], [0], [1], [0, 0, 1, 1], [], []>} : vector<8x256xbf16>, vector<256x768xbf16>, vector<8x768xf32> -> vector<8x768xf32>
    %c48_114 = arith.constant 48 : index
    %c0_115 = arith.constant 0 : index
    %486 = vector.load %arg13[%c48_114, %c0_115] : memref<64x768xf32, #tpu.memory_space<vmem>>, vector<8x384xf32>
    %c8_116 = arith.constant 8 : index
    %c384_117 = arith.constant 384 : index
    %487 = vector.load %arg13[%c8_116, %c384_117] : memref<64x768xf32, #tpu.memory_space<vmem>>, vector<8x384xf32>
    %488 = vector.extract_strided_slice %482 {offsets = [0, 0], sizes = [8, 128], strides = [1, 1]} : vector<8x256xf32> to vector<8x128xf32>
    %489 = vector.extract_strided_slice %482 {offsets = [0, 128], sizes = [8, 128], strides = [1, 1]} : vector<8x256xf32> to vector<8x128xf32>
    %c6_i32_118 = arith.constant 6 : i32
    %490 = vector.broadcast %c6_i32_118 : i32 to vector<8x1xi32>
    %491 = arith.cmpi sgt, %0, %490 : vector<8x1xi32>
    %c1_i32_119 = arith.constant 1 : i32
    %492 = vector.broadcast %c1_i32_119 : i32 to vector<8x1xi32>
    %493 = arith.cmpi sgt, %0, %492 : vector<8x1xi32>
    %494 = vector.extract_strided_slice %486 {offsets = [0, 0], sizes = [8, 128], strides = [1, 1]} : vector<8x384xf32> to vector<8x128xf32>
    %495 = vector.extract_strided_slice %485 {offsets = [0, 0], sizes = [8, 128], strides = [1, 1]} : vector<8x768xf32> to vector<8x128xf32>
    %496 = arith.addf %494, %495 : vector<8x128xf32>
    %497 = arith.negf %496 : vector<8x128xf32>
    %498 = math.exp %497 : vector<8x128xf32>
    %cst_120 = arith.constant 1.000000e+00 : f32
    %499 = vector.broadcast %cst_120 : f32 to vector<8x128xf32>
    %500 = arith.addf %499, %498 : vector<8x128xf32>
    %501 = arith.divf %499, %500 : vector<8x128xf32>
    %502 = vector.extract_strided_slice %487 {offsets = [0, 0], sizes = [8, 128], strides = [1, 1]} : vector<8x384xf32> to vector<8x128xf32>
    %503 = vector.extract_strided_slice %485 {offsets = [0, 384], sizes = [8, 128], strides = [1, 1]} : vector<8x768xf32> to vector<8x128xf32>
    %504 = arith.addf %502, %503 : vector<8x128xf32>
    %505 = arith.negf %504 : vector<8x128xf32>
    %506 = math.exp %505 : vector<8x128xf32>
    %cst_121 = arith.constant 1.000000e+00 : f32
    %507 = vector.broadcast %cst_121 : f32 to vector<8x128xf32>
    %508 = arith.addf %507, %506 : vector<8x128xf32>
    %509 = arith.divf %507, %508 : vector<8x128xf32>
    %510 = vector.extract_strided_slice %486 {offsets = [0, 128], sizes = [8, 128], strides = [1, 1]} : vector<8x384xf32> to vector<8x128xf32>
    %511 = vector.extract_strided_slice %485 {offsets = [0, 128], sizes = [8, 128], strides = [1, 1]} : vector<8x768xf32> to vector<8x128xf32>
    %512 = arith.addf %510, %511 : vector<8x128xf32>
    %513 = arith.negf %512 : vector<8x128xf32>
    %514 = math.exp %513 : vector<8x128xf32>
    %cst_122 = arith.constant 1.000000e+00 : f32
    %515 = vector.broadcast %cst_122 : f32 to vector<8x128xf32>
    %516 = arith.addf %515, %514 : vector<8x128xf32>
    %517 = arith.divf %515, %516 : vector<8x128xf32>
    %518 = vector.extract_strided_slice %487 {offsets = [0, 128], sizes = [8, 128], strides = [1, 1]} : vector<8x384xf32> to vector<8x128xf32>
    %519 = vector.extract_strided_slice %485 {offsets = [0, 512], sizes = [8, 128], strides = [1, 1]} : vector<8x768xf32> to vector<8x128xf32>
    %520 = arith.addf %518, %519 : vector<8x128xf32>
    %521 = arith.negf %520 : vector<8x128xf32>
    %522 = math.exp %521 : vector<8x128xf32>
    %cst_123 = arith.constant 1.000000e+00 : f32
    %523 = vector.broadcast %cst_123 : f32 to vector<8x128xf32>
    %524 = arith.addf %523, %522 : vector<8x128xf32>
    %525 = arith.divf %523, %524 : vector<8x128xf32>
    %526 = vector.extract_strided_slice %486 {offsets = [0, 256], sizes = [8, 128], strides = [1, 1]} : vector<8x384xf32> to vector<8x128xf32>
    %527 = vector.extract_strided_slice %485 {offsets = [0, 256], sizes = [8, 128], strides = [1, 1]} : vector<8x768xf32> to vector<8x128xf32>
    %528 = arith.addf %527, %10 : vector<8x128xf32>
    %529 = arith.mulf %501, %528 : vector<8x128xf32>
    %530 = arith.addf %526, %529 : vector<8x128xf32>
    %531 = math.tanh %530 : vector<8x128xf32>
    %532 = vector.extract_strided_slice %487 {offsets = [0, 256], sizes = [8, 128], strides = [1, 1]} : vector<8x384xf32> to vector<8x128xf32>
    %533 = vector.extract_strided_slice %485 {offsets = [0, 640], sizes = [8, 128], strides = [1, 1]} : vector<8x768xf32> to vector<8x128xf32>
    %534 = arith.addf %533, %13 : vector<8x128xf32>
    %535 = arith.mulf %509, %534 : vector<8x128xf32>
    %536 = arith.addf %532, %535 : vector<8x128xf32>
    %537 = math.tanh %536 : vector<8x128xf32>
    %538 = arith.subf %488, %531 : vector<8x128xf32>
    %539 = arith.mulf %517, %538 : vector<8x128xf32>
    %540 = arith.addf %531, %539 : vector<8x128xf32>
    %541 = arith.subf %489, %537 : vector<8x128xf32>
    %542 = arith.mulf %525, %541 : vector<8x128xf32>
    %543 = arith.addf %537, %542 : vector<8x128xf32>
    %544 = vector.shape_cast %491 : vector<8x1xi1> to vector<8x1xi1>
    %545 = vector.broadcast %544 : vector<8x1xi1> to vector<8x128xi1>
    %546 = arith.select %545, %540, %488 : vector<8x128xi1>, vector<8x128xf32>
    %547 = vector.shape_cast %493 : vector<8x1xi1> to vector<8x1xi1>
    %548 = vector.broadcast %547 : vector<8x1xi1> to vector<8x128xi1>
    %549 = arith.select %548, %543, %489 : vector<8x128xi1>, vector<8x128xf32>
    %cst_124 = arith.constant 0.000000e+00 : f32
    %550 = vector.shape_cast %491 : vector<8x1xi1> to vector<8x1xi1>
    %551 = vector.broadcast %550 : vector<8x1xi1> to vector<8x128xi1>
    %552 = vector.broadcast %cst_124 : f32 to vector<8x128xf32>
    %553 = arith.select %551, %540, %552 : vector<8x128xi1>, vector<8x128xf32>
    %c48_125 = arith.constant 48 : index
    %c0_126 = arith.constant 0 : index
    %554 = vector.load %arg14[%c48_125, %c0_126] : memref<64x256xf32, #tpu.memory_space<vmem>>, vector<8x128xf32>
    tpu.vector_store %arg14[%c48_125, %c0_126], %553 {strides = array<i32>} : memref<64x256xf32, #tpu.memory_space<vmem>>, vector<8x128xf32>,
    %cst_127 = arith.constant 0.000000e+00 : f32
    %555 = vector.shape_cast %493 : vector<8x1xi1> to vector<8x1xi1>
    %556 = vector.broadcast %555 : vector<8x1xi1> to vector<8x128xi1>
    %557 = vector.broadcast %cst_127 : f32 to vector<8x128xf32>
    %558 = arith.select %556, %543, %557 : vector<8x128xi1>, vector<8x128xf32>
    %c8_128 = arith.constant 8 : index
    %c128_129 = arith.constant 128 : index
    %559 = vector.load %arg14[%c8_128, %c128_129] : memref<64x256xf32, #tpu.memory_space<vmem>>, vector<8x128xf32>
    tpu.vector_store %arg14[%c8_128, %c128_129], %558 {strides = array<i32>} : memref<64x256xf32, #tpu.memory_space<vmem>>, vector<8x128xf32>,
    %560 = tpu.concatenate %546, %549 in 1 : vector<8x128xf32>, vector<8x128xf32> -> vector<8x256xf32>
    %561 = arith.truncf %560 : vector<8x256xf32> to vector<8x256xbf16>
    %c0_130 = arith.constant 0 : index
    %c0_131 = arith.constant 0 : index
    %562 = vector.load %arg4[%c0_130, %c0_131] : memref<256x768xbf16, #tpu.memory_space<vmem>>, vector<256x768xbf16>
    %cst_132 = arith.constant dense<0.000000e+00> : vector<8x768xf32>
    %563 = tpu.matmul %561, %562, %cst_132 {dimension_numbers = #tpu.dot_dimension_numbers<[1], [0], [0], [1], [0, 0, 1, 1], [], []>} : vector<8x256xbf16>, vector<256x768xbf16>, vector<8x768xf32> -> vector<8x768xf32>
    %c56_133 = arith.constant 56 : index
    %c0_134 = arith.constant 0 : index
    %564 = vector.load %arg13[%c56_133, %c0_134] : memref<64x768xf32, #tpu.memory_space<vmem>>, vector<8x384xf32>
    %c0_135 = arith.constant 0 : index
    %c384_136 = arith.constant 384 : index
    %565 = vector.load %arg13[%c0_135, %c384_136] : memref<64x768xf32, #tpu.memory_space<vmem>>, vector<8x384xf32>
    %566 = vector.extract_strided_slice %560 {offsets = [0, 0], sizes = [8, 128], strides = [1, 1]} : vector<8x256xf32> to vector<8x128xf32>
    %567 = vector.extract_strided_slice %560 {offsets = [0, 128], sizes = [8, 128], strides = [1, 1]} : vector<8x256xf32> to vector<8x128xf32>
    %c7_i32_137 = arith.constant 7 : i32
    %568 = vector.broadcast %c7_i32_137 : i32 to vector<8x1xi32>
    %569 = arith.cmpi sgt, %0, %568 : vector<8x1xi32>
    %c0_i32_138 = arith.constant 0 : i32
    %570 = vector.broadcast %c0_i32_138 : i32 to vector<8x1xi32>
    %571 = arith.cmpi sgt, %0, %570 : vector<8x1xi32>
    %572 = vector.extract_strided_slice %564 {offsets = [0, 0], sizes = [8, 128], strides = [1, 1]} : vector<8x384xf32> to vector<8x128xf32>
    %573 = vector.extract_strided_slice %563 {offsets = [0, 0], sizes = [8, 128], strides = [1, 1]} : vector<8x768xf32> to vector<8x128xf32>
    %574 = arith.addf %572, %573 : vector<8x128xf32>
    %575 = arith.negf %574 : vector<8x128xf32>
    %576 = math.exp %575 : vector<8x128xf32>
    %cst_139 = arith.constant 1.000000e+00 : f32
    %577 = vector.broadcast %cst_139 : f32 to vector<8x128xf32>
    %578 = arith.addf %577, %576 : vector<8x128xf32>
    %579 = arith.divf %577, %578 : vector<8x128xf32>
    %580 = vector.extract_strided_slice %565 {offsets = [0, 0], sizes = [8, 128], strides = [1, 1]} : vector<8x384xf32> to vector<8x128xf32>
    %581 = vector.extract_strided_slice %563 {offsets = [0, 384], sizes = [8, 128], strides = [1, 1]} : vector<8x768xf32> to vector<8x128xf32>
    %582 = arith.addf %580, %581 : vector<8x128xf32>
    %583 = arith.negf %582 : vector<8x128xf32>
    %584 = math.exp %583 : vector<8x128xf32>
    %cst_140 = arith.constant 1.000000e+00 : f32
    %585 = vector.broadcast %cst_140 : f32 to vector<8x128xf32>
    %586 = arith.addf %585, %584 : vector<8x128xf32>
    %587 = arith.divf %585, %586 : vector<8x128xf32>
    %588 = vector.extract_strided_slice %564 {offsets = [0, 128], sizes = [8, 128], strides = [1, 1]} : vector<8x384xf32> to vector<8x128xf32>
    %589 = vector.extract_strided_slice %563 {offsets = [0, 128], sizes = [8, 128], strides = [1, 1]} : vector<8x768xf32> to vector<8x128xf32>
    %590 = arith.addf %588, %589 : vector<8x128xf32>
    %591 = arith.negf %590 : vector<8x128xf32>
    %592 = math.exp %591 : vector<8x128xf32>
    %cst_141 = arith.constant 1.000000e+00 : f32
    %593 = vector.broadcast %cst_141 : f32 to vector<8x128xf32>
    %594 = arith.addf %593, %592 : vector<8x128xf32>
    %595 = arith.divf %593, %594 : vector<8x128xf32>
    %596 = vector.extract_strided_slice %565 {offsets = [0, 128], sizes = [8, 128], strides = [1, 1]} : vector<8x384xf32> to vector<8x128xf32>
    %597 = vector.extract_strided_slice %563 {offsets = [0, 512], sizes = [8, 128], strides = [1, 1]} : vector<8x768xf32> to vector<8x128xf32>
    %598 = arith.addf %596, %597 : vector<8x128xf32>
    %599 = arith.negf %598 : vector<8x128xf32>
    %600 = math.exp %599 : vector<8x128xf32>
    %cst_142 = arith.constant 1.000000e+00 : f32
    %601 = vector.broadcast %cst_142 : f32 to vector<8x128xf32>
    %602 = arith.addf %601, %600 : vector<8x128xf32>
    %603 = arith.divf %601, %602 : vector<8x128xf32>
    %604 = vector.extract_strided_slice %564 {offsets = [0, 256], sizes = [8, 128], strides = [1, 1]} : vector<8x384xf32> to vector<8x128xf32>
    %605 = vector.extract_strided_slice %563 {offsets = [0, 256], sizes = [8, 128], strides = [1, 1]} : vector<8x768xf32> to vector<8x128xf32>
    %606 = arith.addf %605, %10 : vector<8x128xf32>
    %607 = arith.mulf %579, %606 : vector<8x128xf32>
    %608 = arith.addf %604, %607 : vector<8x128xf32>
    %609 = math.tanh %608 : vector<8x128xf32>
    %610 = vector.extract_strided_slice %565 {offsets = [0, 256], sizes = [8, 128], strides = [1, 1]} : vector<8x384xf32> to vector<8x128xf32>
    %611 = vector.extract_strided_slice %563 {offsets = [0, 640], sizes = [8, 128], strides = [1, 1]} : vector<8x768xf32> to vector<8x128xf32>
    %612 = arith.addf %611, %13 : vector<8x128xf32>
    %613 = arith.mulf %587, %612 : vector<8x128xf32>
    %614 = arith.addf %610, %613 : vector<8x128xf32>
    %615 = math.tanh %614 : vector<8x128xf32>
    %616 = arith.subf %566, %609 : vector<8x128xf32>
    %617 = arith.mulf %595, %616 : vector<8x128xf32>
    %618 = arith.addf %609, %617 : vector<8x128xf32>
    %619 = arith.subf %567, %615 : vector<8x128xf32>
    %620 = arith.mulf %603, %619 : vector<8x128xf32>
    %621 = arith.addf %615, %620 : vector<8x128xf32>
    %cst_143 = arith.constant 0.000000e+00 : f32
    %622 = vector.shape_cast %569 : vector<8x1xi1> to vector<8x1xi1>
    %623 = vector.broadcast %622 : vector<8x1xi1> to vector<8x128xi1>
    %624 = vector.broadcast %cst_143 : f32 to vector<8x128xf32>
    %625 = arith.select %623, %618, %624 : vector<8x128xi1>, vector<8x128xf32>
    %c56_144 = arith.constant 56 : index
    %c0_145 = arith.constant 0 : index
    %626 = vector.load %arg14[%c56_144, %c0_145] : memref<64x256xf32, #tpu.memory_space<vmem>>, vector<8x128xf32>
    tpu.vector_store %arg14[%c56_144, %c0_145], %625 {strides = array<i32>} : memref<64x256xf32, #tpu.memory_space<vmem>>, vector<8x128xf32>,
    %cst_146 = arith.constant 0.000000e+00 : f32
    %627 = vector.shape_cast %571 : vector<8x1xi1> to vector<8x1xi1>
    %628 = vector.broadcast %627 : vector<8x1xi1> to vector<8x128xi1>
    %629 = vector.broadcast %cst_146 : f32 to vector<8x128xf32>
    %630 = arith.select %628, %621, %629 : vector<8x128xi1>, vector<8x128xf32>
    %c0_147 = arith.constant 0 : index
    %c128_148 = arith.constant 128 : index
    %631 = vector.load %arg14[%c0_147, %c128_148] : memref<64x256xf32, #tpu.memory_space<vmem>>, vector<8x128xf32>
    tpu.vector_store %arg14[%c0_147, %c128_148], %630 {strides = array<i32>} : memref<64x256xf32, #tpu.memory_space<vmem>>, vector<8x128xf32>,
    %c0_149 = arith.constant 0 : index
    %c0_150 = arith.constant 0 : index
    %632 = vector.load %arg14[%c0_149, %c0_150] : memref<64x256xf32, #tpu.memory_space<vmem>>, vector<64x256xf32>
    %633 = arith.truncf %632 : vector<64x256xf32> to vector<64x256xbf16>
    %c0_151 = arith.constant 0 : index
    %c0_152 = arith.constant 0 : index
    %634 = vector.load %arg7[%c0_151, %c0_152] : memref<256x768xbf16, #tpu.memory_space<vmem>>, vector<256x768xbf16>
    %cst_153 = arith.constant dense<0.000000e+00> : vector<64x768xf32>
    %635 = tpu.matmul %633, %634, %cst_153 {dimension_numbers = #tpu.dot_dimension_numbers<[1], [0], [0], [1], [0, 0, 1, 1], [], []>} : vector<64x256xbf16>, vector<256x768xbf16>, vector<64x768xf32> -> vector<64x768xf32>
    %c0_154 = arith.constant 0 : index
    %c0_155 = arith.constant 0 : index
    %636 = vector.load %arg8[%c0_154, %c0_155] : memref<1x768xf32, #tpu.memory_space<vmem>>, vector<1x768xf32>
    %637 = vector.broadcast %636 : vector<1x768xf32> to vector<64x768xf32>
    %638 = arith.addf %635, %637 : vector<64x768xf32>
    %c0_156 = arith.constant 0 : index
    %c0_157 = arith.constant 0 : index
    %639 = vector.load %arg13[%c0_156, %c0_157] : memref<64x768xf32, #tpu.memory_space<vmem>>, vector<64x768xf32>
    tpu.vector_store %arg13[%c0_156, %c0_157], %638 {strides = array<i32>} : memref<64x768xf32, #tpu.memory_space<vmem>>, vector<64x768xf32>,
    %c0_158 = arith.constant 0 : index
    %c0_159 = arith.constant 0 : index
    %640 = vector.load %arg10[%c0_158, %c0_159] : memref<1x128xf32, #tpu.memory_space<vmem>>, vector<1x128xf32>
    %641 = vector.shape_cast %640 : vector<1x128xf32> to vector<1x128xf32>
    %642 = vector.broadcast %641 : vector<1x128xf32> to vector<8x128xf32>
    %c0_160 = arith.constant 0 : index
    %c0_161 = arith.constant 0 : index
    %643 = vector.load %arg11[%c0_160, %c0_161] : memref<1x128xf32, #tpu.memory_space<vmem>>, vector<1x128xf32>
    %644 = vector.shape_cast %643 : vector<1x128xf32> to vector<1x128xf32>
    %645 = vector.broadcast %644 : vector<1x128xf32> to vector<8x128xf32>
    %cst_162 = arith.constant 0.000000e+00 : f32
    %646 = vector.broadcast %cst_162 : f32 to vector<8x256xf32>
    %647 = arith.truncf %646 : vector<8x256xf32> to vector<8x256xbf16>
    %c0_163 = arith.constant 0 : index
    %c0_164 = arith.constant 0 : index
    %648 = vector.load %arg9[%c0_163, %c0_164] : memref<256x768xbf16, #tpu.memory_space<vmem>>, vector<256x768xbf16>
    %cst_165 = arith.constant dense<0.000000e+00> : vector<8x768xf32>
    %649 = tpu.matmul %647, %648, %cst_165 {dimension_numbers = #tpu.dot_dimension_numbers<[1], [0], [0], [1], [0, 0, 1, 1], [], []>} : vector<8x256xbf16>, vector<256x768xbf16>, vector<8x768xf32> -> vector<8x768xf32>
    %c0_166 = arith.constant 0 : index
    %c0_167 = arith.constant 0 : index
    %650 = vector.load %arg13[%c0_166, %c0_167] : memref<64x768xf32, #tpu.memory_space<vmem>>, vector<8x384xf32>
    %c56_168 = arith.constant 56 : index
    %c384_169 = arith.constant 384 : index
    %651 = vector.load %arg13[%c56_168, %c384_169] : memref<64x768xf32, #tpu.memory_space<vmem>>, vector<8x384xf32>
    %652 = vector.extract_strided_slice %646 {offsets = [0, 0], sizes = [8, 128], strides = [1, 1]} : vector<8x256xf32> to vector<8x128xf32>
    %653 = vector.extract_strided_slice %646 {offsets = [0, 128], sizes = [8, 128], strides = [1, 1]} : vector<8x256xf32> to vector<8x128xf32>
    %c0_i32_170 = arith.constant 0 : i32
    %654 = vector.broadcast %c0_i32_170 : i32 to vector<8x1xi32>
    %655 = arith.cmpi sgt, %0, %654 : vector<8x1xi32>
    %c7_i32_171 = arith.constant 7 : i32
    %656 = vector.broadcast %c7_i32_171 : i32 to vector<8x1xi32>
    %657 = arith.cmpi sgt, %0, %656 : vector<8x1xi32>
    %658 = vector.extract_strided_slice %650 {offsets = [0, 0], sizes = [8, 128], strides = [1, 1]} : vector<8x384xf32> to vector<8x128xf32>
    %659 = vector.extract_strided_slice %649 {offsets = [0, 0], sizes = [8, 128], strides = [1, 1]} : vector<8x768xf32> to vector<8x128xf32>
    %660 = arith.addf %658, %659 : vector<8x128xf32>
    %661 = arith.negf %660 : vector<8x128xf32>
    %662 = math.exp %661 : vector<8x128xf32>
    %cst_172 = arith.constant 1.000000e+00 : f32
    %663 = vector.broadcast %cst_172 : f32 to vector<8x128xf32>
    %664 = arith.addf %663, %662 : vector<8x128xf32>
    %665 = arith.divf %663, %664 : vector<8x128xf32>
    %666 = vector.extract_strided_slice %651 {offsets = [0, 0], sizes = [8, 128], strides = [1, 1]} : vector<8x384xf32> to vector<8x128xf32>
    %667 = vector.extract_strided_slice %649 {offsets = [0, 384], sizes = [8, 128], strides = [1, 1]} : vector<8x768xf32> to vector<8x128xf32>
    %668 = arith.addf %666, %667 : vector<8x128xf32>
    %669 = arith.negf %668 : vector<8x128xf32>
    %670 = math.exp %669 : vector<8x128xf32>
    %cst_173 = arith.constant 1.000000e+00 : f32
    %671 = vector.broadcast %cst_173 : f32 to vector<8x128xf32>
    %672 = arith.addf %671, %670 : vector<8x128xf32>
    %673 = arith.divf %671, %672 : vector<8x128xf32>
    %674 = vector.extract_strided_slice %650 {offsets = [0, 128], sizes = [8, 128], strides = [1, 1]} : vector<8x384xf32> to vector<8x128xf32>
    %675 = vector.extract_strided_slice %649 {offsets = [0, 128], sizes = [8, 128], strides = [1, 1]} : vector<8x768xf32> to vector<8x128xf32>
    %676 = arith.addf %674, %675 : vector<8x128xf32>
    %677 = arith.negf %676 : vector<8x128xf32>
    %678 = math.exp %677 : vector<8x128xf32>
    %cst_174 = arith.constant 1.000000e+00 : f32
    %679 = vector.broadcast %cst_174 : f32 to vector<8x128xf32>
    %680 = arith.addf %679, %678 : vector<8x128xf32>
    %681 = arith.divf %679, %680 : vector<8x128xf32>
    %682 = vector.extract_strided_slice %651 {offsets = [0, 128], sizes = [8, 128], strides = [1, 1]} : vector<8x384xf32> to vector<8x128xf32>
    %683 = vector.extract_strided_slice %649 {offsets = [0, 512], sizes = [8, 128], strides = [1, 1]} : vector<8x768xf32> to vector<8x128xf32>
    %684 = arith.addf %682, %683 : vector<8x128xf32>
    %685 = arith.negf %684 : vector<8x128xf32>
    %686 = math.exp %685 : vector<8x128xf32>
    %cst_175 = arith.constant 1.000000e+00 : f32
    %687 = vector.broadcast %cst_175 : f32 to vector<8x128xf32>
    %688 = arith.addf %687, %686 : vector<8x128xf32>
    %689 = arith.divf %687, %688 : vector<8x128xf32>
    %690 = vector.extract_strided_slice %650 {offsets = [0, 256], sizes = [8, 128], strides = [1, 1]} : vector<8x384xf32> to vector<8x128xf32>
    %691 = vector.extract_strided_slice %649 {offsets = [0, 256], sizes = [8, 128], strides = [1, 1]} : vector<8x768xf32> to vector<8x128xf32>
    %692 = arith.addf %691, %642 : vector<8x128xf32>
    %693 = arith.mulf %665, %692 : vector<8x128xf32>
    %694 = arith.addf %690, %693 : vector<8x128xf32>
    %695 = math.tanh %694 : vector<8x128xf32>
    %696 = vector.extract_strided_slice %651 {offsets = [0, 256], sizes = [8, 128], strides = [1, 1]} : vector<8x384xf32> to vector<8x128xf32>
    %697 = vector.extract_strided_slice %649 {offsets = [0, 640], sizes = [8, 128], strides = [1, 1]} : vector<8x768xf32> to vector<8x128xf32>
    %698 = arith.addf %697, %645 : vector<8x128xf32>
    %699 = arith.mulf %673, %698 : vector<8x128xf32>
    %700 = arith.addf %696, %699 : vector<8x128xf32>
    %701 = math.tanh %700 : vector<8x128xf32>
    %702 = arith.subf %652, %695 : vector<8x128xf32>
    %703 = arith.mulf %681, %702 : vector<8x128xf32>
    %704 = arith.addf %695, %703 : vector<8x128xf32>
    %705 = arith.subf %653, %701 : vector<8x128xf32>
    %706 = arith.mulf %689, %705 : vector<8x128xf32>
    %707 = arith.addf %701, %706 : vector<8x128xf32>
    %708 = vector.shape_cast %655 : vector<8x1xi1> to vector<8x1xi1>
    %709 = vector.broadcast %708 : vector<8x1xi1> to vector<8x128xi1>
    %710 = arith.select %709, %704, %652 : vector<8x128xi1>, vector<8x128xf32>
    %711 = vector.shape_cast %657 : vector<8x1xi1> to vector<8x1xi1>
    %712 = vector.broadcast %711 : vector<8x1xi1> to vector<8x128xi1>
    %713 = arith.select %712, %707, %653 : vector<8x128xi1>, vector<8x128xf32>
    %cst_176 = arith.constant 0.000000e+00 : f32
    %714 = vector.shape_cast %655 : vector<8x1xi1> to vector<8x1xi1>
    %715 = vector.broadcast %714 : vector<8x1xi1> to vector<8x128xi1>
    %716 = vector.broadcast %cst_176 : f32 to vector<8x128xf32>
    %717 = arith.select %715, %704, %716 : vector<8x128xi1>, vector<8x128xf32>
    %c0_177 = arith.constant 0 : index
    %c0_178 = arith.constant 0 : index
    %718 = vector.load %arg12[%c0_177, %c0_178] : memref<64x256xf32, #tpu.memory_space<vmem>>, vector<8x128xf32>
    tpu.vector_store %arg12[%c0_177, %c0_178], %717 {strides = array<i32>} : memref<64x256xf32, #tpu.memory_space<vmem>>, vector<8x128xf32>,
    %cst_179 = arith.constant 0.000000e+00 : f32
    %719 = vector.shape_cast %657 : vector<8x1xi1> to vector<8x1xi1>
    %720 = vector.broadcast %719 : vector<8x1xi1> to vector<8x128xi1>
    %721 = vector.broadcast %cst_179 : f32 to vector<8x128xf32>
    %722 = arith.select %720, %707, %721 : vector<8x128xi1>, vector<8x128xf32>
    %c56_180 = arith.constant 56 : index
    %c128_181 = arith.constant 128 : index
    %723 = vector.load %arg12[%c56_180, %c128_181] : memref<64x256xf32, #tpu.memory_space<vmem>>, vector<8x128xf32>
    tpu.vector_store %arg12[%c56_180, %c128_181], %722 {strides = array<i32>} : memref<64x256xf32, #tpu.memory_space<vmem>>, vector<8x128xf32>,
    %724 = tpu.concatenate %710, %713 in 1 : vector<8x128xf32>, vector<8x128xf32> -> vector<8x256xf32>
    %725 = arith.truncf %724 : vector<8x256xf32> to vector<8x256xbf16>
    %c0_182 = arith.constant 0 : index
    %c0_183 = arith.constant 0 : index
    %726 = vector.load %arg9[%c0_182, %c0_183] : memref<256x768xbf16, #tpu.memory_space<vmem>>, vector<256x768xbf16>
    %cst_184 = arith.constant dense<0.000000e+00> : vector<8x768xf32>
    %727 = tpu.matmul %725, %726, %cst_184 {dimension_numbers = #tpu.dot_dimension_numbers<[1], [0], [0], [1], [0, 0, 1, 1], [], []>} : vector<8x256xbf16>, vector<256x768xbf16>, vector<8x768xf32> -> vector<8x768xf32>
    %c8_185 = arith.constant 8 : index
    %c0_186 = arith.constant 0 : index
    %728 = vector.load %arg13[%c8_185, %c0_186] : memref<64x768xf32, #tpu.memory_space<vmem>>, vector<8x384xf32>
    %c48_187 = arith.constant 48 : index
    %c384_188 = arith.constant 384 : index
    %729 = vector.load %arg13[%c48_187, %c384_188] : memref<64x768xf32, #tpu.memory_space<vmem>>, vector<8x384xf32>
    %730 = vector.extract_strided_slice %724 {offsets = [0, 0], sizes = [8, 128], strides = [1, 1]} : vector<8x256xf32> to vector<8x128xf32>
    %731 = vector.extract_strided_slice %724 {offsets = [0, 128], sizes = [8, 128], strides = [1, 1]} : vector<8x256xf32> to vector<8x128xf32>
    %c1_i32_189 = arith.constant 1 : i32
    %732 = vector.broadcast %c1_i32_189 : i32 to vector<8x1xi32>
    %733 = arith.cmpi sgt, %0, %732 : vector<8x1xi32>
    %c6_i32_190 = arith.constant 6 : i32
    %734 = vector.broadcast %c6_i32_190 : i32 to vector<8x1xi32>
    %735 = arith.cmpi sgt, %0, %734 : vector<8x1xi32>
    %736 = vector.extract_strided_slice %728 {offsets = [0, 0], sizes = [8, 128], strides = [1, 1]} : vector<8x384xf32> to vector<8x128xf32>
    %737 = vector.extract_strided_slice %727 {offsets = [0, 0], sizes = [8, 128], strides = [1, 1]} : vector<8x768xf32> to vector<8x128xf32>
    %738 = arith.addf %736, %737 : vector<8x128xf32>
    %739 = arith.negf %738 : vector<8x128xf32>
    %740 = math.exp %739 : vector<8x128xf32>
    %cst_191 = arith.constant 1.000000e+00 : f32
    %741 = vector.broadcast %cst_191 : f32 to vector<8x128xf32>
    %742 = arith.addf %741, %740 : vector<8x128xf32>
    %743 = arith.divf %741, %742 : vector<8x128xf32>
    %744 = vector.extract_strided_slice %729 {offsets = [0, 0], sizes = [8, 128], strides = [1, 1]} : vector<8x384xf32> to vector<8x128xf32>
    %745 = vector.extract_strided_slice %727 {offsets = [0, 384], sizes = [8, 128], strides = [1, 1]} : vector<8x768xf32> to vector<8x128xf32>
    %746 = arith.addf %744, %745 : vector<8x128xf32>
    %747 = arith.negf %746 : vector<8x128xf32>
    %748 = math.exp %747 : vector<8x128xf32>
    %cst_192 = arith.constant 1.000000e+00 : f32
    %749 = vector.broadcast %cst_192 : f32 to vector<8x128xf32>
    %750 = arith.addf %749, %748 : vector<8x128xf32>
    %751 = arith.divf %749, %750 : vector<8x128xf32>
    %752 = vector.extract_strided_slice %728 {offsets = [0, 128], sizes = [8, 128], strides = [1, 1]} : vector<8x384xf32> to vector<8x128xf32>
    %753 = vector.extract_strided_slice %727 {offsets = [0, 128], sizes = [8, 128], strides = [1, 1]} : vector<8x768xf32> to vector<8x128xf32>
    %754 = arith.addf %752, %753 : vector<8x128xf32>
    %755 = arith.negf %754 : vector<8x128xf32>
    %756 = math.exp %755 : vector<8x128xf32>
    %cst_193 = arith.constant 1.000000e+00 : f32
    %757 = vector.broadcast %cst_193 : f32 to vector<8x128xf32>
    %758 = arith.addf %757, %756 : vector<8x128xf32>
    %759 = arith.divf %757, %758 : vector<8x128xf32>
    %760 = vector.extract_strided_slice %729 {offsets = [0, 128], sizes = [8, 128], strides = [1, 1]} : vector<8x384xf32> to vector<8x128xf32>
    %761 = vector.extract_strided_slice %727 {offsets = [0, 512], sizes = [8, 128], strides = [1, 1]} : vector<8x768xf32> to vector<8x128xf32>
    %762 = arith.addf %760, %761 : vector<8x128xf32>
    %763 = arith.negf %762 : vector<8x128xf32>
    %764 = math.exp %763 : vector<8x128xf32>
    %cst_194 = arith.constant 1.000000e+00 : f32
    %765 = vector.broadcast %cst_194 : f32 to vector<8x128xf32>
    %766 = arith.addf %765, %764 : vector<8x128xf32>
    %767 = arith.divf %765, %766 : vector<8x128xf32>
    %768 = vector.extract_strided_slice %728 {offsets = [0, 256], sizes = [8, 128], strides = [1, 1]} : vector<8x384xf32> to vector<8x128xf32>
    %769 = vector.extract_strided_slice %727 {offsets = [0, 256], sizes = [8, 128], strides = [1, 1]} : vector<8x768xf32> to vector<8x128xf32>
    %770 = arith.addf %769, %642 : vector<8x128xf32>
    %771 = arith.mulf %743, %770 : vector<8x128xf32>
    %772 = arith.addf %768, %771 : vector<8x128xf32>
    %773 = math.tanh %772 : vector<8x128xf32>
    %774 = vector.extract_strided_slice %729 {offsets = [0, 256], sizes = [8, 128], strides = [1, 1]} : vector<8x384xf32> to vector<8x128xf32>
    %775 = vector.extract_strided_slice %727 {offsets = [0, 640], sizes = [8, 128], strides = [1, 1]} : vector<8x768xf32> to vector<8x128xf32>
    %776 = arith.addf %775, %645 : vector<8x128xf32>
    %777 = arith.mulf %751, %776 : vector<8x128xf32>
    %778 = arith.addf %774, %777 : vector<8x128xf32>
    %779 = math.tanh %778 : vector<8x128xf32>
    %780 = arith.subf %730, %773 : vector<8x128xf32>
    %781 = arith.mulf %759, %780 : vector<8x128xf32>
    %782 = arith.addf %773, %781 : vector<8x128xf32>
    %783 = arith.subf %731, %779 : vector<8x128xf32>
    %784 = arith.mulf %767, %783 : vector<8x128xf32>
    %785 = arith.addf %779, %784 : vector<8x128xf32>
    %786 = vector.shape_cast %733 : vector<8x1xi1> to vector<8x1xi1>
    %787 = vector.broadcast %786 : vector<8x1xi1> to vector<8x128xi1>
    %788 = arith.select %787, %782, %730 : vector<8x128xi1>, vector<8x128xf32>
    %789 = vector.shape_cast %735 : vector<8x1xi1> to vector<8x1xi1>
    %790 = vector.broadcast %789 : vector<8x1xi1> to vector<8x128xi1>
    %791 = arith.select %790, %785, %731 : vector<8x128xi1>, vector<8x128xf32>
    %cst_195 = arith.constant 0.000000e+00 : f32
    %792 = vector.shape_cast %733 : vector<8x1xi1> to vector<8x1xi1>
    %793 = vector.broadcast %792 : vector<8x1xi1> to vector<8x128xi1>
    %794 = vector.broadcast %cst_195 : f32 to vector<8x128xf32>
    %795 = arith.select %793, %782, %794 : vector<8x128xi1>, vector<8x128xf32>
    %c8_196 = arith.constant 8 : index
    %c0_197 = arith.constant 0 : index
    %796 = vector.load %arg12[%c8_196, %c0_197] : memref<64x256xf32, #tpu.memory_space<vmem>>, vector<8x128xf32>
    tpu.vector_store %arg12[%c8_196, %c0_197], %795 {strides = array<i32>} : memref<64x256xf32, #tpu.memory_space<vmem>>, vector<8x128xf32>,
    %cst_198 = arith.constant 0.000000e+00 : f32
    %797 = vector.shape_cast %735 : vector<8x1xi1> to vector<8x1xi1>
    %798 = vector.broadcast %797 : vector<8x1xi1> to vector<8x128xi1>
    %799 = vector.broadcast %cst_198 : f32 to vector<8x128xf32>
    %800 = arith.select %798, %785, %799 : vector<8x128xi1>, vector<8x128xf32>
    %c48_199 = arith.constant 48 : index
    %c128_200 = arith.constant 128 : index
    %801 = vector.load %arg12[%c48_199, %c128_200] : memref<64x256xf32, #tpu.memory_space<vmem>>, vector<8x128xf32>
    tpu.vector_store %arg12[%c48_199, %c128_200], %800 {strides = array<i32>} : memref<64x256xf32, #tpu.memory_space<vmem>>, vector<8x128xf32>,
    %802 = tpu.concatenate %788, %791 in 1 : vector<8x128xf32>, vector<8x128xf32> -> vector<8x256xf32>
    %803 = arith.truncf %802 : vector<8x256xf32> to vector<8x256xbf16>
    %c0_201 = arith.constant 0 : index
    %c0_202 = arith.constant 0 : index
    %804 = vector.load %arg9[%c0_201, %c0_202] : memref<256x768xbf16, #tpu.memory_space<vmem>>, vector<256x768xbf16>
    %cst_203 = arith.constant dense<0.000000e+00> : vector<8x768xf32>
    %805 = tpu.matmul %803, %804, %cst_203 {dimension_numbers = #tpu.dot_dimension_numbers<[1], [0], [0], [1], [0, 0, 1, 1], [], []>} : vector<8x256xbf16>, vector<256x768xbf16>, vector<8x768xf32> -> vector<8x768xf32>
    %c16_204 = arith.constant 16 : index
    %c0_205 = arith.constant 0 : index
    %806 = vector.load %arg13[%c16_204, %c0_205] : memref<64x768xf32, #tpu.memory_space<vmem>>, vector<8x384xf32>
    %c40_206 = arith.constant 40 : index
    %c384_207 = arith.constant 384 : index
    %807 = vector.load %arg13[%c40_206, %c384_207] : memref<64x768xf32, #tpu.memory_space<vmem>>, vector<8x384xf32>
    %808 = vector.extract_strided_slice %802 {offsets = [0, 0], sizes = [8, 128], strides = [1, 1]} : vector<8x256xf32> to vector<8x128xf32>
    %809 = vector.extract_strided_slice %802 {offsets = [0, 128], sizes = [8, 128], strides = [1, 1]} : vector<8x256xf32> to vector<8x128xf32>
    %c2_i32_208 = arith.constant 2 : i32
    %810 = vector.broadcast %c2_i32_208 : i32 to vector<8x1xi32>
    %811 = arith.cmpi sgt, %0, %810 : vector<8x1xi32>
    %c5_i32_209 = arith.constant 5 : i32
    %812 = vector.broadcast %c5_i32_209 : i32 to vector<8x1xi32>
    %813 = arith.cmpi sgt, %0, %812 : vector<8x1xi32>
    %814 = vector.extract_strided_slice %806 {offsets = [0, 0], sizes = [8, 128], strides = [1, 1]} : vector<8x384xf32> to vector<8x128xf32>
    %815 = vector.extract_strided_slice %805 {offsets = [0, 0], sizes = [8, 128], strides = [1, 1]} : vector<8x768xf32> to vector<8x128xf32>
    %816 = arith.addf %814, %815 : vector<8x128xf32>
    %817 = arith.negf %816 : vector<8x128xf32>
    %818 = math.exp %817 : vector<8x128xf32>
    %cst_210 = arith.constant 1.000000e+00 : f32
    %819 = vector.broadcast %cst_210 : f32 to vector<8x128xf32>
    %820 = arith.addf %819, %818 : vector<8x128xf32>
    %821 = arith.divf %819, %820 : vector<8x128xf32>
    %822 = vector.extract_strided_slice %807 {offsets = [0, 0], sizes = [8, 128], strides = [1, 1]} : vector<8x384xf32> to vector<8x128xf32>
    %823 = vector.extract_strided_slice %805 {offsets = [0, 384], sizes = [8, 128], strides = [1, 1]} : vector<8x768xf32> to vector<8x128xf32>
    %824 = arith.addf %822, %823 : vector<8x128xf32>
    %825 = arith.negf %824 : vector<8x128xf32>
    %826 = math.exp %825 : vector<8x128xf32>
    %cst_211 = arith.constant 1.000000e+00 : f32
    %827 = vector.broadcast %cst_211 : f32 to vector<8x128xf32>
    %828 = arith.addf %827, %826 : vector<8x128xf32>
    %829 = arith.divf %827, %828 : vector<8x128xf32>
    %830 = vector.extract_strided_slice %806 {offsets = [0, 128], sizes = [8, 128], strides = [1, 1]} : vector<8x384xf32> to vector<8x128xf32>
    %831 = vector.extract_strided_slice %805 {offsets = [0, 128], sizes = [8, 128], strides = [1, 1]} : vector<8x768xf32> to vector<8x128xf32>
    %832 = arith.addf %830, %831 : vector<8x128xf32>
    %833 = arith.negf %832 : vector<8x128xf32>
    %834 = math.exp %833 : vector<8x128xf32>
    %cst_212 = arith.constant 1.000000e+00 : f32
    %835 = vector.broadcast %cst_212 : f32 to vector<8x128xf32>
    %836 = arith.addf %835, %834 : vector<8x128xf32>
    %837 = arith.divf %835, %836 : vector<8x128xf32>
    %838 = vector.extract_strided_slice %807 {offsets = [0, 128], sizes = [8, 128], strides = [1, 1]} : vector<8x384xf32> to vector<8x128xf32>
    %839 = vector.extract_strided_slice %805 {offsets = [0, 512], sizes = [8, 128], strides = [1, 1]} : vector<8x768xf32> to vector<8x128xf32>
    %840 = arith.addf %838, %839 : vector<8x128xf32>
    %841 = arith.negf %840 : vector<8x128xf32>
    %842 = math.exp %841 : vector<8x128xf32>
    %cst_213 = arith.constant 1.000000e+00 : f32
    %843 = vector.broadcast %cst_213 : f32 to vector<8x128xf32>
    %844 = arith.addf %843, %842 : vector<8x128xf32>
    %845 = arith.divf %843, %844 : vector<8x128xf32>
    %846 = vector.extract_strided_slice %806 {offsets = [0, 256], sizes = [8, 128], strides = [1, 1]} : vector<8x384xf32> to vector<8x128xf32>
    %847 = vector.extract_strided_slice %805 {offsets = [0, 256], sizes = [8, 128], strides = [1, 1]} : vector<8x768xf32> to vector<8x128xf32>
    %848 = arith.addf %847, %642 : vector<8x128xf32>
    %849 = arith.mulf %821, %848 : vector<8x128xf32>
    %850 = arith.addf %846, %849 : vector<8x128xf32>
    %851 = math.tanh %850 : vector<8x128xf32>
    %852 = vector.extract_strided_slice %807 {offsets = [0, 256], sizes = [8, 128], strides = [1, 1]} : vector<8x384xf32> to vector<8x128xf32>
    %853 = vector.extract_strided_slice %805 {offsets = [0, 640], sizes = [8, 128], strides = [1, 1]} : vector<8x768xf32> to vector<8x128xf32>
    %854 = arith.addf %853, %645 : vector<8x128xf32>
    %855 = arith.mulf %829, %854 : vector<8x128xf32>
    %856 = arith.addf %852, %855 : vector<8x128xf32>
    %857 = math.tanh %856 : vector<8x128xf32>
    %858 = arith.subf %808, %851 : vector<8x128xf32>
    %859 = arith.mulf %837, %858 : vector<8x128xf32>
    %860 = arith.addf %851, %859 : vector<8x128xf32>
    %861 = arith.subf %809, %857 : vector<8x128xf32>
    %862 = arith.mulf %845, %861 : vector<8x128xf32>
    %863 = arith.addf %857, %862 : vector<8x128xf32>
    %864 = vector.shape_cast %811 : vector<8x1xi1> to vector<8x1xi1>
    %865 = vector.broadcast %864 : vector<8x1xi1> to vector<8x128xi1>
    %866 = arith.select %865, %860, %808 : vector<8x128xi1>, vector<8x128xf32>
    %867 = vector.shape_cast %813 : vector<8x1xi1> to vector<8x1xi1>
    %868 = vector.broadcast %867 : vector<8x1xi1> to vector<8x128xi1>
    %869 = arith.select %868, %863, %809 : vector<8x128xi1>, vector<8x128xf32>
    %cst_214 = arith.constant 0.000000e+00 : f32
    %870 = vector.shape_cast %811 : vector<8x1xi1> to vector<8x1xi1>
    %871 = vector.broadcast %870 : vector<8x1xi1> to vector<8x128xi1>
    %872 = vector.broadcast %cst_214 : f32 to vector<8x128xf32>
    %873 = arith.select %871, %860, %872 : vector<8x128xi1>, vector<8x128xf32>
    %c16_215 = arith.constant 16 : index
    %c0_216 = arith.constant 0 : index
    %874 = vector.load %arg12[%c16_215, %c0_216] : memref<64x256xf32, #tpu.memory_space<vmem>>, vector<8x128xf32>
    tpu.vector_store %arg12[%c16_215, %c0_216], %873 {strides = array<i32>} : memref<64x256xf32, #tpu.memory_space<vmem>>, vector<8x128xf32>,
    %cst_217 = arith.constant 0.000000e+00 : f32
    %875 = vector.shape_cast %813 : vector<8x1xi1> to vector<8x1xi1>
    %876 = vector.broadcast %875 : vector<8x1xi1> to vector<8x128xi1>
    %877 = vector.broadcast %cst_217 : f32 to vector<8x128xf32>
    %878 = arith.select %876, %863, %877 : vector<8x128xi1>, vector<8x128xf32>
    %c40_218 = arith.constant 40 : index
    %c128_219 = arith.constant 128 : index
    %879 = vector.load %arg12[%c40_218, %c128_219] : memref<64x256xf32, #tpu.memory_space<vmem>>, vector<8x128xf32>
    tpu.vector_store %arg12[%c40_218, %c128_219], %878 {strides = array<i32>} : memref<64x256xf32, #tpu.memory_space<vmem>>, vector<8x128xf32>,
    %880 = tpu.concatenate %866, %869 in 1 : vector<8x128xf32>, vector<8x128xf32> -> vector<8x256xf32>
    %881 = arith.truncf %880 : vector<8x256xf32> to vector<8x256xbf16>
    %c0_220 = arith.constant 0 : index
    %c0_221 = arith.constant 0 : index
    %882 = vector.load %arg9[%c0_220, %c0_221] : memref<256x768xbf16, #tpu.memory_space<vmem>>, vector<256x768xbf16>
    %cst_222 = arith.constant dense<0.000000e+00> : vector<8x768xf32>
    %883 = tpu.matmul %881, %882, %cst_222 {dimension_numbers = #tpu.dot_dimension_numbers<[1], [0], [0], [1], [0, 0, 1, 1], [], []>} : vector<8x256xbf16>, vector<256x768xbf16>, vector<8x768xf32> -> vector<8x768xf32>
    %c24_223 = arith.constant 24 : index
    %c0_224 = arith.constant 0 : index
    %884 = vector.load %arg13[%c24_223, %c0_224] : memref<64x768xf32, #tpu.memory_space<vmem>>, vector<8x384xf32>
    %c32_225 = arith.constant 32 : index
    %c384_226 = arith.constant 384 : index
    %885 = vector.load %arg13[%c32_225, %c384_226] : memref<64x768xf32, #tpu.memory_space<vmem>>, vector<8x384xf32>
    %886 = vector.extract_strided_slice %880 {offsets = [0, 0], sizes = [8, 128], strides = [1, 1]} : vector<8x256xf32> to vector<8x128xf32>
    %887 = vector.extract_strided_slice %880 {offsets = [0, 128], sizes = [8, 128], strides = [1, 1]} : vector<8x256xf32> to vector<8x128xf32>
    %c3_i32_227 = arith.constant 3 : i32
    %888 = vector.broadcast %c3_i32_227 : i32 to vector<8x1xi32>
    %889 = arith.cmpi sgt, %0, %888 : vector<8x1xi32>
    %c4_i32_228 = arith.constant 4 : i32
    %890 = vector.broadcast %c4_i32_228 : i32 to vector<8x1xi32>
    %891 = arith.cmpi sgt, %0, %890 : vector<8x1xi32>
    %892 = vector.extract_strided_slice %884 {offsets = [0, 0], sizes = [8, 128], strides = [1, 1]} : vector<8x384xf32> to vector<8x128xf32>
    %893 = vector.extract_strided_slice %883 {offsets = [0, 0], sizes = [8, 128], strides = [1, 1]} : vector<8x768xf32> to vector<8x128xf32>
    %894 = arith.addf %892, %893 : vector<8x128xf32>
    %895 = arith.negf %894 : vector<8x128xf32>
    %896 = math.exp %895 : vector<8x128xf32>
    %cst_229 = arith.constant 1.000000e+00 : f32
    %897 = vector.broadcast %cst_229 : f32 to vector<8x128xf32>
    %898 = arith.addf %897, %896 : vector<8x128xf32>
    %899 = arith.divf %897, %898 : vector<8x128xf32>
    %900 = vector.extract_strided_slice %885 {offsets = [0, 0], sizes = [8, 128], strides = [1, 1]} : vector<8x384xf32> to vector<8x128xf32>
    %901 = vector.extract_strided_slice %883 {offsets = [0, 384], sizes = [8, 128], strides = [1, 1]} : vector<8x768xf32> to vector<8x128xf32>
    %902 = arith.addf %900, %901 : vector<8x128xf32>
    %903 = arith.negf %902 : vector<8x128xf32>
    %904 = math.exp %903 : vector<8x128xf32>
    %cst_230 = arith.constant 1.000000e+00 : f32
    %905 = vector.broadcast %cst_230 : f32 to vector<8x128xf32>
    %906 = arith.addf %905, %904 : vector<8x128xf32>
    %907 = arith.divf %905, %906 : vector<8x128xf32>
    %908 = vector.extract_strided_slice %884 {offsets = [0, 128], sizes = [8, 128], strides = [1, 1]} : vector<8x384xf32> to vector<8x128xf32>
    %909 = vector.extract_strided_slice %883 {offsets = [0, 128], sizes = [8, 128], strides = [1, 1]} : vector<8x768xf32> to vector<8x128xf32>
    %910 = arith.addf %908, %909 : vector<8x128xf32>
    %911 = arith.negf %910 : vector<8x128xf32>
    %912 = math.exp %911 : vector<8x128xf32>
    %cst_231 = arith.constant 1.000000e+00 : f32
    %913 = vector.broadcast %cst_231 : f32 to vector<8x128xf32>
    %914 = arith.addf %913, %912 : vector<8x128xf32>
    %915 = arith.divf %913, %914 : vector<8x128xf32>
    %916 = vector.extract_strided_slice %885 {offsets = [0, 128], sizes = [8, 128], strides = [1, 1]} : vector<8x384xf32> to vector<8x128xf32>
    %917 = vector.extract_strided_slice %883 {offsets = [0, 512], sizes = [8, 128], strides = [1, 1]} : vector<8x768xf32> to vector<8x128xf32>
    %918 = arith.addf %916, %917 : vector<8x128xf32>
    %919 = arith.negf %918 : vector<8x128xf32>
    %920 = math.exp %919 : vector<8x128xf32>
    %cst_232 = arith.constant 1.000000e+00 : f32
    %921 = vector.broadcast %cst_232 : f32 to vector<8x128xf32>
    %922 = arith.addf %921, %920 : vector<8x128xf32>
    %923 = arith.divf %921, %922 : vector<8x128xf32>
    %924 = vector.extract_strided_slice %884 {offsets = [0, 256], sizes = [8, 128], strides = [1, 1]} : vector<8x384xf32> to vector<8x128xf32>
    %925 = vector.extract_strided_slice %883 {offsets = [0, 256], sizes = [8, 128], strides = [1, 1]} : vector<8x768xf32> to vector<8x128xf32>
    %926 = arith.addf %925, %642 : vector<8x128xf32>
    %927 = arith.mulf %899, %926 : vector<8x128xf32>
    %928 = arith.addf %924, %927 : vector<8x128xf32>
    %929 = math.tanh %928 : vector<8x128xf32>
    %930 = vector.extract_strided_slice %885 {offsets = [0, 256], sizes = [8, 128], strides = [1, 1]} : vector<8x384xf32> to vector<8x128xf32>
    %931 = vector.extract_strided_slice %883 {offsets = [0, 640], sizes = [8, 128], strides = [1, 1]} : vector<8x768xf32> to vector<8x128xf32>
    %932 = arith.addf %931, %645 : vector<8x128xf32>
    %933 = arith.mulf %907, %932 : vector<8x128xf32>
    %934 = arith.addf %930, %933 : vector<8x128xf32>
    %935 = math.tanh %934 : vector<8x128xf32>
    %936 = arith.subf %886, %929 : vector<8x128xf32>
    %937 = arith.mulf %915, %936 : vector<8x128xf32>
    %938 = arith.addf %929, %937 : vector<8x128xf32>
    %939 = arith.subf %887, %935 : vector<8x128xf32>
    %940 = arith.mulf %923, %939 : vector<8x128xf32>
    %941 = arith.addf %935, %940 : vector<8x128xf32>
    %942 = vector.shape_cast %889 : vector<8x1xi1> to vector<8x1xi1>
    %943 = vector.broadcast %942 : vector<8x1xi1> to vector<8x128xi1>
    %944 = arith.select %943, %938, %886 : vector<8x128xi1>, vector<8x128xf32>
    %945 = vector.shape_cast %891 : vector<8x1xi1> to vector<8x1xi1>
    %946 = vector.broadcast %945 : vector<8x1xi1> to vector<8x128xi1>
    %947 = arith.select %946, %941, %887 : vector<8x128xi1>, vector<8x128xf32>
    %cst_233 = arith.constant 0.000000e+00 : f32
    %948 = vector.shape_cast %889 : vector<8x1xi1> to vector<8x1xi1>
    %949 = vector.broadcast %948 : vector<8x1xi1> to vector<8x128xi1>
    %950 = vector.broadcast %cst_233 : f32 to vector<8x128xf32>
    %951 = arith.select %949, %938, %950 : vector<8x128xi1>, vector<8x128xf32>
    %c24_234 = arith.constant 24 : index
    %c0_235 = arith.constant 0 : index
    %952 = vector.load %arg12[%c24_234, %c0_235] : memref<64x256xf32, #tpu.memory_space<vmem>>, vector<8x128xf32>
    tpu.vector_store %arg12[%c24_234, %c0_235], %951 {strides = array<i32>} : memref<64x256xf32, #tpu.memory_space<vmem>>, vector<8x128xf32>,
    %cst_236 = arith.constant 0.000000e+00 : f32
    %953 = vector.shape_cast %891 : vector<8x1xi1> to vector<8x1xi1>
    %954 = vector.broadcast %953 : vector<8x1xi1> to vector<8x128xi1>
    %955 = vector.broadcast %cst_236 : f32 to vector<8x128xf32>
    %956 = arith.select %954, %941, %955 : vector<8x128xi1>, vector<8x128xf32>
    %c32_237 = arith.constant 32 : index
    %c128_238 = arith.constant 128 : index
    %957 = vector.load %arg12[%c32_237, %c128_238] : memref<64x256xf32, #tpu.memory_space<vmem>>, vector<8x128xf32>
    tpu.vector_store %arg12[%c32_237, %c128_238], %956 {strides = array<i32>} : memref<64x256xf32, #tpu.memory_space<vmem>>, vector<8x128xf32>,
    %958 = tpu.concatenate %944, %947 in 1 : vector<8x128xf32>, vector<8x128xf32> -> vector<8x256xf32>
    %959 = arith.truncf %958 : vector<8x256xf32> to vector<8x256xbf16>
    %c0_239 = arith.constant 0 : index
    %c0_240 = arith.constant 0 : index
    %960 = vector.load %arg9[%c0_239, %c0_240] : memref<256x768xbf16, #tpu.memory_space<vmem>>, vector<256x768xbf16>
    %cst_241 = arith.constant dense<0.000000e+00> : vector<8x768xf32>
    %961 = tpu.matmul %959, %960, %cst_241 {dimension_numbers = #tpu.dot_dimension_numbers<[1], [0], [0], [1], [0, 0, 1, 1], [], []>} : vector<8x256xbf16>, vector<256x768xbf16>, vector<8x768xf32> -> vector<8x768xf32>
    %c32_242 = arith.constant 32 : index
    %c0_243 = arith.constant 0 : index
    %962 = vector.load %arg13[%c32_242, %c0_243] : memref<64x768xf32, #tpu.memory_space<vmem>>, vector<8x384xf32>
    %c24_244 = arith.constant 24 : index
    %c384_245 = arith.constant 384 : index
    %963 = vector.load %arg13[%c24_244, %c384_245] : memref<64x768xf32, #tpu.memory_space<vmem>>, vector<8x384xf32>
    %964 = vector.extract_strided_slice %958 {offsets = [0, 0], sizes = [8, 128], strides = [1, 1]} : vector<8x256xf32> to vector<8x128xf32>
    %965 = vector.extract_strided_slice %958 {offsets = [0, 128], sizes = [8, 128], strides = [1, 1]} : vector<8x256xf32> to vector<8x128xf32>
    %c4_i32_246 = arith.constant 4 : i32
    %966 = vector.broadcast %c4_i32_246 : i32 to vector<8x1xi32>
    %967 = arith.cmpi sgt, %0, %966 : vector<8x1xi32>
    %c3_i32_247 = arith.constant 3 : i32
    %968 = vector.broadcast %c3_i32_247 : i32 to vector<8x1xi32>
    %969 = arith.cmpi sgt, %0, %968 : vector<8x1xi32>
    %970 = vector.extract_strided_slice %962 {offsets = [0, 0], sizes = [8, 128], strides = [1, 1]} : vector<8x384xf32> to vector<8x128xf32>
    %971 = vector.extract_strided_slice %961 {offsets = [0, 0], sizes = [8, 128], strides = [1, 1]} : vector<8x768xf32> to vector<8x128xf32>
    %972 = arith.addf %970, %971 : vector<8x128xf32>
    %973 = arith.negf %972 : vector<8x128xf32>
    %974 = math.exp %973 : vector<8x128xf32>
    %cst_248 = arith.constant 1.000000e+00 : f32
    %975 = vector.broadcast %cst_248 : f32 to vector<8x128xf32>
    %976 = arith.addf %975, %974 : vector<8x128xf32>
    %977 = arith.divf %975, %976 : vector<8x128xf32>
    %978 = vector.extract_strided_slice %963 {offsets = [0, 0], sizes = [8, 128], strides = [1, 1]} : vector<8x384xf32> to vector<8x128xf32>
    %979 = vector.extract_strided_slice %961 {offsets = [0, 384], sizes = [8, 128], strides = [1, 1]} : vector<8x768xf32> to vector<8x128xf32>
    %980 = arith.addf %978, %979 : vector<8x128xf32>
    %981 = arith.negf %980 : vector<8x128xf32>
    %982 = math.exp %981 : vector<8x128xf32>
    %cst_249 = arith.constant 1.000000e+00 : f32
    %983 = vector.broadcast %cst_249 : f32 to vector<8x128xf32>
    %984 = arith.addf %983, %982 : vector<8x128xf32>
    %985 = arith.divf %983, %984 : vector<8x128xf32>
    %986 = vector.extract_strided_slice %962 {offsets = [0, 128], sizes = [8, 128], strides = [1, 1]} : vector<8x384xf32> to vector<8x128xf32>
    %987 = vector.extract_strided_slice %961 {offsets = [0, 128], sizes = [8, 128], strides = [1, 1]} : vector<8x768xf32> to vector<8x128xf32>
    %988 = arith.addf %986, %987 : vector<8x128xf32>
    %989 = arith.negf %988 : vector<8x128xf32>
    %990 = math.exp %989 : vector<8x128xf32>
    %cst_250 = arith.constant 1.000000e+00 : f32
    %991 = vector.broadcast %cst_250 : f32 to vector<8x128xf32>
    %992 = arith.addf %991, %990 : vector<8x128xf32>
    %993 = arith.divf %991, %992 : vector<8x128xf32>
    %994 = vector.extract_strided_slice %963 {offsets = [0, 128], sizes = [8, 128], strides = [1, 1]} : vector<8x384xf32> to vector<8x128xf32>
    %995 = vector.extract_strided_slice %961 {offsets = [0, 512], sizes = [8, 128], strides = [1, 1]} : vector<8x768xf32> to vector<8x128xf32>
    %996 = arith.addf %994, %995 : vector<8x128xf32>
    %997 = arith.negf %996 : vector<8x128xf32>
    %998 = math.exp %997 : vector<8x128xf32>
    %cst_251 = arith.constant 1.000000e+00 : f32
    %999 = vector.broadcast %cst_251 : f32 to vector<8x128xf32>
    %1000 = arith.addf %999, %998 : vector<8x128xf32>
    %1001 = arith.divf %999, %1000 : vector<8x128xf32>
    %1002 = vector.extract_strided_slice %962 {offsets = [0, 256], sizes = [8, 128], strides = [1, 1]} : vector<8x384xf32> to vector<8x128xf32>
    %1003 = vector.extract_strided_slice %961 {offsets = [0, 256], sizes = [8, 128], strides = [1, 1]} : vector<8x768xf32> to vector<8x128xf32>
    %1004 = arith.addf %1003, %642 : vector<8x128xf32>
    %1005 = arith.mulf %977, %1004 : vector<8x128xf32>
    %1006 = arith.addf %1002, %1005 : vector<8x128xf32>
    %1007 = math.tanh %1006 : vector<8x128xf32>
    %1008 = vector.extract_strided_slice %963 {offsets = [0, 256], sizes = [8, 128], strides = [1, 1]} : vector<8x384xf32> to vector<8x128xf32>
    %1009 = vector.extract_strided_slice %961 {offsets = [0, 640], sizes = [8, 128], strides = [1, 1]} : vector<8x768xf32> to vector<8x128xf32>
    %1010 = arith.addf %1009, %645 : vector<8x128xf32>
    %1011 = arith.mulf %985, %1010 : vector<8x128xf32>
    %1012 = arith.addf %1008, %1011 : vector<8x128xf32>
    %1013 = math.tanh %1012 : vector<8x128xf32>
    %1014 = arith.subf %964, %1007 : vector<8x128xf32>
    %1015 = arith.mulf %993, %1014 : vector<8x128xf32>
    %1016 = arith.addf %1007, %1015 : vector<8x128xf32>
    %1017 = arith.subf %965, %1013 : vector<8x128xf32>
    %1018 = arith.mulf %1001, %1017 : vector<8x128xf32>
    %1019 = arith.addf %1013, %1018 : vector<8x128xf32>
    %1020 = vector.shape_cast %967 : vector<8x1xi1> to vector<8x1xi1>
    %1021 = vector.broadcast %1020 : vector<8x1xi1> to vector<8x128xi1>
    %1022 = arith.select %1021, %1016, %964 : vector<8x128xi1>, vector<8x128xf32>
    %1023 = vector.shape_cast %969 : vector<8x1xi1> to vector<8x1xi1>
    %1024 = vector.broadcast %1023 : vector<8x1xi1> to vector<8x128xi1>
    %1025 = arith.select %1024, %1019, %965 : vector<8x128xi1>, vector<8x128xf32>
    %cst_252 = arith.constant 0.000000e+00 : f32
    %1026 = vector.shape_cast %967 : vector<8x1xi1> to vector<8x1xi1>
    %1027 = vector.broadcast %1026 : vector<8x1xi1> to vector<8x128xi1>
    %1028 = vector.broadcast %cst_252 : f32 to vector<8x128xf32>
    %1029 = arith.select %1027, %1016, %1028 : vector<8x128xi1>, vector<8x128xf32>
    %c32_253 = arith.constant 32 : index
    %c0_254 = arith.constant 0 : index
    %1030 = vector.load %arg12[%c32_253, %c0_254] : memref<64x256xf32, #tpu.memory_space<vmem>>, vector<8x128xf32>
    tpu.vector_store %arg12[%c32_253, %c0_254], %1029 {strides = array<i32>} : memref<64x256xf32, #tpu.memory_space<vmem>>, vector<8x128xf32>,
    %cst_255 = arith.constant 0.000000e+00 : f32
    %1031 = vector.shape_cast %969 : vector<8x1xi1> to vector<8x1xi1>
    %1032 = vector.broadcast %1031 : vector<8x1xi1> to vector<8x128xi1>
    %1033 = vector.broadcast %cst_255 : f32 to vector<8x128xf32>
    %1034 = arith.select %1032, %1019, %1033 : vector<8x128xi1>, vector<8x128xf32>
    %c24_256 = arith.constant 24 : index
    %c128_257 = arith.constant 128 : index
    %1035 = vector.load %arg12[%c24_256, %c128_257] : memref<64x256xf32, #tpu.memory_space<vmem>>, vector<8x128xf32>
    tpu.vector_store %arg12[%c24_256, %c128_257], %1034 {strides = array<i32>} : memref<64x256xf32, #tpu.memory_space<vmem>>, vector<8x128xf32>,
    %1036 = tpu.concatenate %1022, %1025 in 1 : vector<8x128xf32>, vector<8x128xf32> -> vector<8x256xf32>
    %1037 = arith.truncf %1036 : vector<8x256xf32> to vector<8x256xbf16>
    %c0_258 = arith.constant 0 : index
    %c0_259 = arith.constant 0 : index
    %1038 = vector.load %arg9[%c0_258, %c0_259] : memref<256x768xbf16, #tpu.memory_space<vmem>>, vector<256x768xbf16>
    %cst_260 = arith.constant dense<0.000000e+00> : vector<8x768xf32>
    %1039 = tpu.matmul %1037, %1038, %cst_260 {dimension_numbers = #tpu.dot_dimension_numbers<[1], [0], [0], [1], [0, 0, 1, 1], [], []>} : vector<8x256xbf16>, vector<256x768xbf16>, vector<8x768xf32> -> vector<8x768xf32>
    %c40_261 = arith.constant 40 : index
    %c0_262 = arith.constant 0 : index
    %1040 = vector.load %arg13[%c40_261, %c0_262] : memref<64x768xf32, #tpu.memory_space<vmem>>, vector<8x384xf32>
    %c16_263 = arith.constant 16 : index
    %c384_264 = arith.constant 384 : index
    %1041 = vector.load %arg13[%c16_263, %c384_264] : memref<64x768xf32, #tpu.memory_space<vmem>>, vector<8x384xf32>
    %1042 = vector.extract_strided_slice %1036 {offsets = [0, 0], sizes = [8, 128], strides = [1, 1]} : vector<8x256xf32> to vector<8x128xf32>
    %1043 = vector.extract_strided_slice %1036 {offsets = [0, 128], sizes = [8, 128], strides = [1, 1]} : vector<8x256xf32> to vector<8x128xf32>
    %c5_i32_265 = arith.constant 5 : i32
    %1044 = vector.broadcast %c5_i32_265 : i32 to vector<8x1xi32>
    %1045 = arith.cmpi sgt, %0, %1044 : vector<8x1xi32>
    %c2_i32_266 = arith.constant 2 : i32
    %1046 = vector.broadcast %c2_i32_266 : i32 to vector<8x1xi32>
    %1047 = arith.cmpi sgt, %0, %1046 : vector<8x1xi32>
    %1048 = vector.extract_strided_slice %1040 {offsets = [0, 0], sizes = [8, 128], strides = [1, 1]} : vector<8x384xf32> to vector<8x128xf32>
    %1049 = vector.extract_strided_slice %1039 {offsets = [0, 0], sizes = [8, 128], strides = [1, 1]} : vector<8x768xf32> to vector<8x128xf32>
    %1050 = arith.addf %1048, %1049 : vector<8x128xf32>
    %1051 = arith.negf %1050 : vector<8x128xf32>
    %1052 = math.exp %1051 : vector<8x128xf32>
    %cst_267 = arith.constant 1.000000e+00 : f32
    %1053 = vector.broadcast %cst_267 : f32 to vector<8x128xf32>
    %1054 = arith.addf %1053, %1052 : vector<8x128xf32>
    %1055 = arith.divf %1053, %1054 : vector<8x128xf32>
    %1056 = vector.extract_strided_slice %1041 {offsets = [0, 0], sizes = [8, 128], strides = [1, 1]} : vector<8x384xf32> to vector<8x128xf32>
    %1057 = vector.extract_strided_slice %1039 {offsets = [0, 384], sizes = [8, 128], strides = [1, 1]} : vector<8x768xf32> to vector<8x128xf32>
    %1058 = arith.addf %1056, %1057 : vector<8x128xf32>
    %1059 = arith.negf %1058 : vector<8x128xf32>
    %1060 = math.exp %1059 : vector<8x128xf32>
    %cst_268 = arith.constant 1.000000e+00 : f32
    %1061 = vector.broadcast %cst_268 : f32 to vector<8x128xf32>
    %1062 = arith.addf %1061, %1060 : vector<8x128xf32>
    %1063 = arith.divf %1061, %1062 : vector<8x128xf32>
    %1064 = vector.extract_strided_slice %1040 {offsets = [0, 128], sizes = [8, 128], strides = [1, 1]} : vector<8x384xf32> to vector<8x128xf32>
    %1065 = vector.extract_strided_slice %1039 {offsets = [0, 128], sizes = [8, 128], strides = [1, 1]} : vector<8x768xf32> to vector<8x128xf32>
    %1066 = arith.addf %1064, %1065 : vector<8x128xf32>
    %1067 = arith.negf %1066 : vector<8x128xf32>
    %1068 = math.exp %1067 : vector<8x128xf32>
    %cst_269 = arith.constant 1.000000e+00 : f32
    %1069 = vector.broadcast %cst_269 : f32 to vector<8x128xf32>
    %1070 = arith.addf %1069, %1068 : vector<8x128xf32>
    %1071 = arith.divf %1069, %1070 : vector<8x128xf32>
    %1072 = vector.extract_strided_slice %1041 {offsets = [0, 128], sizes = [8, 128], strides = [1, 1]} : vector<8x384xf32> to vector<8x128xf32>
    %1073 = vector.extract_strided_slice %1039 {offsets = [0, 512], sizes = [8, 128], strides = [1, 1]} : vector<8x768xf32> to vector<8x128xf32>
    %1074 = arith.addf %1072, %1073 : vector<8x128xf32>
    %1075 = arith.negf %1074 : vector<8x128xf32>
    %1076 = math.exp %1075 : vector<8x128xf32>
    %cst_270 = arith.constant 1.000000e+00 : f32
    %1077 = vector.broadcast %cst_270 : f32 to vector<8x128xf32>
    %1078 = arith.addf %1077, %1076 : vector<8x128xf32>
    %1079 = arith.divf %1077, %1078 : vector<8x128xf32>
    %1080 = vector.extract_strided_slice %1040 {offsets = [0, 256], sizes = [8, 128], strides = [1, 1]} : vector<8x384xf32> to vector<8x128xf32>
    %1081 = vector.extract_strided_slice %1039 {offsets = [0, 256], sizes = [8, 128], strides = [1, 1]} : vector<8x768xf32> to vector<8x128xf32>
    %1082 = arith.addf %1081, %642 : vector<8x128xf32>
    %1083 = arith.mulf %1055, %1082 : vector<8x128xf32>
    %1084 = arith.addf %1080, %1083 : vector<8x128xf32>
    %1085 = math.tanh %1084 : vector<8x128xf32>
    %1086 = vector.extract_strided_slice %1041 {offsets = [0, 256], sizes = [8, 128], strides = [1, 1]} : vector<8x384xf32> to vector<8x128xf32>
    %1087 = vector.extract_strided_slice %1039 {offsets = [0, 640], sizes = [8, 128], strides = [1, 1]} : vector<8x768xf32> to vector<8x128xf32>
    %1088 = arith.addf %1087, %645 : vector<8x128xf32>
    %1089 = arith.mulf %1063, %1088 : vector<8x128xf32>
    %1090 = arith.addf %1086, %1089 : vector<8x128xf32>
    %1091 = math.tanh %1090 : vector<8x128xf32>
    %1092 = arith.subf %1042, %1085 : vector<8x128xf32>
    %1093 = arith.mulf %1071, %1092 : vector<8x128xf32>
    %1094 = arith.addf %1085, %1093 : vector<8x128xf32>
    %1095 = arith.subf %1043, %1091 : vector<8x128xf32>
    %1096 = arith.mulf %1079, %1095 : vector<8x128xf32>
    %1097 = arith.addf %1091, %1096 : vector<8x128xf32>
    %1098 = vector.shape_cast %1045 : vector<8x1xi1> to vector<8x1xi1>
    %1099 = vector.broadcast %1098 : vector<8x1xi1> to vector<8x128xi1>
    %1100 = arith.select %1099, %1094, %1042 : vector<8x128xi1>, vector<8x128xf32>
    %1101 = vector.shape_cast %1047 : vector<8x1xi1> to vector<8x1xi1>
    %1102 = vector.broadcast %1101 : vector<8x1xi1> to vector<8x128xi1>
    %1103 = arith.select %1102, %1097, %1043 : vector<8x128xi1>, vector<8x128xf32>
    %cst_271 = arith.constant 0.000000e+00 : f32
    %1104 = vector.shape_cast %1045 : vector<8x1xi1> to vector<8x1xi1>
    %1105 = vector.broadcast %1104 : vector<8x1xi1> to vector<8x128xi1>
    %1106 = vector.broadcast %cst_271 : f32 to vector<8x128xf32>
    %1107 = arith.select %1105, %1094, %1106 : vector<8x128xi1>, vector<8x128xf32>
    %c40_272 = arith.constant 40 : index
    %c0_273 = arith.constant 0 : index
    %1108 = vector.load %arg12[%c40_272, %c0_273] : memref<64x256xf32, #tpu.memory_space<vmem>>, vector<8x128xf32>
    tpu.vector_store %arg12[%c40_272, %c0_273], %1107 {strides = array<i32>} : memref<64x256xf32, #tpu.memory_space<vmem>>, vector<8x128xf32>,
    %cst_274 = arith.constant 0.000000e+00 : f32
    %1109 = vector.shape_cast %1047 : vector<8x1xi1> to vector<8x1xi1>
    %1110 = vector.broadcast %1109 : vector<8x1xi1> to vector<8x128xi1>
    %1111 = vector.broadcast %cst_274 : f32 to vector<8x128xf32>
    %1112 = arith.select %1110, %1097, %1111 : vector<8x128xi1>, vector<8x128xf32>
    %c16_275 = arith.constant 16 : index
    %c128_276 = arith.constant 128 : index
    %1113 = vector.load %arg12[%c16_275, %c128_276] : memref<64x256xf32, #tpu.memory_space<vmem>>, vector<8x128xf32>
    tpu.vector_store %arg12[%c16_275, %c128_276], %1112 {strides = array<i32>} : memref<64x256xf32, #tpu.memory_space<vmem>>, vector<8x128xf32>,
    %1114 = tpu.concatenate %1100, %1103 in 1 : vector<8x128xf32>, vector<8x128xf32> -> vector<8x256xf32>
    %1115 = arith.truncf %1114 : vector<8x256xf32> to vector<8x256xbf16>
    %c0_277 = arith.constant 0 : index
    %c0_278 = arith.constant 0 : index
    %1116 = vector.load %arg9[%c0_277, %c0_278] : memref<256x768xbf16, #tpu.memory_space<vmem>>, vector<256x768xbf16>
    %cst_279 = arith.constant dense<0.000000e+00> : vector<8x768xf32>
    %1117 = tpu.matmul %1115, %1116, %cst_279 {dimension_numbers = #tpu.dot_dimension_numbers<[1], [0], [0], [1], [0, 0, 1, 1], [], []>} : vector<8x256xbf16>, vector<256x768xbf16>, vector<8x768xf32> -> vector<8x768xf32>
    %c48_280 = arith.constant 48 : index
    %c0_281 = arith.constant 0 : index
    %1118 = vector.load %arg13[%c48_280, %c0_281] : memref<64x768xf32, #tpu.memory_space<vmem>>, vector<8x384xf32>
    %c8_282 = arith.constant 8 : index
    %c384_283 = arith.constant 384 : index
    %1119 = vector.load %arg13[%c8_282, %c384_283] : memref<64x768xf32, #tpu.memory_space<vmem>>, vector<8x384xf32>
    %1120 = vector.extract_strided_slice %1114 {offsets = [0, 0], sizes = [8, 128], strides = [1, 1]} : vector<8x256xf32> to vector<8x128xf32>
    %1121 = vector.extract_strided_slice %1114 {offsets = [0, 128], sizes = [8, 128], strides = [1, 1]} : vector<8x256xf32> to vector<8x128xf32>
    %c6_i32_284 = arith.constant 6 : i32
    %1122 = vector.broadcast %c6_i32_284 : i32 to vector<8x1xi32>
    %1123 = arith.cmpi sgt, %0, %1122 : vector<8x1xi32>
    %c1_i32_285 = arith.constant 1 : i32
    %1124 = vector.broadcast %c1_i32_285 : i32 to vector<8x1xi32>
    %1125 = arith.cmpi sgt, %0, %1124 : vector<8x1xi32>
    %1126 = vector.extract_strided_slice %1118 {offsets = [0, 0], sizes = [8, 128], strides = [1, 1]} : vector<8x384xf32> to vector<8x128xf32>
    %1127 = vector.extract_strided_slice %1117 {offsets = [0, 0], sizes = [8, 128], strides = [1, 1]} : vector<8x768xf32> to vector<8x128xf32>
    %1128 = arith.addf %1126, %1127 : vector<8x128xf32>
    %1129 = arith.negf %1128 : vector<8x128xf32>
    %1130 = math.exp %1129 : vector<8x128xf32>
    %cst_286 = arith.constant 1.000000e+00 : f32
    %1131 = vector.broadcast %cst_286 : f32 to vector<8x128xf32>
    %1132 = arith.addf %1131, %1130 : vector<8x128xf32>
    %1133 = arith.divf %1131, %1132 : vector<8x128xf32>
    %1134 = vector.extract_strided_slice %1119 {offsets = [0, 0], sizes = [8, 128], strides = [1, 1]} : vector<8x384xf32> to vector<8x128xf32>
    %1135 = vector.extract_strided_slice %1117 {offsets = [0, 384], sizes = [8, 128], strides = [1, 1]} : vector<8x768xf32> to vector<8x128xf32>
    %1136 = arith.addf %1134, %1135 : vector<8x128xf32>
    %1137 = arith.negf %1136 : vector<8x128xf32>
    %1138 = math.exp %1137 : vector<8x128xf32>
    %cst_287 = arith.constant 1.000000e+00 : f32
    %1139 = vector.broadcast %cst_287 : f32 to vector<8x128xf32>
    %1140 = arith.addf %1139, %1138 : vector<8x128xf32>
    %1141 = arith.divf %1139, %1140 : vector<8x128xf32>
    %1142 = vector.extract_strided_slice %1118 {offsets = [0, 128], sizes = [8, 128], strides = [1, 1]} : vector<8x384xf32> to vector<8x128xf32>
    %1143 = vector.extract_strided_slice %1117 {offsets = [0, 128], sizes = [8, 128], strides = [1, 1]} : vector<8x768xf32> to vector<8x128xf32>
    %1144 = arith.addf %1142, %1143 : vector<8x128xf32>
    %1145 = arith.negf %1144 : vector<8x128xf32>
    %1146 = math.exp %1145 : vector<8x128xf32>
    %cst_288 = arith.constant 1.000000e+00 : f32
    %1147 = vector.broadcast %cst_288 : f32 to vector<8x128xf32>
    %1148 = arith.addf %1147, %1146 : vector<8x128xf32>
    %1149 = arith.divf %1147, %1148 : vector<8x128xf32>
    %1150 = vector.extract_strided_slice %1119 {offsets = [0, 128], sizes = [8, 128], strides = [1, 1]} : vector<8x384xf32> to vector<8x128xf32>
    %1151 = vector.extract_strided_slice %1117 {offsets = [0, 512], sizes = [8, 128], strides = [1, 1]} : vector<8x768xf32> to vector<8x128xf32>
    %1152 = arith.addf %1150, %1151 : vector<8x128xf32>
    %1153 = arith.negf %1152 : vector<8x128xf32>
    %1154 = math.exp %1153 : vector<8x128xf32>
    %cst_289 = arith.constant 1.000000e+00 : f32
    %1155 = vector.broadcast %cst_289 : f32 to vector<8x128xf32>
    %1156 = arith.addf %1155, %1154 : vector<8x128xf32>
    %1157 = arith.divf %1155, %1156 : vector<8x128xf32>
    %1158 = vector.extract_strided_slice %1118 {offsets = [0, 256], sizes = [8, 128], strides = [1, 1]} : vector<8x384xf32> to vector<8x128xf32>
    %1159 = vector.extract_strided_slice %1117 {offsets = [0, 256], sizes = [8, 128], strides = [1, 1]} : vector<8x768xf32> to vector<8x128xf32>
    %1160 = arith.addf %1159, %642 : vector<8x128xf32>
    %1161 = arith.mulf %1133, %1160 : vector<8x128xf32>
    %1162 = arith.addf %1158, %1161 : vector<8x128xf32>
    %1163 = math.tanh %1162 : vector<8x128xf32>
    %1164 = vector.extract_strided_slice %1119 {offsets = [0, 256], sizes = [8, 128], strides = [1, 1]} : vector<8x384xf32> to vector<8x128xf32>
    %1165 = vector.extract_strided_slice %1117 {offsets = [0, 640], sizes = [8, 128], strides = [1, 1]} : vector<8x768xf32> to vector<8x128xf32>
    %1166 = arith.addf %1165, %645 : vector<8x128xf32>
    %1167 = arith.mulf %1141, %1166 : vector<8x128xf32>
    %1168 = arith.addf %1164, %1167 : vector<8x128xf32>
    %1169 = math.tanh %1168 : vector<8x128xf32>
    %1170 = arith.subf %1120, %1163 : vector<8x128xf32>
    %1171 = arith.mulf %1149, %1170 : vector<8x128xf32>
    %1172 = arith.addf %1163, %1171 : vector<8x128xf32>
    %1173 = arith.subf %1121, %1169 : vector<8x128xf32>
    %1174 = arith.mulf %1157, %1173 : vector<8x128xf32>
    %1175 = arith.addf %1169, %1174 : vector<8x128xf32>
    %1176 = vector.shape_cast %1123 : vector<8x1xi1> to vector<8x1xi1>
    %1177 = vector.broadcast %1176 : vector<8x1xi1> to vector<8x128xi1>
    %1178 = arith.select %1177, %1172, %1120 : vector<8x128xi1>, vector<8x128xf32>
    %1179 = vector.shape_cast %1125 : vector<8x1xi1> to vector<8x1xi1>
    %1180 = vector.broadcast %1179 : vector<8x1xi1> to vector<8x128xi1>
    %1181 = arith.select %1180, %1175, %1121 : vector<8x128xi1>, vector<8x128xf32>
    %cst_290 = arith.constant 0.000000e+00 : f32
    %1182 = vector.shape_cast %1123 : vector<8x1xi1> to vector<8x1xi1>
    %1183 = vector.broadcast %1182 : vector<8x1xi1> to vector<8x128xi1>
    %1184 = vector.broadcast %cst_290 : f32 to vector<8x128xf32>
    %1185 = arith.select %1183, %1172, %1184 : vector<8x128xi1>, vector<8x128xf32>
    %c48_291 = arith.constant 48 : index
    %c0_292 = arith.constant 0 : index
    %1186 = vector.load %arg12[%c48_291, %c0_292] : memref<64x256xf32, #tpu.memory_space<vmem>>, vector<8x128xf32>
    tpu.vector_store %arg12[%c48_291, %c0_292], %1185 {strides = array<i32>} : memref<64x256xf32, #tpu.memory_space<vmem>>, vector<8x128xf32>,
    %cst_293 = arith.constant 0.000000e+00 : f32
    %1187 = vector.shape_cast %1125 : vector<8x1xi1> to vector<8x1xi1>
    %1188 = vector.broadcast %1187 : vector<8x1xi1> to vector<8x128xi1>
    %1189 = vector.broadcast %cst_293 : f32 to vector<8x128xf32>
    %1190 = arith.select %1188, %1175, %1189 : vector<8x128xi1>, vector<8x128xf32>
    %c8_294 = arith.constant 8 : index
    %c128_295 = arith.constant 128 : index
    %1191 = vector.load %arg12[%c8_294, %c128_295] : memref<64x256xf32, #tpu.memory_space<vmem>>, vector<8x128xf32>
    tpu.vector_store %arg12[%c8_294, %c128_295], %1190 {strides = array<i32>} : memref<64x256xf32, #tpu.memory_space<vmem>>, vector<8x128xf32>,
    %1192 = tpu.concatenate %1178, %1181 in 1 : vector<8x128xf32>, vector<8x128xf32> -> vector<8x256xf32>
    %1193 = arith.truncf %1192 : vector<8x256xf32> to vector<8x256xbf16>
    %c0_296 = arith.constant 0 : index
    %c0_297 = arith.constant 0 : index
    %1194 = vector.load %arg9[%c0_296, %c0_297] : memref<256x768xbf16, #tpu.memory_space<vmem>>, vector<256x768xbf16>
    %cst_298 = arith.constant dense<0.000000e+00> : vector<8x768xf32>
    %1195 = tpu.matmul %1193, %1194, %cst_298 {dimension_numbers = #tpu.dot_dimension_numbers<[1], [0], [0], [1], [0, 0, 1, 1], [], []>} : vector<8x256xbf16>, vector<256x768xbf16>, vector<8x768xf32> -> vector<8x768xf32>
    %c56_299 = arith.constant 56 : index
    %c0_300 = arith.constant 0 : index
    %1196 = vector.load %arg13[%c56_299, %c0_300] : memref<64x768xf32, #tpu.memory_space<vmem>>, vector<8x384xf32>
    %c0_301 = arith.constant 0 : index
    %c384_302 = arith.constant 384 : index
    %1197 = vector.load %arg13[%c0_301, %c384_302] : memref<64x768xf32, #tpu.memory_space<vmem>>, vector<8x384xf32>
    %1198 = vector.extract_strided_slice %1192 {offsets = [0, 0], sizes = [8, 128], strides = [1, 1]} : vector<8x256xf32> to vector<8x128xf32>
    %1199 = vector.extract_strided_slice %1192 {offsets = [0, 128], sizes = [8, 128], strides = [1, 1]} : vector<8x256xf32> to vector<8x128xf32>
    %c7_i32_303 = arith.constant 7 : i32
    %1200 = vector.broadcast %c7_i32_303 : i32 to vector<8x1xi32>
    %1201 = arith.cmpi sgt, %0, %1200 : vector<8x1xi32>
    %c0_i32_304 = arith.constant 0 : i32
    %1202 = vector.broadcast %c0_i32_304 : i32 to vector<8x1xi32>
    %1203 = arith.cmpi sgt, %0, %1202 : vector<8x1xi32>
    %1204 = vector.extract_strided_slice %1196 {offsets = [0, 0], sizes = [8, 128], strides = [1, 1]} : vector<8x384xf32> to vector<8x128xf32>
    %1205 = vector.extract_strided_slice %1195 {offsets = [0, 0], sizes = [8, 128], strides = [1, 1]} : vector<8x768xf32> to vector<8x128xf32>
    %1206 = arith.addf %1204, %1205 : vector<8x128xf32>
    %1207 = arith.negf %1206 : vector<8x128xf32>
    %1208 = math.exp %1207 : vector<8x128xf32>
    %cst_305 = arith.constant 1.000000e+00 : f32
    %1209 = vector.broadcast %cst_305 : f32 to vector<8x128xf32>
    %1210 = arith.addf %1209, %1208 : vector<8x128xf32>
    %1211 = arith.divf %1209, %1210 : vector<8x128xf32>
    %1212 = vector.extract_strided_slice %1197 {offsets = [0, 0], sizes = [8, 128], strides = [1, 1]} : vector<8x384xf32> to vector<8x128xf32>
    %1213 = vector.extract_strided_slice %1195 {offsets = [0, 384], sizes = [8, 128], strides = [1, 1]} : vector<8x768xf32> to vector<8x128xf32>
    %1214 = arith.addf %1212, %1213 : vector<8x128xf32>
    %1215 = arith.negf %1214 : vector<8x128xf32>
    %1216 = math.exp %1215 : vector<8x128xf32>
    %cst_306 = arith.constant 1.000000e+00 : f32
    %1217 = vector.broadcast %cst_306 : f32 to vector<8x128xf32>
    %1218 = arith.addf %1217, %1216 : vector<8x128xf32>
    %1219 = arith.divf %1217, %1218 : vector<8x128xf32>
    %1220 = vector.extract_strided_slice %1196 {offsets = [0, 128], sizes = [8, 128], strides = [1, 1]} : vector<8x384xf32> to vector<8x128xf32>
    %1221 = vector.extract_strided_slice %1195 {offsets = [0, 128], sizes = [8, 128], strides = [1, 1]} : vector<8x768xf32> to vector<8x128xf32>
    %1222 = arith.addf %1220, %1221 : vector<8x128xf32>
    %1223 = arith.negf %1222 : vector<8x128xf32>
    %1224 = math.exp %1223 : vector<8x128xf32>
    %cst_307 = arith.constant 1.000000e+00 : f32
    %1225 = vector.broadcast %cst_307 : f32 to vector<8x128xf32>
    %1226 = arith.addf %1225, %1224 : vector<8x128xf32>
    %1227 = arith.divf %1225, %1226 : vector<8x128xf32>
    %1228 = vector.extract_strided_slice %1197 {offsets = [0, 128], sizes = [8, 128], strides = [1, 1]} : vector<8x384xf32> to vector<8x128xf32>
    %1229 = vector.extract_strided_slice %1195 {offsets = [0, 512], sizes = [8, 128], strides = [1, 1]} : vector<8x768xf32> to vector<8x128xf32>
    %1230 = arith.addf %1228, %1229 : vector<8x128xf32>
    %1231 = arith.negf %1230 : vector<8x128xf32>
    %1232 = math.exp %1231 : vector<8x128xf32>
    %cst_308 = arith.constant 1.000000e+00 : f32
    %1233 = vector.broadcast %cst_308 : f32 to vector<8x128xf32>
    %1234 = arith.addf %1233, %1232 : vector<8x128xf32>
    %1235 = arith.divf %1233, %1234 : vector<8x128xf32>
    %1236 = vector.extract_strided_slice %1196 {offsets = [0, 256], sizes = [8, 128], strides = [1, 1]} : vector<8x384xf32> to vector<8x128xf32>
    %1237 = vector.extract_strided_slice %1195 {offsets = [0, 256], sizes = [8, 128], strides = [1, 1]} : vector<8x768xf32> to vector<8x128xf32>
    %1238 = arith.addf %1237, %642 : vector<8x128xf32>
    %1239 = arith.mulf %1211, %1238 : vector<8x128xf32>
    %1240 = arith.addf %1236, %1239 : vector<8x128xf32>
    %1241 = math.tanh %1240 : vector<8x128xf32>
    %1242 = vector.extract_strided_slice %1197 {offsets = [0, 256], sizes = [8, 128], strides = [1, 1]} : vector<8x384xf32> to vector<8x128xf32>
    %1243 = vector.extract_strided_slice %1195 {offsets = [0, 640], sizes = [8, 128], strides = [1, 1]} : vector<8x768xf32> to vector<8x128xf32>
    %1244 = arith.addf %1243, %645 : vector<8x128xf32>
    %1245 = arith.mulf %1219, %1244 : vector<8x128xf32>
    %1246 = arith.addf %1242, %1245 : vector<8x128xf32>
    %1247 = math.tanh %1246 : vector<8x128xf32>
    %1248 = arith.subf %1198, %1241 : vector<8x128xf32>
    %1249 = arith.mulf %1227, %1248 : vector<8x128xf32>
    %1250 = arith.addf %1241, %1249 : vector<8x128xf32>
    %1251 = arith.subf %1199, %1247 : vector<8x128xf32>
    %1252 = arith.mulf %1235, %1251 : vector<8x128xf32>
    %1253 = arith.addf %1247, %1252 : vector<8x128xf32>
    %cst_309 = arith.constant 0.000000e+00 : f32
    %1254 = vector.shape_cast %1201 : vector<8x1xi1> to vector<8x1xi1>
    %1255 = vector.broadcast %1254 : vector<8x1xi1> to vector<8x128xi1>
    %1256 = vector.broadcast %cst_309 : f32 to vector<8x128xf32>
    %1257 = arith.select %1255, %1250, %1256 : vector<8x128xi1>, vector<8x128xf32>
    %c56_310 = arith.constant 56 : index
    %c0_311 = arith.constant 0 : index
    %1258 = vector.load %arg12[%c56_310, %c0_311] : memref<64x256xf32, #tpu.memory_space<vmem>>, vector<8x128xf32>
    tpu.vector_store %arg12[%c56_310, %c0_311], %1257 {strides = array<i32>} : memref<64x256xf32, #tpu.memory_space<vmem>>, vector<8x128xf32>,
    %cst_312 = arith.constant 0.000000e+00 : f32
    %1259 = vector.shape_cast %1203 : vector<8x1xi1> to vector<8x1xi1>
    %1260 = vector.broadcast %1259 : vector<8x1xi1> to vector<8x128xi1>
    %1261 = vector.broadcast %cst_312 : f32 to vector<8x128xf32>
    %1262 = arith.select %1260, %1253, %1261 : vector<8x128xi1>, vector<8x128xf32>
    %c0_313 = arith.constant 0 : index
    %c128_314 = arith.constant 128 : index
    %1263 = vector.load %arg12[%c0_313, %c128_314] : memref<64x256xf32, #tpu.memory_space<vmem>>, vector<8x128xf32>
    tpu.vector_store %arg12[%c0_313, %c128_314], %1262 {strides = array<i32>} : memref<64x256xf32, #tpu.memory_space<vmem>>, vector<8x128xf32>,
    return
  }
}

</mosaic_0001>

<bundles_post_ra>
// kernel: inner_path_forward.1
= control target key start
LH: loop header
LB: loop body
LE: loop exit
PB: predicated region body
PF: predicated region fallthrough
CT: control target
= control target key end

     0   :  { %17 = vsyncpa [#allocation5], 0  ;;  %s21391_s0 = inlined_call_operand.vmem [shape: bf16[64,128], index: 0, kind: input, shape index: {}]   ;;  %s21392_s1 = inlined_call_operand.vmem [shape: s32[8,1], index: 1, kind: input, shape index: {}]   ;;  %s21393_s2 = inlined_call_operand.hbm [shape: bf16[128,768], index: 2, kind: input, shape index: {}]   ;;  %s21394_s3 = inlined_call_operand.vmem [shape: f32[1,768], index: 3, kind: input, shape index: {}]   ;;  %s21395_s4 = inlined_call_operand.hbm [shape: bf16[256,768], index: 4, kind: input, shape index: {}]   ;;  %s21396_s5 = inlined_call_operand.vmem [shape: f32[1,128], index: 5, kind: input, shape index: {}]   ;;  %s21397_s6 = inlined_call_operand.vmem [shape: f32[1,128], index: 6, kind: input, shape index: {}]   ;;  %s21398_s7 = inlined_call_operand.hbm [shape: bf16[256,768], index: 7, kind: input, shape index: {}]   ;;  %s21399_s8 = inlined_call_operand.vmem [shape: f32[1,768], index: 8, kind: input, shape index: {}]   ;;  %s21400_s9 = inlined_call_operand.hbm [shape: bf16[256,768], index: 9, kind: input, shape index: {}]   ;;  %s21401_s10 = inlined_call_operand.vmem [shape: f32[1,128], index: 10, kind: input, shape index: {}]   ;;  %s21402_s11 = inlined_call_operand.vmem [shape: f32[1,128], index: 11, kind: input, shape index: {}]   ;;  %s21403_s12 = inlined_call_operand.vmem [shape: f32[64,256], index: 12, kind: output, shape index: {}]  }
   0x1   :  { %18 = vsyncpa [#allocation7], 0 }
   0x2   :  { %19 = vsyncpa [#allocation10], 0  ;;  %s17611_s21 = smov [#allocation6]   ;;  %s17612_s23 = smov [#allocation4]  }
   0x3   :  { %s43_s22 = sshll.u32 %s17611_s21, 4  ;;  %s29_s24 = sshll.u32 %s17612_s23, 4  ;;  %s44_s22 = int_to_ptr.vmem [resolvable:$true] %s43_s22  ;;  %s17683_s24 = int_to_ptr.vmem [resolvable:$true] %s29_s24 }
   0x4   :  { %s17517_s27 = scalar_lea.hbm %s21395_s4, 12288 }
   0x5   :  { %p17518_p0 = scmp.ne.s32.totalorder %s21395_s4, %s17517_s27  ;;  %p17521_p1 = scmp.lt.u32.totalorder %s17517_s27, %s21395_s4 }
   0x7   :  { %p17523_p2 = pnand %p17521_p1, %p17518_p0 }
   0x9   :  { %17526 = shalt.err (!%p17523_p2)
}
   0xa   :  { %s17527_s14 = scalar_lea.vmem %s44_s22, 12288  ;;  %p17532_p4 = scmp.lt.s32.totalorder %s44_s22, %s44_s22 }
   0xb   :  { %p17528_p3 = scmp.ne.s32.totalorder %s44_s22, %s17527_s14  ;;  %p17533_p5 = scmp.lt.s32.totalorder %s17527_s14, %s17527_s14 }
   0xd   :  { %p17534_p6 = por %p17533_p5, %p17532_p4 }
   0xf   :  { %p17535_p7 = pnand %p17534_p6, %p17528_p3 }
  0x11   :  { %17538 = shalt.err (!%p17535_p7)
}
  0x12   :  { %s17613_s15 = smov 384   ;;  %s17614_s16 = smov 24  }
  0x13   :  { %49 = dma.hbm_to_vmem [thread:$0]  %s21395_s4, 12288, %s44_s22, [#allocation7], %s17613_s15, %s17613_s15, %s17614_s16  }
  0x14   :  { %s17539_s21 = scalar_lea.hbm %s21393_s2, 6144 }
  0x15   :  { %p17540_p8 = scmp.ne.s32.totalorder %s21393_s2, %s17539_s21  ;;  %p17543_p9 = scmp.lt.u32.totalorder %s17539_s21, %s21393_s2 }
  0x17   :  { %p17545_p10 = pnand %p17543_p9, %p17540_p8 }
  0x19   :  { %17548 = shalt.err (!%p17545_p10)
}
  0x1a   :  { %s17549_s28 = scalar_lea.vmem %s17683_s24, 6144  ;;  %p17554_p12 = scmp.lt.s32.totalorder %s17683_s24, %s17683_s24 }
  0x1b   :  { %p17550_p11 = scmp.ne.s32.totalorder %s17683_s24, %s17549_s28  ;;  %p17555_p13 = scmp.lt.s32.totalorder %s17549_s28, %s17549_s28 }
  0x1d   :  { %p17556_p0 = por %p17555_p13, %p17554_p12 }
  0x1f   :  { %p17557_p1 = pnand %p17556_p0, %p17550_p11 }
  0x21   :  { %17560 = shalt.err (!%p17557_p1)
}
  0x22   :  { %35 = dma.hbm_to_vmem [thread:$0]  %s21393_s2, 6144, %s17683_s24, [#allocation5], %s17613_s15, %s17613_s15, %s17614_s16  }
  0x23   :  { %s17615_s29 = smov [#allocation8]   ;;  %s17616_s13 = smov [#allocation9]  }
  0x24   :  { %s59_s30 = sshll.u32 %s17615_s29, 4  ;;  %s73_s14 = sshll.u32 %s17616_s13, 4  ;;  %s60_s30 = int_to_ptr.vmem [resolvable:$true] %s59_s30  ;;  %s17720_s14 = int_to_ptr.vmem [resolvable:$true] %s73_s14 }
  0x25   :  { %s17561_s19 = scalar_lea.hbm %s21398_s7, 12288 }
  0x26   :  { %p17562_p2 = scmp.ne.s32.totalorder %s21398_s7, %s17561_s19  ;;  %p17565_p3 = scmp.lt.u32.totalorder %s17561_s19, %s21398_s7 }
  0x28   :  { %p17567_p4 = pnand %p17565_p3, %p17562_p2 }
  0x2a   :  { %17570 = shalt.err (!%p17567_p4)
}
  0x2b   :  { %s17571_s2 = scalar_lea.vmem %s60_s30, 12288  ;;  %p17576_p6 = scmp.lt.s32.totalorder %s60_s30, %s60_s30 }
  0x2c   :  { %p17572_p5 = scmp.ne.s32.totalorder %s60_s30, %s17571_s2  ;;  %p17577_p7 = scmp.lt.s32.totalorder %s17571_s2, %s17571_s2 }
  0x2e   :  { %p17578_p8 = por %p17577_p7, %p17576_p6 }
  0x30   :  { %p17579_p9 = pnand %p17578_p8, %p17572_p5 }
  0x32   :  { %17582 = shalt.err (!%p17579_p9)
}
  0x33   :  { %65 = dma.hbm_to_vmem [thread:$0]  %s21398_s7, 12288, %s60_s30, [#allocation7], %s17613_s15, %s17613_s15, %s17614_s16  }
  0x34   :  { %s17583_s4 = scalar_lea.hbm %s21400_s9, 12288 }
  0x35   :  { %p17584_p10 = scmp.ne.s32.totalorder %s21400_s9, %s17583_s4  ;;  %p17587_p11 = scmp.lt.u32.totalorder %s17583_s4, %s21400_s9 }
  0x37   :  { %p17589_p12 = pnand %p17587_p11, %p17584_p10 }
  0x39   :  { %17592 = shalt.err (!%p17589_p12)
}
  0x3a   :  { %s17593_s18 = scalar_lea.vmem %s17720_s14, 12288  ;;  %p17598_p0 = scmp.lt.s32.totalorder %s17720_s14, %s17720_s14 }
  0x3b   :  { %p17594_p13 = scmp.ne.s32.totalorder %s17720_s14, %s17593_s18  ;;  %p17599_p1 = scmp.lt.s32.totalorder %s17593_s18, %s17593_s18 }
  0x3d   :  { %p17600_p2 = por %p17599_p1, %p17598_p0 }
  0x3f   :  { %p17601_p3 = pnand %p17600_p2, %p17594_p13 }
  0x41   :  { %17604 = shalt.err (!%p17601_p3)
}
  0x42   :  { %79 = dma.hbm_to_vmem [thread:$0]  %s21400_s9, 12288, %s17720_s14, [#allocation10], %s17613_s15, %s17613_s15, %s17614_s16  }
  0x43   :  { %17605 = dma.done.wait [#allocation5], 6144  }
  0x44   :  { %17606 = vsyncadd [#allocation5], 4294961152 }
  0x45   :  { %17607 = dma.done.wait [#allocation7], 24576  }
  0x46   :  { %17608 = vsyncadd [#allocation7], 4294942720 }
  0x47   :  { %17609 = dma.done.wait [#allocation10], 12288  }
  0x48   :  { %17610 = vsyncadd [#allocation10], 4294955008  ;;  %v21410_v0 = vmov 0   ;;  %v15636_v1 = vld [vmem:[#allocation4 + $0x4] ss:$24 sps:$4 sm:$0xff]   ;;  %v17773_v45 = vld [vmem:[%s21391_s0 + $0x8] sm:$0xff]  }
  0x49   :  { %555 = vmatprep.mubr.bf16.mxu1 %v21410_v0  ;;  %482 = vmatprep.mubr.bf16.mxu0 %v21410_v0  ;;  %v15638_v2 = vld [vmem:[#allocation4 + $0xc] ss:$24 sps:$4 sm:$0xff]   ;;  %v15640_v3 = vld [vmem:[#allocation4] ss:$24 sps:$4 sm:$0xff]   ;;  %v15644_v6 = vld [vmem:[#allocation4 + $0x3c] ss:$24 sps:$4 sm:$0xff]  }
  0x4a   :  { %15634 = vset.pattern.permute.xlu0 %v21410_v0  ;;  %15635 = vset.pattern.permute.xlu1 %v21410_v0  ;;  %v15641_v4 = vld [vmem:[#allocation4 + $0x8] ss:$24 sps:$4 sm:$0xff]   ;;  %v15642_v5 = vld [vmem:[#allocation4 + $0x34] ss:$24 sps:$4 sm:$0xff]   ;;  %v15647_v8 = vld [vmem:[#allocation4 + $0x38] ss:$24 sps:$4 sm:$0xff]  }
  0x4b   :  { %450 = vmatprep.subr.bf16.mxu0 %v15636_v1  ;;  %523 = vmatprep.subr.bf16.mxu1 %v15638_v2  ;;  %v15646_v7 = vld [vmem:[#allocation4 + $0x30] ss:$24 sps:$4 sm:$0xff]   ;;  %v15648_v9 = vld [vmem:[#allocation4 + $0x64] ss:$24 sps:$4 sm:$0xff]   ;;  %v15652_v11 = vld [vmem:[#allocation4 + $0x60] ss:$24 sps:$4 sm:$0xff]  }
  0x4c   :  { %451 = vmatpush1.bf16.msra.mxu0 %v15640_v3  ;;  %524 = vmatpush1.bf16.msra.mxu1 %v15641_v4  ;;  %v15650_v10 = vld [vmem:[#allocation4 + $0x6c] ss:$24 sps:$4 sm:$0xff]   ;;  %v15653_v12 = vld [vmem:[#allocation4 + $0x68] ss:$24 sps:$4 sm:$0xff]   ;;  %v15656_v14 = vld [vmem:[#allocation4 + $0x9c] ss:$24 sps:$4 sm:$0xff]  }
  0x4d   :  { %452 = vmatprep.subr.bf16.mxu0 %v15642_v5  ;;  %525 = vmatprep.subr.bf16.mxu1 %v15644_v6  ;;  %v15654_v13 = vld [vmem:[#allocation4 + $0x94] ss:$24 sps:$4 sm:$0xff]   ;;  %v15658_v15 = vld [vmem:[#allocation4 + $0x90] ss:$24 sps:$4 sm:$0xff]   ;;  %v15660_v17 = vld [vmem:[#allocation4 + $0xc4] ss:$24 sps:$4 sm:$0xff]  }
  0x4e   :  { %v15659_v16 = vld [vmem:[#allocation4 + $0x98] ss:$24 sps:$4 sm:$0xff]   ;;  %v15662_v18 = vld [vmem:[#allocation4 + $0xcc] ss:$24 sps:$4 sm:$0xff]   ;;  %v15665_v20 = vld [vmem:[#allocation4 + $0xc8] ss:$24 sps:$4 sm:$0xff]  }
  0x4f   :  { %v15664_v19 = vld [vmem:[#allocation4 + $0xc0] ss:$24 sps:$4 sm:$0xff]   ;;  %v15666_v21 = vld [vmem:[#allocation4 + $0xf4] ss:$24 sps:$4 sm:$0xff]   ;;  %v15670_v23 = vld [vmem:[#allocation4 + $0xf0] ss:$24 sps:$4 sm:$0xff]  }
  0x50   :  { %453 = vmatpush1.bf16.msra.mxu0 %v15646_v7  ;;  %526 = vmatpush1.bf16.msra.mxu1 %v15647_v8  ;;  %v15668_v22 = vld [vmem:[#allocation4 + $0xfc] ss:$24 sps:$4 sm:$0xff]   ;;  %v15671_v24 = vld [vmem:[#allocation4 + $0xf8] ss:$24 sps:$4 sm:$0xff]   ;;  %v15674_v26 = vld [vmem:[#allocation4 + $0x12c] ss:$24 sps:$4 sm:$0xff]  }
  0x51   :  { %454 = vmatprep.subr.bf16.mxu0 %v15648_v9  ;;  %527 = vmatprep.subr.bf16.mxu1 %v15650_v10  ;;  %v15672_v25 = vld [vmem:[#allocation4 + $0x124] ss:$24 sps:$4 sm:$0xff]   ;;  %v15676_v27 = vld [vmem:[#allocation4 + $0x120] ss:$24 sps:$4 sm:$0xff]   ;;  %v15678_v29 = vld [vmem:[#allocation4 + $0x154] ss:$24 sps:$4 sm:$0xff]  }
  0x52   :  { %v15677_v28 = vld [vmem:[#allocation4 + $0x128] ss:$24 sps:$4 sm:$0xff]   ;;  %v15680_v30 = vld [vmem:[#allocation4 + $0x15c] ss:$24 sps:$4 sm:$0xff]   ;;  %v15683_v32 = vld [vmem:[#allocation4 + $0x158] ss:$24 sps:$4 sm:$0xff]  }
  0x53   :  { %v15682_v31 = vld [vmem:[#allocation4 + $0x150] ss:$24 sps:$4 sm:$0xff]   ;;  %v15687_v33 = vld [vmem:[#allocation4 + $0x14] ss:$24 sps:$4 sm:$0xff]   ;;  %v15690_v34 = vld [vmem:[#allocation6 + $0x4] ss:$24 sps:$4 sm:$0xff]  }
  0x54   :  { %455 = vmatpush1.bf16.msra.mxu0 %v15652_v11  ;;  %528 = vmatpush1.bf16.msra.mxu1 %v15653_v12  ;;  %v17764_v35 = vld [vmem:[%s21391_s0] sm:$0xff]   ;;  %v15685_v36 = vld [vmem:[#allocation4 + $0x10] ss:$24 sps:$4 sm:$0xff]   ;;  %v15696_v39 = vld [vmem:[#allocation6 + $0x34] ss:$24 sps:$4 sm:$0xff]  }
  0x55   :  { %456 = vmatprep.subr.bf16.mxu0 %v15654_v13  ;;  %529 = vmatprep.subr.bf16.mxu1 %v15656_v14  ;;  %v15688_v37 = vld [vmem:[#allocation6] ss:$24 sps:$4 sm:$0xff]   ;;  %v15693_v38 = vld [vmem:[#allocation4 + $0x44] ss:$24 sps:$4 sm:$0xff]   ;;  %v15694_v41 = vld [vmem:[#allocation6 + $0x30] ss:$24 sps:$4 sm:$0xff]  }
  0x56   :  { %v15691_v40 = vld [vmem:[#allocation4 + $0x40] ss:$24 sps:$4 sm:$0xff]   ;;  %v15699_v42 = vld [vmem:[#allocation4 + $0x74] ss:$24 sps:$4 sm:$0xff]   ;;  %v15702_v43 = vld [vmem:[#allocation6 + $0x64] ss:$24 sps:$4 sm:$0xff]  }
  0x57   :  { %v15697_v44 = vld [vmem:[#allocation4 + $0x70] ss:$24 sps:$4 sm:$0xff]   ;;  %v15700_v46 = vld [vmem:[#allocation6 + $0x60] ss:$24 sps:$4 sm:$0xff]   ;;  %v15706_v47 = vld [vmem:[#allocation4 + $0xa4] ss:$24 sps:$4 sm:$0xff]  }
  0x58   :  { %457 = vmatpush1.bf16.msra.mxu0 %v15658_v15  ;;  %530 = vmatpush1.bf16.msra.mxu1 %v15659_v16  ;;  %v15709_v48 = vld [vmem:[#allocation6 + $0x94] ss:$24 sps:$4 sm:$0xff]   ;;  %v15704_v49 = vld [vmem:[#allocation4 + $0xa0] ss:$24 sps:$4 sm:$0xff]   ;;  %v15707_v50 = vld [vmem:[#allocation6 + $0x90] ss:$24 sps:$4 sm:$0xff]  }
  0x59   :  { %458 = vmatprep.subr.bf16.mxu0 %v15660_v17  ;;  %531 = vmatprep.subr.bf16.mxu1 %v15662_v18  ;;  %v15712_v51 = vld [vmem:[#allocation4 + $0xd4] ss:$24 sps:$4 sm:$0xff]   ;;  %v15715_v52 = vld [vmem:[#allocation6 + $0xc4] ss:$24 sps:$4 sm:$0xff]   ;;  %v15710_v53 = vld [vmem:[#allocation4 + $0xd0] ss:$24 sps:$4 sm:$0xff]  }
  0x5a   :  { %v15713_v54 = vld [vmem:[#allocation6 + $0xc0] ss:$24 sps:$4 sm:$0xff]   ;;  %v17782_v55 = vld [vmem:[%s21391_s0 + $0x10] sm:$0xff]   ;;  %v15719_v56 = vld [vmem:[#allocation4 + $0x104] ss:$24 sps:$4 sm:$0xff]  }
  0x5b   :  { %v15722_v57 = vld [vmem:[#allocation6 + $0xf4] ss:$24 sps:$4 sm:$0xff]   ;;  %v15717_v58 = vld [vmem:[#allocation4 + $0x100] ss:$24 sps:$4 sm:$0xff]   ;;  %v15720_v59 = vld [vmem:[#allocation6 + $0xf0] ss:$24 sps:$4 sm:$0xff]  }
  0x5c   :  { %459 = vmatpush1.bf16.msra.mxu0 %v15664_v19  ;;  %532 = vmatpush1.bf16.msra.mxu1 %v15665_v20  ;;  %v15725_v60 = vld [vmem:[#allocation4 + $0x134] ss:$24 sps:$4 sm:$0xff]   ;;  %v15728_v61 = vld [vmem:[#allocation6 + $0x124] ss:$24 sps:$4 sm:$0xff]   ;;  %v15723_v62 = vld [vmem:[#allocation4 + $0x130] ss:$24 sps:$4 sm:$0xff]  }
  0x5d   :  { %460 = vmatprep.subr.bf16.mxu0 %v15666_v21  ;;  %533 = vmatprep.subr.bf16.mxu1 %v15668_v22  ;;  %v15726_v63 = vld [vmem:[#allocation6 + $0x120] ss:$24 sps:$4 sm:$0xff]   ;;  %v15732_v2 = vld [vmem:[#allocation4 + $0x164] ss:$24 sps:$4 sm:$0xff]   ;;  %v15735_v3 = vld [vmem:[#allocation6 + $0x154] ss:$24 sps:$4 sm:$0xff]  }
  0x5e   :  { %v17791_v1 = vld [vmem:[%s21391_s0 + $0x18] sm:$0xff]   ;;  %v15733_v5 = vld [vmem:[#allocation6 + $0x150] ss:$24 sps:$4 sm:$0xff]   ;;  %v17795_v7 = vld [vmem:[#allocation6 + $0xc] ss:$24 sps:$4 sm:$0xff]  }
  0x5f   :  { %v15730_v4 = vld [vmem:[#allocation4 + $0x160] ss:$24 sps:$4 sm:$0xff]   ;;  %v15738_v6 = vld [vmem:[#allocation6 + $0x184] ss:$24 sps:$4 sm:$0xff]   ;;  %v15744_v10 = vld [vmem:[#allocation6 + $0x1b4] ss:$24 sps:$4 sm:$0xff]  }
  0x60   :  { %461 = vmatpush1.bf16.msra.mxu0 %v15670_v23  ;;  %534 = vmatpush1.bf16.msra.mxu1 %v15671_v24  ;;  %v15736_v8 = vld [vmem:[#allocation6 + $0x180] ss:$24 sps:$4 sm:$0xff]   ;;  %v17802_v11 = vld [vmem:[#allocation6 + $0x3c] ss:$24 sps:$4 sm:$0xff]   ;;  %v15742_v12 = vld [vmem:[#allocation6 + $0x1b0] ss:$24 sps:$4 sm:$0xff]  }
  0x61   :  { %462 = vmatprep.subr.bf16.mxu0 %v15672_v25  ;;  %535 = vmatprep.subr.bf16.mxu1 %v15674_v26  ;;  %v17799_v9 = vld [vmem:[#allocation6 + $0x8] ss:$24 sps:$4 sm:$0xff]   ;;  %v17805_v13 = vld [vmem:[#allocation6 + $0x38] ss:$24 sps:$4 sm:$0xff]   ;;  %v15750_v14 = vld [vmem:[#allocation6 + $0x1e4] ss:$24 sps:$4 sm:$0xff]  }
  0x62   :  { %v17809_v15 = vld [vmem:[#allocation6 + $0x6c] ss:$24 sps:$4 sm:$0xff]   ;;  %v15748_v16 = vld [vmem:[#allocation6 + $0x1e0] ss:$24 sps:$4 sm:$0xff]   ;;  %v17816_v19 = vld [vmem:[#allocation6 + $0x9c] ss:$24 sps:$4 sm:$0xff]  }
  0x63   :  { %v17812_v17 = vld [vmem:[#allocation6 + $0x68] ss:$24 sps:$4 sm:$0xff]   ;;  %v15756_v18 = vld [vmem:[#allocation6 + $0x214] ss:$24 sps:$4 sm:$0xff]   ;;  %v17818_v21 = vld [vmem:[#allocation6 + $0x98] ss:$24 sps:$4 sm:$0xff]  }
  0x64   :  { %463 = vmatpush1.bf16.msra.mxu0 %v15676_v27  ;;  %536 = vmatpush1.bf16.msra.mxu1 %v15677_v28  ;;  %v15754_v20 = vld [vmem:[#allocation6 + $0x210] ss:$24 sps:$4 sm:$0xff]   ;;  %v15762_v22 = vld [vmem:[#allocation6 + $0x244] ss:$24 sps:$4 sm:$0xff]   ;;  %v15760_v24 = vld [vmem:[#allocation6 + $0x240] ss:$24 sps:$4 sm:$0xff]  }
  0x65   :  { %464 = vmatprep.subr.bf16.mxu0 %v15678_v29  ;;  %537 = vmatprep.subr.bf16.mxu1 %v15680_v30  ;;  %v17823_v23 = vld [vmem:[#allocation6 + $0xcc] ss:$24 sps:$4 sm:$0xff]   ;;  %v17826_v25 = vld [vmem:[#allocation6 + $0xc8] ss:$24 sps:$4 sm:$0xff]   ;;  %v17830_v27 = vld [vmem:[#allocation6 + $0xfc] ss:$24 sps:$4 sm:$0xff]  }
  0x66   :  { %v15768_v26 = vld [vmem:[#allocation6 + $0x274] ss:$24 sps:$4 sm:$0xff]   ;;  %v15766_v28 = vld [vmem:[#allocation6 + $0x270] ss:$24 sps:$4 sm:$0xff]   ;;  %v15774_v30 = vld [vmem:[#allocation6 + $0x2a4] ss:$24 sps:$4 sm:$0xff]  }
  0x67   :  { %v17832_v29 = vld [vmem:[#allocation6 + $0xf8] ss:$24 sps:$4 sm:$0xff]  }
  0x68   :  { %465 = vmatpush1.bf16.msra.mxu0 %v15682_v31  ;;  %538 = vmatpush1.bf16.msra.mxu1 %v15683_v32  ;;  %v17837_v31 = vld [vmem:[#allocation6 + $0x12c] ss:$24 sps:$4 sm:$0xff]   ;;  %v15772_v32 = vld [vmem:[#allocation6 + $0x2a0] ss:$24 sps:$4 sm:$0xff]  }
  0x69   :  { %596 = vmatprep.subr.bf16.mxu0 %v15687_v33  ;;  %1307 = vmatprep.subr.bf16.mxu1 %v15690_v34  ;;  %v17840_v33 = vld [vmem:[#allocation6 + $0x128] ss:$24 sps:$4 sm:$0xff]   ;;  %v15780_v34 = vld [vmem:[#allocation6 + $0x2d4] ss:$24 sps:$4 sm:$0xff]  }
  0x6b   :  { %556 = vmatmul.mubr.bf16.vlgmr.msra.gmra.mrb[0].mxu1 %v17764_v35  ;;  %483 = vmatmul.mubr.bf16.vlgmr.msra.gmra.mrb[0].mxu0 %v17764_v35 }
  0x6c   :  { %597 = vmatpush1.bf16.msra.mxu0 %v15685_v36  ;;  %1308 = vmatpush1.bf16.msra.mxu1 %v15688_v37  ;;  %v15778_v36 = vld [vmem:[#allocation6 + $0x2d0] ss:$24 sps:$4 sm:$0xff]  }
  0x6d   :  { %598 = vmatprep.subr.bf16.mxu0 %v15693_v38  ;;  %1309 = vmatprep.subr.bf16.mxu1 %v15696_v39  ;;  %v17846_v37 = vld [vmem:[#allocation6 + $0x158] ss:$24 sps:$4 sm:$0xff]   ;;  %v17850_v38 = vld [vmem:[#allocation6 + $0x18c] ss:$24 sps:$4 sm:$0xff]  }
  0x6e   :  { %492 = vmatprep.mubr.bf16.mxu0 %v21410_v0  ;;  %565 = vmatprep.mubr.bf16.mxu1 %v21410_v0  ;;  %v15789_v39 = vld [vmem:[#allocation6 + $0x14] ss:$24 sps:$4 sm:$0xff]  }
  0x70   :  { %599 = vmatpush1.bf16.msra.mxu0 %v15691_v40  ;;  %1310 = vmatpush1.bf16.msra.mxu1 %v15694_v41  ;;  %v17854_v40 = vld [vmem:[#allocation6 + $0x188] ss:$24 sps:$4 sm:$0xff]  }
  0x71   :  { %600 = vmatprep.subr.bf16.mxu0 %v15699_v42  ;;  %1311 = vmatprep.subr.bf16.mxu1 %v15702_v43  ;;  %v15787_v41 = vld [vmem:[#allocation6 + $0x10] ss:$24 sps:$4 sm:$0xff]   ;;  %v17857_v42 = vld [vmem:[#allocation6 + $0x1bc] ss:$24 sps:$4 sm:$0xff]  }
  0x72   :  { %v15795_v43 = vld [vmem:[#allocation6 + $0x44] ss:$24 sps:$4 sm:$0xff]  }
  0x73   :  { %493 = vmatmul.mubr.bf16.gmra.mrb[4].mxu0 %v17773_v45  ;;  %566 = vmatmul.mubr.bf16.gmra.mrb[4].mxu1 %v17773_v45 }
  0x74   :  { %601 = vmatpush1.bf16.msra.mxu0 %v15697_v44  ;;  %1312 = vmatpush1.bf16.msra.mxu1 %v15700_v46  ;;  %v17860_v44 = vld [vmem:[#allocation6 + $0x1b8] ss:$24 sps:$4 sm:$0xff]   ;;  %v17863_v46 = vld [vmem:[#allocation6 + $0x1ec] ss:$24 sps:$4 sm:$0xff]  }
  0x75   :  { %602 = vmatprep.subr.bf16.mxu0 %v15706_v47  ;;  %1313 = vmatprep.subr.bf16.mxu1 %v15709_v48  ;;  %v15801_v47 = vld [vmem:[#allocation6 + $0x74] ss:$24 sps:$4 sm:$0xff]   ;;  %v17869_v48 = vld [vmem:[%s21392_s1] sm:$0xff] }
  0x76   :  { %502 = vmatprep.mubr.bf16.mxu0 %v21410_v0  ;;  %575 = vmatprep.mubr.bf16.mxu1 %v21410_v0  ;;  %vm1437_vm0 = vcmp.gt.s32.totalorder %v17869_v48, 7  ;;  %vm1436_vm1 = vcmp.gt.s32.totalorder %v17869_v48, 0  ;;  %vm2202_vm2 = vcmp.gt.s32.totalorder %v17869_v48, 6  ;;  %vm2969_vm3 = vcmp.gt.s32.totalorder %v17869_v48, 5 }
  0x77   :  { %vm2201_vm4 = vcmp.gt.s32.totalorder %v17869_v48, 1  ;;  %vm3736_vm5 = vcmp.gt.s32.totalorder %v17869_v48, 4  ;;  %v15855_v48 = vld [vmem:[#allocation6 + $0x2e4] ss:$24 sps:$4 sm:$0xff]  }
  0x78   :  { %603 = vmatpush1.bf16.msra.mxu0 %v15704_v49  ;;  %1314 = vmatpush1.bf16.msra.mxu1 %v15707_v50  ;;  %v17874_v49 = vld [vmem:[#allocation6 + $0x1e8] ss:$24 sps:$4 sm:$0xff]  }
  0x79   :  { %604 = vmatprep.subr.bf16.mxu0 %v15712_v51  ;;  %1315 = vmatprep.subr.bf16.mxu1 %v15715_v52  ;;  %v15799_v50 = vld [vmem:[#allocation6 + $0x70] ss:$24 sps:$4 sm:$0xff]   ;;  %v1486_v51 = vsel %vm1437_vm0, 1, %v21410_v0  ;;  %v17878_v52 = vld [vmem:[#allocation6 + $0x21c] ss:$24 sps:$4 sm:$0xff]  }
  0x7a   :  { %1488 = vperm.xlu0 %15634, %v1486_v51   ;;  %v15853_v51 = vld [vmem:[#allocation6 + $0x2e0] ss:$24 sps:$4 sm:$0xff]  }
  0x7b   :  { %503 = vmatmul.mubr.bf16.gmra.mrb[8].mxu0 %v17782_v55  ;;  %576 = vmatmul.mubr.bf16.gmra.mrb[8].mxu1 %v17782_v55 }
  0x7c   :  { %605 = vmatpush1.bf16.msra.mxu0 %v15710_v53  ;;  %1316 = vmatpush1.bf16.msra.mxu1 %v15713_v54  ;;  %v15807_v53 = vld [vmem:[#allocation6 + $0xa4] ss:$24 sps:$4 sm:$0xff]   ;;  %v1480_v54 = vsel %vm1436_vm1, 1, %v21410_v0 }
  0x7d   :  { %606 = vmatprep.subr.bf16.mxu0 %v15719_v56  ;;  %1317 = vmatprep.subr.bf16.mxu1 %v15722_v57  ;;  %v15805_v56 = vld [vmem:[#allocation6 + $0xa0] ss:$24 sps:$4 sm:$0xff]   ;;  %v17885_v57 = vld [vmem:[#allocation6 + $0x24c] ss:$24 sps:$4 sm:$0xff]  }
  0x7e   :  { %512 = vmatprep.mubr.bf16.mxu0 %v21410_v0  ;;  %585 = vmatprep.mubr.bf16.mxu1 %v21410_v0 }
  0x7f   :  { %1482 = vperm.xlu0 %15634, %v1480_v54  }
  0x80   :  { %607 = vmatpush1.bf16.msra.mxu0 %v15717_v58  ;;  %1318 = vmatpush1.bf16.msra.mxu1 %v15720_v59  ;;  %v15813_v58 = vld [vmem:[#allocation6 + $0xd4] ss:$24 sps:$4 sm:$0xff]   ;;  %v17889_v59 = vld [vmem:[#allocation6 + $0x248] ss:$24 sps:$4 sm:$0xff]  }
  0x81   :  { %608 = vmatprep.subr.bf16.mxu0 %v15725_v60  ;;  %1319 = vmatprep.subr.bf16.mxu1 %v15728_v61  ;;  %v15811_v60 = vld [vmem:[#allocation6 + $0xd0] ss:$24 sps:$4 sm:$0xff]   ;;  %v17891_v61 = vld [vmem:[#allocation6 + $0x27c] ss:$24 sps:$4 sm:$0xff]  }
  0x83   :  { %513 = vmatmul.mubr.bf16.gmra.mrb[12].mxu0 %v17791_v1  ;;  %586 = vmatmul.mubr.bf16.gmra.mrb[12].mxu1 %v17791_v1 }
  0x84   :  { %609 = vmatpush1.bf16.msra.mxu0 %v15723_v62  ;;  %1320 = vmatpush1.bf16.msra.mxu1 %v15726_v63  ;;  %v15819_v62 = vld [vmem:[#allocation6 + $0x104] ss:$24 sps:$4 sm:$0xff]   ;;  %v17895_v63 = vld [vmem:[#allocation6 + $0x278] ss:$24 sps:$4 sm:$0xff]  }
  0x85   :  { %610 = vmatprep.subr.bf16.mxu0 %v15732_v2  ;;  %1321 = vmatprep.subr.bf16.mxu1 %v15735_v3  ;;  %v17897_v2 = vld [vmem:[#allocation6 + $0x2ac] ss:$24 sps:$4 sm:$0xff]  }
  0x86   :  { %628 = vmatprep.mubr.bf16.mxu0 %v21410_v0  ;;  %1339 = vmatprep.mubr.bf16.mxu1 %v21410_v0  ;;  %v15825_v3 = vld [vmem:[#allocation6 + $0x134] ss:$24 sps:$4 sm:$0xff]  }
  0x88   :  { %611 = vmatpush1.bf16.msra.mxu0 %v15730_v4  ;;  %1322 = vmatpush1.bf16.msra.mxu1 %v15733_v5  ;;  %v17901_v4 = vld [vmem:[#allocation6 + $0x2a8] ss:$24 sps:$4 sm:$0xff]  }
  0x89   :  { %1323 = vmatprep.subr.bf16.mxu1 %v15738_v6  ;;  %1348 = vmatprep.subr.bf16.mxu0 %v17795_v7  ;;  %v15823_v5 = vld [vmem:[#allocation6 + $0x130] ss:$24 sps:$4 sm:$0xff]   ;;  %v17903_v6 = vld [vmem:[#allocation6 + $0x2dc] ss:$24 sps:$4 sm:$0xff]  }
  0x8b   :  { %629 = vmatmul.mubr.bf16.vlgmr.msra.gmra.mrb[16].mxu0 %v17764_v35  ;;  %v17844_v35 = vld [vmem:[#allocation6 + $0x15c] ss:$24 sps:$4 sm:$0xff]  }
  0x8c   :  { %1324 = vmatpush1.bf16.msra.mxu1 %v15736_v8  ;;  %1349 = vmatpush1.bf16.msra.mxu0 %v17799_v9  ;;  %v15831_v8 = vld [vmem:[#allocation6 + $0x164] ss:$24 sps:$4 sm:$0xff]  }
  0x8d   :  { %1325 = vmatprep.subr.bf16.mxu1 %v15744_v10  ;;  %1350 = vmatprep.subr.bf16.mxu0 %v17802_v11  ;;  %v17907_v10 = vld [vmem:[#allocation6 + $0x2d8] ss:$24 sps:$4 sm:$0xff]  }
  0x8e   :  { %638 = vmatprep.mubr.bf16.mxu0 %v21410_v0 }
  0x90   :  { %1326 = vmatpush1.bf16.msra.mxu1 %v15742_v12  ;;  %1351 = vmatpush1.bf16.msra.mxu0 %v17805_v13  ;;  %v15829_v12 = vld [vmem:[#allocation6 + $0x160] ss:$24 sps:$4 sm:$0xff]  }
  0x91   :  { %1327 = vmatprep.subr.bf16.mxu1 %v15750_v14  ;;  %1352 = vmatprep.subr.bf16.mxu0 %v17809_v15  ;;  %v15834_v14 = vld [vmem:[#allocation6 + $0x194] ss:$24 sps:$4 sm:$0xff]  }
  0x93   :  { %639 = vmatmul.mubr.bf16.gmra.mrb[20].mxu0 %v17773_v45  ;;  %v15793_v45 = vld [vmem:[#allocation6 + $0x40] ss:$24 sps:$4 sm:$0xff]  }
  0x94   :  { %1328 = vmatpush1.bf16.msra.mxu1 %v15748_v16  ;;  %1353 = vmatpush1.bf16.msra.mxu0 %v17812_v17  ;;  %v15832_v16 = vld [vmem:[#allocation6 + $0x190] ss:$24 sps:$4 sm:$0xff]  }
  0x95   :  { %1329 = vmatprep.subr.bf16.mxu1 %v15756_v18  ;;  %1354 = vmatprep.subr.bf16.mxu0 %v17816_v19  ;;  %v15837_v18 = vld [vmem:[#allocation6 + $0x1c4] ss:$24 sps:$4 sm:$0xff]  }
  0x96   :  { %648 = vmatprep.mubr.bf16.mxu0 %v21410_v0 }
  0x98   :  { %1330 = vmatpush1.bf16.msra.mxu1 %v15754_v20  ;;  %1355 = vmatpush1.bf16.msra.mxu0 %v17818_v21  ;;  %v15835_v20 = vld [vmem:[#allocation6 + $0x1c0] ss:$24 sps:$4 sm:$0xff]  }
  0x99   :  { %1331 = vmatprep.subr.bf16.mxu1 %v15762_v22  ;;  %1356 = vmatprep.subr.bf16.mxu0 %v17823_v23  ;;  %v15840_v22 = vld [vmem:[#allocation6 + $0x1f4] ss:$24 sps:$4 sm:$0xff]  }
  0x9b   :  { %649 = vmatmul.mubr.bf16.gmra.mrb[24].mxu0 %v17782_v55  ;;  %v17883_v55 = vld [vmem:[#allocation6 + $0x218] ss:$24 sps:$4 sm:$0xff]  }
  0x9c   :  { %1332 = vmatpush1.bf16.msra.mxu1 %v15760_v24  ;;  %1357 = vmatpush1.bf16.msra.mxu0 %v17826_v25  ;;  %v2251_v24 = vsel %vm2202_vm2, 1, %v21410_v0 }
  0x9d   :  { %1333 = vmatprep.subr.bf16.mxu1 %v15768_v26  ;;  %1358 = vmatprep.subr.bf16.mxu0 %v17830_v27  ;;  %v3018_v26 = vsel %vm2969_vm3, 1, %v21410_v0 }
  0x9e   :  { %658 = vmatprep.mubr.bf16.mxu0 %v21410_v0  ;;  %2253 = vperm.xlu1 %15635, %v2251_v24  }
  0x9f   :  { %3020 = vperm.xlu0 %15634, %v3018_v26  }
  0xa0   :  { %1334 = vmatpush1.bf16.msra.mxu1 %v15766_v28  ;;  %1359 = vmatpush1.bf16.msra.mxu0 %v17832_v29  ;;  %v15838_v28 = vld [vmem:[#allocation6 + $0x1f0] ss:$24 sps:$4 sm:$0xff]  }
  0xa1   :  { %1335 = vmatprep.subr.bf16.mxu1 %v15774_v30  ;;  %1360 = vmatprep.subr.bf16.mxu0 %v17837_v31  ;;  %v15843_v30 = vld [vmem:[#allocation6 + $0x224] ss:$24 sps:$4 sm:$0xff]  }
  0xa3   :  { %659 = vmatmul.mubr.bf16.gmra.mrb[28].mxu0 %v17791_v1  ;;  %v15817_v1 = vld [vmem:[#allocation6 + $0x100] ss:$24 sps:$4 sm:$0xff]  }
  0xa4   :  { %1336 = vmatpush1.bf16.msra.mxu1 %v15772_v32  ;;  %1361 = vmatpush1.bf16.msra.mxu0 %v17840_v33  ;;  %v15841_v32 = vld [vmem:[#allocation6 + $0x220] ss:$24 sps:$4 sm:$0xff]  }
  0xa5   :  { %1337 = vmatprep.subr.bf16.mxu1 %v15780_v34  ;;  %1362 = vmatprep.subr.bf16.mxu0 %v17844_v35  ;;  %v2245_v34 = vsel %vm2201_vm4, 1, %v21410_v0 }
  0xa6   :  { %1380 = vmatprep.mubr.bf16.mxu0 %v21410_v0  ;;  %2247 = vperm.xlu1 %15635, %v2245_v34  }
  0xa8   :  { %1338 = vmatpush1.bf16.msra.mxu1 %v15778_v36  ;;  %1363 = vmatpush1.bf16.msra.mxu0 %v17846_v37  ;;  %v3785_v36 = vsel %vm3736_vm5, 1, %v21410_v0 }
  0xa9   :  { %1364 = vmatprep.subr.bf16.mxu0 %v17850_v38  ;;  %1389 = vmatprep.subr.bf16.mxu1 %v15789_v39  ;;  %v15846_v39 = vld [vmem:[#allocation6 + $0x254] ss:$24 sps:$4 sm:$0xff]  }
  0xaa   :  { %3787 = vperm.xlu0 %15634, %v3785_v36  }
  0xab   :  { %1340 = vmatmul.mubr.bf16.vlgmr.msra.gmra.mrb[16].mxu1 %v21410_v0 }
  0xac   :  { %1365 = vmatpush1.bf16.msra.mxu0 %v17854_v40  ;;  %1390 = vmatpush1.bf16.msra.mxu1 %v15787_v41  ;;  %v15844_v41 = vld [vmem:[#allocation6 + $0x250] ss:$24 sps:$4 sm:$0xff]  }
  0xad   :  { %1366 = vmatprep.subr.bf16.mxu0 %v17857_v42  ;;  %1391 = vmatprep.subr.bf16.mxu1 %v15795_v43  ;;  %v15849_v43 = vld [vmem:[#allocation6 + $0x284] ss:$24 sps:$4 sm:$0xff]  }
  0xae   :  { %1421 = vmatprep.mubr.bf16.mxu1 %v21410_v0 }
  0xb0   :  { %1367 = vmatpush1.bf16.msra.mxu0 %v17860_v44  ;;  %1392 = vmatpush1.bf16.msra.mxu1 %v15793_v45  ;;  %v15847_v45 = vld [vmem:[#allocation6 + $0x280] ss:$24 sps:$4 sm:$0xff]  }
  0xb1   :  { %1368 = vmatprep.subr.bf16.mxu0 %v17863_v46  ;;  %1393 = vmatprep.subr.bf16.mxu1 %v15801_v47  ;;  %v15852_v47 = vld [vmem:[#allocation6 + $0x2b4] ss:$24 sps:$4 sm:$0xff]  }
  0xb4   :  { %1369 = vmatpush1.bf16.msra.mxu0 %v17874_v49  ;;  %1394 = vmatpush1.bf16.msra.mxu1 %v15799_v50  ;;  %v15850_v50 = vld [vmem:[#allocation6 + $0x2b0] ss:$24 sps:$4 sm:$0xff]  }
  0xb5   :  { %1370 = vmatprep.subr.bf16.mxu0 %v17878_v52  ;;  %1395 = vmatprep.subr.bf16.mxu1 %v15807_v53 }
  0xb8   :  { %1371 = vmatpush1.bf16.msra.mxu0 %v17883_v55  ;;  %1396 = vmatpush1.bf16.msra.mxu1 %v15805_v56 }
  0xb9   :  { %1372 = vmatprep.subr.bf16.mxu0 %v17885_v57  ;;  %1397 = vmatprep.subr.bf16.mxu1 %v15813_v58 }
  0xbc   :  { %1373 = vmatpush1.bf16.msra.mxu0 %v17889_v59  ;;  %1398 = vmatpush1.bf16.msra.mxu1 %v15811_v60 }
  0xbd   :  { %1374 = vmatprep.subr.bf16.mxu0 %v17891_v61  ;;  %1399 = vmatprep.subr.bf16.mxu1 %v15819_v62 }
  0xc0   :  { %1375 = vmatpush1.bf16.msra.mxu0 %v17895_v63  ;;  %1400 = vmatpush1.bf16.msra.mxu1 %v15817_v1 }
  0xc1   :  { %1376 = vmatprep.subr.bf16.mxu0 %v17897_v2  ;;  %1401 = vmatprep.subr.bf16.mxu1 %v15825_v3 }
  0xc4   :  { %1377 = vmatpush1.bf16.msra.mxu0 %v17901_v4  ;;  %1402 = vmatpush1.bf16.msra.mxu1 %v15823_v5 }
  0xc5   :  { %1378 = vmatprep.subr.bf16.mxu0 %v17903_v6  ;;  %1403 = vmatprep.subr.bf16.mxu1 %v15831_v8 }
  0xc8   :  { %1379 = vmatpush1.bf16.msra.mxu0 %v17907_v10  ;;  %1404 = vmatpush1.bf16.msra.mxu1 %v15829_v12  ;;  %v15885_v12 = vld [vmem:[#allocation6 + $0x1b4] ss:$24 sps:$4 sm:$0xff]  }
  0xc9   :  { %1405 = vmatprep.subr.bf16.mxu1 %v15834_v14  ;;  %v15883_v14 = vld [vmem:[#allocation6 + $0x1b0] ss:$24 sps:$4 sm:$0xff]  }
  0xcb   :  { %1381 = vmatmul.mubr.bf16.vlgmr.msra.gmra.mrb[32].mxu0 %v21410_v0 }
  0xcc   :  { %1406 = vmatpush1.bf16.msra.mxu1 %v15832_v16 }
  0xcd   :  { %1407 = vmatprep.subr.bf16.mxu1 %v15837_v18 }
  0xd0   :  { %1408 = vmatpush1.bf16.msra.mxu1 %v15835_v20 }
  0xd1   :  { %1409 = vmatprep.subr.bf16.mxu1 %v15840_v22 }
  0xd4   :  { %1410 = vmatpush1.bf16.msra.mxu1 %v15838_v28  ;;  %v15888_v28 = vld [vmem:[#allocation6 + $0x1e4] ss:$24 sps:$4 sm:$0xff]  }
  0xd5   :  { %1411 = vmatprep.subr.bf16.mxu1 %v15843_v30 }
  0xd8   :  { %1412 = vmatpush1.bf16.msra.mxu1 %v15841_v32 }
  0xd9   :  { %1413 = vmatprep.subr.bf16.mxu1 %v15846_v39  ;;  %v15886_v39 = vld [vmem:[#allocation6 + $0x1e0] ss:$24 sps:$4 sm:$0xff]  }
  0xdc   :  { %1414 = vmatpush1.bf16.msra.mxu1 %v15844_v41 }
  0xdd   :  { %1415 = vmatprep.subr.bf16.mxu1 %v15849_v43 }
  0xe0   :  { %1416 = vmatpush1.bf16.msra.mxu1 %v15847_v45 }
  0xe1   :  { %1417 = vmatprep.subr.bf16.mxu1 %v15852_v47 }
  0xe4   :  { %1418 = vmatpush1.bf16.msra.mxu1 %v15850_v50 }
  0xe5   :  { %1419 = vmatprep.subr.bf16.mxu1 %v15855_v48 }
  0xe8   :  { %1420 = vmatpush1.bf16.msra.mxu1 %v15853_v51  ;;  %v15891_v51 = vld [vmem:[#allocation6 + $0x214] ss:$24 sps:$4 sm:$0xff]  }
  0xe9   :  { %2113 = vmatprep.subr.bf16.mxu1 %v17795_v7  ;;  %v15858_v7 = vld [vmem:[#allocation6 + $0x4] ss:$24 sps:$4 sm:$0xff]  }
  0xea   :  { %2072 = vmatprep.subr.bf16.mxu0 %v15858_v7 }
  0xeb   :  { %1422 = vmatmul.mubr.bf16.vlgmr.msra.gmra.mrb[20].mxu1 %v21410_v0 }
  0xec   :  { %2114 = vmatpush1.bf16.msra.mxu1 %v17799_v9  ;;  %v15856_v9 = vld [vmem:[#allocation6] ss:$24 sps:$4 sm:$0xff]  }
  0xed   :  { %2115 = vmatprep.subr.bf16.mxu1 %v17802_v11  ;;  %2073 = vmatpush1.bf16.msra.mxu0 %v15856_v9  ;;  %v15861_v11 = vld [vmem:[#allocation6 + $0x34] ss:$24 sps:$4 sm:$0xff]  }
  0xee   :  { %2074 = vmatprep.subr.bf16.mxu0 %v15861_v11 }
  0xf0   :  { %2116 = vmatpush1.bf16.msra.mxu1 %v17805_v13  ;;  %v15859_v13 = vld [vmem:[#allocation6 + $0x30] ss:$24 sps:$4 sm:$0xff]  }
  0xf1   :  { %2117 = vmatprep.subr.bf16.mxu1 %v17809_v15  ;;  %2075 = vmatpush1.bf16.msra.mxu0 %v15859_v13  ;;  %v15864_v15 = vld [vmem:[#allocation6 + $0x64] ss:$24 sps:$4 sm:$0xff]  }
  0xf2   :  { %2076 = vmatprep.subr.bf16.mxu0 %v15864_v15 }
  0xf4   :  { %2118 = vmatpush1.bf16.msra.mxu1 %v17812_v17  ;;  %v15862_v17 = vld [vmem:[#allocation6 + $0x60] ss:$24 sps:$4 sm:$0xff]  }
  0xf5   :  { %2119 = vmatprep.subr.bf16.mxu1 %v17816_v19  ;;  %2077 = vmatpush1.bf16.msra.mxu0 %v15862_v17  ;;  %v15867_v19 = vld [vmem:[#allocation6 + $0x94] ss:$24 sps:$4 sm:$0xff]  }
  0xf6   :  { %2078 = vmatprep.subr.bf16.mxu0 %v15867_v19 }
  0xf8   :  { %2120 = vmatpush1.bf16.msra.mxu1 %v17818_v21  ;;  %v15865_v21 = vld [vmem:[#allocation6 + $0x90] ss:$24 sps:$4 sm:$0xff]  }
  0xf9   :  { %2121 = vmatprep.subr.bf16.mxu1 %v17823_v23  ;;  %2079 = vmatpush1.bf16.msra.mxu0 %v15865_v21  ;;  %v15870_v23 = vld [vmem:[#allocation6 + $0xc4] ss:$24 sps:$4 sm:$0xff]  }
  0xfa   :  { %2080 = vmatprep.subr.bf16.mxu0 %v15870_v23  ;;  %v15894_v21 = vld [vmem:[#allocation6 + $0x244] ss:$24 sps:$4 sm:$0xff]  }
  0xfc   :  { %2122 = vmatpush1.bf16.msra.mxu1 %v17826_v25  ;;  %v156_v25 = vlaneseq }
  0xfd   :  { %2123 = vmatprep.subr.bf16.mxu1 %v17830_v27  ;;  %v15868_v27 = vld [vmem:[#allocation6 + $0xc0] ss:$24 sps:$4 sm:$0xff]  }
  0xfe   :  { %2081 = vmatpush1.bf16.msra.mxu0 %v15868_v27 }
 0x100   :  { %2124 = vmatpush1.bf16.msra.mxu1 %v17832_v29  ;;  %v15873_v29 = vld [vmem:[#allocation6 + $0xf4] ss:$24 sps:$4 sm:$0xff]  }
 0x101   :  { %2125 = vmatprep.subr.bf16.mxu1 %v17837_v31  ;;  %v17954_v31 = vshrl.u32 %v156_v25, 7  ;;  %2082 = vmatprep.subr.bf16.mxu0 %v15873_v29 }
 0x103   :  { %21548 = vst [vmem:[#allocation14_spill] sm:$0xff] %v17954_v31 }
 0x104   :  { %2126 = vmatpush1.bf16.msra.mxu1 %v17840_v33  ;;  %v15871_v33 = vld [vmem:[#allocation6 + $0xf0] ss:$24 sps:$4 sm:$0xff]  }
 0x105   :  { %2127 = vmatprep.subr.bf16.mxu1 %v17844_v35  ;;  %2083 = vmatpush1.bf16.msra.mxu0 %v15871_v33  ;;  %v15874_v35 = vld [vmem:[#allocation6 + $0x120] ss:$24 sps:$4 sm:$0xff]  }
 0x106   :  { %v15892_v33 = vld [vmem:[#allocation6 + $0x240] ss:$24 sps:$4 sm:$0xff]  }
 0x108   :  { %2128 = vmatpush1.bf16.msra.mxu1 %v17846_v37  ;;  %v15876_v37 = vld [vmem:[#allocation6 + $0x124] ss:$24 sps:$4 sm:$0xff]  }
 0x109   :  { %2129 = vmatprep.subr.bf16.mxu1 %v17850_v38  ;;  %v17959_v38 = vld [vmem:[%s21394_s3] sm:$0x3f]  ;;  %2084 = vmatprep.subr.bf16.mxu0 %v15876_v37 }
 0x10a   :  { %2085 = vmatpush1.bf16.msra.mxu0 %v15874_v35 }
 0x10c   :  { %2130 = vmatpush1.bf16.msra.mxu1 %v17854_v40  ;;  %v15879_v40 = vld [vmem:[#allocation6 + $0x154] ss:$24 sps:$4 sm:$0xff]  }
 0x10d   :  { %2131 = vmatprep.subr.bf16.mxu1 %v17857_v42  ;;  %v21409_v42 = vsub.s32 3, %v17954_v31  ;;  %2086 = vmatprep.subr.bf16.mxu0 %v15879_v40 }
 0x10f   :  { %v17968_v53 = vrot.slane %v17959_v38, %v21409_v42 }
 0x110   :  { %2132 = vmatpush1.bf16.msra.mxu1 %v17860_v44  ;;  %v15877_v44 = vld [vmem:[#allocation6 + $0x150] ss:$24 sps:$4 sm:$0xff]  }
 0x111   :  { %2133 = vmatprep.subr.bf16.mxu1 %v17863_v46  ;;  %v21407_v46 = vsub.s32 2, %v17954_v31  ;;  %2087 = vmatpush1.bf16.msra.mxu0 %v15877_v44 }
 0x113   :  { %v17973_v54 = vrot.slane %v17959_v38, %v21407_v46 }
 0x114   :  { %2134 = vmatpush1.bf16.msra.mxu1 %v17874_v49  ;;  %v21408_v49 = vsub.s32 0, %v17954_v31 }
 0x115   :  { %2135 = vmatprep.subr.bf16.mxu1 %v17878_v52  ;;  %v21406_v52 = vsub.s32 1, %v17954_v31 }
 0x117   :  { %v17987_v58 = vrot.slane %v17959_v38, %v21406_v52 }
 0x118   :  { %2136 = vmatpush1.bf16.msra.mxu1 %v17883_v55  ;;  %v17978_v55 = vrot.slane %v17959_v38, %v21408_v49 }
 0x119   :  { %2137 = vmatprep.subr.bf16.mxu1 %v17885_v57 }
 0x11c   :  { %2138 = vmatpush1.bf16.msra.mxu1 %v17889_v59 }
 0x11d   :  { %2139 = vmatprep.subr.bf16.mxu1 %v17891_v61  ;;  %v15882_v61 = vld [vmem:[#allocation6 + $0x184] ss:$24 sps:$4 sm:$0xff]  }
 0x11e   :  { %2088 = vmatprep.subr.bf16.mxu0 %v15882_v61 }
 0x120   :  { %2140 = vmatpush1.bf16.msra.mxu1 %v17895_v63 }
 0x121   :  { %2141 = vmatprep.subr.bf16.mxu1 %v17897_v2  ;;  %v15880_v2 = vld [vmem:[#allocation6 + $0x180] ss:$24 sps:$4 sm:$0xff]  }
 0x122   :  { %2089 = vmatpush1.bf16.msra.mxu0 %v15880_v2  ;;  %v15900_v2 = vld [vmem:[#allocation6 + $0x2a4] ss:$24 sps:$4 sm:$0xff]  }
 0x123   :  { %2090 = vmatprep.subr.bf16.mxu0 %v15885_v12 }
 0x124   :  { %2142 = vmatpush1.bf16.msra.mxu1 %v17901_v4 }
 0x125   :  { %2143 = vmatprep.subr.bf16.mxu1 %v17903_v6 }
 0x126   :  { %2091 = vmatpush1.bf16.msra.mxu0 %v15883_v14 }
 0x127   :  { %2092 = vmatprep.subr.bf16.mxu0 %v15888_v28 }
 0x128   :  { %2144 = vmatpush1.bf16.msra.mxu1 %v17907_v10 }
 0x129   :  { %2839 = vmatprep.subr.bf16.mxu1 %v15858_v7  ;;  %v15889_v7 = vld [vmem:[#allocation6 + $0x210] ss:$24 sps:$4 sm:$0xff]  }
 0x12a   :  { %2093 = vmatpush1.bf16.msra.mxu0 %v15886_v39  ;;  %v21404_v39 = vsub.s32 5, %v17954_v31 }
 0x12b   :  { %2094 = vmatprep.subr.bf16.mxu0 %v15891_v51  ;;  %v15901_v51 = vld [vmem:[#allocation6 + $0x2d0] ss:$24 sps:$4 sm:$0xff]  }
 0x12e   :  { %2095 = vmatpush1.bf16.msra.mxu0 %v15889_v7 }
 0x12f   :  { %2096 = vmatprep.subr.bf16.mxu0 %v15894_v21 }
 0x132   :  { %2097 = vmatpush1.bf16.msra.mxu0 %v15892_v33 }
 0x13e   :  { %v17980_v56 = vpop.f32.mrb[0].mxu1  ;;  %v17982_v57 = vpop.f32.mrb[0].mxu0 }
 0x13f   :  { %v559_v59 = vpop.f32.mrb[1].mxu1  ;;  %v17989_v60 = vpop.f32.mrb[1].mxu0 }
 0x140   :  { %v17992_v62 = vadd.f32 %v559_v59, %v17968_v53  ;;  %v561_v63 = vpop.f32.mrb[2].mxu1  ;;  %v488_v1 = vpop.f32.mrb[2].mxu0  ;;  %v15897_v59 = vld [vmem:[#allocation6 + $0x274] ss:$24 sps:$4 sm:$0xff]  }
 0x141   :  { %v17995_v3 = vadd.f32 %v561_v63, %v17973_v54  ;;  %v563_v4 = vpop.f32.mrb[3].mxu1  ;;  %v17998_v5 = vadd.f32 %v488_v1, %v17978_v55  ;;  %v490_v6 = vpop.f32.mrb[3].mxu0  ;;  %v15895_v1 = vld [vmem:[#allocation6 + $0x270] ss:$24 sps:$4 sm:$0xff]   ;;  %2098 = vmatprep.subr.bf16.mxu0 %v15897_v59 }
 0x142   :  { %21549 = vst [vmem:[#allocation15_spill] sm:$0xff] %v17992_v62  ;;  %v18001_v8 = vadd.f32 %v563_v4, %v17968_v53  ;;  %v18004_v10 = vadd.f32 %v490_v6, %v17987_v58  ;;  %v15898_v4 = vld [vmem:[#allocation6 + $0x2a0] ss:$24 sps:$4 sm:$0xff]   ;;  %v15903_v6 = vld [vmem:[#allocation6 + $0x2d4] ss:$24 sps:$4 sm:$0xff]   ;;  %2099 = vmatpush1.bf16.msra.mxu0 %v15895_v1 }
 0x143   :  { %2100 = vmatprep.subr.bf16.mxu0 %v15900_v2  ;;  %v17469_v62 = vld [vmem:[#allocation6 + $0x124] ss:$24 sps:$4 sm:$0xff]  }
 0x144   :  { %21550 = vst [vmem:[#allocation16_spill] sm:$0xff] %v18001_v8  ;;  %v18275_v8 = vld [vmem:[#allocation6 + $0x18c] ss:$24 sps:$4 sm:$0xff]  }
 0x146   :  { %v494_v16 = vpop.f32.mrb[4].mxu0  ;;  %v567_v18 = vpop.f32.mrb[4].mxu1  ;;  %2101 = vmatpush1.bf16.msra.mxu0 %v15898_v4 }
 0x147   :  { %v18007_v20 = vadd.f32 %v494_v16, %v17978_v55  ;;  %v496_v22 = vpop.f32.mrb[5].mxu0  ;;  %v18010_v24 = vadd.f32 %v567_v18, %v17973_v54  ;;  %v569_v26 = vpop.f32.mrb[5].mxu1  ;;  %2102 = vmatprep.subr.bf16.mxu0 %v15903_v6 }
 0x148   :  { %v18013_v30 = vadd.f32 %v496_v22, %v17987_v58  ;;  %v498_v32 = vpop.f32.mrb[6].mxu0  ;;  %v18016_v34 = vadd.f32 %v569_v26, %v17968_v53  ;;  %v571_v36 = vpop.f32.mrb[6].mxu1  ;;  %v21405_v22 = vsub.s32 4, %v17954_v31 }
 0x149   :  { %21551 = vst [vmem:[#allocation17_spill] sm:$0xff] %v18007_v20  ;;  %21552 = vst [vmem:[#allocation18_spill] sm:$0xff] %v18010_v24  ;;  %v18019_v41 = vadd.f32 %v498_v32, %v17978_v55  ;;  %v500_v43 = vpop.f32.mrb[7].mxu0  ;;  %v18022_v45 = vadd.f32 %v571_v36, %v17973_v54  ;;  %v573_v47 = vpop.f32.mrb[7].mxu1 }
 0x14a   :  { %21553 = vst [vmem:[#allocation19_spill] sm:$0xff] %v18013_v30  ;;  %21554 = vst [vmem:[#allocation20_spill] sm:$0xff] %v18016_v34  ;;  %v18025_v50 = vadd.f32 %v500_v43, %v17987_v58  ;;  %v18028_v48 = vadd.f32 %v573_v47, %v17968_v53  ;;  %v18080_v21 = vrot.slane %v17959_v38, %v21405_v22  ;;  %2103 = vmatpush1.bf16.msra.mxu0 %v15901_v51  ;;  %v18293_v34 = vld [vmem:[#allocation6 + $0x21c] ss:$24 sps:$4 sm:$0xff]  }
 0x14b   :  { %21555 = vst [vmem:[#allocation21_spill] sm:$0xff] %v18019_v41  ;;  %21556 = vst [vmem:[#allocation22_spill] sm:$0xff] %v18022_v45 }
 0x14c   :  { %21557 = vst [vmem:[#allocation23_spill] sm:$0xff] %v18025_v50  ;;  %21558 = vst [vmem:[#allocation24_spill] sm:$0xff] %v18028_v48  ;;  %v18310_v48 = vld [vmem:[#allocation6 + $0x2ac] ss:$24 sps:$4 sm:$0xff]  }
 0x14d   :  { %21598 = vst [vmem:[#allocation59_spill] sm:$0xff] %v18310_v48 }
 0x14e   :  { %v504_v9 = vpop.f32.mrb[8].mxu0  ;;  %v577_v11 = vpop.f32.mrb[8].mxu1 }
 0x14f   :  { %v18031_v13 = vadd.f32 %v504_v9, %v17978_v55  ;;  %v506_v15 = vpop.f32.mrb[9].mxu0  ;;  %v18034_v17 = vadd.f32 %v577_v11, %v17973_v54  ;;  %v579_v19 = vpop.f32.mrb[9].mxu1 }
 0x150   :  { %v18037_v23 = vadd.f32 %v506_v15, %v17987_v58  ;;  %v508_v25 = vpop.f32.mrb[10].mxu0  ;;  %v18040_v27 = vadd.f32 %v579_v19, %v17968_v53  ;;  %v581_v29 = vpop.f32.mrb[10].mxu1 }
 0x151   :  { %21559 = vst [vmem:[#allocation25_spill] sm:$0xff] %v18031_v13  ;;  %21560 = vst [vmem:[#allocation26_spill] sm:$0xff] %v18034_v17  ;;  %v18043_v35 = vadd.f32 %v508_v25, %v17978_v55  ;;  %v510_v37 = vpop.f32.mrb[11].mxu0  ;;  %v18046_v40 = vadd.f32 %v581_v29, %v17973_v54  ;;  %v583_v44 = vpop.f32.mrb[11].mxu1  ;;  %v18085_v25 = vrot.slane %v17959_v38, %v21404_v39  ;;  %v18307_v17 = vld [vmem:[#allocation6 + $0x278] ss:$24 sps:$4 sm:$0xff]  }
 0x152   :  { %21561 = vst [vmem:[#allocation27_spill] sm:$0xff] %v18037_v23  ;;  %21562 = vst [vmem:[#allocation28_spill] sm:$0xff] %v18040_v27  ;;  %v18049_v61 = vadd.f32 %v510_v37, %v17987_v58  ;;  %v18052_v63 = vadd.f32 %v583_v44, %v17968_v53  ;;  %v15906_v44 = vld [vmem:[#allocation6 + $0x14] ss:$24 sps:$4 sm:$0xff]   ;;  %v18313_v23 = vld [vmem:[#allocation6 + $0x2a8] ss:$24 sps:$4 sm:$0xff]  }
 0x153   :  { %21563 = vst [vmem:[#allocation29_spill] sm:$0xff] %v18043_v35  ;;  %21564 = vst [vmem:[#allocation30_spill] sm:$0xff] %v18046_v40  ;;  %2154 = vmatprep.subr.bf16.mxu0 %v15906_v44  ;;  %v18289_v40 = vld [vmem:[#allocation6 + $0x1e8] ss:$24 sps:$4 sm:$0xff]   ;;  %v18316_v13 = vld [vmem:[#allocation6 + $0x2dc] ss:$24 sps:$4 sm:$0xff]  }
 0x154   :  { %21565 = vst [vmem:[#allocation31_spill] sm:$0xff] %v18049_v61  ;;  %21566 = vst [vmem:[#allocation32_spill] sm:$0xff] %v18052_v63  ;;  %v18295_v61 = vld [vmem:[#allocation6 + $0x218] ss:$24 sps:$4 sm:$0xff]   ;;  %v18299_v35 = vld [vmem:[#allocation6 + $0x248] ss:$24 sps:$4 sm:$0xff]  }
 0x155   :  { %21597 = vst [vmem:[#allocation58_spill] sm:$0xff] %v18307_v17  ;;  %21599 = vst [vmem:[#allocation60_spill] sm:$0xff] %v18313_v23 }
 0x156   :  { %v514_v12 = vpop.f32.mrb[12].mxu0  ;;  %v587_v14 = vpop.f32.mrb[12].mxu1  ;;  %21600 = vst [vmem:[#allocation61_spill] sm:$0xff] %v18316_v13 }
 0x157   :  { %v18055_v16 = vadd.f32 %v514_v12, %v17978_v55  ;;  %v516_v18 = vpop.f32.mrb[13].mxu0  ;;  %v18059_v26 = vadd.f32 %v587_v14, %v17973_v54  ;;  %v589_v28 = vpop.f32.mrb[13].mxu1 }
 0x158   :  { %v18062_v32 = vadd.f32 %v516_v18, %v17987_v58  ;;  %v518_v36 = vpop.f32.mrb[14].mxu0  ;;  %v18066_v43 = vadd.f32 %v589_v28, %v17968_v53  ;;  %v591_v47 = vpop.f32.mrb[14].mxu1 }
 0x159   :  { %21567 = vst [vmem:[#allocation33_spill] sm:$0xff] %v18055_v16  ;;  %21568 = vst [vmem:[#allocation34_spill] sm:$0xff] %v18059_v26  ;;  %v18069_v7 = vadd.f32 %v518_v36, %v17978_v55  ;;  %v520_v9 = vpop.f32.mrb[15].mxu0  ;;  %v18072_v11 = vadd.f32 %v591_v47, %v17973_v54  ;;  %v593_v15 = vpop.f32.mrb[15].mxu1  ;;  %v18271_v26 = vld [vmem:[#allocation6 + $0x158] ss:$24 sps:$4 sm:$0xff]  }
 0x15a   :  { %21569 = vst [vmem:[#allocation35_spill] sm:$0xff] %v18062_v32  ;;  %v18075_v19 = vadd.f32 %v520_v9, %v17987_v58  ;;  %v18277_v32 = vld [vmem:[#allocation6 + $0x188] ss:$24 sps:$4 sm:$0xff]   ;;  %v18281_v16 = vld [vmem:[#allocation6 + $0x1bc] ss:$24 sps:$4 sm:$0xff]  }
 0x15b   :  { %21570 = vst [vmem:[#allocation36_spill] sm:$0xff] %v18069_v7  ;;  %21571 = vst [vmem:[#allocation37_spill] sm:$0xff] %v18072_v11  ;;  %v17468_v11 = vld [vmem:[#allocation6 + $0xf0] ss:$24 sps:$4 sm:$0xff]   ;;  %v17473_v7 = vld [vmem:[#allocation6 + $0x154] ss:$24 sps:$4 sm:$0xff]  }
 0x15c   :  { %21572 = vst [vmem:[#allocation38_spill] sm:$0xff] %v18075_v19  ;;  %v17470_v19 = vld [vmem:[#allocation6 + $0x130] ss:$24 sps:$4 sm:$0xff]  }
 0x15e   :  { %v630_v29 = vpop.f32.mrb[16].mxu0 }
 0x15f   :  { %v18088_v33 = vadd.f32 %v630_v29, %v18080_v21  ;;  %v632_v37 = vpop.f32.mrb[17].mxu0 }
 0x160   :  { %v18091_v59 = vadd.f32 %v632_v37, %v18085_v25  ;;  %v634_v1 = vpop.f32.mrb[18].mxu0 }
 0x161   :  { %21573 = vst [vmem:[#allocation39_spill] sm:$0xff] %v18088_v33  ;;  %v18094_v2 = vadd.f32 %v634_v1, %v18080_v21  ;;  %v636_v4 = vpop.f32.mrb[19].mxu0 }
 0x162   :  { %21574 = vst [vmem:[#allocation40_spill] sm:$0xff] %v18091_v59  ;;  %v18097_v6 = vadd.f32 %v636_v4, %v18085_v25 }
 0x163   :  { %21575 = vst [vmem:[#allocation41_spill] sm:$0xff] %v18094_v2  ;;  %v18269_v2 = vld [vmem:[#allocation6 + $0x15c] ss:$24 sps:$4 sm:$0xff]  }
 0x164   :  { %21576 = vst [vmem:[#allocation42_spill] sm:$0xff] %v18097_v6  ;;  %v18265_v6 = vld [vmem:[#allocation6 + $0x128] ss:$24 sps:$4 sm:$0xff]  }
 0x166   :  { %v640_v38 = vpop.f32.mrb[20].mxu0 }
 0x167   :  { %v18100_v12 = vadd.f32 %v640_v38, %v18080_v21  ;;  %v642_v14 = vpop.f32.mrb[21].mxu0 }
 0x168   :  { %v18103_v18 = vadd.f32 %v642_v14, %v18085_v25  ;;  %v644_v28 = vpop.f32.mrb[22].mxu0 }
 0x169   :  { %21577 = vst [vmem:[#allocation43_spill] sm:$0xff] %v18100_v12  ;;  %v18106_v36 = vadd.f32 %v644_v28, %v18080_v21  ;;  %v646_v47 = vpop.f32.mrb[23].mxu0  ;;  %v18287_v12 = vld [vmem:[#allocation6 + $0x1ec] ss:$24 sps:$4 sm:$0xff]  }
 0x16a   :  { %21578 = vst [vmem:[#allocation44_spill] sm:$0xff] %v18103_v18  ;;  %v18109_v51 = vadd.f32 %v646_v47, %v18085_v25  ;;  %v18283_v18 = vld [vmem:[#allocation6 + $0x1b8] ss:$24 sps:$4 sm:$0xff]  }
 0x16b   :  { %21579 = vst [vmem:[#allocation45_spill] sm:$0xff] %v18106_v36  ;;  %v18303_v36 = vld [vmem:[#allocation6 + $0x27c] ss:$24 sps:$4 sm:$0xff]  }
 0x16c   :  { %21580 = vst [vmem:[#allocation46_spill] sm:$0xff] %v18109_v51  ;;  %v18301_v51 = vld [vmem:[#allocation6 + $0x24c] ss:$24 sps:$4 sm:$0xff]   ;;  %21596 = vst [vmem:[#allocation57_spill] sm:$0xff] %v18303_v36 }
 0x16e   :  { %v650_v9 = vpop.f32.mrb[24].mxu0 }
 0x16f   :  { %v18112_v29 = vadd.f32 %v650_v9, %v18080_v21  ;;  %v652_v37 = vpop.f32.mrb[25].mxu0 }
 0x170   :  { %v18115_v44 = vadd.f32 %v652_v37, %v18085_v25  ;;  %v654_v1 = vpop.f32.mrb[26].mxu0  ;;  %v485_v37 = vadd.f32 %v17982_v57, %v17978_v55  ;;  %v18136_v55 = vld [vmem:[%s21396_s5] ss:$0 sm:$0xff]  ;;  %v594_v57 = vadd.f32 %v593_v15, %v17968_v53 }
 0x171   :  { %21581 = vst [vmem:[#allocation47_spill] sm:$0xff] %v18112_v29  ;;  %v18118_v4 = vadd.f32 %v654_v1, %v18080_v21  ;;  %v656_v38 = vpop.f32.mrb[27].mxu0  ;;  %v487_v1 = vadd.f32 %v17989_v60, %v17987_v58 }
 0x172   :  { %21582 = vst [vmem:[#allocation48_spill] sm:$0xff] %v18115_v44  ;;  %v18121_v14 = vadd.f32 %v656_v38, %v18085_v25  ;;  %v18319_v44 = vld [vmem:[#allocation6 + $0x2d8] ss:$24 sps:$4 sm:$0xff]  }
 0x173   :  { %21583 = vst [vmem:[#allocation49_spill] sm:$0xff] %v18118_v4  ;;  %21601 = vst [vmem:[#allocation62_spill] sm:$0xff] %v18319_v44 }
 0x174   :  { %21584 = vst [vmem:[#allocation50_spill] sm:$0xff] %v18121_v14 }
 0x176   :  { %v660_v28 = vpop.f32.mrb[28].mxu0 }
 0x177   :  { %v18124_v47 = vadd.f32 %v660_v28, %v18080_v21  ;;  %v662_v39 = vpop.f32.mrb[29].mxu0 }
 0x178   :  { %v18127_v9 = vadd.f32 %v662_v39, %v18085_v25  ;;  %v664_v22 = vpop.f32.mrb[30].mxu0 }
 0x179   :  { %v666_v52 = vpop.f32.mrb[31].mxu0 }
 0x17e   :  { %v1341_v46 = vpop.f32.mrb[16].mxu1 }
 0x17f   :  { %v1438_v49 = vadd.f32 %v1341_v46, %v485_v37  ;;  %v1343_v38 = vpop.f32.mrb[17].mxu1 }
 0x180   :  { %v1452_v42 = vadd.f32 %v1343_v38, %v487_v1  ;;  %v1345_v0 = vpop.f32.mrb[18].mxu1  ;;  %v17454_v38 = vld [vmem:[%s21392_s1] sm:$0xff] }
 0x181   :  { %v13917_v31 = vmul.f32 -1.442695, %v1438_v49  ;;  %v1346_v28 = vpop.f32.mrb[19].mxu1  ;;  %vm2968_vm6 = vcmp.gt.s32.totalorder %v17454_v38, 2  ;;  %vm3735_vm7 = vcmp.gt.s32.totalorder %v17454_v38, 3 }
 0x182   :  { %v13919_v33 = vmul.f32 -1.442695, %v1452_v42  ;;  %v558_v42 = vadd.f32 %v17980_v56, %v17973_v54  ;;  %v21585_v28 = vmov 0  }
 0x183   :  { %17134 = vpow2.f32 %v13917_v31 }
 0x184   :  { %17136 = vpow2.f32 %v13919_v33 }
 0x18d   :  { %v17135_v59 = vpop.eup %17134 }
 0x18e   :  { %v1442_v39 = vadd.f32 1.0, %v17135_v59  ;;  %v17137_v46 = vpop.eup %17136 }
 0x18f   :  { %v1456_v53 = vadd.f32 1.0, %v17137_v46  ;;  %v18152_v46 = vld [vmem:[%s21397_s6] ss:$0 sm:$0xff] }
 0x190   :  { %17138 = vrcp.f32 %v1442_v39  ;;  %v3012_v39 = vsel %vm2968_vm6, 1, %v21585_v28 }
 0x191   :  { %3014 = vperm.xlu1 %15635, %v3012_v39  }
 0x19a   :  { %v17139_v49 = vpop.eup %17138 }
 0x19e   :  { %v1382_v58 = vpop.f32.mrb[32].mxu0 }
 0x19f   :  { %v1466_v60 = vadd.f32 %v18136_v55, %v1382_v58  ;;  %v1384_v0 = vpop.f32.mrb[33].mxu0 }
 0x1a0   :  { %v1445_v37 = vadd.f32 %v1384_v0, %v594_v57  ;;  %v1386_v31 = vpop.f32.mrb[34].mxu0  ;;  %v3779_v57 = vsel %vm3735_vm7, 1, %v21585_v28  ;;  %v17465_v28 = vld [vmem:[#allocation6 + $0xf4] ss:$24 sps:$4 sm:$0xff]  }
 0x1a1   :  { %v1467_v33 = vmul.f32 %v17139_v49, %v1466_v60  ;;  %v1387_v59 = vpop.f32.mrb[35].mxu0  ;;  %3781 = vperm.xlu1 %15635, %v3779_v57   ;;  %v665_v31 = vadd.f32 %v664_v22, %v18080_v21  ;;  %v667_v57 = vadd.f32 %v666_v52, %v18085_v25  ;;  %v18157_v22 = vpop.permute.xlu0 %1488  ;;  %v18166_v25 = vld [vmem:[#allocation6 + $0x10] ss:$24 sps:$4 sm:$0xff]  }
 0x1a2   :  { %v13918_v1 = vmul.f32 -1.442695, %v1445_v37  ;;  %21587 = vst [vmem:[#allocation52_spill] sm:$0xff] %v18157_v22  ;;  %vm1490_vm8 = vcmp.eq.s32.totalorder %v18157_v22, 1 }
 0x1a3   :  { %v1468_v15 = vadd.f32 %v1467_v33, %v558_v42  ;;  %vm18171_vm9 = vmpackc.low %vm1490_vm8, %vm1490_vm8 }
 0x1a5   :  { %17140 = vtanh.f32 %v1468_v15 }
 0x1a6   :  { %17142 = vpow2.f32 %v13918_v1 }
 0x1a7   :  { %17144 = vrcp.f32 %v1456_v53 }
 0x1af   :  { %v17141_v54 = vpop.eup %17140 }
 0x1b0   :  { %v17143_v56 = vpop.eup %17142  ;;  %v1474_v58 = vsub.f32 0.0, %v17141_v54 }
 0x1b1   :  { %v17145_v60 = vpop.eup %17144  ;;  %v1449_v49 = vadd.f32 1.0, %v17143_v56 }
 0x1b2   :  { %v1475_v0 = vmul.f32 %v17145_v60, %v1474_v58 }
 0x1b3   :  { %17146 = vrcp.f32 %v1449_v49 }
 0x1b4   :  { %v18147_v37 = vadd.f32 %v17141_v54, %v1475_v0 }
 0x1b6   :  { %21586 = vst [vmem:[#allocation51_spill] sm:$0xff] %v18147_v37 }
 0x1bd   :  { %v17147_v53 = vpop.eup %17146 }
 0x1be   :  { %v1423_v42 = vpop.f32.mrb[20].mxu1 }
 0x1bf   :  { %v1459_v33 = vadd.f32 %v1423_v42, %v665_v31  ;;  %v1425_v59 = vpop.f32.mrb[21].mxu1  ;;  %v18160_v42 = vpop.permute.xlu0 %1482 }
 0x1c0   :  { %v1470_v1 = vadd.f32 %v18152_v46, %v1425_v59  ;;  %v1427_v38 = vpop.f32.mrb[22].mxu1  ;;  %21588 = vst [vmem:[#allocation53_spill] sm:$0xff] %v18160_v42  ;;  %v21590_v59 = vmov 0  ;;  %vm1484_vm10 = vcmp.eq.s32.totalorder %v18160_v42, 1 }
 0x1c1   :  { %v13920_v15 = vmul.f32 -1.442695, %v1459_v33  ;;  %v1428_v39 = vpop.f32.mrb[23].mxu1  ;;  %v21591_v59 = vsel %vm18171_vm9, 4294967295, %v21590_v59  ;;  %v18180_v38 = vld [vmem:[#allocation6 + $0x44] ss:$24 sps:$4 sm:$0xff]   ;;  %vm18185_vm11 = vmpackc.low %vm1484_vm10, %vm1484_vm10 }
 0x1c2   :  { %v1471_v54 = vmul.f32 %v17147_v53, %v1470_v1  ;;  %21592 = vst [vmem:[#allocation55_spill] sm:$0xff] %v21591_v59  ;;  %v18178_v1 = vpack.c.bf16 %v18147_v37, %v18147_v37  ;;  %v21593_v53 = vmov 0  ;;  %v18205_v39 = vld [vmem:[#allocation6 + $0x74] ss:$24 sps:$4 sm:$0xff]   ;;  %v17464_v59 = vld [vmem:[#allocation6 + $0xc0] ss:$24 sps:$4 sm:$0xff]  }
 0x1c3   :  { %17148 = vpow2.f32 %v13920_v15  ;;  %v21594_v53 = vsel %vm18185_vm11, 4294967295, %v21593_v53  ;;  %v18202_v15 = vld [vmem:[#allocation6 + $0x40] ss:$24 sps:$4 sm:$0xff]  }
 0x1c4   :  { %v1472_v56 = vadd.f32 %v1471_v54, %v667_v57  ;;  %21595 = vst [vmem:[#allocation56_spill] sm:$0xff] %v21594_v53  ;;  %v17455_v57 = vld [vmem:[#allocation6] ss:$24 sps:$4 sm:$0xff]   ;;  %v17456_v54 = vld [vmem:[#allocation6 + $0x34] ss:$24 sps:$4 sm:$0xff]  }
 0x1c5   :  { %v18262_v53 = vld [vmem:[#allocation6 + $0x12c] ss:$24 sps:$4 sm:$0xff]  }
 0x1c6   :  { %17150 = vtanh.f32 %v1472_v56  ;;  %v18208_v56 = vld [vmem:[#allocation6 + $0x70] ss:$24 sps:$4 sm:$0xff]  }
 0x1cd   :  { %v17149_v58 = vpop.eup %17148 }
 0x1ce   :  { %v1463_v60 = vadd.f32 1.0, %v17149_v58  ;;  %v18211_v58 = vld [vmem:[#allocation6 + $0xa4] ss:$24 sps:$4 sm:$0xff]  }
 0x1d0   :  { %17152 = vrcp.f32 %v1463_v60  ;;  %v17151_v0 = vpop.eup %17150  ;;  %v17457_v60 = vld [vmem:[#allocation6 + $0x30] ss:$24 sps:$4 sm:$0xff]  }
 0x1d1   :  { %v1477_v21 = vsub.f32 0.0, %v17151_v0 }
 0x1da   :  { %v17153_v49 = vpop.eup %17152 }
 0x1db   :  { %v1478_v31 = vmul.f32 %v17153_v49, %v1477_v21  ;;  %v18214_v21 = vld [vmem:[#allocation6 + $0xa0] ss:$24 sps:$4 sm:$0xff]   ;;  %v18217_v49 = vld [vmem:[#allocation6 + $0xd4] ss:$24 sps:$4 sm:$0xff]  }
 0x1dd   :  { %v18162_v33 = vadd.f32 %v17151_v0, %v1478_v31  ;;  %v17458_v0 = vld [vmem:[#allocation6 + $0x64] ss:$24 sps:$4 sm:$0xff]   ;;  %v17459_v31 = vld [vmem:[#allocation6 + $0x60] ss:$24 sps:$4 sm:$0xff]  }
 0x1df   :  { %21589 = vst [vmem:[#allocation54_spill] sm:$0xff] %v18162_v33  ;;  %v14018_v52 = vpack.c.bf16 %v18162_v33, %v18162_v33 }
 0x1e1   :  { %14019 = vmatprep.mubr.msk.bf16.mxu0 %vm18171_vm9, %v14018_v52  ;;  %14025 = vmatprep.mubr.msk.bf16.mxu1 %vm18171_vm9, %v14018_v52 }
 0x1e2   :  { %14022 = vmatmul.mubr.msk.bf16.vlgmr.msra.gmra.mrb[36].mxu0 %vm18185_vm11, %v18178_v1  ;;  %14028 = vmatmul.mubr.msk.bf16.vlgmr.msra.gmra.mrb[24].mxu1 %vm18185_vm11, %v18178_v1 }
 0x1e3   :  { %2155 = vmatpush1.bf16.msra.mxu0 %v18166_v25  ;;  %14031 = vmatprep.mubr.msk.bf16.mxu0 %vm18171_vm9, %v14018_v52  ;;  %v17460_v52 = vld [vmem:[#allocation6 + $0x94] ss:$24 sps:$4 sm:$0xff]  }
 0x1e4   :  { %2156 = vmatprep.subr.bf16.mxu0 %v18180_v38  ;;  %2840 = vmatpush1.bf16.msra.mxu1 %v17455_v57  ;;  %v18220_v57 = vld [vmem:[#allocation6 + $0xd0] ss:$24 sps:$4 sm:$0xff]  }
 0x1e5   :  { %2841 = vmatprep.subr.bf16.mxu1 %v17456_v54  ;;  %v17461_v54 = vld [vmem:[#allocation6 + $0x90] ss:$24 sps:$4 sm:$0xff]  }
 0x1e7   :  { %2157 = vmatpush1.bf16.msra.mxu0 %v18202_v15 }
 0x1e8   :  { %2158 = vmatprep.subr.bf16.mxu0 %v18205_v39  ;;  %2842 = vmatpush1.bf16.msra.mxu1 %v17457_v60  ;;  %v17462_v60 = vld [vmem:[#allocation6 + $0xc4] ss:$24 sps:$4 sm:$0xff]  }
 0x1e9   :  { %2843 = vmatprep.subr.bf16.mxu1 %v17458_v0  ;;  %v17463_v0 = vld [vmem:[#allocation6 + $0x104] ss:$24 sps:$4 sm:$0xff]  }
 0x1eb   :  { %2159 = vmatpush1.bf16.msra.mxu0 %v18208_v56 }
 0x1ec   :  { %2160 = vmatprep.subr.bf16.mxu0 %v18211_v58  ;;  %2844 = vmatpush1.bf16.msra.mxu1 %v17459_v31  ;;  %v17466_v31 = vld [vmem:[#allocation6 + $0x100] ss:$24 sps:$4 sm:$0xff]  }
 0x1ed   :  { %2845 = vmatprep.subr.bf16.mxu1 %v17460_v52  ;;  %v17467_v52 = vld [vmem:[#allocation6 + $0x134] ss:$24 sps:$4 sm:$0xff]  }
 0x1ef   :  { %2161 = vmatpush1.bf16.msra.mxu0 %v18214_v21 }
 0x1f0   :  { %2162 = vmatprep.subr.bf16.mxu0 %v18217_v49  ;;  %2846 = vmatpush1.bf16.msra.mxu1 %v17461_v54  ;;  %v17471_v54 = vld [vmem:[#allocation6 + $0x164] ss:$24 sps:$4 sm:$0xff]  }
 0x1f1   :  { %2847 = vmatprep.subr.bf16.mxu1 %v17462_v60  ;;  %v17472_v60 = vld [vmem:[#allocation6 + $0x120] ss:$24 sps:$4 sm:$0xff]  }
 0x1f3   :  { %2163 = vmatpush1.bf16.msra.mxu0 %v18220_v57 }
 0x1f4   :  { %2164 = vmatprep.subr.bf16.mxu0 %v17463_v0  ;;  %2848 = vmatpush1.bf16.msra.mxu1 %v17464_v59  ;;  %v17474_v0 = vld [vmem:[#allocation6 + $0x160] ss:$24 sps:$4 sm:$0xff]   ;;  %v17475_v59 = vld [vmem:[#allocation6 + $0x194] ss:$24 sps:$4 sm:$0xff]  }
 0x1f5   :  { %2849 = vmatprep.subr.bf16.mxu1 %v17465_v28  ;;  %v17476_v28 = vld [vmem:[#allocation6 + $0x150] ss:$24 sps:$4 sm:$0xff]  }
 0x1f7   :  { %2165 = vmatpush1.bf16.msra.mxu0 %v17466_v31  ;;  %v17477_v31 = vld [vmem:[#allocation6 + $0x184] ss:$24 sps:$4 sm:$0xff]  }
 0x1f8   :  { %2166 = vmatprep.subr.bf16.mxu0 %v17467_v52  ;;  %2850 = vmatpush1.bf16.msra.mxu1 %v17468_v11  ;;  %v17478_v52 = vld [vmem:[#allocation6 + $0x190] ss:$24 sps:$4 sm:$0xff]   ;;  %v17479_v11 = vld [vmem:[#allocation6 + $0x1c4] ss:$24 sps:$4 sm:$0xff]  }
 0x1f9   :  { %2851 = vmatprep.subr.bf16.mxu1 %v17469_v62  ;;  %v17480_v62 = vld [vmem:[#allocation6 + $0x180] ss:$24 sps:$4 sm:$0xff]  }
 0x1fb   :  { %2167 = vmatpush1.bf16.msra.mxu0 %v17470_v19  ;;  %v17481_v19 = vld [vmem:[#allocation6 + $0x1b4] ss:$24 sps:$4 sm:$0xff]  }
 0x1fc   :  { %2168 = vmatprep.subr.bf16.mxu0 %v17471_v54  ;;  %2852 = vmatpush1.bf16.msra.mxu1 %v17472_v60  ;;  %v17482_v54 = vld [vmem:[#allocation6 + $0x1c0] ss:$24 sps:$4 sm:$0xff]   ;;  %v17483_v60 = vld [vmem:[#allocation6 + $0x1f4] ss:$24 sps:$4 sm:$0xff]  }
 0x1fd   :  { %2853 = vmatprep.subr.bf16.mxu1 %v17473_v7  ;;  %v17484_v7 = vld [vmem:[#allocation6 + $0x1b0] ss:$24 sps:$4 sm:$0xff]  }
 0x1ff   :  { %2169 = vmatpush1.bf16.msra.mxu0 %v17474_v0  ;;  %v17485_v0 = vld [vmem:[#allocation6 + $0x1e4] ss:$24 sps:$4 sm:$0xff]  }
 0x200   :  { %2170 = vmatprep.subr.bf16.mxu0 %v17475_v59  ;;  %2854 = vmatpush1.bf16.msra.mxu1 %v17476_v28  ;;  %v17486_v59 = vld [vmem:[#allocation6 + $0x1f0] ss:$24 sps:$4 sm:$0xff]   ;;  %v17487_v28 = vld [vmem:[#allocation6 + $0x224] ss:$24 sps:$4 sm:$0xff]  }
 0x201   :  { %2855 = vmatprep.subr.bf16.mxu1 %v17477_v31  ;;  %v17488_v31 = vld [vmem:[#allocation6 + $0x1e0] ss:$24 sps:$4 sm:$0xff]  }
 0x203   :  { %2171 = vmatpush1.bf16.msra.mxu0 %v17478_v52  ;;  %v17489_v52 = vld [vmem:[#allocation6 + $0x214] ss:$24 sps:$4 sm:$0xff]  }
 0x204   :  { %2172 = vmatprep.subr.bf16.mxu0 %v17479_v11  ;;  %2856 = vmatpush1.bf16.msra.mxu1 %v17480_v62  ;;  %v17490_v11 = vld [vmem:[#allocation6 + $0x220] ss:$24 sps:$4 sm:$0xff]   ;;  %v17491_v62 = vld [vmem:[#allocation6 + $0x254] ss:$24 sps:$4 sm:$0xff]  }
 0x205   :  { %2857 = vmatprep.subr.bf16.mxu1 %v17481_v19  ;;  %v17492_v19 = vld [vmem:[#allocation6 + $0x210] ss:$24 sps:$4 sm:$0xff]  }
 0x207   :  { %2173 = vmatpush1.bf16.msra.mxu0 %v17482_v54  ;;  %v17493_v54 = vld [vmem:[#allocation6 + $0x244] ss:$24 sps:$4 sm:$0xff]  }
 0x208   :  { %2174 = vmatprep.subr.bf16.mxu0 %v17483_v60  ;;  %2858 = vmatpush1.bf16.msra.mxu1 %v17484_v7  ;;  %v17494_v60 = vld [vmem:[#allocation6 + $0x250] ss:$24 sps:$4 sm:$0xff]   ;;  %v17495_v7 = vld [vmem:[#allocation6 + $0x284] ss:$24 sps:$4 sm:$0xff]  }
 0x209   :  { %2859 = vmatprep.subr.bf16.mxu1 %v17485_v0  ;;  %v17496_v0 = vld [vmem:[#allocation6 + $0x240] ss:$24 sps:$4 sm:$0xff]  }
 0x20b   :  { %2175 = vmatpush1.bf16.msra.mxu0 %v17486_v59  ;;  %v17497_v59 = vld [vmem:[#allocation6 + $0x274] ss:$24 sps:$4 sm:$0xff]  }
 0x20c   :  { %2176 = vmatprep.subr.bf16.mxu0 %v17487_v28  ;;  %2860 = vmatpush1.bf16.msra.mxu1 %v17488_v31  ;;  %v17498_v28 = vld [vmem:[#allocation6 + $0x280] ss:$24 sps:$4 sm:$0xff]   ;;  %v17499_v31 = vld [vmem:[#allocation6 + $0x2b4] ss:$24 sps:$4 sm:$0xff]  }
 0x20d   :  { %2861 = vmatprep.subr.bf16.mxu1 %v17489_v52  ;;  %v17500_v52 = vld [vmem:[#allocation6 + $0x270] ss:$24 sps:$4 sm:$0xff]  }
 0x20f   :  { %2177 = vmatpush1.bf16.msra.mxu0 %v17490_v11  ;;  %v17501_v11 = vld [vmem:[#allocation6 + $0x2a4] ss:$24 sps:$4 sm:$0xff]  }
 0x210   :  { %2178 = vmatprep.subr.bf16.mxu0 %v17491_v62  ;;  %2862 = vmatpush1.bf16.msra.mxu1 %v17492_v19  ;;  %v17502_v62 = vld [vmem:[#allocation6 + $0x2b0] ss:$24 sps:$4 sm:$0xff]   ;;  %v17503_v19 = vld [vmem:[#allocation6 + $0x2e4] ss:$24 sps:$4 sm:$0xff]  }
 0x211   :  { %2863 = vmatprep.subr.bf16.mxu1 %v17493_v54  ;;  %v17504_v54 = vld [vmem:[#allocation6 + $0x2a0] ss:$24 sps:$4 sm:$0xff]  }
 0x213   :  { %2179 = vmatpush1.bf16.msra.mxu0 %v17494_v60  ;;  %v17505_v60 = vld [vmem:[#allocation6 + $0x2d4] ss:$24 sps:$4 sm:$0xff]  }
 0x214   :  { %2180 = vmatprep.subr.bf16.mxu0 %v17495_v7  ;;  %2864 = vmatpush1.bf16.msra.mxu1 %v17496_v0  ;;  %v17506_v7 = vld [vmem:[#allocation6 + $0x2e0] ss:$24 sps:$4 sm:$0xff]   ;;  %v17507_v0 = vld [vmem:[#allocation6 + $0x2d0] ss:$24 sps:$4 sm:$0xff]  }
 0x215   :  { %2865 = vmatprep.subr.bf16.mxu1 %v17497_v59  ;;  %v17508_v59 = vld [vmem:[#allocation6 + $0x14] ss:$24 sps:$4 sm:$0xff]  }
 0x217   :  { %2181 = vmatpush1.bf16.msra.mxu0 %v17498_v28  ;;  %v18227_v28 = vld [vmem:[#allocation6 + $0xc] ss:$24 sps:$4 sm:$0xff]  }
 0x218   :  { %2182 = vmatprep.subr.bf16.mxu0 %v17499_v31  ;;  %2866 = vmatpush1.bf16.msra.mxu1 %v17500_v52  ;;  %v18229_v31 = vld [vmem:[#allocation6 + $0x8] ss:$24 sps:$4 sm:$0xff]   ;;  %v18233_v52 = vld [vmem:[#allocation6 + $0x3c] ss:$24 sps:$4 sm:$0xff]  }
 0x219   :  { %2867 = vmatprep.subr.bf16.mxu1 %v17501_v11  ;;  %v18235_v11 = vld [vmem:[#allocation6 + $0x38] ss:$24 sps:$4 sm:$0xff]  }
 0x21b   :  { %2183 = vmatpush1.bf16.msra.mxu0 %v17502_v62  ;;  %v18239_v62 = vld [vmem:[#allocation6 + $0x6c] ss:$24 sps:$4 sm:$0xff]  }
 0x21c   :  { %2184 = vmatprep.subr.bf16.mxu0 %v17503_v19  ;;  %2868 = vmatpush1.bf16.msra.mxu1 %v17504_v54  ;;  %v18241_v19 = vld [vmem:[#allocation6 + $0x68] ss:$24 sps:$4 sm:$0xff]   ;;  %v18247_v54 = vld [vmem:[#allocation6 + $0x9c] ss:$24 sps:$4 sm:$0xff]  }
 0x21d   :  { %2869 = vmatprep.subr.bf16.mxu1 %v17505_v60  ;;  %v18249_v60 = vld [vmem:[#allocation6 + $0xcc] ss:$24 sps:$4 sm:$0xff]  }
 0x21f   :  { %2185 = vmatpush1.bf16.msra.mxu0 %v17506_v7  ;;  %v18253_v7 = vld [vmem:[#allocation6 + $0xc8] ss:$24 sps:$4 sm:$0xff]  }
 0x220   :  { %2870 = vmatpush1.bf16.msra.mxu1 %v17507_v0  ;;  %2880 = vmatprep.subr.bf16.mxu0 %v18227_v28  ;;  %v18256_v0 = vld [vmem:[#allocation6 + $0xfc] ss:$24 sps:$4 sm:$0xff]  }
 0x221   :  { %2921 = vmatprep.subr.bf16.mxu1 %v17508_v59  ;;  %v18259_v59 = vld [vmem:[#allocation6 + $0xf8] ss:$24 sps:$4 sm:$0xff]  }
 0x222   :  { %14034 = vmatmul.mubr.msk.bf16.vlgmr.msra.gmra.mrb[40].mxu0 %vm18185_vm11, %v18178_v1  ;;  %v18245_v1 = vld [vmem:[#allocation6 + $0x98] ss:$24 sps:$4 sm:$0xff]  }
 0x223   :  { %2881 = vmatpush1.bf16.msra.mxu0 %v18229_v31 }
 0x224   :  { %2882 = vmatprep.subr.bf16.mxu0 %v18233_v52 }
 0x227   :  { %2883 = vmatpush1.bf16.msra.mxu0 %v18235_v11 }
 0x228   :  { %2884 = vmatprep.subr.bf16.mxu0 %v18239_v62 }
 0x22b   :  { %2885 = vmatpush1.bf16.msra.mxu0 %v18241_v19 }
 0x22c   :  { %2886 = vmatprep.subr.bf16.mxu0 %v18247_v54 }
 0x22f   :  { %2887 = vmatpush1.bf16.msra.mxu0 %v18245_v1 }
 0x230   :  { %2888 = vmatprep.subr.bf16.mxu0 %v18249_v60 }
 0x233   :  { %2889 = vmatpush1.bf16.msra.mxu0 %v18253_v7 }
 0x234   :  { %2890 = vmatprep.subr.bf16.mxu0 %v18256_v0 }
 0x237   :  { %2891 = vmatpush1.bf16.msra.mxu0 %v18259_v59 }
 0x238   :  { %2892 = vmatprep.subr.bf16.mxu0 %v18262_v53 }
 0x23b   :  { %2893 = vmatpush1.bf16.msra.mxu0 %v18265_v6 }
 0x23c   :  { %2894 = vmatprep.subr.bf16.mxu0 %v18269_v2 }
 0x23f   :  { %2895 = vmatpush1.bf16.msra.mxu0 %v18271_v26 }
 0x240   :  { %2896 = vmatprep.subr.bf16.mxu0 %v18275_v8 }
 0x243   :  { %2897 = vmatpush1.bf16.msra.mxu0 %v18277_v32 }
 0x244   :  { %2898 = vmatprep.subr.bf16.mxu0 %v18281_v16 }
 0x247   :  { %2899 = vmatpush1.bf16.msra.mxu0 %v18283_v18 }
 0x248   :  { %2900 = vmatprep.subr.bf16.mxu0 %v18287_v12 }
 0x24b   :  { %2901 = vmatpush1.bf16.msra.mxu0 %v18289_v40 }
 0x24c   :  { %2902 = vmatprep.subr.bf16.mxu0 %v18293_v34 }
 0x24f   :  { %2903 = vmatpush1.bf16.msra.mxu0 %v18295_v61 }
 0x250   :  { %2904 = vmatprep.subr.bf16.mxu0 %v18301_v51 }
 0x253   :  { %2905 = vmatpush1.bf16.msra.mxu0 %v18299_v35 }
 0x254   :  { %2906 = vmatprep.subr.bf16.mxu0 %v18303_v36 }
 0x257   :  { %2907 = vmatpush1.bf16.msra.mxu0 %v18307_v17 }
 0x258   :  { %2908 = vmatprep.subr.bf16.mxu0 %v18310_v48 }
 0x25b   :  { %2909 = vmatpush1.bf16.msra.mxu0 %v18313_v23 }
 0x25c   :  { %2910 = vmatprep.subr.bf16.mxu0 %v18316_v13 }
 0x25f   :  { %2911 = vmatpush1.bf16.msra.mxu0 %v18319_v44 }
 0x2b5   :  { %v2106_v29 = vpop.f32.mrb[36].mxu0  ;;  %v2147_v45 = vpop.f32.mrb[24].mxu1 }
 0x2b6   :  { %v2203_v27 = vadd.f32 %v2106_v29, %v17998_v5  ;;  %v2108_v50 = vpop.f32.mrb[37].mxu0  ;;  %v2149_v41 = vpop.f32.mrb[25].mxu1  ;;  %v2231_v5 = vadd.f32 %v18136_v55, %v2147_v45 }
 0x2b7   :  { %v2217_v14 = vadd.f32 %v2108_v50, %v18004_v10  ;;  %v2210_v4 = vadd.f32 %v2149_v41, %v18066_v43  ;;  %v2110_v24 = vpop.f32.mrb[38].mxu0  ;;  %v2151_v63 = vpop.f32.mrb[26].mxu1 }
 0x2b8   :  { %v14035_v30 = vmul.f32 -1.442695, %v2203_v27  ;;  %v2111_v20 = vpop.f32.mrb[39].mxu0  ;;  %v2152_v23 = vpop.f32.mrb[27].mxu1 }
 0x2b9   :  { %v14037_v48 = vmul.f32 -1.442695, %v2217_v14  ;;  %v14036_v24 = vmul.f32 -1.442695, %v2210_v4 }
 0x2ba   :  { %17154 = vpow2.f32 %v14035_v30  ;;  %v1485_v30 = vsel %vm1484_vm10, %v18147_v37, 0.0 }
 0x2bb   :  { %17156 = vpow2.f32 %v14037_v48 }
 0x2c4   :  { %v17155_v13 = vpop.eup %17154 }
 0x2c5   :  { %v2207_v17 = vadd.f32 1.0, %v17155_v13  ;;  %v17157_v44 = vpop.eup %17156 }
 0x2c6   :  { %v2221_v50 = vadd.f32 1.0, %v17157_v44 }
 0x2c7   :  { %17158 = vrcp.f32 %v2207_v17 }
 0x2d1   :  { %v17159_v29 = vpop.eup %17158 }
 0x2d2   :  { %v2232_v36 = vmul.f32 %v17159_v29, %v2231_v5 }
 0x2d4   :  { %v2233_v10 = vadd.f32 %v2232_v36, %v17995_v3 }
 0x2d6   :  { %17160 = vtanh.f32 %v2233_v10 }
 0x2d7   :  { %17162 = vrcp.f32 %v2221_v50  ;;  %v18336_v50 = vpop.permute.xlu1 %2253 }
 0x2d8   :  { %17164 = vpow2.f32 %v14036_v24  ;;  %21603 = vst [vmem:[#allocation64_spill] sm:$0xff] %v18336_v50  ;;  %vm2255_vm13 = vcmp.eq.s32.totalorder %v18336_v50, 1 }
 0x2d9   :  { %vm19545_vm5 = vmpackc.low %vm1490_vm8, %vm2255_vm13 }
 0x2e0   :  { %v17161_v20 = vpop.eup %17160 }
 0x2e1   :  { %v2239_v41 = vsub.f32 %v1485_v30, %v17161_v20  ;;  %v17163_v48 = vpop.eup %17162 }
 0x2e2   :  { %v17165_v45 = vpop.eup %17164 }
 0x2e3   :  { %v2240_v13 = vmul.f32 %v17163_v48, %v2239_v41  ;;  %v2214_v23 = vadd.f32 1.0, %v17165_v45  ;;  %v18341_v41 = vpop.permute.xlu1 %2247 }
 0x2e4   :  { %21604 = vst [vmem:[#allocation65_spill] sm:$0xff] %v18341_v41  ;;  %vm2249_vm12 = vcmp.eq.s32.totalorder %v18341_v41, 1  ;;  %v21624_v41 = vld [vmem:[#allocation19_spill] sm:$0xff] }
 0x2e5   :  { %v18331_v17 = vadd.f32 %v17161_v20, %v2240_v13  ;;  %17166 = vrcp.f32 %v2214_v23  ;;  %vm19461_vm2 = vmpackc.low %vm2249_vm12, %vm1484_vm10 }
 0x2e7   :  { %21602 = vst [vmem:[#allocation63_spill] sm:$0xff] %v18331_v17 }
 0x2ef   :  { %v17167_v44 = vpop.eup %17166 }
 0x2f5   :  { %v2188_v27 = vpop.f32.mrb[40].mxu0 }
 0x2f6   :  { %v2224_v3 = vadd.f32 %v2188_v27, %v18124_v47  ;;  %v2190_v63 = vpop.f32.mrb[41].mxu0  ;;  %v1491_v47 = vsel %vm1490_vm8, %v18162_v33, 0.0 }
 0x2f7   :  { %v2235_v43 = vadd.f32 %v18152_v46, %v2190_v63  ;;  %v2192_v36 = vpop.f32.mrb[42].mxu0  ;;  %v18402_v63 = vld [vmem:[#allocation6 + $0x1f0] ss:$24 sps:$4 sm:$0xff]  }
 0x2f8   :  { %v14038_v4 = vmul.f32 -1.442695, %v2224_v3  ;;  %v2193_v14 = vpop.f32.mrb[43].mxu0  ;;  %v18399_v3 = vld [vmem:[#allocation6 + $0x1f4] ss:$24 sps:$4 sm:$0xff]  }
 0x2f9   :  { %v2236_v55 = vmul.f32 %v17167_v44, %v2235_v43  ;;  %v18405_v43 = vld [vmem:[#allocation6 + $0x224] ss:$24 sps:$4 sm:$0xff]   ;;  %v18408_v36 = vld [vmem:[#allocation6 + $0x220] ss:$24 sps:$4 sm:$0xff]   ;;  %v18411_v44 = vld [vmem:[#allocation6 + $0x254] ss:$24 sps:$4 sm:$0xff]  }
 0x2fa   :  { %17168 = vpow2.f32 %v14038_v4  ;;  %v18414_v4 = vld [vmem:[#allocation6 + $0x250] ss:$24 sps:$4 sm:$0xff]   ;;  %v18417_v14 = vld [vmem:[#allocation6 + $0x284] ss:$24 sps:$4 sm:$0xff]  }
 0x2fb   :  { %v2237_v5 = vadd.f32 %v2236_v55, %v18127_v9  ;;  %v18350_v9 = vsel %vm2249_vm12, %v18331_v17, %v1485_v30  ;;  %v18369_v30 = vld [vmem:[#allocation6 + $0x104] ss:$24 sps:$4 sm:$0xff]   ;;  %v18420_v55 = vld [vmem:[#allocation6 + $0x280] ss:$24 sps:$4 sm:$0xff]  }
 0x2fc   :  { %v2261_v27 = vpack.c.bf16 %v18350_v9, %v18350_v9  ;;  %21606 = vst [vmem:[#allocation67_spill] sm:$0xff] %v18420_v55 }
 0x2fd   :  { %17170 = vtanh.f32 %v2237_v5  ;;  %v18423_v5 = vld [vmem:[#allocation6 + $0x2b4] ss:$24 sps:$4 sm:$0xff]  }
 0x2fe   :  { %21607 = vst [vmem:[#allocation68_spill] sm:$0xff] %v18423_v5 }
 0x304   :  { %v17169_v29 = vpop.eup %17168 }
 0x305   :  { %v2228_v10 = vadd.f32 1.0, %v17169_v29  ;;  %v18426_v29 = vld [vmem:[#allocation6 + $0x2b0] ss:$24 sps:$4 sm:$0xff]  }
 0x306   :  { %21608 = vst [vmem:[#allocation69_spill] sm:$0xff] %v18426_v29 }
 0x307   :  { %17172 = vrcp.f32 %v2228_v10  ;;  %v17171_v24 = vpop.eup %17170  ;;  %v18429_v10 = vld [vmem:[#allocation6 + $0x2e4] ss:$24 sps:$4 sm:$0xff]  }
 0x308   :  { %v2242_v46 = vsub.f32 %v1491_v47, %v17171_v24  ;;  %21609 = vst [vmem:[#allocation70_spill] sm:$0xff] %v18429_v10 }
 0x311   :  { %v17173_v20 = vpop.eup %17172 }
 0x312   :  { %v2243_v48 = vmul.f32 %v17173_v20, %v2242_v46  ;;  %v18527_v46 = vld [vmem:[#allocation6 + $0x1e0] ss:$24 sps:$4 sm:$0xff]   ;;  %v18531_v20 = vld [vmem:[#allocation6 + $0x214] ss:$24 sps:$4 sm:$0xff]  }
 0x314   :  { %v18344_v13 = vadd.f32 %v17171_v24, %v2243_v48  ;;  %v18432_v24 = vld [vmem:[#allocation6 + $0x2e0] ss:$24 sps:$4 sm:$0xff]   ;;  %v18533_v48 = vld [vmem:[#allocation6 + $0x210] ss:$24 sps:$4 sm:$0xff]  }
 0x315   :  { %21610 = vst [vmem:[#allocation71_spill] sm:$0xff] %v18432_v24 }
 0x316   :  { %21605 = vst [vmem:[#allocation66_spill] sm:$0xff] %v18344_v13  ;;  %v18355_v45 = vsel %vm2255_vm13, %v18344_v13, %v1491_v47  ;;  %v18525_v47 = vld [vmem:[#allocation6 + $0x1e4] ss:$24 sps:$4 sm:$0xff]  }
 0x317   :  { %v2262_v23 = vpack.c.bf16 %v18355_v45, %v18355_v45  ;;  %v21623_v13 = vld [vmem:[#allocation17_spill] sm:$0xff] }
 0x319   :  { %2871 = vmatprep.mubr.bf16.mxu1 %v2262_v23  ;;  %2912 = vmatprep.mubr.bf16.mxu0 %v2262_v23 }
 0x31a   :  { %2872 = vmatmul.mubr.bf16.vlgmr.msra.gmra.mrb[28].mxu1 %v2261_v27  ;;  %2913 = vmatmul.mubr.bf16.vlgmr.msra.gmra.mrb[44].mxu0 %v2261_v27 }
 0x31b   :  { %2922 = vmatpush1.bf16.msra.mxu1 %v18166_v25  ;;  %2953 = vmatprep.mubr.bf16.mxu1 %v2262_v23  ;;  %v18372_v25 = vld [vmem:[#allocation6 + $0x100] ss:$24 sps:$4 sm:$0xff]  }
 0x31c   :  { %2923 = vmatprep.subr.bf16.mxu1 %v18180_v38  ;;  %v18375_v38 = vld [vmem:[#allocation6 + $0x134] ss:$24 sps:$4 sm:$0xff]   ;;  %v18537_v23 = vld [vmem:[#allocation6 + $0x240] ss:$24 sps:$4 sm:$0xff]  }
 0x31f   :  { %2924 = vmatpush1.bf16.msra.mxu1 %v18202_v15  ;;  %v18378_v15 = vld [vmem:[#allocation6 + $0x130] ss:$24 sps:$4 sm:$0xff]  }
 0x320   :  { %2925 = vmatprep.subr.bf16.mxu1 %v18205_v39  ;;  %v18381_v39 = vld [vmem:[#allocation6 + $0x164] ss:$24 sps:$4 sm:$0xff]  }
 0x323   :  { %2926 = vmatpush1.bf16.msra.mxu1 %v18208_v56  ;;  %v18384_v56 = vld [vmem:[#allocation6 + $0x160] ss:$24 sps:$4 sm:$0xff]  }
 0x324   :  { %2927 = vmatprep.subr.bf16.mxu1 %v18211_v58  ;;  %v18387_v58 = vld [vmem:[#allocation6 + $0x194] ss:$24 sps:$4 sm:$0xff]  }
 0x327   :  { %2928 = vmatpush1.bf16.msra.mxu1 %v18214_v21  ;;  %v18390_v21 = vld [vmem:[#allocation6 + $0x190] ss:$24 sps:$4 sm:$0xff]  }
 0x328   :  { %2929 = vmatprep.subr.bf16.mxu1 %v18217_v49  ;;  %v18393_v49 = vld [vmem:[#allocation6 + $0x1c4] ss:$24 sps:$4 sm:$0xff]  }
 0x32b   :  { %2930 = vmatpush1.bf16.msra.mxu1 %v18220_v57  ;;  %v18396_v57 = vld [vmem:[#allocation6 + $0x1c0] ss:$24 sps:$4 sm:$0xff]  }
 0x32c   :  { %2931 = vmatprep.subr.bf16.mxu1 %v18369_v30 }
 0x32f   :  { %2932 = vmatpush1.bf16.msra.mxu1 %v18372_v25 }
 0x330   :  { %2933 = vmatprep.subr.bf16.mxu1 %v18375_v38 }
 0x333   :  { %2934 = vmatpush1.bf16.msra.mxu1 %v18378_v15 }
 0x334   :  { %2935 = vmatprep.subr.bf16.mxu1 %v18381_v39 }
 0x337   :  { %2936 = vmatpush1.bf16.msra.mxu1 %v18384_v56 }
 0x338   :  { %2937 = vmatprep.subr.bf16.mxu1 %v18387_v58 }
 0x33b   :  { %2938 = vmatpush1.bf16.msra.mxu1 %v18390_v21 }
 0x33c   :  { %2939 = vmatprep.subr.bf16.mxu1 %v18393_v49 }
 0x33f   :  { %2940 = vmatpush1.bf16.msra.mxu1 %v18396_v57 }
 0x340   :  { %2941 = vmatprep.subr.bf16.mxu1 %v18399_v3 }
 0x343   :  { %2942 = vmatpush1.bf16.msra.mxu1 %v18402_v63 }
 0x344   :  { %2943 = vmatprep.subr.bf16.mxu1 %v18405_v43 }
 0x347   :  { %2944 = vmatpush1.bf16.msra.mxu1 %v18408_v36 }
 0x348   :  { %2945 = vmatprep.subr.bf16.mxu1 %v18411_v44 }
 0x34b   :  { %2946 = vmatpush1.bf16.msra.mxu1 %v18414_v4 }
 0x34c   :  { %2947 = vmatprep.subr.bf16.mxu1 %v18417_v14 }
 0x34f   :  { %2948 = vmatpush1.bf16.msra.mxu1 %v18420_v55 }
 0x350   :  { %2949 = vmatprep.subr.bf16.mxu1 %v18423_v5 }
 0x353   :  { %2950 = vmatpush1.bf16.msra.mxu1 %v18426_v29 }
 0x354   :  { %2951 = vmatprep.subr.bf16.mxu1 %v18429_v10 }
 0x357   :  { %2952 = vmatpush1.bf16.msra.mxu1 %v18432_v24  ;;  %v21625_v24 = vld [vmem:[#allocation32_spill] sm:$0xff] }
 0x358   :  { %3647 = vmatprep.subr.bf16.mxu1 %v18227_v28  ;;  %v18487_v28 = vld [vmem:[#allocation6 + $0xc4] ss:$24 sps:$4 sm:$0xff]  }
 0x35a   :  { %2954 = vmatmul.mubr.bf16.vlgmr.msra.gmra.mrb[32].mxu1 %v2261_v27  ;;  %v18539_v27 = vld [vmem:[#allocation6 + $0x244] ss:$24 sps:$4 sm:$0xff]  }
 0x35b   :  { %3648 = vmatpush1.bf16.msra.mxu1 %v18229_v31  ;;  %v18491_v31 = vld [vmem:[#allocation6 + $0xc0] ss:$24 sps:$4 sm:$0xff]  }
 0x35c   :  { %3649 = vmatprep.subr.bf16.mxu1 %v18233_v52  ;;  %v18494_v52 = vld [vmem:[#allocation6 + $0xf4] ss:$24 sps:$4 sm:$0xff]  }
 0x35f   :  { %3650 = vmatpush1.bf16.msra.mxu1 %v18235_v11  ;;  %v18497_v11 = vld [vmem:[#allocation6 + $0xf0] ss:$24 sps:$4 sm:$0xff]  }
 0x360   :  { %3651 = vmatprep.subr.bf16.mxu1 %v18239_v62  ;;  %v18500_v62 = vld [vmem:[#allocation6 + $0x124] ss:$24 sps:$4 sm:$0xff]  }
 0x363   :  { %3652 = vmatpush1.bf16.msra.mxu1 %v18241_v19  ;;  %v18503_v19 = vld [vmem:[#allocation6 + $0x120] ss:$24 sps:$4 sm:$0xff]  }
 0x364   :  { %3653 = vmatprep.subr.bf16.mxu1 %v18247_v54  ;;  %v18509_v54 = vld [vmem:[#allocation6 + $0x150] ss:$24 sps:$4 sm:$0xff]  }
 0x367   :  { %3654 = vmatpush1.bf16.msra.mxu1 %v18245_v1  ;;  %v18507_v1 = vld [vmem:[#allocation6 + $0x154] ss:$24 sps:$4 sm:$0xff]  }
 0x368   :  { %3655 = vmatprep.subr.bf16.mxu1 %v18249_v60  ;;  %v18513_v60 = vld [vmem:[#allocation6 + $0x184] ss:$24 sps:$4 sm:$0xff]  }
 0x36b   :  { %3656 = vmatpush1.bf16.msra.mxu1 %v18253_v7  ;;  %v18515_v7 = vld [vmem:[#allocation6 + $0x180] ss:$24 sps:$4 sm:$0xff]  }
 0x36c   :  { %3657 = vmatprep.subr.bf16.mxu1 %v18256_v0  ;;  %v18519_v0 = vld [vmem:[#allocation6 + $0x1b4] ss:$24 sps:$4 sm:$0xff]  }
 0x36f   :  { %3658 = vmatpush1.bf16.msra.mxu1 %v18259_v59  ;;  %v18521_v59 = vld [vmem:[#allocation6 + $0x1b0] ss:$24 sps:$4 sm:$0xff]  }
 0x370   :  { %3659 = vmatprep.subr.bf16.mxu1 %v18262_v53  ;;  %v18485_v53 = vld [vmem:[#allocation6 + $0x94] ss:$24 sps:$4 sm:$0xff]  }
 0x373   :  { %3660 = vmatpush1.bf16.msra.mxu1 %v18265_v6  ;;  %v21615_v6 = vld [vmem:[#allocation61_spill] sm:$0xff] }
 0x374   :  { %3661 = vmatprep.subr.bf16.mxu1 %v18269_v2  ;;  %v21613_v2 = vld [vmem:[#allocation59_spill] sm:$0xff] }
 0x377   :  { %3662 = vmatpush1.bf16.msra.mxu1 %v18271_v26  ;;  %v21611_v26 = vld [vmem:[#allocation57_spill] sm:$0xff] }
 0x378   :  { %3663 = vmatprep.subr.bf16.mxu1 %v18275_v8  ;;  %v16002_v8 = vld [vmem:[#allocation6 + $0x4] ss:$24 sps:$4 sm:$0xff]  }
 0x379   :  { %3606 = vmatprep.subr.bf16.mxu0 %v16002_v8 }
 0x37b   :  { %3664 = vmatpush1.bf16.msra.mxu1 %v18277_v32  ;;  %v21612_v32 = vld [vmem:[#allocation58_spill] sm:$0xff] }
 0x37c   :  { %3665 = vmatprep.subr.bf16.mxu1 %v18281_v16  ;;  %v18464_v16 = vld [vmem:[#allocation6] ss:$24 sps:$4 sm:$0xff]  }
 0x37d   :  { %3607 = vmatpush1.bf16.msra.mxu0 %v18464_v16 }
 0x37f   :  { %3666 = vmatpush1.bf16.msra.mxu1 %v18283_v18  ;;  %v18479_v18 = vld [vmem:[#allocation6 + $0x60] ss:$24 sps:$4 sm:$0xff]  }
 0x380   :  { %3667 = vmatprep.subr.bf16.mxu1 %v18287_v12  ;;  %v21616_v12 = vld [vmem:[#allocation62_spill] sm:$0xff] }
 0x383   :  { %3668 = vmatpush1.bf16.msra.mxu1 %v18289_v40  ;;  %v18468_v40 = vld [vmem:[#allocation6 + $0x34] ss:$24 sps:$4 sm:$0xff]  }
 0x384   :  { %3669 = vmatprep.subr.bf16.mxu1 %v18293_v34  ;;  %v21614_v34 = vld [vmem:[#allocation60_spill] sm:$0xff]  ;;  %3608 = vmatprep.subr.bf16.mxu0 %v18468_v40 }
 0x387   :  { %3670 = vmatpush1.bf16.msra.mxu1 %v18295_v61  ;;  %v18471_v61 = vld [vmem:[#allocation6 + $0x30] ss:$24 sps:$4 sm:$0xff]  }
 0x388   :  { %3671 = vmatprep.subr.bf16.mxu1 %v18301_v51  ;;  %3609 = vmatpush1.bf16.msra.mxu0 %v18471_v61  ;;  %v18483_v51 = vld [vmem:[#allocation6 + $0x90] ss:$24 sps:$4 sm:$0xff]  }
 0x38b   :  { %3672 = vmatpush1.bf16.msra.mxu1 %v18299_v35  ;;  %v18476_v35 = vld [vmem:[#allocation6 + $0x64] ss:$24 sps:$4 sm:$0xff]  }
 0x38c   :  { %3673 = vmatprep.subr.bf16.mxu1 %v21611_v26  ;;  %3610 = vmatprep.subr.bf16.mxu0 %v18476_v35  ;;  %v18541_v26 = vld [vmem:[#allocation6 + $0x274] ss:$24 sps:$4 sm:$0xff]  }
 0x38d   :  { %3611 = vmatpush1.bf16.msra.mxu0 %v18479_v18 }
 0x38e   :  { %3612 = vmatprep.subr.bf16.mxu0 %v18485_v53 }
 0x38f   :  { %3674 = vmatpush1.bf16.msra.mxu1 %v21612_v32  ;;  %v18548_v32 = vld [vmem:[#allocation6 + $0x2a4] ss:$24 sps:$4 sm:$0xff]  }
 0x390   :  { %3675 = vmatprep.subr.bf16.mxu1 %v21613_v2  ;;  %21618 = vst [vmem:[#allocation58_spill] sm:$0xff] %v18548_v32  ;;  %v18551_v2 = vld [vmem:[#allocation6 + $0x2a0] ss:$24 sps:$4 sm:$0xff]  }
 0x391   :  { %3613 = vmatpush1.bf16.msra.mxu0 %v18483_v51  ;;  %21619 = vst [vmem:[#allocation59_spill] sm:$0xff] %v18551_v2 }
 0x392   :  { %3614 = vmatprep.subr.bf16.mxu0 %v18487_v28 }
 0x393   :  { %3676 = vmatpush1.bf16.msra.mxu1 %v21614_v34  ;;  %v18554_v34 = vld [vmem:[#allocation6 + $0x2d4] ss:$24 sps:$4 sm:$0xff]  }
 0x394   :  { %3677 = vmatprep.subr.bf16.mxu1 %v21615_v6  ;;  %21620 = vst [vmem:[#allocation60_spill] sm:$0xff] %v18554_v34  ;;  %v18557_v6 = vld [vmem:[#allocation6 + $0x2d0] ss:$24 sps:$4 sm:$0xff]  }
 0x395   :  { %3615 = vmatpush1.bf16.msra.mxu0 %v18491_v31  ;;  %21621 = vst [vmem:[#allocation61_spill] sm:$0xff] %v18557_v6 }
 0x396   :  { %3616 = vmatprep.subr.bf16.mxu0 %v18494_v52 }
 0x397   :  { %3678 = vmatpush1.bf16.msra.mxu1 %v21616_v12  ;;  %v18561_v12 = vld [vmem:[#allocation6 + $0x14] ss:$24 sps:$4 sm:$0xff]  }
 0x398   :  { %4373 = vmatprep.subr.bf16.mxu1 %v16002_v8  ;;  %v18545_v8 = vld [vmem:[#allocation6 + $0x270] ss:$24 sps:$4 sm:$0xff]   ;;  %21622 = vst [vmem:[#allocation62_spill] sm:$0xff] %v18561_v12 }
 0x399   :  { %3617 = vmatpush1.bf16.msra.mxu0 %v18497_v11  ;;  %21617 = vst [vmem:[#allocation57_spill] sm:$0xff] %v18545_v8 }
 0x39a   :  { %3618 = vmatprep.subr.bf16.mxu0 %v18500_v62 }
 0x39d   :  { %3619 = vmatpush1.bf16.msra.mxu0 %v18503_v19 }
 0x39e   :  { %3620 = vmatprep.subr.bf16.mxu0 %v18507_v1 }
 0x3a1   :  { %3621 = vmatpush1.bf16.msra.mxu0 %v18509_v54 }
 0x3a2   :  { %3622 = vmatprep.subr.bf16.mxu0 %v18513_v60 }
 0x3a5   :  { %3623 = vmatpush1.bf16.msra.mxu0 %v18515_v7 }
 0x3a6   :  { %3624 = vmatprep.subr.bf16.mxu0 %v18519_v0 }
 0x3a9   :  { %3625 = vmatpush1.bf16.msra.mxu0 %v18521_v59 }
 0x3aa   :  { %3626 = vmatprep.subr.bf16.mxu0 %v18525_v47 }
 0x3ad   :  { %3627 = vmatpush1.bf16.msra.mxu0 %v18527_v46 }
 0x3ae   :  { %3628 = vmatprep.subr.bf16.mxu0 %v18531_v20 }
 0x3b1   :  { %3629 = vmatpush1.bf16.msra.mxu0 %v18533_v48 }
 0x3b2   :  { %3630 = vmatprep.subr.bf16.mxu0 %v18539_v27 }
 0x3b5   :  { %3631 = vmatpush1.bf16.msra.mxu0 %v18537_v23 }
 0x3b6   :  { %3632 = vmatprep.subr.bf16.mxu0 %v18541_v26 }
 0x3b9   :  { %3633 = vmatpush1.bf16.msra.mxu0 %v18545_v8 }
 0x3ba   :  { %3634 = vmatprep.subr.bf16.mxu0 %v18548_v32 }
 0x3bd   :  { %3635 = vmatpush1.bf16.msra.mxu0 %v18551_v2 }
 0x3be   :  { %3636 = vmatprep.subr.bf16.mxu0 %v18554_v34 }
 0x3c1   :  { %3637 = vmatpush1.bf16.msra.mxu0 %v18557_v6 }
 0x3c2   :  { %3688 = vmatprep.subr.bf16.mxu0 %v18561_v12 }
 0x3ed   :  { %v2873_v22 = vpop.f32.mrb[28].mxu1  ;;  %v2914_v33 = vpop.f32.mrb[44].mxu0 }
 0x3ee   :  { %v2970_v17 = vadd.f32 %v2873_v22, %v21623_v13  ;;  %v2875_v37 = vpop.f32.mrb[29].mxu1  ;;  %v2916_v42 = vpop.f32.mrb[45].mxu0  ;;  %v18570_v22 = vld [vmem:[%s21396_s5] ss:$0 sm:$0xff] }
 0x3ef   :  { %v2984_v50 = vadd.f32 %v2875_v37, %v21624_v41  ;;  %v2977_v2 = vadd.f32 %v2916_v42, %v21625_v24  ;;  %v2877_v10 = vpop.f32.mrb[30].mxu1  ;;  %v2918_v29 = vpop.f32.mrb[46].mxu0  ;;  %21626 = vst [vmem:[#allocation17_spill] sm:$0xff] %v18570_v22  ;;  %v2998_v37 = vadd.f32 %v18570_v22, %v2914_v33  ;;  %v21627_v13 = vld [vmem:[#allocation18_spill] sm:$0xff] }
 0x3f0   :  { %v14135_v32 = vmul.f32 -1.442695, %v2970_v17  ;;  %v2878_v34 = vpop.f32.mrb[31].mxu1  ;;  %v2919_v8 = vpop.f32.mrb[47].mxu0 }
 0x3f1   :  { %v14137_v6 = vmul.f32 -1.442695, %v2984_v50  ;;  %v14136_v50 = vmul.f32 -1.442695, %v2977_v2  ;;  %v18586_v22 = vpop.permute.xlu1 %3014 }
 0x3f2   :  { %17174 = vpow2.f32 %v14135_v32  ;;  %21631 = vst [vmem:[#allocation32_spill] sm:$0xff] %v18586_v22  ;;  %vm3016_vm14 = vcmp.eq.s32.totalorder %v18586_v22, 1 }
 0x3f3   :  { %17176 = vpow2.f32 %v14137_v6  ;;  %v21629_v6 = vld [vmem:[#allocation49_spill] sm:$0xff] }
 0x3fc   :  { %v17175_v5 = vpop.eup %17174 }
 0x3fd   :  { %v2974_v55 = vadd.f32 1.0, %v17175_v5  ;;  %v17177_v12 = vpop.eup %17176 }
 0x3fe   :  { %v2988_v29 = vadd.f32 1.0, %v17177_v12  ;;  %v18581_v12 = vld [vmem:[%s21397_s6] ss:$0 sm:$0xff] }
 0x3ff   :  { %17178 = vrcp.f32 %v2974_v55 }
 0x409   :  { %v17179_v42 = vpop.eup %17178 }
 0x40a   :  { %v2999_v41 = vmul.f32 %v17179_v42, %v2998_v37 }
 0x40c   :  { %v3000_v17 = vadd.f32 %v2999_v41, %v21627_v13 }
 0x40e   :  { %17180 = vtanh.f32 %v3000_v17 }
 0x40f   :  { %17182 = vrcp.f32 %v2988_v29 }
 0x410   :  { %17184 = vpow2.f32 %v14136_v50 }
 0x418   :  { %v17181_v5 = vpop.eup %17180 }
 0x419   :  { %v3006_v55 = vsub.f32 %v18350_v9, %v17181_v5  ;;  %v17183_v10 = vpop.eup %17182 }
 0x41a   :  { %v17185_v32 = vpop.eup %17184 }
 0x41b   :  { %v3007_v24 = vmul.f32 %v17183_v10, %v3006_v55  ;;  %v2981_v34 = vadd.f32 1.0, %v17185_v32 }
 0x41d   :  { %v18575_v8 = vadd.f32 %v17181_v5, %v3007_v24  ;;  %17186 = vrcp.f32 %v2981_v34  ;;  %v21630_v5 = vld [vmem:[#allocation50_spill] sm:$0xff] }
 0x41f   :  { %21628 = vst [vmem:[#allocation19_spill] sm:$0xff] %v18575_v8 }
 0x427   :  { %v17187_v13 = vpop.eup %17186 }
 0x42d   :  { %v2955_v33 = vpop.f32.mrb[32].mxu1 }
 0x42e   :  { %v2991_v37 = vadd.f32 %v2955_v33, %v21629_v6  ;;  %v2957_v42 = vpop.f32.mrb[33].mxu1 }
 0x42f   :  { %v3002_v2 = vadd.f32 %v18581_v12, %v2957_v42  ;;  %v2959_v41 = vpop.f32.mrb[34].mxu1  ;;  %v18588_v42 = vpop.permute.xlu0 %3020 }
 0x430   :  { %v14138_v17 = vmul.f32 -1.442695, %v2991_v37  ;;  %v2960_v29 = vpop.f32.mrb[35].mxu1  ;;  %21632 = vst [vmem:[#allocation18_spill] sm:$0xff] %v18588_v42  ;;  %vm3022_vm15 = vcmp.eq.s32.totalorder %v18588_v42, 1  ;;  %v21650_v42 = vld [vmem:[#allocation17_spill] sm:$0xff] }
 0x431   :  { %v3003_v50 = vmul.f32 %v17187_v13, %v3002_v2  ;;  %v18598_v2 = vsel %vm3016_vm14, %v18575_v8, %v18350_v9  ;;  %v18619_v9 = vld [vmem:[#allocation6 + $0x40] ss:$24 sps:$4 sm:$0xff]  }
 0x432   :  { %17188 = vpow2.f32 %v14138_v17  ;;  %v18608_v17 = vld [vmem:[#allocation6 + $0x10] ss:$24 sps:$4 sm:$0xff]   ;;  %v18612_v29 = vpack.c.bf16 %v18598_v2, %v18598_v2 }
 0x433   :  { %v3004_v55 = vadd.f32 %v3003_v50, %v21630_v5  ;;  %v18614_v50 = vld [vmem:[#allocation6 + $0x44] ss:$24 sps:$4 sm:$0xff]   ;;  %v18627_v5 = vld [vmem:[#allocation6 + $0x70] ss:$24 sps:$4 sm:$0xff]  }
 0x435   :  { %17190 = vtanh.f32 %v3004_v55  ;;  %v18630_v55 = vld [vmem:[#allocation6 + $0xa4] ss:$24 sps:$4 sm:$0xff]  }
 0x43c   :  { %v17189_v10 = vpop.eup %17188 }
 0x43d   :  { %v2995_v24 = vadd.f32 1.0, %v17189_v10  ;;  %v18635_v10 = vld [vmem:[#allocation6 + $0xa0] ss:$24 sps:$4 sm:$0xff]  }
 0x43f   :  { %17192 = vrcp.f32 %v2995_v24  ;;  %v17191_v32 = vpop.eup %17190  ;;  %v18785_v24 = vld [vmem:[#allocation6 + $0x2dc] ss:$24 sps:$4 sm:$0xff]  }
 0x440   :  { %v3009_v34 = vsub.f32 %v18355_v45, %v17191_v32  ;;  %21645 = vst [vmem:[#allocation50_spill] sm:$0xff] %v18785_v24 }
 0x449   :  { %v17193_v33 = vpop.eup %17192 }
 0x44a   :  { %v3010_v6 = vmul.f32 %v17193_v33, %v3009_v34 }
 0x44c   :  { %v18591_v37 = vadd.f32 %v17191_v32, %v3010_v6  ;;  %v18788_v32 = vld [vmem:[#allocation6 + $0x2d8] ss:$24 sps:$4 sm:$0xff]  }
 0x44d   :  { %v21647_v6 = vld [vmem:[#allocation21_spill] sm:$0xff] }
 0x44e   :  { %21633 = vst [vmem:[#allocation49_spill] sm:$0xff] %v18591_v37  ;;  %v18604_v41 = vsel %vm3022_vm15, %v18591_v37, %v18355_v45  ;;  %v18622_v45 = vld [vmem:[#allocation6 + $0x74] ss:$24 sps:$4 sm:$0xff]  }
 0x44f   :  { %v3029_v13 = vpack.c.bf16 %v18604_v41, %v18604_v41 }
 0x451   :  { %3638 = vmatprep.mubr.bf16.mxu0 %v3029_v13  ;;  %3679 = vmatprep.mubr.bf16.mxu1 %v3029_v13 }
 0x452   :  { %3639 = vmatmul.mubr.bf16.vlgmr.msra.gmra.mrb[48].mxu0 %v18612_v29  ;;  %3680 = vmatmul.mubr.bf16.vlgmr.msra.gmra.mrb[36].mxu1 %v18612_v29 }
 0x453   :  { %3689 = vmatpush1.bf16.msra.mxu0 %v18608_v17  ;;  %3720 = vmatprep.mubr.bf16.mxu0 %v3029_v13 }
 0x454   :  { %3690 = vmatprep.subr.bf16.mxu0 %v18614_v50  ;;  %4374 = vmatpush1.bf16.msra.mxu1 %v18464_v16  ;;  %v18638_v16 = vld [vmem:[#allocation6 + $0xd4] ss:$24 sps:$4 sm:$0xff]  }
 0x455   :  { %4375 = vmatprep.subr.bf16.mxu1 %v18468_v40  ;;  %v18643_v40 = vld [vmem:[#allocation6 + $0xd0] ss:$24 sps:$4 sm:$0xff]  }
 0x457   :  { %3691 = vmatpush1.bf16.msra.mxu0 %v18619_v9 }
 0x458   :  { %3692 = vmatprep.subr.bf16.mxu0 %v18622_v45  ;;  %4376 = vmatpush1.bf16.msra.mxu1 %v18471_v61  ;;  %v18714_v61 = vld [vmem:[#allocation6 + $0x98] ss:$24 sps:$4 sm:$0xff]  }
 0x459   :  { %4377 = vmatprep.subr.bf16.mxu1 %v18476_v35  ;;  %v18716_v35 = vld [vmem:[#allocation6 + $0x9c] ss:$24 sps:$4 sm:$0xff]  }
 0x45b   :  { %3693 = vmatpush1.bf16.msra.mxu0 %v18627_v5 }
 0x45c   :  { %3694 = vmatprep.subr.bf16.mxu0 %v18630_v55  ;;  %4378 = vmatpush1.bf16.msra.mxu1 %v18479_v18  ;;  %v18718_v18 = vld [vmem:[#allocation6 + $0xcc] ss:$24 sps:$4 sm:$0xff]  }
 0x45d   :  { %4379 = vmatprep.subr.bf16.mxu1 %v18485_v53  ;;  %v18725_v53 = vld [vmem:[#allocation6 + $0xfc] ss:$24 sps:$4 sm:$0xff]  }
 0x45f   :  { %3695 = vmatpush1.bf16.msra.mxu0 %v18635_v10 }
 0x460   :  { %3696 = vmatprep.subr.bf16.mxu0 %v18638_v16  ;;  %4380 = vmatpush1.bf16.msra.mxu1 %v18483_v51  ;;  %v18722_v51 = vld [vmem:[#allocation6 + $0xc8] ss:$24 sps:$4 sm:$0xff]  }
 0x461   :  { %4381 = vmatprep.subr.bf16.mxu1 %v18487_v28  ;;  %v18728_v28 = vld [vmem:[#allocation6 + $0xf8] ss:$24 sps:$4 sm:$0xff]  }
 0x463   :  { %3697 = vmatpush1.bf16.msra.mxu0 %v18643_v40 }
 0x464   :  { %3698 = vmatprep.subr.bf16.mxu0 %v18369_v30  ;;  %4382 = vmatpush1.bf16.msra.mxu1 %v18491_v31  ;;  %v21634_v30 = vld [vmem:[#allocation67_spill] sm:$0xff] }
 0x465   :  { %4383 = vmatprep.subr.bf16.mxu1 %v18494_v52  ;;  %v18731_v31 = vld [vmem:[#allocation6 + $0x12c] ss:$24 sps:$4 sm:$0xff]   ;;  %v18734_v52 = vld [vmem:[#allocation6 + $0x128] ss:$24 sps:$4 sm:$0xff]   ;;  %21646 = vst [vmem:[#allocation67_spill] sm:$0xff] %v18788_v32 }
 0x467   :  { %3699 = vmatpush1.bf16.msra.mxu0 %v18372_v25  ;;  %v21635_v25 = vld [vmem:[#allocation68_spill] sm:$0xff] }
 0x468   :  { %3700 = vmatprep.subr.bf16.mxu0 %v18375_v38  ;;  %4384 = vmatpush1.bf16.msra.mxu1 %v18497_v11  ;;  %v21636_v38 = vld [vmem:[#allocation57_spill] sm:$0xff] }
 0x469   :  { %4385 = vmatprep.subr.bf16.mxu1 %v18500_v62  ;;  %v18738_v11 = vld [vmem:[#allocation6 + $0x15c] ss:$24 sps:$4 sm:$0xff]   ;;  %v18740_v62 = vld [vmem:[#allocation6 + $0x158] ss:$24 sps:$4 sm:$0xff]  }
 0x46b   :  { %3701 = vmatpush1.bf16.msra.mxu0 %v18378_v15  ;;  %v21637_v15 = vld [vmem:[#allocation58_spill] sm:$0xff] }
 0x46c   :  { %3702 = vmatprep.subr.bf16.mxu0 %v18381_v39  ;;  %4386 = vmatpush1.bf16.msra.mxu1 %v18503_v19  ;;  %v21638_v39 = vld [vmem:[#allocation69_spill] sm:$0xff]  ;;  %v18744_v19 = vld [vmem:[#allocation6 + $0x18c] ss:$24 sps:$4 sm:$0xff]  }
 0x46d   :  { %4387 = vmatprep.subr.bf16.mxu1 %v18507_v1  ;;  %v18746_v1 = vld [vmem:[#allocation6 + $0x188] ss:$24 sps:$4 sm:$0xff]  }
 0x46f   :  { %3703 = vmatpush1.bf16.msra.mxu0 %v18384_v56  ;;  %v21639_v56 = vld [vmem:[#allocation70_spill] sm:$0xff] }
 0x470   :  { %3704 = vmatprep.subr.bf16.mxu0 %v18387_v58  ;;  %4388 = vmatpush1.bf16.msra.mxu1 %v18509_v54  ;;  %v21640_v58 = vld [vmem:[#allocation59_spill] sm:$0xff]  ;;  %v18750_v54 = vld [vmem:[#allocation6 + $0x1bc] ss:$24 sps:$4 sm:$0xff]  }
 0x471   :  { %4389 = vmatprep.subr.bf16.mxu1 %v18513_v60  ;;  %v18752_v60 = vld [vmem:[#allocation6 + $0x1b8] ss:$24 sps:$4 sm:$0xff]  }
 0x473   :  { %3705 = vmatpush1.bf16.msra.mxu0 %v18390_v21  ;;  %v21641_v21 = vld [vmem:[#allocation60_spill] sm:$0xff] }
 0x474   :  { %3706 = vmatprep.subr.bf16.mxu0 %v18393_v49  ;;  %4390 = vmatpush1.bf16.msra.mxu1 %v18515_v7  ;;  %v21642_v49 = vld [vmem:[#allocation71_spill] sm:$0xff] }
 0x475   :  { %4391 = vmatprep.subr.bf16.mxu1 %v18519_v0  ;;  %v18756_v7 = vld [vmem:[#allocation6 + $0x1ec] ss:$24 sps:$4 sm:$0xff]   ;;  %v18758_v0 = vld [vmem:[#allocation6 + $0x1e8] ss:$24 sps:$4 sm:$0xff]  }
 0x477   :  { %3707 = vmatpush1.bf16.msra.mxu0 %v18396_v57  ;;  %v21643_v57 = vld [vmem:[#allocation61_spill] sm:$0xff] }
 0x478   :  { %3708 = vmatprep.subr.bf16.mxu0 %v18399_v3  ;;  %4392 = vmatpush1.bf16.msra.mxu1 %v18521_v59  ;;  %v21644_v3 = vld [vmem:[#allocation62_spill] sm:$0xff]  ;;  %v18762_v59 = vld [vmem:[#allocation6 + $0x21c] ss:$24 sps:$4 sm:$0xff]  }
 0x479   :  { %4393 = vmatprep.subr.bf16.mxu1 %v18525_v47  ;;  %v18764_v47 = vld [vmem:[#allocation6 + $0x218] ss:$24 sps:$4 sm:$0xff]  }
 0x47b   :  { %3709 = vmatpush1.bf16.msra.mxu0 %v18402_v63  ;;  %v18696_v63 = vld [vmem:[#allocation6 + $0xc] ss:$24 sps:$4 sm:$0xff]  }
 0x47c   :  { %3710 = vmatprep.subr.bf16.mxu0 %v18405_v43  ;;  %4394 = vmatpush1.bf16.msra.mxu1 %v18527_v46  ;;  %v18698_v43 = vld [vmem:[#allocation6 + $0x8] ss:$24 sps:$4 sm:$0xff]  }
 0x47d   :  { %4395 = vmatprep.subr.bf16.mxu1 %v18531_v20  ;;  %v18768_v46 = vld [vmem:[#allocation6 + $0x248] ss:$24 sps:$4 sm:$0xff]   ;;  %v18770_v20 = vld [vmem:[#allocation6 + $0x24c] ss:$24 sps:$4 sm:$0xff]  }
 0x47f   :  { %3711 = vmatpush1.bf16.msra.mxu0 %v18408_v36  ;;  %v18702_v36 = vld [vmem:[#allocation6 + $0x3c] ss:$24 sps:$4 sm:$0xff]  }
 0x480   :  { %3712 = vmatprep.subr.bf16.mxu0 %v18411_v44  ;;  %4396 = vmatpush1.bf16.msra.mxu1 %v18533_v48  ;;  %v18704_v44 = vld [vmem:[#allocation6 + $0x38] ss:$24 sps:$4 sm:$0xff]   ;;  %v18772_v48 = vld [vmem:[#allocation6 + $0x27c] ss:$24 sps:$4 sm:$0xff]  }
 0x481   :  { %4397 = vmatprep.subr.bf16.mxu1 %v18539_v27  ;;  %v18779_v27 = vld [vmem:[#allocation6 + $0x2ac] ss:$24 sps:$4 sm:$0xff]  }
 0x483   :  { %3713 = vmatpush1.bf16.msra.mxu0 %v18414_v4  ;;  %v18708_v4 = vld [vmem:[#allocation6 + $0x6c] ss:$24 sps:$4 sm:$0xff]  }
 0x484   :  { %3714 = vmatprep.subr.bf16.mxu0 %v18417_v14  ;;  %4398 = vmatpush1.bf16.msra.mxu1 %v18537_v23  ;;  %v18710_v14 = vld [vmem:[#allocation6 + $0x68] ss:$24 sps:$4 sm:$0xff]   ;;  %v18776_v23 = vld [vmem:[#allocation6 + $0x278] ss:$24 sps:$4 sm:$0xff]  }
 0x485   :  { %4399 = vmatprep.subr.bf16.mxu1 %v18541_v26  ;;  %v18782_v26 = vld [vmem:[#allocation6 + $0x2a8] ss:$24 sps:$4 sm:$0xff]  }
 0x487   :  { %3715 = vmatpush1.bf16.msra.mxu0 %v21634_v30 }
 0x488   :  { %3716 = vmatprep.subr.bf16.mxu0 %v21635_v25  ;;  %4400 = vmatpush1.bf16.msra.mxu1 %v21636_v38  ;;  %v21648_v25 = vld [vmem:[#allocation23_spill] sm:$0xff] }
 0x489   :  { %4401 = vmatprep.subr.bf16.mxu1 %v21637_v15  ;;  %v21649_v15 = vld [vmem:[#allocation28_spill] sm:$0xff] }
 0x48b   :  { %3717 = vmatpush1.bf16.msra.mxu0 %v21638_v39 }
 0x48c   :  { %3718 = vmatprep.subr.bf16.mxu0 %v21639_v56  ;;  %4402 = vmatpush1.bf16.msra.mxu1 %v21640_v58 }
 0x48d   :  { %4403 = vmatprep.subr.bf16.mxu1 %v21641_v21 }
 0x48f   :  { %3719 = vmatpush1.bf16.msra.mxu0 %v21642_v49 }
 0x490   :  { %4404 = vmatpush1.bf16.msra.mxu1 %v21643_v57  ;;  %4414 = vmatprep.subr.bf16.mxu0 %v18696_v63 }
 0x491   :  { %4455 = vmatprep.subr.bf16.mxu1 %v21644_v3 }
 0x492   :  { %3721 = vmatmul.mubr.bf16.vlgmr.msra.gmra.mrb[52].mxu0 %v18612_v29 }
 0x493   :  { %4415 = vmatpush1.bf16.msra.mxu0 %v18698_v43 }
 0x494   :  { %4416 = vmatprep.subr.bf16.mxu0 %v18702_v36 }
 0x497   :  { %4417 = vmatpush1.bf16.msra.mxu0 %v18704_v44 }
 0x498   :  { %4418 = vmatprep.subr.bf16.mxu0 %v18708_v4 }
 0x49b   :  { %4419 = vmatpush1.bf16.msra.mxu0 %v18710_v14 }
 0x49c   :  { %4420 = vmatprep.subr.bf16.mxu0 %v18716_v35 }
 0x49f   :  { %4421 = vmatpush1.bf16.msra.mxu0 %v18714_v61 }
 0x4a0   :  { %4422 = vmatprep.subr.bf16.mxu0 %v18718_v18 }
 0x4a3   :  { %4423 = vmatpush1.bf16.msra.mxu0 %v18722_v51 }
 0x4a4   :  { %4424 = vmatprep.subr.bf16.mxu0 %v18725_v53 }
 0x4a7   :  { %4425 = vmatpush1.bf16.msra.mxu0 %v18728_v28 }
 0x4a8   :  { %4426 = vmatprep.subr.bf16.mxu0 %v18731_v31 }
 0x4ab   :  { %4427 = vmatpush1.bf16.msra.mxu0 %v18734_v52 }
 0x4ac   :  { %4428 = vmatprep.subr.bf16.mxu0 %v18738_v11 }
 0x4af   :  { %4429 = vmatpush1.bf16.msra.mxu0 %v18740_v62 }
 0x4b0   :  { %4430 = vmatprep.subr.bf16.mxu0 %v18744_v19 }
 0x4b3   :  { %4431 = vmatpush1.bf16.msra.mxu0 %v18746_v1 }
 0x4b4   :  { %4432 = vmatprep.subr.bf16.mxu0 %v18750_v54 }
 0x4b7   :  { %4433 = vmatpush1.bf16.msra.mxu0 %v18752_v60 }
 0x4b8   :  { %4434 = vmatprep.subr.bf16.mxu0 %v18756_v7 }
 0x4bb   :  { %4435 = vmatpush1.bf16.msra.mxu0 %v18758_v0 }
 0x4bc   :  { %4436 = vmatprep.subr.bf16.mxu0 %v18762_v59 }
 0x4bf   :  { %4437 = vmatpush1.bf16.msra.mxu0 %v18764_v47 }
 0x4c0   :  { %4438 = vmatprep.subr.bf16.mxu0 %v18770_v20 }
 0x4c3   :  { %4439 = vmatpush1.bf16.msra.mxu0 %v18768_v46 }
 0x4c4   :  { %4440 = vmatprep.subr.bf16.mxu0 %v18772_v48 }
 0x4c7   :  { %4441 = vmatpush1.bf16.msra.mxu0 %v18776_v23 }
 0x4c8   :  { %4442 = vmatprep.subr.bf16.mxu0 %v18779_v27 }
 0x4cb   :  { %4443 = vmatpush1.bf16.msra.mxu0 %v18782_v26 }
 0x4cc   :  { %4444 = vmatprep.subr.bf16.mxu0 %v18785_v24  ;;  %v21651_v24 = vld [vmem:[#allocation22_spill] sm:$0xff] }
 0x4cf   :  { %4445 = vmatpush1.bf16.msra.mxu0 %v18788_v32 }
 0x525   :  { %v3640_v34 = vpop.f32.mrb[48].mxu0  ;;  %v3681_v33 = vpop.f32.mrb[36].mxu1 }
 0x526   :  { %v3737_v13 = vadd.f32 %v3640_v34, %v21647_v6  ;;  %v3642_v29 = vpop.f32.mrb[49].mxu0  ;;  %v3683_v30 = vpop.f32.mrb[37].mxu1  ;;  %v3765_v34 = vadd.f32 %v21650_v42, %v3681_v33 }
 0x527   :  { %v3751_v38 = vadd.f32 %v3642_v29, %v21648_v25  ;;  %v3744_v39 = vadd.f32 %v3683_v30, %v21649_v15  ;;  %v3644_v56 = vpop.f32.mrb[50].mxu0  ;;  %v3685_v58 = vpop.f32.mrb[38].mxu1 }
 0x528   :  { %v14235_v21 = vmul.f32 -1.442695, %v3737_v13  ;;  %v3645_v49 = vpop.f32.mrb[51].mxu0  ;;  %v3686_v57 = vpop.f32.mrb[39].mxu1 }
 0x529   :  { %v14237_v3 = vmul.f32 -1.442695, %v3751_v38  ;;  %v14236_v30 = vmul.f32 -1.442695, %v3744_v39 }
 0x52a   :  { %17194 = vpow2.f32 %v14235_v21  ;;  %v21653_v21 = vld [vmem:[#allocation47_spill] sm:$0xff] }
 0x52b   :  { %17196 = vpow2.f32 %v14237_v3 }
 0x534   :  { %v17195_v37 = vpop.eup %17194 }
 0x535   :  { %v3741_v8 = vadd.f32 1.0, %v17195_v37  ;;  %v17197_v22 = vpop.eup %17196 }
 0x536   :  { %v3755_v25 = vadd.f32 1.0, %v17197_v22 }
 0x537   :  { %17198 = vrcp.f32 %v3741_v8 }
 0x541   :  { %v17199_v6 = vpop.eup %17198 }
 0x542   :  { %v3766_v32 = vmul.f32 %v17199_v6, %v3765_v34  ;;  %v21654_v6 = vld [vmem:[#allocation48_spill] sm:$0xff] }
 0x544   :  { %v3767_v29 = vadd.f32 %v3766_v32, %v21651_v24 }
 0x546   :  { %17200 = vtanh.f32 %v3767_v29 }
 0x547   :  { %17202 = vrcp.f32 %v3755_v25 }
 0x548   :  { %17204 = vpow2.f32 %v14236_v30 }
 0x550   :  { %v17201_v13 = vpop.eup %17200 }
 0x551   :  { %v3773_v15 = vsub.f32 %v18598_v2, %v17201_v13  ;;  %v17203_v38 = vpop.eup %17202 }
 0x552   :  { %v17205_v8 = vpop.eup %17204 }
 0x553   :  { %v3774_v56 = vmul.f32 %v17203_v38, %v3773_v15  ;;  %v3748_v58 = vadd.f32 1.0, %v17205_v8  ;;  %v18806_v8 = vpop.permute.xlu0 %3787 }
 0x554   :  { %21656 = vst [vmem:[#allocation58_spill] sm:$0xff] %v18806_v8  ;;  %vm3789_vm1 = vcmp.eq.s32.totalorder %v18806_v8, 1 }
 0x555   :  { %v18798_v37 = vadd.f32 %v17201_v13, %v3774_v56  ;;  %17206 = vrcp.f32 %v3748_v58  ;;  %v18804_v56 = vpop.permute.xlu1 %3781  ;;  %vm19517_vm4 = vmpackc.low %vm3022_vm15, %vm3789_vm1 }
 0x556   :  { %21655 = vst [vmem:[#allocation57_spill] sm:$0xff] %v18804_v56  ;;  %vm3783_vm0 = vcmp.eq.s32.totalorder %v18804_v56, 1 }
 0x557   :  { %21652 = vst [vmem:[#allocation68_spill] sm:$0xff] %v18798_v37  ;;  %vm19489_vm3 = vmpackc.low %vm3783_vm0, %vm3016_vm14 }
 0x55f   :  { %v17207_v32 = vpop.eup %17206 }
 0x565   :  { %v3722_v33 = vpop.f32.mrb[52].mxu0 }
 0x566   :  { %v3758_v49 = vadd.f32 %v3722_v33, %v21653_v21  ;;  %v3724_v57 = vpop.f32.mrb[53].mxu0  ;;  %v18816_v21 = vsel %vm3783_vm0, %v18798_v37, %v18598_v2  ;;  %v18836_v2 = vld [vmem:[#allocation6 + $0x104] ss:$24 sps:$4 sm:$0xff]  }
 0x567   :  { %v3769_v22 = vadd.f32 %v18581_v12, %v3724_v57  ;;  %v3726_v24 = vpop.f32.mrb[54].mxu0 }
 0x568   :  { %v14238_v39 = vmul.f32 -1.442695, %v3758_v49  ;;  %v3727_v3 = vpop.f32.mrb[55].mxu0  ;;  %v18869_v24 = vld [vmem:[#allocation6 + $0x1f0] ss:$24 sps:$4 sm:$0xff]  }
 0x569   :  { %v3770_v34 = vmul.f32 %v17207_v32, %v3769_v22  ;;  %v3795_v22 = vpack.c.bf16 %v18816_v21, %v18816_v21  ;;  %v18872_v32 = vld [vmem:[#allocation6 + $0x224] ss:$24 sps:$4 sm:$0xff]   ;;  %v18878_v3 = vld [vmem:[#allocation6 + $0x254] ss:$24 sps:$4 sm:$0xff]  }
 0x56a   :  { %17208 = vpow2.f32 %v14238_v39  ;;  %v18875_v39 = vld [vmem:[#allocation6 + $0x220] ss:$24 sps:$4 sm:$0xff]  }
 0x56b   :  { %v3771_v29 = vadd.f32 %v3770_v34, %v21654_v6  ;;  %v18881_v34 = vld [vmem:[#allocation6 + $0x250] ss:$24 sps:$4 sm:$0xff]   ;;  %v18884_v6 = vld [vmem:[#allocation6 + $0x284] ss:$24 sps:$4 sm:$0xff]  }
 0x56c   :  { %21658 = vst [vmem:[#allocation70_spill] sm:$0xff] %v18881_v34  ;;  %21659 = vst [vmem:[#allocation59_spill] sm:$0xff] %v18884_v6 }
 0x56d   :  { %17210 = vtanh.f32 %v3771_v29  ;;  %v18887_v29 = vld [vmem:[#allocation6 + $0x280] ss:$24 sps:$4 sm:$0xff]  }
 0x56e   :  { %21660 = vst [vmem:[#allocation60_spill] sm:$0xff] %v18887_v29 }
 0x574   :  { %v17209_v25 = vpop.eup %17208 }
 0x575   :  { %v3762_v30 = vadd.f32 1.0, %v17209_v25  ;;  %v18890_v25 = vld [vmem:[#allocation6 + $0x2b4] ss:$24 sps:$4 sm:$0xff]  }
 0x576   :  { %21661 = vst [vmem:[#allocation71_spill] sm:$0xff] %v18890_v25 }
 0x577   :  { %17212 = vrcp.f32 %v3762_v30  ;;  %v17211_v13 = vpop.eup %17210  ;;  %v18893_v30 = vld [vmem:[#allocation6 + $0x2b0] ss:$24 sps:$4 sm:$0xff]  }
 0x578   :  { %v3776_v15 = vsub.f32 %v18604_v41, %v17211_v13  ;;  %21662 = vst [vmem:[#allocation61_spill] sm:$0xff] %v18893_v30 }
 0x581   :  { %v17213_v38 = vpop.eup %17212 }
 0x582   :  { %v3777_v58 = vmul.f32 %v17213_v38, %v3776_v15  ;;  %v18899_v15 = vld [vmem:[#allocation6 + $0x2e0] ss:$24 sps:$4 sm:$0xff]   ;;  %v19015_v38 = vld [vmem:[#allocation6 + $0x2a4] ss:$24 sps:$4 sm:$0xff]  }
 0x583   :  { %21664 = vst [vmem:[#allocation21_spill] sm:$0xff] %v18899_v15  ;;  %21672 = vst [vmem:[#allocation48_spill] sm:$0xff] %v19015_v38 }
 0x584   :  { %v18809_v33 = vadd.f32 %v17211_v13, %v3777_v58  ;;  %v18896_v13 = vld [vmem:[#allocation6 + $0x2e4] ss:$24 sps:$4 sm:$0xff]   ;;  %v19018_v58 = vld [vmem:[#allocation6 + $0x2a0] ss:$24 sps:$4 sm:$0xff]  }
 0x585   :  { %21663 = vst [vmem:[#allocation62_spill] sm:$0xff] %v18896_v13 }
 0x586   :  { %21657 = vst [vmem:[#allocation69_spill] sm:$0xff] %v18809_v33  ;;  %v18822_v49 = vsel %vm3789_vm1, %v18809_v33, %v18604_v41  ;;  %v18839_v41 = vld [vmem:[#allocation6 + $0x100] ss:$24 sps:$4 sm:$0xff]  }
 0x587   :  { %v3796_v57 = vpack.c.bf16 %v18822_v49, %v18822_v49  ;;  %v21677_v33 = vld [vmem:[#allocation25_spill] sm:$0xff] }
 0x589   :  { %4405 = vmatprep.mubr.bf16.mxu1 %v3796_v57  ;;  %4446 = vmatprep.mubr.bf16.mxu0 %v3796_v57 }
 0x58a   :  { %4406 = vmatmul.mubr.bf16.vlgmr.msra.gmra.mrb[40].mxu1 %v3795_v22  ;;  %4447 = vmatmul.mubr.bf16.vlgmr.msra.gmra.mrb[56].mxu0 %v3795_v22 }
 0x58b   :  { %4456 = vmatpush1.bf16.msra.mxu1 %v18608_v17  ;;  %4487 = vmatprep.mubr.bf16.mxu1 %v3796_v57  ;;  %v18842_v17 = vld [vmem:[#allocation6 + $0x134] ss:$24 sps:$4 sm:$0xff]  }
 0x58c   :  { %4457 = vmatprep.subr.bf16.mxu1 %v18614_v50  ;;  %v18845_v50 = vld [vmem:[#allocation6 + $0x130] ss:$24 sps:$4 sm:$0xff]   ;;  %v19021_v57 = vld [vmem:[#allocation6 + $0x2d4] ss:$24 sps:$4 sm:$0xff]  }
 0x58f   :  { %4458 = vmatpush1.bf16.msra.mxu1 %v18619_v9  ;;  %v18848_v9 = vld [vmem:[#allocation6 + $0x164] ss:$24 sps:$4 sm:$0xff]  }
 0x590   :  { %4459 = vmatprep.subr.bf16.mxu1 %v18622_v45  ;;  %v18851_v45 = vld [vmem:[#allocation6 + $0x160] ss:$24 sps:$4 sm:$0xff]  }
 0x593   :  { %4460 = vmatpush1.bf16.msra.mxu1 %v18627_v5  ;;  %v18854_v5 = vld [vmem:[#allocation6 + $0x194] ss:$24 sps:$4 sm:$0xff]  }
 0x594   :  { %4461 = vmatprep.subr.bf16.mxu1 %v18630_v55  ;;  %v18857_v55 = vld [vmem:[#allocation6 + $0x190] ss:$24 sps:$4 sm:$0xff]  }
 0x597   :  { %4462 = vmatpush1.bf16.msra.mxu1 %v18635_v10  ;;  %v18860_v10 = vld [vmem:[#allocation6 + $0x1c4] ss:$24 sps:$4 sm:$0xff]  }
 0x598   :  { %4463 = vmatprep.subr.bf16.mxu1 %v18638_v16  ;;  %v18863_v16 = vld [vmem:[#allocation6 + $0x1c0] ss:$24 sps:$4 sm:$0xff]  }
 0x59b   :  { %4464 = vmatpush1.bf16.msra.mxu1 %v18643_v40  ;;  %v18866_v40 = vld [vmem:[#allocation6 + $0x1f4] ss:$24 sps:$4 sm:$0xff]  }
 0x59c   :  { %4465 = vmatprep.subr.bf16.mxu1 %v18836_v2 }
 0x59f   :  { %4466 = vmatpush1.bf16.msra.mxu1 %v18839_v41 }
 0x5a0   :  { %4467 = vmatprep.subr.bf16.mxu1 %v18842_v17 }
 0x5a3   :  { %4468 = vmatpush1.bf16.msra.mxu1 %v18845_v50 }
 0x5a4   :  { %4469 = vmatprep.subr.bf16.mxu1 %v18848_v9 }
 0x5a7   :  { %4470 = vmatpush1.bf16.msra.mxu1 %v18851_v45 }
 0x5a8   :  { %4471 = vmatprep.subr.bf16.mxu1 %v18854_v5 }
 0x5ab   :  { %4472 = vmatpush1.bf16.msra.mxu1 %v18857_v55 }
 0x5ac   :  { %4473 = vmatprep.subr.bf16.mxu1 %v18860_v10 }
 0x5af   :  { %4474 = vmatpush1.bf16.msra.mxu1 %v18863_v16 }
 0x5b0   :  { %4475 = vmatprep.subr.bf16.mxu1 %v18866_v40 }
 0x5b3   :  { %4476 = vmatpush1.bf16.msra.mxu1 %v18869_v24 }
 0x5b4   :  { %4477 = vmatprep.subr.bf16.mxu1 %v18872_v32 }
 0x5b7   :  { %4478 = vmatpush1.bf16.msra.mxu1 %v18875_v39 }
 0x5b8   :  { %4479 = vmatprep.subr.bf16.mxu1 %v18878_v3 }
 0x5bb   :  { %4480 = vmatpush1.bf16.msra.mxu1 %v18881_v34 }
 0x5bc   :  { %4481 = vmatprep.subr.bf16.mxu1 %v18884_v6 }
 0x5bf   :  { %4482 = vmatpush1.bf16.msra.mxu1 %v18887_v29 }
 0x5c0   :  { %4483 = vmatprep.subr.bf16.mxu1 %v18890_v25 }
 0x5c3   :  { %4484 = vmatpush1.bf16.msra.mxu1 %v18893_v30  ;;  %v21678_v30 = vld [vmem:[#allocation27_spill] sm:$0xff] }
 0x5c4   :  { %4485 = vmatprep.subr.bf16.mxu1 %v18896_v13 }
 0x5c7   :  { %4486 = vmatpush1.bf16.msra.mxu1 %v18899_v15 }
 0x5c8   :  { %5169 = vmatprep.subr.bf16.mxu1 %v18696_v63  ;;  %v16146_v63 = vld [vmem:[#allocation6 + $0x4] ss:$24 sps:$4 sm:$0xff]  }
 0x5c9   :  { %5128 = vmatprep.subr.bf16.mxu0 %v16146_v63 }
 0x5ca   :  { %4488 = vmatmul.mubr.bf16.vlgmr.msra.gmra.mrb[44].mxu1 %v3795_v22  ;;  %v19024_v22 = vld [vmem:[#allocation6 + $0x2d0] ss:$24 sps:$4 sm:$0xff]  }
 0x5cb   :  { %5170 = vmatpush1.bf16.msra.mxu1 %v18698_v43  ;;  %v18931_v43 = vld [vmem:[#allocation6] ss:$24 sps:$4 sm:$0xff]   ;;  %21675 = vst [vmem:[#allocation72_spill] sm:$0xff] %v19024_v22 }
 0x5cc   :  { %5171 = vmatprep.subr.bf16.mxu1 %v18702_v36  ;;  %5129 = vmatpush1.bf16.msra.mxu0 %v18931_v43  ;;  %v18935_v36 = vld [vmem:[#allocation6 + $0x34] ss:$24 sps:$4 sm:$0xff]  }
 0x5cd   :  { %5130 = vmatprep.subr.bf16.mxu0 %v18935_v36 }
 0x5cf   :  { %5172 = vmatpush1.bf16.msra.mxu1 %v18704_v44  ;;  %v18938_v44 = vld [vmem:[#allocation6 + $0x30] ss:$24 sps:$4 sm:$0xff]  }
 0x5d0   :  { %5173 = vmatprep.subr.bf16.mxu1 %v18708_v4  ;;  %v21665_v4 = vld [vmem:[#allocation50_spill] sm:$0xff]  ;;  %5131 = vmatpush1.bf16.msra.mxu0 %v18938_v44 }
 0x5d1   :  { %21673 = vst [vmem:[#allocation50_spill] sm:$0xff] %v19018_v58 }
 0x5d3   :  { %5174 = vmatpush1.bf16.msra.mxu1 %v18710_v14  ;;  %v18943_v14 = vld [vmem:[#allocation6 + $0x64] ss:$24 sps:$4 sm:$0xff]  }
 0x5d4   :  { %5175 = vmatprep.subr.bf16.mxu1 %v18716_v35  ;;  %v18946_v35 = vld [vmem:[#allocation6 + $0x60] ss:$24 sps:$4 sm:$0xff]   ;;  %5132 = vmatprep.subr.bf16.mxu0 %v18943_v14 }
 0x5d5   :  { %5133 = vmatpush1.bf16.msra.mxu0 %v18946_v35 }
 0x5d7   :  { %5176 = vmatpush1.bf16.msra.mxu1 %v18714_v61  ;;  %v21666_v61 = vld [vmem:[#allocation67_spill] sm:$0xff] }
 0x5d8   :  { %5177 = vmatprep.subr.bf16.mxu1 %v18718_v18  ;;  %v18950_v18 = vld [vmem:[#allocation6 + $0x90] ss:$24 sps:$4 sm:$0xff]   ;;  %21674 = vst [vmem:[#allocation67_spill] sm:$0xff] %v19021_v57 }
 0x5db   :  { %5178 = vmatpush1.bf16.msra.mxu1 %v18722_v51  ;;  %v18952_v51 = vld [vmem:[#allocation6 + $0x94] ss:$24 sps:$4 sm:$0xff]  }
 0x5dc   :  { %5179 = vmatprep.subr.bf16.mxu1 %v18725_v53  ;;  %v18954_v53 = vld [vmem:[#allocation6 + $0xc4] ss:$24 sps:$4 sm:$0xff]   ;;  %5134 = vmatprep.subr.bf16.mxu0 %v18952_v51 }
 0x5dd   :  { %5135 = vmatpush1.bf16.msra.mxu0 %v18950_v18 }
 0x5de   :  { %5136 = vmatprep.subr.bf16.mxu0 %v18954_v53 }
 0x5df   :  { %5180 = vmatpush1.bf16.msra.mxu1 %v18728_v28  ;;  %v18958_v28 = vld [vmem:[#allocation6 + $0xc0] ss:$24 sps:$4 sm:$0xff]  }
 0x5e0   :  { %5181 = vmatprep.subr.bf16.mxu1 %v18731_v31  ;;  %v18961_v31 = vld [vmem:[#allocation6 + $0xf4] ss:$24 sps:$4 sm:$0xff]  }
 0x5e1   :  { %5137 = vmatpush1.bf16.msra.mxu0 %v18958_v28 }
 0x5e2   :  { %5138 = vmatprep.subr.bf16.mxu0 %v18961_v31 }
 0x5e3   :  { %5182 = vmatpush1.bf16.msra.mxu1 %v18734_v52  ;;  %v18964_v52 = vld [vmem:[#allocation6 + $0xf0] ss:$24 sps:$4 sm:$0xff]  }
 0x5e4   :  { %5183 = vmatprep.subr.bf16.mxu1 %v18738_v11  ;;  %v18967_v11 = vld [vmem:[#allocation6 + $0x124] ss:$24 sps:$4 sm:$0xff]  }
 0x5e5   :  { %5139 = vmatpush1.bf16.msra.mxu0 %v18964_v52 }
 0x5e6   :  { %5140 = vmatprep.subr.bf16.mxu0 %v18967_v11 }
 0x5e7   :  { %5184 = vmatpush1.bf16.msra.mxu1 %v18740_v62  ;;  %v18970_v62 = vld [vmem:[#allocation6 + $0x120] ss:$24 sps:$4 sm:$0xff]  }
 0x5e8   :  { %5185 = vmatprep.subr.bf16.mxu1 %v18744_v19  ;;  %v18974_v19 = vld [vmem:[#allocation6 + $0x154] ss:$24 sps:$4 sm:$0xff]  }
 0x5e9   :  { %5141 = vmatpush1.bf16.msra.mxu0 %v18970_v62 }
 0x5ea   :  { %5142 = vmatprep.subr.bf16.mxu0 %v18974_v19 }
 0x5eb   :  { %5186 = vmatpush1.bf16.msra.mxu1 %v18746_v1  ;;  %v18976_v1 = vld [vmem:[#allocation6 + $0x150] ss:$24 sps:$4 sm:$0xff]  }
 0x5ec   :  { %5187 = vmatprep.subr.bf16.mxu1 %v18750_v54  ;;  %v18980_v54 = vld [vmem:[#allocation6 + $0x184] ss:$24 sps:$4 sm:$0xff]  }
 0x5ed   :  { %5143 = vmatpush1.bf16.msra.mxu0 %v18976_v1 }
 0x5ee   :  { %5144 = vmatprep.subr.bf16.mxu0 %v18980_v54 }
 0x5ef   :  { %5188 = vmatpush1.bf16.msra.mxu1 %v18752_v60  ;;  %v18982_v60 = vld [vmem:[#allocation6 + $0x180] ss:$24 sps:$4 sm:$0xff]  }
 0x5f0   :  { %5189 = vmatprep.subr.bf16.mxu1 %v18756_v7  ;;  %v18986_v7 = vld [vmem:[#allocation6 + $0x1b4] ss:$24 sps:$4 sm:$0xff]  }
 0x5f1   :  { %5145 = vmatpush1.bf16.msra.mxu0 %v18982_v60 }
 0x5f2   :  { %5146 = vmatprep.subr.bf16.mxu0 %v18986_v7 }
 0x5f3   :  { %5190 = vmatpush1.bf16.msra.mxu1 %v18758_v0  ;;  %v18988_v0 = vld [vmem:[#allocation6 + $0x1b0] ss:$24 sps:$4 sm:$0xff]  }
 0x5f4   :  { %5191 = vmatprep.subr.bf16.mxu1 %v18762_v59  ;;  %v18992_v59 = vld [vmem:[#allocation6 + $0x1e4] ss:$24 sps:$4 sm:$0xff]  }
 0x5f5   :  { %5147 = vmatpush1.bf16.msra.mxu0 %v18988_v0 }
 0x5f6   :  { %5148 = vmatprep.subr.bf16.mxu0 %v18992_v59 }
 0x5f7   :  { %5192 = vmatpush1.bf16.msra.mxu1 %v18764_v47  ;;  %v18994_v47 = vld [vmem:[#allocation6 + $0x1e0] ss:$24 sps:$4 sm:$0xff]  }
 0x5f8   :  { %5193 = vmatprep.subr.bf16.mxu1 %v18770_v20  ;;  %v19000_v20 = vld [vmem:[#allocation6 + $0x210] ss:$24 sps:$4 sm:$0xff]  }
 0x5f9   :  { %5149 = vmatpush1.bf16.msra.mxu0 %v18994_v47  ;;  %21667 = vst [vmem:[#allocation23_spill] sm:$0xff] %v19000_v20 }
 0x5fb   :  { %5194 = vmatpush1.bf16.msra.mxu1 %v18768_v46  ;;  %v18998_v46 = vld [vmem:[#allocation6 + $0x214] ss:$24 sps:$4 sm:$0xff]  }
 0x5fc   :  { %5195 = vmatprep.subr.bf16.mxu1 %v18772_v48  ;;  %5150 = vmatprep.subr.bf16.mxu0 %v18998_v46  ;;  %v19004_v48 = vld [vmem:[#allocation6 + $0x240] ss:$24 sps:$4 sm:$0xff]  }
 0x5fd   :  { %5151 = vmatpush1.bf16.msra.mxu0 %v19000_v20  ;;  %21668 = vst [vmem:[#allocation28_spill] sm:$0xff] %v19004_v48  ;;  %v21680_v20 = vld [vmem:[#allocation26_spill] sm:$0xff] }
 0x5ff   :  { %5196 = vmatpush1.bf16.msra.mxu1 %v18776_v23  ;;  %v19006_v23 = vld [vmem:[#allocation6 + $0x244] ss:$24 sps:$4 sm:$0xff]  }
 0x600   :  { %5197 = vmatprep.subr.bf16.mxu1 %v18779_v27  ;;  %21669 = vst [vmem:[#allocation17_spill] sm:$0xff] %v19006_v23  ;;  %v19008_v27 = vld [vmem:[#allocation6 + $0x274] ss:$24 sps:$4 sm:$0xff]   ;;  %5152 = vmatprep.subr.bf16.mxu0 %v19006_v23 }
 0x601   :  { %21670 = vst [vmem:[#allocation22_spill] sm:$0xff] %v19008_v27  ;;  %5153 = vmatpush1.bf16.msra.mxu0 %v19004_v48 }
 0x602   :  { %5154 = vmatprep.subr.bf16.mxu0 %v19008_v27 }
 0x603   :  { %5198 = vmatpush1.bf16.msra.mxu1 %v18782_v26  ;;  %v19012_v26 = vld [vmem:[#allocation6 + $0x270] ss:$24 sps:$4 sm:$0xff]  }
 0x604   :  { %5199 = vmatprep.subr.bf16.mxu1 %v21665_v4  ;;  %21671 = vst [vmem:[#allocation47_spill] sm:$0xff] %v19012_v26 }
 0x605   :  { %5155 = vmatpush1.bf16.msra.mxu0 %v19012_v26  ;;  %v21679_v26 = vld [vmem:[#allocation24_spill] sm:$0xff] }
 0x606   :  { %5156 = vmatprep.subr.bf16.mxu0 %v19015_v38 }
 0x607   :  { %5200 = vmatpush1.bf16.msra.mxu1 %v21666_v61 }
 0x608   :  { %5883 = vmatprep.subr.bf16.mxu1 %v16146_v63  ;;  %v19028_v63 = vld [vmem:[#allocation6 + $0x14] ss:$24 sps:$4 sm:$0xff]  }
 0x609   :  { %5157 = vmatpush1.bf16.msra.mxu0 %v19018_v58  ;;  %21676 = vst [vmem:[#allocation73_spill] sm:$0xff] %v19028_v63 }
 0x60a   :  { %5158 = vmatprep.subr.bf16.mxu0 %v19021_v57 }
 0x60d   :  { %5159 = vmatpush1.bf16.msra.mxu0 %v19024_v22 }
 0x60e   :  { %5210 = vmatprep.subr.bf16.mxu0 %v19028_v63 }
 0x65d   :  { %v4407_v4 = vpop.f32.mrb[40].mxu1  ;;  %v4448_v61 = vpop.f32.mrb[56].mxu0 }
 0x65e   :  { %v4502_v37 = vadd.f32 %v4407_v4, %v21677_v33  ;;  %v4409_v15 = vpop.f32.mrb[41].mxu1  ;;  %v4450_v13 = vpop.f32.mrb[57].mxu0  ;;  %v4530_v33 = vadd.f32 %v21650_v42, %v4448_v61 }
 0x65f   :  { %v4516_v38 = vadd.f32 %v4409_v15, %v21678_v30  ;;  %v4509_v58 = vadd.f32 %v4450_v13, %v21679_v26  ;;  %v4411_v25 = vpop.f32.mrb[42].mxu1  ;;  %v4452_v29 = vpop.f32.mrb[58].mxu0  ;;  %v21682_v26 = vld [vmem:[#allocation45_spill] sm:$0xff] }
 0x660   :  { %v14335_v27 = vmul.f32 -1.442695, %v4502_v37  ;;  %v4412_v57 = vpop.f32.mrb[43].mxu1  ;;  %v4453_v48 = vpop.f32.mrb[59].mxu0 }
 0x661   :  { %v14337_v22 = vmul.f32 -1.442695, %v4516_v38  ;;  %v14336_v29 = vmul.f32 -1.442695, %v4509_v58 }
 0x662   :  { %17214 = vpow2.f32 %v14335_v27 }
 0x663   :  { %17216 = vpow2.f32 %v14337_v22 }
 0x66c   :  { %v17215_v6 = vpop.eup %17214 }
 0x66d   :  { %v4506_v34 = vadd.f32 1.0, %v17215_v6  ;;  %v17217_v63 = vpop.eup %17216 }
 0x66e   :  { %v4520_v15 = vadd.f32 1.0, %v17217_v63 }
 0x66f   :  { %17218 = vrcp.f32 %v4506_v34 }
 0x679   :  { %v17219_v4 = vpop.eup %17218 }
 0x67a   :  { %v4531_v23 = vmul.f32 %v17219_v4, %v4530_v33  ;;  %v21683_v33 = vld [vmem:[#allocation46_spill] sm:$0xff] }
 0x67c   :  { %v4532_v30 = vadd.f32 %v4531_v23, %v21680_v20 }
 0x67e   :  { %17220 = vtanh.f32 %v4532_v30 }
 0x67f   :  { %17222 = vrcp.f32 %v4520_v15 }
 0x680   :  { %17224 = vpow2.f32 %v14336_v29 }
 0x688   :  { %v17221_v37 = vpop.eup %17220 }
 0x689   :  { %v4538_v25 = vsub.f32 %v18816_v21, %v17221_v37  ;;  %v17223_v13 = vpop.eup %17222 }
 0x68a   :  { %v17225_v34 = vpop.eup %17224 }
 0x68b   :  { %v4539_v48 = vmul.f32 %v17223_v13, %v4538_v25  ;;  %v4513_v27 = vadd.f32 1.0, %v17225_v34 }
 0x68d   :  { %v19037_v6 = vadd.f32 %v17221_v37, %v4539_v48  ;;  %17226 = vrcp.f32 %v4513_v27 }
 0x68f   :  { %21681 = vst [vmem:[#allocation25_spill] sm:$0xff] %v19037_v6 }
 0x697   :  { %v17227_v22 = vpop.eup %17226 }
 0x69d   :  { %v4489_v42 = vpop.f32.mrb[44].mxu1 }
 0x69e   :  { %v4523_v38 = vadd.f32 %v4489_v42, %v21682_v26  ;;  %v4491_v57 = vpop.f32.mrb[45].mxu1  ;;  %v19059_v42 = vld [vmem:[#allocation6 + $0x10] ss:$24 sps:$4 sm:$0xff]  }
 0x69f   :  { %v4534_v20 = vadd.f32 %v18581_v12, %v4491_v57  ;;  %v4493_v23 = vpop.f32.mrb[46].mxu1  ;;  %v19049_v12 = vsel %vm3789_vm1, %v19037_v6, %v18816_v21  ;;  %v19070_v21 = vld [vmem:[#allocation6 + $0x40] ss:$24 sps:$4 sm:$0xff]   ;;  %v19078_v57 = vld [vmem:[#allocation6 + $0x70] ss:$24 sps:$4 sm:$0xff]  }
 0x6a0   :  { %v14338_v58 = vmul.f32 -1.442695, %v4523_v38  ;;  %v4494_v63 = vpop.f32.mrb[47].mxu1  ;;  %v19063_v26 = vpack.c.bf16 %v19049_v12, %v19049_v12  ;;  %v19065_v38 = vld [vmem:[#allocation6 + $0x44] ss:$24 sps:$4 sm:$0xff]  }
 0x6a1   :  { %v4535_v61 = vmul.f32 %v17227_v22, %v4534_v20  ;;  %v19081_v20 = vld [vmem:[#allocation6 + $0xa4] ss:$24 sps:$4 sm:$0xff]   ;;  %v19086_v23 = vld [vmem:[#allocation6 + $0xa0] ss:$24 sps:$4 sm:$0xff]  }
 0x6a2   :  { %17228 = vpow2.f32 %v14338_v58  ;;  %v19201_v22 = vld [vmem:[#allocation6 + $0x1bc] ss:$24 sps:$4 sm:$0xff]   ;;  %v19203_v58 = vld [vmem:[#allocation6 + $0x1b8] ss:$24 sps:$4 sm:$0xff]   ;;  %v19207_v63 = vld [vmem:[#allocation6 + $0x1ec] ss:$24 sps:$4 sm:$0xff]  }
 0x6a3   :  { %v4536_v4 = vadd.f32 %v4535_v61, %v21683_v33  ;;  %v19209_v61 = vld [vmem:[#allocation6 + $0x1e8] ss:$24 sps:$4 sm:$0xff]   ;;  %v19213_v33 = vld [vmem:[#allocation6 + $0x21c] ss:$24 sps:$4 sm:$0xff]  }
 0x6a5   :  { %17230 = vtanh.f32 %v4536_v4  ;;  %v19215_v4 = vld [vmem:[#allocation6 + $0x218] ss:$24 sps:$4 sm:$0xff]  }
 0x6ac   :  { %v17229_v30 = vpop.eup %17228 }
 0x6ad   :  { %v4527_v15 = vadd.f32 1.0, %v17229_v30  ;;  %v19219_v30 = vld [vmem:[#allocation6 + $0x248] ss:$24 sps:$4 sm:$0xff]  }
 0x6af   :  { %17232 = vrcp.f32 %v4527_v15  ;;  %v17231_v29 = vpop.eup %17230  ;;  %v19221_v15 = vld [vmem:[#allocation6 + $0x24c] ss:$24 sps:$4 sm:$0xff]  }
 0x6b0   :  { %v4541_v37 = vsub.f32 %v18822_v49, %v17231_v29 }
 0x6b9   :  { %v17233_v25 = vpop.eup %17232 }
 0x6ba   :  { %v4542_v13 = vmul.f32 %v17233_v25, %v4541_v37  ;;  %v19227_v37 = vld [vmem:[#allocation6 + $0x278] ss:$24 sps:$4 sm:$0xff]   ;;  %v19230_v25 = vld [vmem:[#allocation6 + $0x2ac] ss:$24 sps:$4 sm:$0xff]  }
 0x6bc   :  { %v19043_v48 = vadd.f32 %v17231_v29, %v4542_v13  ;;  %v19223_v29 = vld [vmem:[#allocation6 + $0x27c] ss:$24 sps:$4 sm:$0xff]   ;;  %v19233_v13 = vld [vmem:[#allocation6 + $0x2a8] ss:$24 sps:$4 sm:$0xff]  }
 0x6be   :  { %v19055_v34 = vsel %vm3783_vm0, %v19043_v48, %v18822_v49  ;;  %v19073_v49 = vld [vmem:[#allocation6 + $0x74] ss:$24 sps:$4 sm:$0xff]  }
 0x6bf   :  { %v4551_v27 = vpack.c.bf16 %v19055_v34, %v19055_v34 }
 0x6c1   :  { %5160 = vmatprep.mubr.bf16.mxu0 %v4551_v27  ;;  %5201 = vmatprep.mubr.bf16.mxu1 %v4551_v27 }
 0x6c2   :  { %5161 = vmatmul.mubr.bf16.vlgmr.msra.gmra.mrb[60].mxu0 %v19063_v26  ;;  %5202 = vmatmul.mubr.bf16.vlgmr.msra.gmra.mrb[48].mxu1 %v19063_v26 }
 0x6c3   :  { %5211 = vmatpush1.bf16.msra.mxu0 %v19059_v42  ;;  %5242 = vmatprep.mubr.bf16.mxu0 %v4551_v27  ;;  %v19236_v27 = vld [vmem:[#allocation6 + $0x2dc] ss:$24 sps:$4 sm:$0xff]  }
 0x6c4   :  { %5212 = vmatprep.subr.bf16.mxu0 %v19065_v38  ;;  %5884 = vmatpush1.bf16.msra.mxu1 %v18931_v43  ;;  %v19089_v43 = vld [vmem:[#allocation6 + $0xd4] ss:$24 sps:$4 sm:$0xff]  }
 0x6c5   :  { %5885 = vmatprep.subr.bf16.mxu1 %v18935_v36  ;;  %v19094_v36 = vld [vmem:[#allocation6 + $0xd0] ss:$24 sps:$4 sm:$0xff]  }
 0x6c7   :  { %5213 = vmatpush1.bf16.msra.mxu0 %v19070_v21 }
 0x6c8   :  { %5214 = vmatprep.subr.bf16.mxu0 %v19073_v49  ;;  %5886 = vmatpush1.bf16.msra.mxu1 %v18938_v44  ;;  %v21699_v44 = vld [vmem:[#allocation72_spill] sm:$0xff] }
 0x6c9   :  { %5887 = vmatprep.subr.bf16.mxu1 %v18943_v14  ;;  %v21700_v14 = vld [vmem:[#allocation73_spill] sm:$0xff] }
 0x6cb   :  { %5215 = vmatpush1.bf16.msra.mxu0 %v19078_v57 }
 0x6cc   :  { %5216 = vmatprep.subr.bf16.mxu0 %v19081_v20  ;;  %5888 = vmatpush1.bf16.msra.mxu1 %v18946_v35  ;;  %v19147_v35 = vld [vmem:[#allocation6 + $0xc] ss:$24 sps:$4 sm:$0xff]  }
 0x6cd   :  { %5889 = vmatprep.subr.bf16.mxu1 %v18952_v51  ;;  %v19153_v51 = vld [vmem:[#allocation6 + $0x3c] ss:$24 sps:$4 sm:$0xff]  }
 0x6cf   :  { %5217 = vmatpush1.bf16.msra.mxu0 %v19086_v23 }
 0x6d0   :  { %5218 = vmatprep.subr.bf16.mxu0 %v19089_v43  ;;  %5890 = vmatpush1.bf16.msra.mxu1 %v18950_v18  ;;  %v19149_v18 = vld [vmem:[#allocation6 + $0x8] ss:$24 sps:$4 sm:$0xff]  }
 0x6d1   :  { %5891 = vmatprep.subr.bf16.mxu1 %v18954_v53  ;;  %v19155_v53 = vld [vmem:[#allocation6 + $0x38] ss:$24 sps:$4 sm:$0xff]  }
 0x6d3   :  { %5219 = vmatpush1.bf16.msra.mxu0 %v19094_v36 }
 0x6d4   :  { %5220 = vmatprep.subr.bf16.mxu0 %v18836_v2  ;;  %5892 = vmatpush1.bf16.msra.mxu1 %v18958_v28  ;;  %v21684_v2 = vld [vmem:[#allocation23_spill] sm:$0xff] }
 0x6d5   :  { %5893 = vmatprep.subr.bf16.mxu1 %v18961_v31  ;;  %v19159_v28 = vld [vmem:[#allocation6 + $0x6c] ss:$24 sps:$4 sm:$0xff]   ;;  %v19161_v31 = vld [vmem:[#allocation6 + $0x68] ss:$24 sps:$4 sm:$0xff]  }
 0x6d7   :  { %5221 = vmatpush1.bf16.msra.mxu0 %v18839_v41  ;;  %v21685_v41 = vld [vmem:[#allocation17_spill] sm:$0xff] }
 0x6d8   :  { %5222 = vmatprep.subr.bf16.mxu0 %v18842_v17  ;;  %5894 = vmatpush1.bf16.msra.mxu1 %v18964_v52  ;;  %v21686_v17 = vld [vmem:[#allocation70_spill] sm:$0xff]  ;;  %v19165_v52 = vld [vmem:[#allocation6 + $0x98] ss:$24 sps:$4 sm:$0xff]  }
 0x6d9   :  { %5895 = vmatprep.subr.bf16.mxu1 %v18967_v11  ;;  %v19167_v11 = vld [vmem:[#allocation6 + $0x9c] ss:$24 sps:$4 sm:$0xff]  }
 0x6db   :  { %5223 = vmatpush1.bf16.msra.mxu0 %v18845_v50  ;;  %v21687_v50 = vld [vmem:[#allocation59_spill] sm:$0xff] }
 0x6dc   :  { %5224 = vmatprep.subr.bf16.mxu0 %v18848_v9  ;;  %5896 = vmatpush1.bf16.msra.mxu1 %v18970_v62  ;;  %v21688_v9 = vld [vmem:[#allocation28_spill] sm:$0xff]  ;;  %v19169_v62 = vld [vmem:[#allocation6 + $0xcc] ss:$24 sps:$4 sm:$0xff]  }
 0x6dd   :  { %5897 = vmatprep.subr.bf16.mxu1 %v18974_v19  ;;  %v19173_v19 = vld [vmem:[#allocation6 + $0xc8] ss:$24 sps:$4 sm:$0xff]  }
 0x6df   :  { %5225 = vmatpush1.bf16.msra.mxu0 %v18851_v45  ;;  %v21689_v45 = vld [vmem:[#allocation22_spill] sm:$0xff] }
 0x6e0   :  { %5226 = vmatprep.subr.bf16.mxu0 %v18854_v5  ;;  %5898 = vmatpush1.bf16.msra.mxu1 %v18976_v1  ;;  %v21690_v5 = vld [vmem:[#allocation60_spill] sm:$0xff] }
 0x6e1   :  { %5899 = vmatprep.subr.bf16.mxu1 %v18980_v54  ;;  %v19176_v1 = vld [vmem:[#allocation6 + $0xfc] ss:$24 sps:$4 sm:$0xff]   ;;  %v19179_v54 = vld [vmem:[#allocation6 + $0xf8] ss:$24 sps:$4 sm:$0xff]  }
 0x6e3   :  { %5227 = vmatpush1.bf16.msra.mxu0 %v18857_v55  ;;  %v21691_v55 = vld [vmem:[#allocation71_spill] sm:$0xff] }
 0x6e4   :  { %5228 = vmatprep.subr.bf16.mxu0 %v18860_v10  ;;  %5900 = vmatpush1.bf16.msra.mxu1 %v18982_v60  ;;  %v21692_v10 = vld [vmem:[#allocation47_spill] sm:$0xff] }
 0x6e5   :  { %5901 = vmatprep.subr.bf16.mxu1 %v18986_v7  ;;  %v19182_v60 = vld [vmem:[#allocation6 + $0x12c] ss:$24 sps:$4 sm:$0xff]   ;;  %v19185_v7 = vld [vmem:[#allocation6 + $0x128] ss:$24 sps:$4 sm:$0xff]  }
 0x6e7   :  { %5229 = vmatpush1.bf16.msra.mxu0 %v18863_v16  ;;  %v21693_v16 = vld [vmem:[#allocation48_spill] sm:$0xff] }
 0x6e8   :  { %5230 = vmatprep.subr.bf16.mxu0 %v18866_v40  ;;  %5902 = vmatpush1.bf16.msra.mxu1 %v18988_v0  ;;  %v21694_v40 = vld [vmem:[#allocation61_spill] sm:$0xff] }
 0x6e9   :  { %5903 = vmatprep.subr.bf16.mxu1 %v18992_v59  ;;  %v19189_v0 = vld [vmem:[#allocation6 + $0x15c] ss:$24 sps:$4 sm:$0xff]   ;;  %v19191_v59 = vld [vmem:[#allocation6 + $0x158] ss:$24 sps:$4 sm:$0xff]  }
 0x6eb   :  { %5231 = vmatpush1.bf16.msra.mxu0 %v18869_v24  ;;  %v21695_v24 = vld [vmem:[#allocation62_spill] sm:$0xff] }
 0x6ec   :  { %5232 = vmatprep.subr.bf16.mxu0 %v18872_v32  ;;  %5904 = vmatpush1.bf16.msra.mxu1 %v18994_v47  ;;  %v21696_v32 = vld [vmem:[#allocation50_spill] sm:$0xff] }
 0x6ed   :  { %5905 = vmatprep.subr.bf16.mxu1 %v18998_v46  ;;  %v19195_v47 = vld [vmem:[#allocation6 + $0x18c] ss:$24 sps:$4 sm:$0xff]   ;;  %v19197_v46 = vld [vmem:[#allocation6 + $0x188] ss:$24 sps:$4 sm:$0xff]  }
 0x6ef   :  { %5233 = vmatpush1.bf16.msra.mxu0 %v18875_v39  ;;  %v21697_v39 = vld [vmem:[#allocation67_spill] sm:$0xff] }
 0x6f0   :  { %5234 = vmatprep.subr.bf16.mxu0 %v18878_v3  ;;  %5906 = vmatpush1.bf16.msra.mxu1 %v21684_v2  ;;  %v21698_v3 = vld [vmem:[#allocation21_spill] sm:$0xff] }
 0x6f1   :  { %5907 = vmatprep.subr.bf16.mxu1 %v21685_v41 }
 0x6f3   :  { %5235 = vmatpush1.bf16.msra.mxu0 %v21686_v17  ;;  %v21701_v17 = vld [vmem:[#allocation29_spill] sm:$0xff] }
 0x6f4   :  { %5236 = vmatprep.subr.bf16.mxu0 %v21687_v50  ;;  %5908 = vmatpush1.bf16.msra.mxu1 %v21688_v9 }
 0x6f5   :  { %5909 = vmatprep.subr.bf16.mxu1 %v21689_v45 }
 0x6f7   :  { %5237 = vmatpush1.bf16.msra.mxu0 %v21690_v5  ;;  %v21702_v5 = vld [vmem:[#allocation31_spill] sm:$0xff] }
 0x6f8   :  { %5238 = vmatprep.subr.bf16.mxu0 %v21691_v55  ;;  %5910 = vmatpush1.bf16.msra.mxu1 %v21692_v10  ;;  %v21703_v10 = vld [vmem:[#allocation20_spill] sm:$0xff] }
 0x6f9   :  { %5911 = vmatprep.subr.bf16.mxu1 %v21693_v16 }
 0x6fb   :  { %5239 = vmatpush1.bf16.msra.mxu0 %v21694_v40 }
 0x6fc   :  { %5240 = vmatprep.subr.bf16.mxu0 %v21695_v24  ;;  %5912 = vmatpush1.bf16.msra.mxu1 %v21696_v32 }
 0x6fd   :  { %5913 = vmatprep.subr.bf16.mxu1 %v21697_v39 }
 0x6ff   :  { %5241 = vmatpush1.bf16.msra.mxu0 %v21698_v3 }
 0x700   :  { %5914 = vmatpush1.bf16.msra.mxu1 %v21699_v44  ;;  %5924 = vmatprep.subr.bf16.mxu0 %v19147_v35 }
 0x701   :  { %5965 = vmatprep.subr.bf16.mxu1 %v21700_v14 }
 0x702   :  { %5243 = vmatmul.mubr.bf16.vlgmr.msra.gmra.mrb[64].mxu0 %v19063_v26  ;;  %v19239_v26 = vld [vmem:[#allocation6 + $0x2d8] ss:$24 sps:$4 sm:$0xff]  }
 0x703   :  { %5925 = vmatpush1.bf16.msra.mxu0 %v19149_v18 }
 0x704   :  { %5926 = vmatprep.subr.bf16.mxu0 %v19153_v51 }
 0x707   :  { %5927 = vmatpush1.bf16.msra.mxu0 %v19155_v53 }
 0x708   :  { %5928 = vmatprep.subr.bf16.mxu0 %v19159_v28 }
 0x70b   :  { %5929 = vmatpush1.bf16.msra.mxu0 %v19161_v31 }
 0x70c   :  { %5930 = vmatprep.subr.bf16.mxu0 %v19167_v11 }
 0x70f   :  { %5931 = vmatpush1.bf16.msra.mxu0 %v19165_v52 }
 0x710   :  { %5932 = vmatprep.subr.bf16.mxu0 %v19169_v62 }
 0x713   :  { %5933 = vmatpush1.bf16.msra.mxu0 %v19173_v19 }
 0x714   :  { %5934 = vmatprep.subr.bf16.mxu0 %v19176_v1 }
 0x717   :  { %5935 = vmatpush1.bf16.msra.mxu0 %v19179_v54 }
 0x718   :  { %5936 = vmatprep.subr.bf16.mxu0 %v19182_v60 }
 0x71b   :  { %5937 = vmatpush1.bf16.msra.mxu0 %v19185_v7 }
 0x71c   :  { %5938 = vmatprep.subr.bf16.mxu0 %v19189_v0 }
 0x71f   :  { %5939 = vmatpush1.bf16.msra.mxu0 %v19191_v59 }
 0x720   :  { %5940 = vmatprep.subr.bf16.mxu0 %v19195_v47 }
 0x723   :  { %5941 = vmatpush1.bf16.msra.mxu0 %v19197_v46 }
 0x724   :  { %5942 = vmatprep.subr.bf16.mxu0 %v19201_v22 }
 0x727   :  { %5943 = vmatpush1.bf16.msra.mxu0 %v19203_v58 }
 0x728   :  { %5944 = vmatprep.subr.bf16.mxu0 %v19207_v63 }
 0x72b   :  { %5945 = vmatpush1.bf16.msra.mxu0 %v19209_v61 }
 0x72c   :  { %5946 = vmatprep.subr.bf16.mxu0 %v19213_v33 }
 0x72f   :  { %5947 = vmatpush1.bf16.msra.mxu0 %v19215_v4 }
 0x730   :  { %5948 = vmatprep.subr.bf16.mxu0 %v19221_v15 }
 0x733   :  { %5949 = vmatpush1.bf16.msra.mxu0 %v19219_v30 }
 0x734   :  { %5950 = vmatprep.subr.bf16.mxu0 %v19223_v29 }
 0x737   :  { %5951 = vmatpush1.bf16.msra.mxu0 %v19227_v37 }
 0x738   :  { %5952 = vmatprep.subr.bf16.mxu0 %v19230_v25 }
 0x73b   :  { %5953 = vmatpush1.bf16.msra.mxu0 %v19233_v13 }
 0x73c   :  { %5954 = vmatprep.subr.bf16.mxu0 %v19236_v27 }
 0x73f   :  { %5955 = vmatpush1.bf16.msra.mxu0 %v19239_v26 }
 0x795   :  { %v5162_v2 = vpop.f32.mrb[60].mxu0  ;;  %v5203_v41 = vpop.f32.mrb[48].mxu1 }
 0x796   :  { %v5257_v50 = vadd.f32 %v5162_v2, %v21701_v17  ;;  %v5164_v9 = vpop.f32.mrb[61].mxu0  ;;  %v5205_v45 = vpop.f32.mrb[49].mxu1  ;;  %v19249_v2 = vld [vmem:[%s21396_s5] ss:$0 sm:$0xff] }
 0x797   :  { %v5271_v55 = vadd.f32 %v5164_v9, %v21702_v5  ;;  %v5264_v16 = vadd.f32 %v5205_v45, %v21703_v10  ;;  %v5166_v40 = vpop.f32.mrb[62].mxu0  ;;  %v5207_v24 = vpop.f32.mrb[50].mxu1  ;;  %v5285_v17 = vadd.f32 %v19249_v2, %v5203_v41  ;;  %v21704_v5 = vld [vmem:[#allocation30_spill] sm:$0xff] }
 0x798   :  { %v14435_v32 = vmul.f32 -1.442695, %v5257_v50  ;;  %v5167_v39 = vpop.f32.mrb[63].mxu0  ;;  %v5208_v3 = vpop.f32.mrb[51].mxu1 }
 0x799   :  { %v14437_v44 = vmul.f32 -1.442695, %v5271_v55  ;;  %v14436_v55 = vmul.f32 -1.442695, %v5264_v16 }
 0x79a   :  { %17234 = vpow2.f32 %v14435_v32 }
 0x79b   :  { %17236 = vpow2.f32 %v14437_v44 }
 0x7a4   :  { %v17235_v14 = vpop.eup %17234 }
 0x7a5   :  { %v5261_v6 = vadd.f32 1.0, %v17235_v14  ;;  %v17237_v8 = vpop.eup %17236  ;;  %v21705_v14 = vld [vmem:[#allocation43_spill] sm:$0xff] }
 0x7a6   :  { %v5275_v10 = vadd.f32 1.0, %v17237_v8  ;;  %v19260_v8 = vld [vmem:[%s21397_s6] ss:$0 sm:$0xff] }
 0x7a7   :  { %17238 = vrcp.f32 %v5261_v6 }
 0x7b1   :  { %v17239_v9 = vpop.eup %17238 }
 0x7b2   :  { %v5286_v45 = vmul.f32 %v17239_v9, %v5285_v17 }
 0x7b4   :  { %v5287_v50 = vadd.f32 %v5286_v45, %v21704_v5 }
 0x7b6   :  { %17240 = vtanh.f32 %v5287_v50 }
 0x7b7   :  { %17242 = vrcp.f32 %v5275_v10 }
 0x7b8   :  { %17244 = vpow2.f32 %v14436_v55 }
 0x7c0   :  { %v17241_v40 = vpop.eup %17240 }
 0x7c1   :  { %v5293_v6 = vsub.f32 %v19049_v12, %v17241_v40  ;;  %v17243_v24 = vpop.eup %17242 }
 0x7c2   :  { %v17245_v3 = vpop.eup %17244 }
 0x7c3   :  { %v5294_v32 = vmul.f32 %v17243_v24, %v5293_v6  ;;  %v5268_v44 = vadd.f32 1.0, %v17245_v3 }
 0x7c5   :  { %v19254_v39 = vadd.f32 %v17241_v40, %v5294_v32  ;;  %17246 = vrcp.f32 %v5268_v44  ;;  %v21706_v40 = vld [vmem:[#allocation44_spill] sm:$0xff] }
 0x7cf   :  { %v17247_v5 = vpop.eup %17246 }
 0x7d5   :  { %v5244_v41 = vpop.f32.mrb[64].mxu0 }
 0x7d6   :  { %v5278_v17 = vadd.f32 %v5244_v41, %v21705_v14  ;;  %v5246_v9 = vpop.f32.mrb[65].mxu0 }
 0x7d7   :  { %v5289_v16 = vadd.f32 %v19260_v8, %v5246_v9  ;;  %v5248_v45 = vpop.f32.mrb[66].mxu0 }
 0x7d8   :  { %v14438_v50 = vmul.f32 -1.442695, %v5278_v17  ;;  %v5249_v10 = vpop.f32.mrb[67].mxu0  ;;  %v19271_v17 = vsel %vm3022_vm15, %v19254_v39, %v19049_v12  ;;  %v19291_v12 = vld [vmem:[#allocation6 + $0x104] ss:$24 sps:$4 sm:$0xff]  }
 0x7d9   :  { %v5290_v55 = vmul.f32 %v17247_v5, %v5289_v16  ;;  %v19324_v10 = vld [vmem:[#allocation6 + $0x1f0] ss:$24 sps:$4 sm:$0xff]  }
 0x7da   :  { %17248 = vpow2.f32 %v14438_v50  ;;  %v5305_v50 = vpack.c.bf16 %v19271_v17, %v19271_v17 }
 0x7db   :  { %v5291_v6 = vadd.f32 %v5290_v55, %v21706_v40  ;;  %v19327_v55 = vld [vmem:[#allocation6 + $0x224] ss:$24 sps:$4 sm:$0xff]   ;;  %v19330_v40 = vld [vmem:[#allocation6 + $0x220] ss:$24 sps:$4 sm:$0xff]  }
 0x7dd   :  { %17250 = vtanh.f32 %v5291_v6  ;;  %v19333_v6 = vld [vmem:[#allocation6 + $0x254] ss:$24 sps:$4 sm:$0xff]  }
 0x7e4   :  { %v17249_v24 = vpop.eup %17248 }
 0x7e5   :  { %v5282_v32 = vadd.f32 1.0, %v17249_v24  ;;  %v19336_v24 = vld [vmem:[#allocation6 + $0x250] ss:$24 sps:$4 sm:$0xff]  }
 0x7e7   :  { %17252 = vrcp.f32 %v5282_v32  ;;  %v17251_v3 = vpop.eup %17250  ;;  %v19339_v32 = vld [vmem:[#allocation6 + $0x284] ss:$24 sps:$4 sm:$0xff]  }
 0x7e8   :  { %v5296_v44 = vsub.f32 %v19055_v34, %v17251_v3 }
 0x7f1   :  { %v17253_v41 = vpop.eup %17252 }
 0x7f2   :  { %v5297_v14 = vmul.f32 %v17253_v41, %v5296_v44  ;;  %v19345_v44 = vld [vmem:[#allocation6 + $0x2b4] ss:$24 sps:$4 sm:$0xff]   ;;  %v19348_v41 = vld [vmem:[#allocation6 + $0x2b0] ss:$24 sps:$4 sm:$0xff]  }
 0x7f4   :  { %v19265_v56 = vadd.f32 %v17251_v3, %v5297_v14  ;;  %v19342_v3 = vld [vmem:[#allocation6 + $0x280] ss:$24 sps:$4 sm:$0xff]   ;;  %v19351_v14 = vld [vmem:[#allocation6 + $0x2e4] ss:$24 sps:$4 sm:$0xff]  }
 0x7f6   :  { %v19277_v45 = vsel %vm3016_vm14, %v19265_v56, %v19055_v34  ;;  %v19294_v34 = vld [vmem:[#allocation6 + $0x100] ss:$24 sps:$4 sm:$0xff]  }
 0x7f7   :  { %v5306_v5 = vpack.c.bf16 %v19277_v45, %v19277_v45 }
 0x7f9   :  { %5915 = vmatprep.mubr.bf16.mxu1 %v5306_v5  ;;  %5956 = vmatprep.mubr.bf16.mxu0 %v5306_v5 }
 0x7fa   :  { %5916 = vmatmul.mubr.bf16.vlgmr.msra.gmra.mrb[52].mxu1 %v5305_v50  ;;  %5957 = vmatmul.mubr.bf16.vlgmr.msra.gmra.mrb[68].mxu0 %v5305_v50 }
 0x7fb   :  { %5966 = vmatpush1.bf16.msra.mxu1 %v19059_v42  ;;  %5997 = vmatprep.mubr.bf16.mxu1 %v5306_v5  ;;  %v19297_v42 = vld [vmem:[#allocation6 + $0x134] ss:$24 sps:$4 sm:$0xff]   ;;  %v19354_v5 = vld [vmem:[#allocation6 + $0x2e0] ss:$24 sps:$4 sm:$0xff]  }
 0x7fc   :  { %5967 = vmatprep.subr.bf16.mxu1 %v19065_v38  ;;  %v19300_v38 = vld [vmem:[#allocation6 + $0x130] ss:$24 sps:$4 sm:$0xff]  }
 0x7ff   :  { %5968 = vmatpush1.bf16.msra.mxu1 %v19070_v21  ;;  %v19303_v21 = vld [vmem:[#allocation6 + $0x164] ss:$24 sps:$4 sm:$0xff]  }
 0x800   :  { %5969 = vmatprep.subr.bf16.mxu1 %v19073_v49  ;;  %v19306_v49 = vld [vmem:[#allocation6 + $0x160] ss:$24 sps:$4 sm:$0xff]  }
 0x803   :  { %5970 = vmatpush1.bf16.msra.mxu1 %v19078_v57  ;;  %v19309_v57 = vld [vmem:[#allocation6 + $0x194] ss:$24 sps:$4 sm:$0xff]  }
 0x804   :  { %5971 = vmatprep.subr.bf16.mxu1 %v19081_v20  ;;  %v19312_v20 = vld [vmem:[#allocation6 + $0x190] ss:$24 sps:$4 sm:$0xff]  }
 0x807   :  { %5972 = vmatpush1.bf16.msra.mxu1 %v19086_v23  ;;  %v19315_v23 = vld [vmem:[#allocation6 + $0x1c4] ss:$24 sps:$4 sm:$0xff]  }
 0x808   :  { %5973 = vmatprep.subr.bf16.mxu1 %v19089_v43  ;;  %v19318_v43 = vld [vmem:[#allocation6 + $0x1c0] ss:$24 sps:$4 sm:$0xff]  }
 0x80b   :  { %5974 = vmatpush1.bf16.msra.mxu1 %v19094_v36  ;;  %v19321_v36 = vld [vmem:[#allocation6 + $0x1f4] ss:$24 sps:$4 sm:$0xff]  }
 0x80c   :  { %5975 = vmatprep.subr.bf16.mxu1 %v19291_v12 }
 0x80f   :  { %5976 = vmatpush1.bf16.msra.mxu1 %v19294_v34 }
 0x810   :  { %5977 = vmatprep.subr.bf16.mxu1 %v19297_v42 }
 0x813   :  { %5978 = vmatpush1.bf16.msra.mxu1 %v19300_v38 }
 0x814   :  { %5979 = vmatprep.subr.bf16.mxu1 %v19303_v21 }
 0x817   :  { %5980 = vmatpush1.bf16.msra.mxu1 %v19306_v49 }
 0x818   :  { %5981 = vmatprep.subr.bf16.mxu1 %v19309_v57 }
 0x81b   :  { %5982 = vmatpush1.bf16.msra.mxu1 %v19312_v20 }
 0x81c   :  { %5983 = vmatprep.subr.bf16.mxu1 %v19315_v23 }
 0x81f   :  { %5984 = vmatpush1.bf16.msra.mxu1 %v19318_v43 }
 0x820   :  { %5985 = vmatprep.subr.bf16.mxu1 %v19321_v36 }
 0x823   :  { %5986 = vmatpush1.bf16.msra.mxu1 %v19324_v10 }
 0x824   :  { %5987 = vmatprep.subr.bf16.mxu1 %v19327_v55 }
 0x827   :  { %5988 = vmatpush1.bf16.msra.mxu1 %v19330_v40 }
 0x828   :  { %5989 = vmatprep.subr.bf16.mxu1 %v19333_v6 }
 0x82b   :  { %5990 = vmatpush1.bf16.msra.mxu1 %v19336_v24 }
 0x82c   :  { %5991 = vmatprep.subr.bf16.mxu1 %v19339_v32 }
 0x82f   :  { %5992 = vmatpush1.bf16.msra.mxu1 %v19342_v3 }
 0x830   :  { %5993 = vmatprep.subr.bf16.mxu1 %v19345_v44 }
 0x833   :  { %5994 = vmatpush1.bf16.msra.mxu1 %v19348_v41 }
 0x834   :  { %5995 = vmatprep.subr.bf16.mxu1 %v19351_v14 }
 0x837   :  { %5996 = vmatpush1.bf16.msra.mxu1 %v19354_v5 }
 0x838   :  { %6679 = vmatprep.subr.bf16.mxu1 %v19147_v35  ;;  %v16290_v35 = vld [vmem:[#allocation6 + $0x4] ss:$24 sps:$4 sm:$0xff]  }
 0x839   :  { %6638 = vmatprep.subr.bf16.mxu0 %v16290_v35 }
 0x83a   :  { %5998 = vmatmul.mubr.bf16.vlgmr.msra.gmra.mrb[56].mxu1 %v5305_v50  ;;  %v16338_v50 = vld [vmem:[#allocation6 + $0x14] ss:$24 sps:$4 sm:$0xff]  }
 0x83b   :  { %6680 = vmatpush1.bf16.msra.mxu1 %v19149_v18  ;;  %v16288_v18 = vld [vmem:[#allocation6] ss:$24 sps:$4 sm:$0xff]  }
 0x83c   :  { %6681 = vmatprep.subr.bf16.mxu1 %v19153_v51  ;;  %6639 = vmatpush1.bf16.msra.mxu0 %v16288_v18  ;;  %v16293_v51 = vld [vmem:[#allocation6 + $0x34] ss:$24 sps:$4 sm:$0xff]  }
 0x83d   :  { %6640 = vmatprep.subr.bf16.mxu0 %v16293_v51  ;;  %v21709_v51 = vld [vmem:[#allocation33_spill] sm:$0xff] }
 0x83f   :  { %6682 = vmatpush1.bf16.msra.mxu1 %v19155_v53  ;;  %v16291_v53 = vld [vmem:[#allocation6 + $0x30] ss:$24 sps:$4 sm:$0xff]  }
 0x840   :  { %6683 = vmatprep.subr.bf16.mxu1 %v19159_v28  ;;  %6641 = vmatpush1.bf16.msra.mxu0 %v16291_v53  ;;  %v16296_v28 = vld [vmem:[#allocation6 + $0x64] ss:$24 sps:$4 sm:$0xff]  }
 0x841   :  { %6642 = vmatprep.subr.bf16.mxu0 %v16296_v28 }
 0x843   :  { %6684 = vmatpush1.bf16.msra.mxu1 %v19161_v31  ;;  %v16294_v31 = vld [vmem:[#allocation6 + $0x60] ss:$24 sps:$4 sm:$0xff]  }
 0x844   :  { %6685 = vmatprep.subr.bf16.mxu1 %v19167_v11  ;;  %6643 = vmatpush1.bf16.msra.mxu0 %v16294_v31  ;;  %v16297_v11 = vld [vmem:[#allocation6 + $0x90] ss:$24 sps:$4 sm:$0xff]  }
 0x847   :  { %6686 = vmatpush1.bf16.msra.mxu1 %v19165_v52  ;;  %v16299_v52 = vld [vmem:[#allocation6 + $0x94] ss:$24 sps:$4 sm:$0xff]  }
 0x848   :  { %6687 = vmatprep.subr.bf16.mxu1 %v19169_v62  ;;  %6644 = vmatprep.subr.bf16.mxu0 %v16299_v52  ;;  %v16302_v62 = vld [vmem:[#allocation6 + $0xc4] ss:$24 sps:$4 sm:$0xff]   ;;  %v21710_v52 = vld [vmem:[#allocation35_spill] sm:$0xff] }
 0x849   :  { %6645 = vmatpush1.bf16.msra.mxu0 %v16297_v11 }
 0x84a   :  { %6646 = vmatprep.subr.bf16.mxu0 %v16302_v62  ;;  %v21711_v62 = vld [vmem:[#allocation16_spill] sm:$0xff] }
 0x84b   :  { %6688 = vmatpush1.bf16.msra.mxu1 %v19173_v19  ;;  %v16300_v19 = vld [vmem:[#allocation6 + $0xc0] ss:$24 sps:$4 sm:$0xff]  }
 0x84c   :  { %6689 = vmatprep.subr.bf16.mxu1 %v19176_v1  ;;  %v16305_v1 = vld [vmem:[#allocation6 + $0xf4] ss:$24 sps:$4 sm:$0xff]  }
 0x84d   :  { %6647 = vmatpush1.bf16.msra.mxu0 %v16300_v19 }
 0x84e   :  { %6648 = vmatprep.subr.bf16.mxu0 %v16305_v1 }
 0x84f   :  { %6690 = vmatpush1.bf16.msra.mxu1 %v19179_v54  ;;  %v16303_v54 = vld [vmem:[#allocation6 + $0xf0] ss:$24 sps:$4 sm:$0xff]  }
 0x850   :  { %6691 = vmatprep.subr.bf16.mxu1 %v19182_v60  ;;  %v16308_v60 = vld [vmem:[#allocation6 + $0x124] ss:$24 sps:$4 sm:$0xff]  }
 0x851   :  { %6649 = vmatpush1.bf16.msra.mxu0 %v16303_v54 }
 0x852   :  { %6650 = vmatprep.subr.bf16.mxu0 %v16308_v60 }
 0x853   :  { %6692 = vmatpush1.bf16.msra.mxu1 %v19185_v7  ;;  %v16306_v7 = vld [vmem:[#allocation6 + $0x120] ss:$24 sps:$4 sm:$0xff]  }
 0x854   :  { %6693 = vmatprep.subr.bf16.mxu1 %v19189_v0  ;;  %v16311_v0 = vld [vmem:[#allocation6 + $0x154] ss:$24 sps:$4 sm:$0xff]  }
 0x855   :  { %6651 = vmatpush1.bf16.msra.mxu0 %v16306_v7 }
 0x856   :  { %6652 = vmatprep.subr.bf16.mxu0 %v16311_v0 }
 0x857   :  { %6694 = vmatpush1.bf16.msra.mxu1 %v19191_v59  ;;  %v16309_v59 = vld [vmem:[#allocation6 + $0x150] ss:$24 sps:$4 sm:$0xff]  }
 0x858   :  { %6695 = vmatprep.subr.bf16.mxu1 %v19195_v47  ;;  %v16314_v47 = vld [vmem:[#allocation6 + $0x184] ss:$24 sps:$4 sm:$0xff]  }
 0x859   :  { %6653 = vmatpush1.bf16.msra.mxu0 %v16309_v59 }
 0x85a   :  { %6654 = vmatprep.subr.bf16.mxu0 %v16314_v47 }
 0x85b   :  { %6696 = vmatpush1.bf16.msra.mxu1 %v19197_v46  ;;  %v16312_v46 = vld [vmem:[#allocation6 + $0x180] ss:$24 sps:$4 sm:$0xff]  }
 0x85c   :  { %6697 = vmatprep.subr.bf16.mxu1 %v19201_v22  ;;  %v16317_v22 = vld [vmem:[#allocation6 + $0x1b4] ss:$24 sps:$4 sm:$0xff]  }
 0x85d   :  { %6655 = vmatpush1.bf16.msra.mxu0 %v16312_v46 }
 0x85e   :  { %6656 = vmatprep.subr.bf16.mxu0 %v16317_v22 }
 0x85f   :  { %6698 = vmatpush1.bf16.msra.mxu1 %v19203_v58  ;;  %v16315_v58 = vld [vmem:[#allocation6 + $0x1b0] ss:$24 sps:$4 sm:$0xff]  }
 0x860   :  { %6699 = vmatprep.subr.bf16.mxu1 %v19207_v63  ;;  %v16320_v63 = vld [vmem:[#allocation6 + $0x1e4] ss:$24 sps:$4 sm:$0xff]  }
 0x861   :  { %6657 = vmatpush1.bf16.msra.mxu0 %v16315_v58 }
 0x862   :  { %6658 = vmatprep.subr.bf16.mxu0 %v16320_v63 }
 0x863   :  { %6700 = vmatpush1.bf16.msra.mxu1 %v19209_v61  ;;  %v16318_v61 = vld [vmem:[#allocation6 + $0x1e0] ss:$24 sps:$4 sm:$0xff]  }
 0x864   :  { %6701 = vmatprep.subr.bf16.mxu1 %v19213_v33  ;;  %v16323_v33 = vld [vmem:[#allocation6 + $0x214] ss:$24 sps:$4 sm:$0xff]  }
 0x865   :  { %6659 = vmatpush1.bf16.msra.mxu0 %v16318_v61 }
 0x866   :  { %6660 = vmatprep.subr.bf16.mxu0 %v16323_v33  ;;  %v21712_v33 = vld [vmem:[#allocation34_spill] sm:$0xff] }
 0x867   :  { %6702 = vmatpush1.bf16.msra.mxu1 %v19215_v4  ;;  %v16321_v4 = vld [vmem:[#allocation6 + $0x210] ss:$24 sps:$4 sm:$0xff]  }
 0x868   :  { %6703 = vmatprep.subr.bf16.mxu1 %v19221_v15  ;;  %v16326_v15 = vld [vmem:[#allocation6 + $0x244] ss:$24 sps:$4 sm:$0xff]  }
 0x869   :  { %6661 = vmatpush1.bf16.msra.mxu0 %v16321_v4 }
 0x86a   :  { %6662 = vmatprep.subr.bf16.mxu0 %v16326_v15 }
 0x86b   :  { %6704 = vmatpush1.bf16.msra.mxu1 %v19219_v30  ;;  %v16324_v30 = vld [vmem:[#allocation6 + $0x240] ss:$24 sps:$4 sm:$0xff]  }
 0x86c   :  { %6705 = vmatprep.subr.bf16.mxu1 %v19223_v29  ;;  %v16329_v29 = vld [vmem:[#allocation6 + $0x274] ss:$24 sps:$4 sm:$0xff]  }
 0x86d   :  { %6663 = vmatpush1.bf16.msra.mxu0 %v16324_v30 }
 0x86e   :  { %6664 = vmatprep.subr.bf16.mxu0 %v16329_v29 }
 0x86f   :  { %6706 = vmatpush1.bf16.msra.mxu1 %v19227_v37  ;;  %v16327_v37 = vld [vmem:[#allocation6 + $0x270] ss:$24 sps:$4 sm:$0xff]  }
 0x870   :  { %6707 = vmatprep.subr.bf16.mxu1 %v19230_v25  ;;  %v16332_v25 = vld [vmem:[#allocation6 + $0x2a4] ss:$24 sps:$4 sm:$0xff]  }
 0x871   :  { %6665 = vmatpush1.bf16.msra.mxu0 %v16327_v37 }
 0x872   :  { %6666 = vmatprep.subr.bf16.mxu0 %v16332_v25 }
 0x873   :  { %6708 = vmatpush1.bf16.msra.mxu1 %v19233_v13  ;;  %v16330_v13 = vld [vmem:[#allocation6 + $0x2a0] ss:$24 sps:$4 sm:$0xff]  }
 0x874   :  { %6709 = vmatprep.subr.bf16.mxu1 %v19236_v27  ;;  %v16335_v27 = vld [vmem:[#allocation6 + $0x2d4] ss:$24 sps:$4 sm:$0xff]  }
 0x875   :  { %6667 = vmatpush1.bf16.msra.mxu0 %v16330_v13 }
 0x876   :  { %6668 = vmatprep.subr.bf16.mxu0 %v16335_v27 }
 0x877   :  { %6710 = vmatpush1.bf16.msra.mxu1 %v19239_v26  ;;  %v16333_v26 = vld [vmem:[#allocation6 + $0x2d0] ss:$24 sps:$4 sm:$0xff]  }
 0x879   :  { %6669 = vmatpush1.bf16.msra.mxu0 %v16333_v26 }
 0x87a   :  { %6720 = vmatprep.subr.bf16.mxu0 %v16338_v50 }
 0x8cd   :  { %v5917_v35 = vpop.f32.mrb[52].mxu1  ;;  %v5958_v18 = vpop.f32.mrb[68].mxu0 }
 0x8ce   :  { %v6012_v53 = vadd.f32 %v5917_v35, %v21709_v51  ;;  %v5919_v28 = vpop.f32.mrb[53].mxu1  ;;  %v5960_v31 = vpop.f32.mrb[69].mxu0  ;;  %v6040_v58 = vadd.f32 %v19249_v2, %v5958_v18  ;;  %v21713_v18 = vld [vmem:[#allocation41_spill] sm:$0xff] }
 0x8cf   :  { %v6026_v11 = vadd.f32 %v5919_v28, %v21710_v52  ;;  %v6019_v19 = vadd.f32 %v5960_v31, %v21711_v62  ;;  %v5921_v1 = vpop.f32.mrb[54].mxu1  ;;  %v5962_v54 = vpop.f32.mrb[70].mxu0 }
 0x8d0   :  { %v14535_v60 = vmul.f32 -1.442695, %v6012_v53  ;;  %v5922_v7 = vpop.f32.mrb[55].mxu1  ;;  %v5963_v0 = vpop.f32.mrb[71].mxu0  ;;  %v21714_v1 = vld [vmem:[#allocation42_spill] sm:$0xff] }
 0x8d1   :  { %v14537_v59 = vmul.f32 -1.442695, %v6026_v11  ;;  %v14536_v15 = vmul.f32 -1.442695, %v6019_v19 }
 0x8d2   :  { %17254 = vpow2.f32 %v14535_v60 }
 0x8d3   :  { %17256 = vpow2.f32 %v14537_v59 }
 0x8dc   :  { %v17255_v47 = vpop.eup %17254 }
 0x8dd   :  { %v6016_v46 = vadd.f32 1.0, %v17255_v47  ;;  %v17257_v22 = vpop.eup %17256 }
 0x8de   :  { %v6030_v30 = vadd.f32 1.0, %v17257_v22 }
 0x8df   :  { %17258 = vrcp.f32 %v6016_v46 }
 0x8e9   :  { %v17259_v63 = vpop.eup %17258 }
 0x8ea   :  { %v6041_v61 = vmul.f32 %v17259_v63, %v6040_v58 }
 0x8ec   :  { %v6042_v4 = vadd.f32 %v6041_v61, %v21712_v33 }
 0x8ee   :  { %17260 = vtanh.f32 %v6042_v4 }
 0x8ef   :  { %17262 = vrcp.f32 %v6030_v30  ;;  %v16336_v30 = vld [vmem:[#allocation6 + $0x10] ss:$24 sps:$4 sm:$0xff]  }
 0x8f0   :  { %17264 = vpow2.f32 %v14536_v15 }
 0x8f8   :  { %v17261_v29 = vpop.eup %17260 }
 0x8f9   :  { %v6048_v37 = vsub.f32 %v19271_v17, %v17261_v29  ;;  %v17263_v25 = vpop.eup %17262 }
 0x8fa   :  { %v17265_v26 = vpop.eup %17264 }
 0x8fb   :  { %v6049_v13 = vmul.f32 %v17263_v25, %v6048_v37  ;;  %v6023_v50 = vadd.f32 1.0, %v17265_v26  ;;  %v16344_v37 = vld [vmem:[#allocation6 + $0x74] ss:$24 sps:$4 sm:$0xff]   ;;  %v16347_v25 = vld [vmem:[#allocation6 + $0xa4] ss:$24 sps:$4 sm:$0xff]  }
 0x8fc   :  { %v16350_v26 = vld [vmem:[#allocation6 + $0xd4] ss:$24 sps:$4 sm:$0xff]  }
 0x8fd   :  { %v19396_v27 = vadd.f32 %v17261_v29, %v6049_v13  ;;  %17266 = vrcp.f32 %v6023_v50  ;;  %v16341_v29 = vld [vmem:[#allocation6 + $0x44] ss:$24 sps:$4 sm:$0xff]   ;;  %v16345_v13 = vld [vmem:[#allocation6 + $0xa0] ss:$24 sps:$4 sm:$0xff]   ;;  %v16348_v50 = vld [vmem:[#allocation6 + $0xd0] ss:$24 sps:$4 sm:$0xff]  }
 0x8ff   :  { %v19408_v63 = vsel %vm2255_vm13, %v19396_v27, %v19271_v17  ;;  %v16339_v17 = vld [vmem:[#allocation6 + $0x40] ss:$24 sps:$4 sm:$0xff]  }
 0x900   :  { %v6060_v15 = vpack.c.bf16 %v19408_v63, %v19408_v63 }
 0x907   :  { %v17267_v52 = vpop.eup %17266 }
 0x90d   :  { %v5999_v35 = vpop.f32.mrb[56].mxu1 }
 0x90e   :  { %v6033_v51 = vadd.f32 %v5999_v35, %v21713_v18  ;;  %v6001_v53 = vpop.f32.mrb[57].mxu1  ;;  %v16381_v35 = vld [vmem:[#allocation8 + $0xf0] ss:$24 sps:$4 sm:$0xff]  }
 0x90f   :  { %v6044_v28 = vadd.f32 %v19260_v8, %v6001_v53  ;;  %v6003_v31 = vpop.f32.mrb[58].mxu1  ;;  %v16384_v18 = vld [vmem:[#allocation8 + $0xf8] ss:$24 sps:$4 sm:$0xff]   ;;  %v16392_v53 = vld [vmem:[#allocation8 + $0x12c] ss:$24 sps:$4 sm:$0xff]  }
 0x910   :  { %v14538_v11 = vmul.f32 -1.442695, %v6033_v51  ;;  %v6004_v62 = vpop.f32.mrb[59].mxu1  ;;  %v16389_v51 = vld [vmem:[#allocation8 + $0x124] ss:$24 sps:$4 sm:$0xff]  }
 0x911   :  { %v6045_v19 = vmul.f32 %v17267_v52, %v6044_v28  ;;  %v16387_v28 = vld [vmem:[#allocation8 + $0x120] ss:$24 sps:$4 sm:$0xff]   ;;  %v16395_v52 = vld [vmem:[#allocation8 + $0x154] ss:$24 sps:$4 sm:$0xff]   ;;  %v16393_v62 = vld [vmem:[#allocation8 + $0x150] ss:$24 sps:$4 sm:$0xff]  }
 0x912   :  { %17268 = vpow2.f32 %v14538_v11  ;;  %v16390_v31 = vld [vmem:[#allocation8 + $0x128] ss:$24 sps:$4 sm:$0xff]   ;;  %v16398_v11 = vld [vmem:[#allocation8 + $0x15c] ss:$24 sps:$4 sm:$0xff]  }
 0x913   :  { %v6046_v54 = vadd.f32 %v6045_v19, %v21714_v1  ;;  %v16396_v19 = vld [vmem:[#allocation8 + $0x158] ss:$24 sps:$4 sm:$0xff]   ;;  %v16401_v1 = vld [vmem:[#allocation8 + $0x184] ss:$24 sps:$4 sm:$0xff]  }
 0x915   :  { %17270 = vtanh.f32 %v6046_v54  ;;  %v16404_v54 = vld [vmem:[#allocation8 + $0x18c] ss:$24 sps:$4 sm:$0xff]  }
 0x91c   :  { %v17269_v60 = vpop.eup %17268 }
 0x91d   :  { %v6037_v7 = vadd.f32 1.0, %v17269_v60  ;;  %v16399_v60 = vld [vmem:[#allocation8 + $0x180] ss:$24 sps:$4 sm:$0xff]  }
 0x91f   :  { %17272 = vrcp.f32 %v6037_v7  ;;  %v17271_v0 = vpop.eup %17270  ;;  %v16402_v7 = vld [vmem:[#allocation8 + $0x188] ss:$24 sps:$4 sm:$0xff]  }
 0x920   :  { %v6051_v59 = vsub.f32 %v19277_v45, %v17271_v0 }
 0x929   :  { %v17273_v47 = vpop.eup %17272 }
 0x92a   :  { %v6052_v46 = vmul.f32 %v17273_v47, %v6051_v59  ;;  %v16410_v59 = vld [vmem:[#allocation8 + $0x1bc] ss:$24 sps:$4 sm:$0xff]   ;;  %v16405_v47 = vld [vmem:[#allocation8 + $0x1b0] ss:$24 sps:$4 sm:$0xff]  }
 0x92c   :  { %v19402_v22 = vadd.f32 %v17271_v0, %v6052_v46  ;;  %v16407_v0 = vld [vmem:[#allocation8 + $0x1b4] ss:$24 sps:$4 sm:$0xff]   ;;  %v16408_v46 = vld [vmem:[#allocation8 + $0x1b8] ss:$24 sps:$4 sm:$0xff]  }
 0x92e   :  { %v19414_v33 = vsel %vm2249_vm12, %v19402_v22, %v19277_v45  ;;  %v16342_v45 = vld [vmem:[#allocation6 + $0x70] ss:$24 sps:$4 sm:$0xff]  }
 0x92f   :  { %v6061_v4 = vpack.c.bf16 %v19414_v33, %v19414_v33 }
 0x931   :  { %6670 = vmatprep.mubr.bf16.mxu0 %v6061_v4  ;;  %6711 = vmatprep.mubr.bf16.mxu1 %v6061_v4 }
 0x932   :  { %6671 = vmatmul.mubr.bf16.vlgmr.msra.gmra.mrb[72].mxu0 %v6060_v15  ;;  %6712 = vmatmul.mubr.bf16.vlgmr.msra.gmra.mrb[60].mxu1 %v6060_v15 }
 0x933   :  { %6721 = vmatpush1.bf16.msra.mxu0 %v16336_v30  ;;  %6752 = vmatprep.mubr.bf16.mxu0 %v6061_v4  ;;  %v16413_v4 = vld [vmem:[#allocation8 + $0x1e4] ss:$24 sps:$4 sm:$0xff]  }
 0x934   :  { %6722 = vmatprep.subr.bf16.mxu0 %v16341_v29  ;;  %v16416_v30 = vld [vmem:[#allocation8 + $0x1ec] ss:$24 sps:$4 sm:$0xff]   ;;  %v16414_v29 = vld [vmem:[#allocation8 + $0x1e8] ss:$24 sps:$4 sm:$0xff]  }
 0x937   :  { %6723 = vmatpush1.bf16.msra.mxu0 %v16339_v17  ;;  %v16419_v17 = vld [vmem:[#allocation8 + $0x214] ss:$24 sps:$4 sm:$0xff]  }
 0x938   :  { %6724 = vmatprep.subr.bf16.mxu0 %v16344_v37  ;;  %v16422_v37 = vld [vmem:[#allocation8 + $0x21c] ss:$24 sps:$4 sm:$0xff]  }
 0x93b   :  { %6725 = vmatpush1.bf16.msra.mxu0 %v16342_v45  ;;  %v16417_v45 = vld [vmem:[#allocation8 + $0x210] ss:$24 sps:$4 sm:$0xff]  }
 0x93c   :  { %6726 = vmatprep.subr.bf16.mxu0 %v16347_v25  ;;  %v16420_v25 = vld [vmem:[#allocation8 + $0x218] ss:$24 sps:$4 sm:$0xff]  }
 0x93f   :  { %6727 = vmatpush1.bf16.msra.mxu0 %v16345_v13  ;;  %v16425_v13 = vld [vmem:[#allocation8 + $0x244] ss:$24 sps:$4 sm:$0xff]  }
 0x940   :  { %6728 = vmatprep.subr.bf16.mxu0 %v16350_v26  ;;  %v16428_v26 = vld [vmem:[#allocation8 + $0x24c] ss:$24 sps:$4 sm:$0xff]  }
 0x943   :  { %6729 = vmatpush1.bf16.msra.mxu0 %v16348_v50  ;;  %v16423_v50 = vld [vmem:[#allocation8 + $0x240] ss:$24 sps:$4 sm:$0xff]  }
 0x944   :  { %6730 = vmatprep.subr.bf16.mxu0 %v19291_v12  ;;  %v16351_v12 = vld [vmem:[#allocation8] ss:$24 sps:$4 sm:$0xff]  }
 0x947   :  { %6731 = vmatpush1.bf16.msra.mxu0 %v19294_v34  ;;  %v16353_v34 = vld [vmem:[#allocation8 + $0x4] ss:$24 sps:$4 sm:$0xff]  }
 0x948   :  { %6732 = vmatprep.subr.bf16.mxu0 %v19297_v42  ;;  %v16354_v42 = vld [vmem:[#allocation8 + $0x8] ss:$24 sps:$4 sm:$0xff]   ;;  %7445 = vmatprep.subr.bf16.mxu1 %v16353_v34  ;;  %v16431_v34 = vld [vmem:[#allocation8 + $0x274] ss:$24 sps:$4 sm:$0xff]  }
 0x949   :  { %7446 = vmatpush1.bf16.msra.mxu1 %v16351_v12  ;;  %v16426_v12 = vld [vmem:[#allocation8 + $0x248] ss:$24 sps:$4 sm:$0xff]  }
 0x94b   :  { %6733 = vmatpush1.bf16.msra.mxu0 %v19300_v38  ;;  %v16356_v38 = vld [vmem:[#allocation8 + $0xc] ss:$24 sps:$4 sm:$0xff]  }
 0x94c   :  { %6734 = vmatprep.subr.bf16.mxu0 %v19303_v21  ;;  %v16359_v21 = vld [vmem:[#allocation8 + $0x34] ss:$24 sps:$4 sm:$0xff]  }
 0x94d   :  { %7447 = vmatprep.subr.bf16.mxu1 %v16359_v21  ;;  %v16432_v21 = vld [vmem:[#allocation8 + $0x278] ss:$24 sps:$4 sm:$0xff]  }
 0x94f   :  { %6735 = vmatpush1.bf16.msra.mxu0 %v19306_v49  ;;  %v16362_v49 = vld [vmem:[#allocation8 + $0x3c] ss:$24 sps:$4 sm:$0xff]  }
 0x950   :  { %6736 = vmatprep.subr.bf16.mxu0 %v19309_v57  ;;  %v16357_v57 = vld [vmem:[#allocation8 + $0x30] ss:$24 sps:$4 sm:$0xff]  }
 0x951   :  { %7448 = vmatpush1.bf16.msra.mxu1 %v16357_v57  ;;  %v16440_v57 = vld [vmem:[#allocation8 + $0x2ac] ss:$24 sps:$4 sm:$0xff]  }
 0x953   :  { %6737 = vmatpush1.bf16.msra.mxu0 %v19312_v20  ;;  %v16360_v20 = vld [vmem:[#allocation8 + $0x38] ss:$24 sps:$4 sm:$0xff]  }
 0x954   :  { %6738 = vmatprep.subr.bf16.mxu0 %v19315_v23  ;;  %v16365_v23 = vld [vmem:[#allocation8 + $0x64] ss:$24 sps:$4 sm:$0xff]  }
 0x955   :  { %7449 = vmatprep.subr.bf16.mxu1 %v16365_v23  ;;  %v16438_v23 = vld [vmem:[#allocation8 + $0x2a8] ss:$24 sps:$4 sm:$0xff]  }
 0x957   :  { %6739 = vmatpush1.bf16.msra.mxu0 %v19318_v43  ;;  %v16368_v43 = vld [vmem:[#allocation8 + $0x6c] ss:$24 sps:$4 sm:$0xff]  }
 0x958   :  { %6740 = vmatprep.subr.bf16.mxu0 %v19321_v36  ;;  %v16363_v36 = vld [vmem:[#allocation8 + $0x60] ss:$24 sps:$4 sm:$0xff]  }
 0x959   :  { %7450 = vmatpush1.bf16.msra.mxu1 %v16363_v36  ;;  %v16446_v36 = vld [vmem:[#allocation8 + $0x2dc] ss:$24 sps:$4 sm:$0xff]  }
 0x95b   :  { %6741 = vmatpush1.bf16.msra.mxu0 %v19324_v10  ;;  %v16366_v10 = vld [vmem:[#allocation8 + $0x68] ss:$24 sps:$4 sm:$0xff]  }
 0x95c   :  { %6742 = vmatprep.subr.bf16.mxu0 %v19327_v55  ;;  %v16371_v55 = vld [vmem:[#allocation8 + $0x94] ss:$24 sps:$4 sm:$0xff]  }
 0x95d   :  { %7451 = vmatprep.subr.bf16.mxu1 %v16371_v55  ;;  %v16444_v55 = vld [vmem:[#allocation8 + $0x2d8] ss:$24 sps:$4 sm:$0xff]  }
 0x95f   :  { %6743 = vmatpush1.bf16.msra.mxu0 %v19330_v40  ;;  %v16374_v40 = vld [vmem:[#allocation8 + $0x9c] ss:$24 sps:$4 sm:$0xff]  }
 0x960   :  { %6744 = vmatprep.subr.bf16.mxu0 %v19333_v6  ;;  %v16369_v6 = vld [vmem:[#allocation8 + $0x90] ss:$24 sps:$4 sm:$0xff]  }
 0x961   :  { %7452 = vmatpush1.bf16.msra.mxu1 %v16369_v6  ;;  %v16452_v6 = vld [vmem:[#allocation9 + $0x4] ss:$24 sps:$4 sm:$0xff]  }
 0x963   :  { %6745 = vmatpush1.bf16.msra.mxu0 %v19336_v24  ;;  %v16372_v24 = vld [vmem:[#allocation8 + $0x98] ss:$24 sps:$4 sm:$0xff]  }
 0x964   :  { %6746 = vmatprep.subr.bf16.mxu0 %v19339_v32  ;;  %v16377_v32 = vld [vmem:[#allocation8 + $0xc4] ss:$24 sps:$4 sm:$0xff]  }
 0x965   :  { %7453 = vmatprep.subr.bf16.mxu1 %v16377_v32 }
 0x967   :  { %6747 = vmatpush1.bf16.msra.mxu0 %v19342_v3  ;;  %v16380_v3 = vld [vmem:[#allocation8 + $0xcc] ss:$24 sps:$4 sm:$0xff]  }
 0x968   :  { %6748 = vmatprep.subr.bf16.mxu0 %v19345_v44  ;;  %v16375_v44 = vld [vmem:[#allocation8 + $0xc0] ss:$24 sps:$4 sm:$0xff]  }
 0x969   :  { %7454 = vmatpush1.bf16.msra.mxu1 %v16375_v44 }
 0x96b   :  { %6749 = vmatpush1.bf16.msra.mxu0 %v19348_v41  ;;  %v16378_v41 = vld [vmem:[#allocation8 + $0xc8] ss:$24 sps:$4 sm:$0xff]  }
 0x96c   :  { %6750 = vmatprep.subr.bf16.mxu0 %v19351_v14  ;;  %v16383_v14 = vld [vmem:[#allocation8 + $0xf4] ss:$24 sps:$4 sm:$0xff]  }
 0x96d   :  { %7455 = vmatprep.subr.bf16.mxu1 %v16383_v14 }
 0x96e   :  { %7456 = vmatpush1.bf16.msra.mxu1 %v16381_v35 }
 0x96f   :  { %6751 = vmatpush1.bf16.msra.mxu0 %v19354_v5  ;;  %v16386_v5 = vld [vmem:[#allocation8 + $0xfc] ss:$24 sps:$4 sm:$0xff]   ;;  %7457 = vmatprep.subr.bf16.mxu1 %v16389_v51 }
 0x970   :  { %7518 = vmatprep.subr.bf16.mxu0 %v16356_v38  ;;  %v16429_v38 = vld [vmem:[#allocation8 + $0x270] ss:$24 sps:$4 sm:$0xff]  }
 0x972   :  { %6753 = vmatmul.mubr.bf16.vlgmr.msra.gmra.mrb[76].mxu0 %v6060_v15  ;;  %7458 = vmatpush1.bf16.msra.mxu1 %v16387_v28  ;;  %v16411_v15 = vld [vmem:[#allocation8 + $0x1e0] ss:$24 sps:$4 sm:$0xff]  }
 0x973   :  { %7519 = vmatpush1.bf16.msra.mxu0 %v16354_v42  ;;  %7459 = vmatprep.subr.bf16.mxu1 %v16395_v52  ;;  %v16434_v42 = vld [vmem:[#allocation8 + $0x27c] ss:$24 sps:$4 sm:$0xff]  }
 0x974   :  { %7520 = vmatprep.subr.bf16.mxu0 %v16362_v49  ;;  %v16437_v49 = vld [vmem:[#allocation8 + $0x2a4] ss:$24 sps:$4 sm:$0xff]  }
 0x976   :  { %7460 = vmatpush1.bf16.msra.mxu1 %v16393_v62 }
 0x977   :  { %7521 = vmatpush1.bf16.msra.mxu0 %v16360_v20  ;;  %7461 = vmatprep.subr.bf16.mxu1 %v16401_v1  ;;  %v16435_v20 = vld [vmem:[#allocation8 + $0x2a0] ss:$24 sps:$4 sm:$0xff]  }
 0x978   :  { %7522 = vmatprep.subr.bf16.mxu0 %v16368_v43  ;;  %v16443_v43 = vld [vmem:[#allocation8 + $0x2d4] ss:$24 sps:$4 sm:$0xff]  }
 0x97a   :  { %7462 = vmatpush1.bf16.msra.mxu1 %v16399_v60 }
 0x97b   :  { %7523 = vmatpush1.bf16.msra.mxu0 %v16366_v10  ;;  %7463 = vmatprep.subr.bf16.mxu1 %v16407_v0  ;;  %v16441_v10 = vld [vmem:[#allocation8 + $0x2d0] ss:$24 sps:$4 sm:$0xff]  }
 0x97c   :  { %7524 = vmatprep.subr.bf16.mxu0 %v16374_v40  ;;  %v16449_v40 = vld [vmem:[#allocation8 + $0x14] ss:$24 sps:$4 sm:$0xff]  }
 0x97e   :  { %7464 = vmatpush1.bf16.msra.mxu1 %v16405_v47 }
 0x97f   :  { %7525 = vmatpush1.bf16.msra.mxu0 %v16372_v24  ;;  %7465 = vmatprep.subr.bf16.mxu1 %v16413_v4 }
 0x980   :  { %7526 = vmatprep.subr.bf16.mxu0 %v16380_v3  ;;  %v21717_v3 = vld [vmem:[#allocation36_spill] sm:$0xff] }
 0x982   :  { %7466 = vmatpush1.bf16.msra.mxu1 %v16411_v15 }
 0x983   :  { %7527 = vmatpush1.bf16.msra.mxu0 %v16378_v41  ;;  %7467 = vmatprep.subr.bf16.mxu1 %v16419_v17 }
 0x984   :  { %7528 = vmatprep.subr.bf16.mxu0 %v16386_v5  ;;  %v21718_v5 = vld [vmem:[#allocation38_spill] sm:$0xff] }
 0x986   :  { %7468 = vmatpush1.bf16.msra.mxu1 %v16417_v45 }
 0x987   :  { %7529 = vmatpush1.bf16.msra.mxu0 %v16384_v18  ;;  %7469 = vmatprep.subr.bf16.mxu1 %v16425_v13  ;;  %v21719_v18 = vld [vmem:[#allocation15_spill] sm:$0xff] }
 0x988   :  { %7530 = vmatprep.subr.bf16.mxu0 %v16392_v53  ;;  %v21721_v13 = vld [vmem:[#allocation39_spill] sm:$0xff] }
 0x98a   :  { %7470 = vmatpush1.bf16.msra.mxu1 %v16423_v50 }
 0x98b   :  { %7531 = vmatpush1.bf16.msra.mxu0 %v16390_v31  ;;  %7471 = vmatprep.subr.bf16.mxu1 %v16431_v34 }
 0x98c   :  { %7532 = vmatprep.subr.bf16.mxu0 %v16398_v11 }
 0x98e   :  { %7472 = vmatpush1.bf16.msra.mxu1 %v16429_v38 }
 0x98f   :  { %7533 = vmatpush1.bf16.msra.mxu0 %v16396_v19  ;;  %7473 = vmatprep.subr.bf16.mxu1 %v16437_v49 }
 0x990   :  { %7534 = vmatprep.subr.bf16.mxu0 %v16404_v54 }
 0x992   :  { %7474 = vmatpush1.bf16.msra.mxu1 %v16435_v20 }
 0x993   :  { %7535 = vmatpush1.bf16.msra.mxu0 %v16402_v7  ;;  %7475 = vmatprep.subr.bf16.mxu1 %v16443_v43 }
 0x994   :  { %7536 = vmatprep.subr.bf16.mxu0 %v16410_v59  ;;  %v21720_v59 = vld [vmem:[#allocation37_spill] sm:$0xff] }
 0x996   :  { %7476 = vmatpush1.bf16.msra.mxu1 %v16441_v10 }
 0x997   :  { %7537 = vmatpush1.bf16.msra.mxu0 %v16408_v46  ;;  %7591 = vmatprep.subr.bf16.mxu1 %v16449_v40 }
 0x998   :  { %7538 = vmatprep.subr.bf16.mxu0 %v16416_v30 }
 0x99b   :  { %7539 = vmatpush1.bf16.msra.mxu0 %v16414_v29 }
 0x99c   :  { %7540 = vmatprep.subr.bf16.mxu0 %v16422_v37 }
 0x99f   :  { %7541 = vmatpush1.bf16.msra.mxu0 %v16420_v25 }
 0x9a0   :  { %7542 = vmatprep.subr.bf16.mxu0 %v16428_v26 }
 0x9a3   :  { %7543 = vmatpush1.bf16.msra.mxu0 %v16426_v12 }
 0x9a4   :  { %7544 = vmatprep.subr.bf16.mxu0 %v16434_v42 }
 0x9a7   :  { %7545 = vmatpush1.bf16.msra.mxu0 %v16432_v21 }
 0x9a8   :  { %7546 = vmatprep.subr.bf16.mxu0 %v16440_v57 }
 0x9ab   :  { %7547 = vmatpush1.bf16.msra.mxu0 %v16438_v23 }
 0x9ac   :  { %7548 = vmatprep.subr.bf16.mxu0 %v16446_v36 }
 0x9af   :  { %7549 = vmatpush1.bf16.msra.mxu0 %v16444_v55 }
 0x9b0   :  { %8302 = vmatprep.subr.bf16.mxu0 %v16452_v6  ;;  %v16447_v6 = vld [vmem:[#allocation8 + $0x10] ss:$24 sps:$4 sm:$0xff]  }
 0xa05   :  { %v6672_v24 = vpop.f32.mrb[72].mxu0  ;;  %v6713_v32 = vpop.f32.mrb[60].mxu1 }
 0xa06   :  { %v6767_v44 = vadd.f32 %v6672_v24, %v21717_v3  ;;  %v6674_v41 = vpop.f32.mrb[73].mxu0  ;;  %v6715_v14 = vpop.f32.mrb[61].mxu1  ;;  %v6795_v60 = vadd.f32 %v19249_v2, %v6713_v32  ;;  %v16450_v24 = vld [vmem:[#allocation9] ss:$24 sps:$4 sm:$0xff]  }
 0xa07   :  { %v6781_v35 = vadd.f32 %v6674_v41, %v21718_v5  ;;  %v6774_v51 = vadd.f32 %v6715_v14, %v21719_v18  ;;  %v6676_v53 = vpop.f32.mrb[74].mxu0  ;;  %v6717_v28 = vpop.f32.mrb[62].mxu1  ;;  %v21727_v41 = vld [vmem:[#allocation63_spill] sm:$0xff]  ;;  %v19483_v5 = vpack.c.bf16 %v19043_v48, %v19265_v56  ;;  %v16464_v48 = vld [vmem:[#allocation9 + $0x64] ss:$24 sps:$4 sm:$0xff]  }
 0xa08   :  { %v14635_v31 = vmul.f32 -1.442695, %v6767_v44  ;;  %v6677_v52 = vpop.f32.mrb[75].mxu0  ;;  %v6718_v11 = vpop.f32.mrb[63].mxu1  ;;  %v21726_v44 = vld [vmem:[#allocation51_spill] sm:$0xff] }
 0xa09   :  { %v14637_v62 = vmul.f32 -1.442695, %v6781_v35  ;;  %v14636_v4 = vmul.f32 -1.442695, %v6774_v51  ;;  %v19467_v14 = vpack.c.bf16 %v21727_v41, %v21726_v44  ;;  %v16453_v51 = vld [vmem:[#allocation8 + $0x40] ss:$24 sps:$4 sm:$0xff]  }
 0xa0a   :  { %17274 = vpow2.f32 %v14635_v31  ;;  %v16456_v53 = vld [vmem:[#allocation9 + $0x30] ss:$24 sps:$4 sm:$0xff]   ;;  %v16461_v56 = vld [vmem:[#allocation8 + $0x74] ss:$24 sps:$4 sm:$0xff]   ;;  %v16462_v31 = vld [vmem:[#allocation9 + $0x60] ss:$24 sps:$4 sm:$0xff]  }
 0xa0b   :  { %17276 = vpow2.f32 %v14637_v62  ;;  %v16459_v28 = vld [vmem:[#allocation8 + $0x70] ss:$24 sps:$4 sm:$0xff]   ;;  %v16501_v44 = vld [vmem:[#allocation8 + $0x1c0] ss:$24 sps:$4 sm:$0xff]  }
 0xa0c   :  { %v21731_v52 = vld [vmem:[#allocation19_spill] sm:$0xff]  ;;  %v21732_v11 = vld [vmem:[#allocation68_spill] sm:$0xff]  ;;  %v19866_v35 = vld [vmem:[#allocation9 + $0x120] ss:$24 sps:$4 sm:$0xff]  }
 0xa0d   :  { %v19501_v62 = vpack.c.bf16 %v21732_v11, %v21731_v52  ;;  %v16504_v41 = vld [vmem:[#allocation9 + $0x1b0] ss:$24 sps:$4 sm:$0xff]   ;;  %v16524_v52 = vld [vmem:[#allocation9 + $0x244] ss:$24 sps:$4 sm:$0xff]  }
 0xa0e   :  { %v16519_v11 = vld [vmem:[#allocation8 + $0x250] ss:$24 sps:$4 sm:$0xff]  }
 0xa0f   :  { %v19591_v3 = vld [vmem:[#allocation9 + $0x68] ss:$24 sps:$4 sm:$0xff]  }
 0xa10   :  { %v19609_v18 = vld [vmem:[#allocation9 + $0xc8] ss:$24 sps:$4 sm:$0xff]  }
 0xa14   :  { %v17275_v19 = vpop.eup %17274 }
 0xa15   :  { %v6771_v1 = vadd.f32 1.0, %v17275_v19  ;;  %v17277_v54 = vpop.eup %17276  ;;  %v16467_v19 = vld [vmem:[#allocation8 + $0xa4] ss:$24 sps:$4 sm:$0xff]  }
 0xa16   :  { %v6785_v46 = vadd.f32 1.0, %v17277_v54  ;;  %v21733_v54 = vld [vmem:[#allocation69_spill] sm:$0xff] }
 0xa17   :  { %17278 = vrcp.f32 %v6771_v1  ;;  %v16470_v1 = vld [vmem:[#allocation9 + $0x94] ss:$24 sps:$4 sm:$0xff]  }
 0xa21   :  { %v17279_v7 = vpop.eup %17278 }
 0xa22   :  { %v6796_v0 = vmul.f32 %v17279_v7, %v6795_v60  ;;  %v21734_v60 = vld [vmem:[#allocation49_spill] sm:$0xff] }
 0xa23   :  { %v19511_v7 = vpack.c.bf16 %v21734_v60, %v21733_v54  ;;  %v16530_v54 = vld [vmem:[#allocation9 + $0x274] ss:$24 sps:$4 sm:$0xff]   ;;  %v16525_v60 = vld [vmem:[#allocation8 + $0x280] ss:$24 sps:$4 sm:$0xff]  }
 0xa24   :  { %v6797_v47 = vadd.f32 %v6796_v0, %v21720_v59  ;;  %v19634_v59 = vld [vmem:[#allocation9 + $0x128] ss:$24 sps:$4 sm:$0xff]  }
 0xa26   :  { %17280 = vtanh.f32 %v6797_v47  ;;  %v16465_v47 = vld [vmem:[#allocation8 + $0xa0] ss:$24 sps:$4 sm:$0xff]  }
 0xa27   :  { %17282 = vrcp.f32 %v6785_v46  ;;  %v16468_v46 = vld [vmem:[#allocation9 + $0x90] ss:$24 sps:$4 sm:$0xff]  }
 0xa28   :  { %17284 = vpow2.f32 %v14636_v4  ;;  %v16473_v4 = vld [vmem:[#allocation8 + $0xd4] ss:$24 sps:$4 sm:$0xff]  }
 0xa30   :  { %v17281_v30 = vpop.eup %17280 }
 0xa31   :  { %v6803_v15 = vsub.f32 %v19408_v63, %v17281_v30  ;;  %v17283_v29 = vpop.eup %17282  ;;  %v21722_v63 = vld [vmem:[#allocation40_spill] sm:$0xff] }
 0xa32   :  { %v17285_v45 = vpop.eup %17284 }
 0xa33   :  { %v6804_v17 = vmul.f32 %v17283_v29, %v6803_v15  ;;  %v6778_v25 = vadd.f32 1.0, %v17285_v45  ;;  %v16471_v15 = vld [vmem:[#allocation8 + $0xd0] ss:$24 sps:$4 sm:$0xff]   ;;  %v16474_v29 = vld [vmem:[#allocation9 + $0xc0] ss:$24 sps:$4 sm:$0xff]  }
 0xa35   :  { %v19448_v37 = vadd.f32 %v17281_v30, %v6804_v17  ;;  %17286 = vrcp.f32 %v6778_v25  ;;  %v16476_v30 = vld [vmem:[#allocation9 + $0xc4] ss:$24 sps:$4 sm:$0xff]  }
 0xa36   :  { %v21738_v17 = vld [vmem:[#allocation25_spill] sm:$0xff] }
 0xa37   :  { %v19529_v45 = vpack.c.bf16 %v19254_v39, %v21738_v17  ;;  %v16479_v25 = vld [vmem:[#allocation8 + $0x104] ss:$24 sps:$4 sm:$0xff]   ;;  %v16542_v17 = vld [vmem:[#allocation9 + $0x2d4] ss:$24 sps:$4 sm:$0xff]  }
 0xa3f   :  { %v17287_v42 = vpop.eup %17286 }
 0xa45   :  { %v6754_v2 = vpop.f32.mrb[76].mxu0 }
 0xa46   :  { %v6788_v26 = vadd.f32 %v6754_v2, %v21721_v13  ;;  %v6756_v50 = vpop.f32.mrb[77].mxu0  ;;  %v16482_v2 = vld [vmem:[#allocation9 + $0xf4] ss:$24 sps:$4 sm:$0xff]   ;;  %v21739_v13 = vld [vmem:[#allocation66_spill] sm:$0xff] }
 0xa47   :  { %v6799_v12 = vadd.f32 %v19260_v8, %v6756_v50  ;;  %v6758_v34 = vpop.f32.mrb[78].mxu0 }
 0xa48   :  { %v14638_v38 = vmul.f32 -1.442695, %v6788_v26  ;;  %v6759_v21 = vpop.f32.mrb[79].mxu0  ;;  %v21740_v26 = vld [vmem:[#allocation54_spill] sm:$0xff] }
 0xa49   :  { %v6800_v49 = vmul.f32 %v17287_v42, %v6799_v12  ;;  %v19539_v50 = vpack.c.bf16 %v21740_v26, %v21739_v13  ;;  %v16477_v34 = vld [vmem:[#allocation8 + $0x100] ss:$24 sps:$4 sm:$0xff]   ;;  %v16480_v42 = vld [vmem:[#allocation9 + $0xf0] ss:$24 sps:$4 sm:$0xff]   ;;  %v16488_v21 = vld [vmem:[#allocation9 + $0x124] ss:$24 sps:$4 sm:$0xff]  }
 0xa4a   :  { %17288 = vpow2.f32 %v14638_v38  ;;  %v16485_v38 = vld [vmem:[#allocation8 + $0x134] ss:$24 sps:$4 sm:$0xff]   ;;  %v19662_v12 = vld [vmem:[#allocation9 + $0x188] ss:$24 sps:$4 sm:$0xff]  }
 0xa4b   :  { %v6801_v57 = vadd.f32 %v6800_v49, %v21722_v63  ;;  %v16483_v49 = vld [vmem:[#allocation8 + $0x130] ss:$24 sps:$4 sm:$0xff]   ;;  %v16486_v63 = vld [vmem:[#allocation9 + $0x120] ss:$24 sps:$4 sm:$0xff]   ;;  %v19569_v13 = vld [vmem:[#allocation9 + $0xc] ss:$24 sps:$4 sm:$0xff]  }
 0xa4c   :  { %v16548_v26 = vld [vmem:[#allocation9 + $0x14] ss:$24 sps:$4 sm:$0xff]  }
 0xa4d   :  { %17290 = vtanh.f32 %v6801_v57  ;;  %v19557_v57 = vpack.c.bf16 %v19448_v37, %v19396_v27  ;;  %v16497_v27 = vld [vmem:[#allocation8 + $0x194] ss:$24 sps:$4 sm:$0xff]   ;;  %v16500_v37 = vld [vmem:[#allocation9 + $0x184] ss:$24 sps:$4 sm:$0xff]  }
 0xa54   :  { %v17289_v20 = vpop.eup %17288 }
 0xa55   :  { %v6792_v23 = vadd.f32 1.0, %v17289_v20  ;;  %v16491_v20 = vld [vmem:[#allocation8 + $0x164] ss:$24 sps:$4 sm:$0xff]  }
 0xa57   :  { %17292 = vrcp.f32 %v6792_v23  ;;  %v17291_v43 = vpop.eup %17290  ;;  %v16494_v23 = vld [vmem:[#allocation9 + $0x154] ss:$24 sps:$4 sm:$0xff]  }
 0xa58   :  { %v6806_v36 = vsub.f32 %v19414_v33, %v17291_v43  ;;  %v16458_v33 = vld [vmem:[#allocation9 + $0x34] ss:$24 sps:$4 sm:$0xff]  }
 0xa61   :  { %v17293_v10 = vpop.eup %17292 }
 0xa62   :  { %v6807_v55 = vmul.f32 %v17293_v10, %v6806_v36  ;;  %v16492_v36 = vld [vmem:[#allocation9 + $0x150] ss:$24 sps:$4 sm:$0xff]   ;;  %v21744_v10 = vmov 0  }
 0xa64   :  { %v6808_v40 = vadd.f32 %v17291_v43, %v6807_v55  ;;  %v16489_v43 = vld [vmem:[#allocation8 + $0x160] ss:$24 sps:$4 sm:$0xff]   ;;  %v16495_v55 = vld [vmem:[#allocation8 + $0x190] ss:$24 sps:$4 sm:$0xff]  }
 0xa66   :  { %v19455_v8 = vpack.c.bf16 %v19402_v22, %v6808_v40  ;;  %v16455_v22 = vld [vmem:[#allocation8 + $0x44] ss:$24 sps:$4 sm:$0xff]   ;;  %v16498_v40 = vld [vmem:[#allocation9 + $0x180] ss:$24 sps:$4 sm:$0xff]  }
 0xa68   :  { %15557 = vmatprep.mubr.msk.bf16.mxu1 %vm19461_vm2, %v19455_v8  ;;  %15581 = vmatprep.mubr.msk.bf16.mxu0 %vm19461_vm2, %v19455_v8 }
 0xa69   :  { %15560 = vmatmul.mubr.msk.bf16.vlgmr.msra.gmra.mrb[64].mxu1 %vm19461_vm2, %v19467_v14  ;;  %15584 = vmatmul.mubr.msk.bf16.vlgmr.msra.gmra.mrb[80].mxu0 %vm19461_vm2, %v19467_v14 }
 0xa6a   :  { %7592 = vmatpush1.bf16.msra.mxu1 %v16447_v6  ;;  %8303 = vmatpush1.bf16.msra.mxu0 %v16450_v24  ;;  %v16503_v6 = vld [vmem:[#allocation8 + $0x1c4] ss:$24 sps:$4 sm:$0xff]   ;;  %v16506_v24 = vld [vmem:[#allocation9 + $0x1b4] ss:$24 sps:$4 sm:$0xff]  }
 0xa6b   :  { %15563 = vmatprep.mubr.msk.bf16.mxu1 %vm19489_vm3, %v19483_v5  ;;  %15587 = vmatprep.mubr.msk.bf16.mxu0 %vm19489_vm3, %v19483_v5 }
 0xa6c   :  { %7593 = vmatprep.subr.bf16.mxu1 %v16455_v22  ;;  %8304 = vmatprep.subr.bf16.mxu0 %v16458_v33  ;;  %v16512_v22 = vld [vmem:[#allocation9 + $0x1e4] ss:$24 sps:$4 sm:$0xff]   ;;  %v16507_v33 = vld [vmem:[#allocation8 + $0x1f0] ss:$24 sps:$4 sm:$0xff]  }
 0xa6e   :  { %7594 = vmatpush1.bf16.msra.mxu1 %v16453_v51  ;;  %8305 = vmatpush1.bf16.msra.mxu0 %v16456_v53  ;;  %v16510_v51 = vld [vmem:[#allocation9 + $0x1e0] ss:$24 sps:$4 sm:$0xff]   ;;  %v16515_v53 = vld [vmem:[#allocation8 + $0x224] ss:$24 sps:$4 sm:$0xff]  }
 0xa6f   :  { %7595 = vmatprep.subr.bf16.mxu1 %v16461_v56  ;;  %8306 = vmatprep.subr.bf16.mxu0 %v16464_v48  ;;  %v16518_v56 = vld [vmem:[#allocation9 + $0x214] ss:$24 sps:$4 sm:$0xff]   ;;  %v16513_v48 = vld [vmem:[#allocation8 + $0x220] ss:$24 sps:$4 sm:$0xff]  }
 0xa71   :  { %15566 = vmatmul.mubr.msk.bf16.gmra.mrb[68].mxu1 %vm19489_vm3, %v19501_v62  ;;  %15590 = vmatmul.mubr.msk.bf16.gmra.mrb[84].mxu0 %vm19489_vm3, %v19501_v62 }
 0xa72   :  { %7596 = vmatpush1.bf16.msra.mxu1 %v16459_v28  ;;  %8307 = vmatpush1.bf16.msra.mxu0 %v16462_v31  ;;  %v16516_v28 = vld [vmem:[#allocation9 + $0x210] ss:$24 sps:$4 sm:$0xff]   ;;  %v16521_v31 = vld [vmem:[#allocation8 + $0x254] ss:$24 sps:$4 sm:$0xff]  }
 0xa73   :  { %15569 = vmatprep.mubr.msk.bf16.mxu1 %vm19517_vm4, %v19511_v7  ;;  %15593 = vmatprep.mubr.msk.bf16.mxu0 %vm19517_vm4, %v19511_v7 }
 0xa74   :  { %7597 = vmatprep.subr.bf16.mxu1 %v16467_v19  ;;  %8308 = vmatprep.subr.bf16.mxu0 %v16470_v1  ;;  %v16522_v19 = vld [vmem:[#allocation9 + $0x240] ss:$24 sps:$4 sm:$0xff]   ;;  %v16527_v1 = vld [vmem:[#allocation8 + $0x284] ss:$24 sps:$4 sm:$0xff]  }
 0xa76   :  { %7598 = vmatpush1.bf16.msra.mxu1 %v16465_v47  ;;  %8309 = vmatpush1.bf16.msra.mxu0 %v16468_v46  ;;  %v16528_v47 = vld [vmem:[#allocation9 + $0x270] ss:$24 sps:$4 sm:$0xff]   ;;  %v16533_v46 = vld [vmem:[#allocation8 + $0x2b4] ss:$24 sps:$4 sm:$0xff]  }
 0xa77   :  { %7599 = vmatprep.subr.bf16.mxu1 %v16473_v4  ;;  %8310 = vmatprep.subr.bf16.mxu0 %v16476_v30  ;;  %v16536_v4 = vld [vmem:[#allocation9 + $0x2a4] ss:$24 sps:$4 sm:$0xff]   ;;  %v16531_v30 = vld [vmem:[#allocation8 + $0x2b0] ss:$24 sps:$4 sm:$0xff]  }
 0xa79   :  { %15572 = vmatmul.mubr.msk.bf16.gmra.mrb[72].mxu1 %vm19517_vm4, %v19529_v45  ;;  %15596 = vmatmul.mubr.msk.bf16.gmra.mrb[88].mxu0 %vm19517_vm4, %v19529_v45 }
 0xa7a   :  { %7600 = vmatpush1.bf16.msra.mxu1 %v16471_v15  ;;  %8311 = vmatpush1.bf16.msra.mxu0 %v16474_v29  ;;  %v16534_v15 = vld [vmem:[#allocation9 + $0x2a0] ss:$24 sps:$4 sm:$0xff]   ;;  %v16539_v29 = vld [vmem:[#allocation8 + $0x2e4] ss:$24 sps:$4 sm:$0xff]  }
 0xa7b   :  { %15575 = vmatprep.mubr.msk.bf16.mxu1 %vm19545_vm5, %v19539_v50  ;;  %15599 = vmatprep.mubr.msk.bf16.mxu0 %vm19545_vm5, %v19539_v50 }
 0xa7c   :  { %7601 = vmatprep.subr.bf16.mxu1 %v16479_v25  ;;  %8312 = vmatprep.subr.bf16.mxu0 %v16482_v2  ;;  %v16537_v25 = vld [vmem:[#allocation8 + $0x2e0] ss:$24 sps:$4 sm:$0xff]   ;;  %v16540_v2 = vld [vmem:[#allocation9 + $0x2d0] ss:$24 sps:$4 sm:$0xff]  }
 0xa7e   :  { %7602 = vmatpush1.bf16.msra.mxu1 %v16477_v34  ;;  %8313 = vmatpush1.bf16.msra.mxu0 %v16480_v42  ;;  %v19571_v34 = vld [vmem:[#allocation9 + $0x8] ss:$24 sps:$4 sm:$0xff]  }
 0xa7f   :  { %7603 = vmatprep.subr.bf16.mxu1 %v16485_v38  ;;  %8314 = vmatprep.subr.bf16.mxu0 %v16488_v21  ;;  %v16546_v42 = vld [vmem:[#allocation9 + $0x10] ss:$24 sps:$4 sm:$0xff]   ;;  %v19574_v38 = vld [vmem:[#allocation9 + $0x3c] ss:$24 sps:$4 sm:$0xff]  }
 0xa80   :  { %v16554_v21 = vld [vmem:[#allocation9 + $0x44] ss:$24 sps:$4 sm:$0xff]  }
 0xa81   :  { %15578 = vmatmul.mubr.msk.bf16.gmra.mrb[76].mxu1 %vm19545_vm5, %v19557_v57  ;;  %15602 = vmatmul.mubr.msk.bf16.gmra.mrb[92].mxu0 %vm19545_vm5, %v19557_v57 }
 0xa82   :  { %7604 = vmatpush1.bf16.msra.mxu1 %v16483_v49  ;;  %8315 = vmatpush1.bf16.msra.mxu0 %v16486_v63  ;;  %v19584_v49 = vld [vmem:[#allocation9 + $0x38] ss:$24 sps:$4 sm:$0xff]  }
 0xa83   :  { %15605 = vmatprep.mubr.msk.bf16.mxu1 %vm19461_vm2, %v19455_v8  ;;  %7605 = vmatprep.subr.bf16.mxu1 %v16491_v20  ;;  %v16509_v8 = vld [vmem:[#allocation8 + $0x1f4] ss:$24 sps:$4 sm:$0xff]   ;;  %v16552_v63 = vld [vmem:[#allocation9 + $0x40] ss:$24 sps:$4 sm:$0xff]  }
 0xa84   :  { %8316 = vmatprep.subr.bf16.mxu0 %v16494_v23  ;;  %8334 = vmatprep.mubr.bf16.mxu0 %v21744_v10  ;;  %v19587_v20 = vld [vmem:[#allocation9 + $0x6c] ss:$24 sps:$4 sm:$0xff]  }
 0xa85   :  { %v16560_v23 = vld [vmem:[#allocation9 + $0x74] ss:$24 sps:$4 sm:$0xff]  }
 0xa86   :  { %7606 = vmatpush1.bf16.msra.mxu1 %v16489_v43  ;;  %8317 = vmatpush1.bf16.msra.mxu0 %v16492_v36  ;;  %v16566_v43 = vld [vmem:[#allocation9 + $0xa4] ss:$24 sps:$4 sm:$0xff]   ;;  %v19603_v36 = vld [vmem:[#allocation9 + $0x98] ss:$24 sps:$4 sm:$0xff]  }
 0xa87   :  { %7607 = vmatprep.subr.bf16.mxu1 %v16497_v27  ;;  %8318 = vmatprep.subr.bf16.mxu0 %v16500_v37  ;;  %v16564_v27 = vld [vmem:[#allocation9 + $0xa0] ss:$24 sps:$4 sm:$0xff]   ;;  %v19606_v37 = vld [vmem:[#allocation9 + $0xcc] ss:$24 sps:$4 sm:$0xff]  }
 0xa8a   :  { %7608 = vmatpush1.bf16.msra.mxu1 %v16495_v55  ;;  %8319 = vmatpush1.bf16.msra.mxu0 %v16498_v40  ;;  %v16572_v55 = vld [vmem:[#allocation9 + $0xd4] ss:$24 sps:$4 sm:$0xff]   ;;  %v19614_v40 = vld [vmem:[#allocation9 + $0x104] ss:$24 sps:$4 sm:$0xff]  }
 0xa8b   :  { %7609 = vmatprep.subr.bf16.mxu1 %v16503_v6  ;;  %8320 = vmatprep.subr.bf16.mxu0 %v16506_v24  ;;  %v19623_v6 = vld [vmem:[#allocation9 + $0xf8] ss:$24 sps:$4 sm:$0xff]  }
 0xa8c   :  { %v19626_v24 = vld [vmem:[#allocation9 + $0x100] ss:$24 sps:$4 sm:$0xff]  }
 0xa8e   :  { %7610 = vmatpush1.bf16.msra.mxu1 %v16501_v44  ;;  %8321 = vmatpush1.bf16.msra.mxu0 %v16504_v41  ;;  %v19628_v44 = vld [vmem:[#allocation9 + $0x12c] ss:$24 sps:$4 sm:$0xff]  }
 0xa8f   :  { %7611 = vmatprep.subr.bf16.mxu1 %v16509_v8  ;;  %8322 = vmatprep.subr.bf16.mxu0 %v16512_v22  ;;  %v19631_v41 = vld [vmem:[#allocation9 + $0x134] ss:$24 sps:$4 sm:$0xff]   ;;  %v19643_v8 = vld [vmem:[#allocation9 + $0x164] ss:$24 sps:$4 sm:$0xff]   ;;  %v19649_v22 = vld [vmem:[#allocation9 + $0x158] ss:$24 sps:$4 sm:$0xff]  }
 0xa92   :  { %7612 = vmatpush1.bf16.msra.mxu1 %v16507_v33  ;;  %8323 = vmatpush1.bf16.msra.mxu0 %v16510_v51  ;;  %v19654_v33 = vld [vmem:[#allocation9 + $0x160] ss:$24 sps:$4 sm:$0xff]   ;;  %v19656_v51 = vld [vmem:[#allocation9 + $0x18c] ss:$24 sps:$4 sm:$0xff]  }
 0xa93   :  { %7613 = vmatprep.subr.bf16.mxu1 %v16515_v53  ;;  %8324 = vmatprep.subr.bf16.mxu0 %v16518_v56  ;;  %v19659_v53 = vld [vmem:[#allocation9 + $0x194] ss:$24 sps:$4 sm:$0xff]  }
 0xa94   :  { %v19668_v56 = vld [vmem:[#allocation9 + $0x1bc] ss:$24 sps:$4 sm:$0xff]  }
 0xa96   :  { %7614 = vmatpush1.bf16.msra.mxu1 %v16513_v48  ;;  %8325 = vmatpush1.bf16.msra.mxu0 %v16516_v28  ;;  %v19671_v48 = vld [vmem:[#allocation9 + $0x1c4] ss:$24 sps:$4 sm:$0xff]   ;;  %v19674_v28 = vld [vmem:[#allocation9 + $0x1b8] ss:$24 sps:$4 sm:$0xff]  }
 0xa97   :  { %7615 = vmatprep.subr.bf16.mxu1 %v16521_v31  ;;  %8326 = vmatprep.subr.bf16.mxu0 %v16524_v52  ;;  %v19678_v31 = vld [vmem:[#allocation9 + $0x1c0] ss:$24 sps:$4 sm:$0xff]   ;;  %v19680_v52 = vld [vmem:[#allocation9 + $0x1ec] ss:$24 sps:$4 sm:$0xff]  }
 0xa9a   :  { %7616 = vmatpush1.bf16.msra.mxu1 %v16519_v11  ;;  %8327 = vmatpush1.bf16.msra.mxu0 %v16522_v19  ;;  %v19683_v11 = vld [vmem:[#allocation9 + $0x1f4] ss:$24 sps:$4 sm:$0xff]   ;;  %v19686_v19 = vld [vmem:[#allocation9 + $0x1e8] ss:$24 sps:$4 sm:$0xff]  }
 0xa9b   :  { %7617 = vmatprep.subr.bf16.mxu1 %v16527_v1  ;;  %8328 = vmatprep.subr.bf16.mxu0 %v16530_v54  ;;  %v19690_v1 = vld [vmem:[#allocation9 + $0x1f0] ss:$24 sps:$4 sm:$0xff]   ;;  %v19692_v54 = vld [vmem:[#allocation9 + $0x21c] ss:$24 sps:$4 sm:$0xff]  }
 0xa9e   :  { %7618 = vmatpush1.bf16.msra.mxu1 %v16525_v60  ;;  %8329 = vmatpush1.bf16.msra.mxu0 %v16528_v47  ;;  %v19695_v60 = vld [vmem:[#allocation9 + $0x224] ss:$24 sps:$4 sm:$0xff]   ;;  %v19698_v47 = vld [vmem:[#allocation9 + $0x218] ss:$24 sps:$4 sm:$0xff]  }
 0xa9f   :  { %7619 = vmatprep.subr.bf16.mxu1 %v16533_v46  ;;  %8330 = vmatprep.subr.bf16.mxu0 %v16536_v4  ;;  %v19702_v46 = vld [vmem:[#allocation9 + $0x220] ss:$24 sps:$4 sm:$0xff]   ;;  %v16617_v4 = vld [vmem:[#allocation9 + $0x24c] ss:$24 sps:$4 sm:$0xff]  }
 0xaa2   :  { %7620 = vmatpush1.bf16.msra.mxu1 %v16531_v30  ;;  %8331 = vmatpush1.bf16.msra.mxu0 %v16534_v15  ;;  %v19705_v30 = vld [vmem:[#allocation9 + $0x254] ss:$24 sps:$4 sm:$0xff]   ;;  %v19708_v15 = vld [vmem:[#allocation9 + $0x248] ss:$24 sps:$4 sm:$0xff]  }
 0xaa3   :  { %7621 = vmatprep.subr.bf16.mxu1 %v16539_v29  ;;  %8332 = vmatprep.subr.bf16.mxu0 %v16542_v17  ;;  %21745 = vst [vmem:[#allocation27_spill] sm:$0xff] %v19705_v30  ;;  %v19711_v29 = vld [vmem:[#allocation9 + $0x250] ss:$24 sps:$4 sm:$0xff]   ;;  %v16623_v17 = vld [vmem:[#allocation9 + $0x27c] ss:$24 sps:$4 sm:$0xff]  }
 0xaa4   :  { %21746 = vst [vmem:[#allocation24_spill] sm:$0xff] %v19711_v29 }
 0xaa6   :  { %7622 = vmatpush1.bf16.msra.mxu1 %v16537_v25  ;;  %8333 = vmatpush1.bf16.msra.mxu0 %v16540_v2  ;;  %v19714_v25 = vld [vmem:[#allocation9 + $0x284] ss:$24 sps:$4 sm:$0xff]   ;;  %v16621_v2 = vld [vmem:[#allocation9 + $0x278] ss:$24 sps:$4 sm:$0xff]  }
 0xaa7   :  { %8343 = vmatprep.subr.bf16.mxu1 %v19569_v13  ;;  %8384 = vmatprep.subr.bf16.mxu0 %v16548_v26  ;;  %21747 = vst [vmem:[#allocation26_spill] sm:$0xff] %v19714_v25  ;;  %v19718_v26 = vld [vmem:[#allocation9 + $0x280] ss:$24 sps:$4 sm:$0xff]  }
 0xaa8   :  { %21748 = vst [vmem:[#allocation45_spill] sm:$0xff] %v19718_v26 }
 0xaa9   :  { %15608 = vmatmul.mubr.msk.bf16.vlgmr.msra.gmra.mrb[80].mxu1 %vm19461_vm2, %v19467_v14  ;;  %8335 = vmatmul.mubr.bf16.vlgmr.msra.gmra.mrb[96].mxu0 %v21744_v10  ;;  %v16558_v14 = vld [vmem:[#allocation9 + $0x70] ss:$24 sps:$4 sm:$0xff]  }
 0xaaa   :  { %15611 = vmatprep.mubr.msk.bf16.mxu1 %vm19489_vm3, %v19483_v5  ;;  %8344 = vmatpush1.bf16.msra.mxu1 %v19571_v34  ;;  %v19594_v5 = vld [vmem:[#allocation9 + $0x9c] ss:$24 sps:$4 sm:$0xff]  }
 0xaab   :  { %8385 = vmatpush1.bf16.msra.mxu0 %v16546_v42  ;;  %8345 = vmatprep.subr.bf16.mxu1 %v19574_v38  ;;  %v16629_v42 = vld [vmem:[#allocation9 + $0x2ac] ss:$24 sps:$4 sm:$0xff]  }
 0xaac   :  { %8386 = vmatprep.subr.bf16.mxu0 %v16554_v21  ;;  %8416 = vmatprep.mubr.bf16.mxu0 %v21744_v10  ;;  %v19721_v21 = vld [vmem:[#allocation9 + $0x2b4] ss:$24 sps:$4 sm:$0xff]  }
 0xaad   :  { %21749 = vst [vmem:[#allocation46_spill] sm:$0xff] %v19721_v21 }
 0xaae   :  { %8346 = vmatpush1.bf16.msra.mxu1 %v19584_v49 }
 0xaaf   :  { %8387 = vmatpush1.bf16.msra.mxu0 %v16552_v63  ;;  %8347 = vmatprep.subr.bf16.mxu1 %v19587_v20  ;;  %v16627_v63 = vld [vmem:[#allocation9 + $0x2a8] ss:$24 sps:$4 sm:$0xff]  }
 0xab0   :  { %8388 = vmatprep.subr.bf16.mxu0 %v16560_v23  ;;  %v19724_v23 = vld [vmem:[#allocation9 + $0x2b0] ss:$24 sps:$4 sm:$0xff]  }
 0xab1   :  { %15614 = vmatmul.mubr.msk.bf16.gmra.mrb[84].mxu1 %vm19489_vm3, %v19501_v62  ;;  %v16570_v62 = vld [vmem:[#allocation9 + $0xd0] ss:$24 sps:$4 sm:$0xff]   ;;  %21750 = vst [vmem:[#allocation23_spill] sm:$0xff] %v19724_v23 }
 0xab2   :  { %15617 = vmatprep.mubr.msk.bf16.mxu1 %vm19517_vm4, %v19511_v7  ;;  %8348 = vmatpush1.bf16.msra.mxu1 %v19591_v3  ;;  %v19612_v7 = vld [vmem:[#allocation9 + $0xfc] ss:$24 sps:$4 sm:$0xff]  }
 0xab3   :  { %8389 = vmatpush1.bf16.msra.mxu0 %v16558_v14  ;;  %8349 = vmatprep.subr.bf16.mxu1 %v19594_v5  ;;  %v16635_v14 = vld [vmem:[#allocation9 + $0x2dc] ss:$24 sps:$4 sm:$0xff]  }
 0xab4   :  { %8390 = vmatprep.subr.bf16.mxu0 %v16566_v43  ;;  %v19727_v43 = vld [vmem:[#allocation9 + $0x2e4] ss:$24 sps:$4 sm:$0xff]  }
 0xab5   :  { %21751 = vst [vmem:[#allocation17_spill] sm:$0xff] %v19727_v43 }
 0xab6   :  { %8350 = vmatpush1.bf16.msra.mxu1 %v19603_v36 }
 0xab7   :  { %8391 = vmatpush1.bf16.msra.mxu0 %v16564_v27  ;;  %8351 = vmatprep.subr.bf16.mxu1 %v19606_v37  ;;  %v16633_v27 = vld [vmem:[#allocation9 + $0x2d8] ss:$24 sps:$4 sm:$0xff]  }
 0xab8   :  { %8392 = vmatprep.subr.bf16.mxu0 %v16572_v55  ;;  %v19730_v55 = vld [vmem:[#allocation9 + $0x2e0] ss:$24 sps:$4 sm:$0xff]  }
 0xab9   :  { %15620 = vmatmul.mubr.msk.bf16.gmra.mrb[88].mxu1 %vm19517_vm4, %v19529_v45  ;;  %v19638_v45 = vld [vmem:[#allocation9 + $0x130] ss:$24 sps:$4 sm:$0xff]   ;;  %21752 = vst [vmem:[#allocation70_spill] sm:$0xff] %v19730_v55 }
 0xaba   :  { %15623 = vmatprep.mubr.msk.bf16.mxu1 %vm19545_vm5, %v19539_v50  ;;  %8352 = vmatpush1.bf16.msra.mxu1 %v19609_v18  ;;  %v19640_v50 = vld [vmem:[#allocation9 + $0x15c] ss:$24 sps:$4 sm:$0xff]  }
 0xabb   :  { %8393 = vmatpush1.bf16.msra.mxu0 %v16570_v62  ;;  %8353 = vmatprep.subr.bf16.mxu1 %v19612_v7 }
 0xabc   :  { %8394 = vmatprep.subr.bf16.mxu0 %v19614_v40 }
 0xabe   :  { %8354 = vmatpush1.bf16.msra.mxu1 %v19623_v6 }
 0xabf   :  { %8395 = vmatpush1.bf16.msra.mxu0 %v19626_v24  ;;  %8355 = vmatprep.subr.bf16.mxu1 %v19628_v44 }
 0xac0   :  { %8396 = vmatprep.subr.bf16.mxu0 %v19631_v41 }
 0xac1   :  { %15626 = vmatmul.mubr.msk.bf16.gmra.mrb[92].mxu1 %vm19545_vm5, %v19557_v57  ;;  %v19666_v57 = vld [vmem:[#allocation9 + $0x190] ss:$24 sps:$4 sm:$0xff]  }
 0xac2   :  { %8356 = vmatpush1.bf16.msra.mxu1 %v19634_v59  ;;  %8375 = vmatprep.mubr.bf16.mxu1 %v21744_v10 }
 0xac3   :  { %8397 = vmatpush1.bf16.msra.mxu0 %v19638_v45  ;;  %8357 = vmatprep.subr.bf16.mxu1 %v19640_v50 }
 0xac4   :  { %8398 = vmatprep.subr.bf16.mxu0 %v19643_v8 }
 0xac6   :  { %8358 = vmatpush1.bf16.msra.mxu1 %v19649_v22 }
 0xac7   :  { %8399 = vmatpush1.bf16.msra.mxu0 %v19654_v33  ;;  %8359 = vmatprep.subr.bf16.mxu1 %v19656_v51 }
 0xac8   :  { %8400 = vmatprep.subr.bf16.mxu0 %v19659_v53 }
 0xaca   :  { %8360 = vmatpush1.bf16.msra.mxu1 %v19662_v12 }
 0xacb   :  { %8401 = vmatpush1.bf16.msra.mxu0 %v19666_v57  ;;  %8361 = vmatprep.subr.bf16.mxu1 %v19668_v56 }
 0xacc   :  { %8402 = vmatprep.subr.bf16.mxu0 %v19671_v48 }
 0xace   :  { %8362 = vmatpush1.bf16.msra.mxu1 %v19674_v28 }
 0xacf   :  { %8403 = vmatpush1.bf16.msra.mxu0 %v19678_v31  ;;  %8363 = vmatprep.subr.bf16.mxu1 %v19680_v52 }
 0xad0   :  { %8404 = vmatprep.subr.bf16.mxu0 %v19683_v11 }
 0xad2   :  { %8364 = vmatpush1.bf16.msra.mxu1 %v19686_v19 }
 0xad3   :  { %8405 = vmatpush1.bf16.msra.mxu0 %v19690_v1  ;;  %8365 = vmatprep.subr.bf16.mxu1 %v19692_v54 }
 0xad4   :  { %8406 = vmatprep.subr.bf16.mxu0 %v19695_v60 }
 0xad6   :  { %8366 = vmatpush1.bf16.msra.mxu1 %v19698_v47 }
 0xad7   :  { %8407 = vmatpush1.bf16.msra.mxu0 %v19702_v46  ;;  %8367 = vmatprep.subr.bf16.mxu1 %v16617_v4 }
 0xad8   :  { %8408 = vmatprep.subr.bf16.mxu0 %v19705_v30 }
 0xada   :  { %8368 = vmatpush1.bf16.msra.mxu1 %v19708_v15 }
 0xadb   :  { %8409 = vmatpush1.bf16.msra.mxu0 %v19711_v29  ;;  %8369 = vmatprep.subr.bf16.mxu1 %v16623_v17 }
 0xadc   :  { %8410 = vmatprep.subr.bf16.mxu0 %v19714_v25 }
 0xade   :  { %8370 = vmatpush1.bf16.msra.mxu1 %v16621_v2 }
 0xadf   :  { %8411 = vmatpush1.bf16.msra.mxu0 %v19718_v26  ;;  %8371 = vmatprep.subr.bf16.mxu1 %v16629_v42 }
 0xae0   :  { %8412 = vmatprep.subr.bf16.mxu0 %v19721_v21 }
 0xae2   :  { %8372 = vmatpush1.bf16.msra.mxu1 %v16627_v63 }
 0xae3   :  { %8413 = vmatpush1.bf16.msra.mxu0 %v19724_v23  ;;  %8373 = vmatprep.subr.bf16.mxu1 %v16635_v14 }
 0xae4   :  { %8414 = vmatprep.subr.bf16.mxu0 %v19727_v43  ;;  %v19971_v43 = vld [vmem:[#allocation9 + $0x14] ss:$24 sps:$4 sm:$0xff]  }
 0xae5   :  { %21795 = vst [vmem:[#allocation49_spill] sm:$0xff] %v19971_v43 }
 0xae6   :  { %8374 = vmatpush1.bf16.msra.mxu1 %v16633_v27 }
 0xae7   :  { %8415 = vmatpush1.bf16.msra.mxu0 %v19730_v55  ;;  %v19967_v55 = vld [vmem:[#allocation9 + $0x2d0] ss:$24 sps:$4 sm:$0xff]  }
 0xae8   :  { %9096 = vmatprep.subr.bf16.mxu0 %v19569_v13  ;;  %v16641_v13 = vld [vmem:[#allocation9 + $0x4] ss:$24 sps:$4 sm:$0xff]   ;;  %21794 = vst [vmem:[#allocation69_spill] sm:$0xff] %v19967_v55 }
 0xae9   :  { %8376 = vmatmul.mubr.bf16.vlgmr.msra.gmra.mrb[96].mxu1 %v21744_v10  ;;  %9055 = vmatprep.subr.bf16.mxu1 %v16641_v13 }
 0xaea   :  { %8417 = vmatmul.mubr.bf16.vlgmr.msra.gmra.mrb[100].mxu0 %v21744_v10  ;;  %v19760_v10 = vld [vmem:[#allocation9] ss:$24 sps:$4 sm:$0xff]  }
 0xaeb   :  { %9097 = vmatpush1.bf16.msra.mxu0 %v19571_v34  ;;  %v19762_v34 = vld [vmem:[#allocation9 + $0x34] ss:$24 sps:$4 sm:$0xff]   ;;  %9056 = vmatpush1.bf16.msra.mxu1 %v19760_v10 }
 0xaec   :  { %9098 = vmatprep.subr.bf16.mxu0 %v19574_v38  ;;  %v19765_v38 = vld [vmem:[#allocation9 + $0x30] ss:$24 sps:$4 sm:$0xff]   ;;  %9057 = vmatprep.subr.bf16.mxu1 %v19762_v34 }
 0xaef   :  { %9099 = vmatpush1.bf16.msra.mxu0 %v19584_v49  ;;  %v19769_v49 = vld [vmem:[#allocation9 + $0x64] ss:$24 sps:$4 sm:$0xff]   ;;  %9058 = vmatpush1.bf16.msra.mxu1 %v19765_v38 }
 0xaf0   :  { %9100 = vmatprep.subr.bf16.mxu0 %v19587_v20  ;;  %v19772_v20 = vld [vmem:[#allocation9 + $0x60] ss:$24 sps:$4 sm:$0xff]   ;;  %9059 = vmatprep.subr.bf16.mxu1 %v19769_v49 }
 0xaf3   :  { %9101 = vmatpush1.bf16.msra.mxu0 %v19591_v3  ;;  %9060 = vmatpush1.bf16.msra.mxu1 %v19772_v20  ;;  %v19779_v3 = vld [vmem:[%s21399_s8] sm:$0x3f] }
 0xaf4   :  { %9102 = vmatprep.subr.bf16.mxu0 %v19594_v5  ;;  %v21753_v5 = vld [vmem:[#allocation14_spill] sm:$0xff] }
 0xaf5   :  { %v21796_v23 = vsub.s32 4, %v21753_v5 }
 0xaf7   :  { %9103 = vmatpush1.bf16.msra.mxu0 %v19603_v36  ;;  %v21754_v36 = vsub.s32 3, %v21753_v5 }
 0xaf8   :  { %9104 = vmatprep.subr.bf16.mxu0 %v19606_v37 }
 0xaf9   :  { %v19784_v37 = vrot.slane %v19779_v3, %v21754_v36 }
 0xafb   :  { %9105 = vmatpush1.bf16.msra.mxu0 %v19609_v18 }
 0xafc   :  { %9106 = vmatprep.subr.bf16.mxu0 %v19612_v7  ;;  %v21755_v7 = vsub.s32 0, %v21753_v5 }
 0xaff   :  { %9107 = vmatpush1.bf16.msra.mxu0 %v19623_v6  ;;  %v19793_v6 = vrot.slane %v19779_v3, %v21755_v7 }
 0xb00   :  { %9108 = vmatprep.subr.bf16.mxu0 %v19628_v44  ;;  %v21756_v44 = vsub.s32 2, %v21753_v5 }
 0xb03   :  { %9109 = vmatpush1.bf16.msra.mxu0 %v19634_v59  ;;  %v19798_v59 = vrot.slane %v19779_v3, %v21756_v44 }
 0xb04   :  { %9110 = vmatprep.subr.bf16.mxu0 %v19640_v50 }
 0xb07   :  { %9111 = vmatpush1.bf16.msra.mxu0 %v19649_v22 }
 0xb08   :  { %9112 = vmatprep.subr.bf16.mxu0 %v19656_v51  ;;  %v19802_v51 = vld [vmem:[#allocation9 + $0x94] ss:$24 sps:$4 sm:$0xff]  }
 0xb09   :  { %9061 = vmatprep.subr.bf16.mxu1 %v19802_v51 }
 0xb0b   :  { %9113 = vmatpush1.bf16.msra.mxu0 %v19662_v12  ;;  %v21757_v12 = vsub.s32 1, %v21753_v5 }
 0xb0c   :  { %9114 = vmatprep.subr.bf16.mxu0 %v19668_v56 }
 0xb0d   :  { %v19807_v56 = vrot.slane %v19779_v3, %v21757_v12  ;;  %v19840_v12 = vld [vmem:[#allocation9 + $0xf4] ss:$24 sps:$4 sm:$0xff]  }
 0xb0f   :  { %9115 = vmatpush1.bf16.msra.mxu0 %v19674_v28 }
 0xb10   :  { %9116 = vmatprep.subr.bf16.mxu0 %v19680_v52 }
 0xb13   :  { %9117 = vmatpush1.bf16.msra.mxu0 %v19686_v19 }
 0xb14   :  { %9118 = vmatprep.subr.bf16.mxu0 %v19692_v54  ;;  %v19812_v54 = vld [vmem:[#allocation9 + $0x90] ss:$24 sps:$4 sm:$0xff]  }
 0xb15   :  { %9062 = vmatpush1.bf16.msra.mxu1 %v19812_v54 }
 0xb17   :  { %9119 = vmatpush1.bf16.msra.mxu0 %v19698_v47 }
 0xb18   :  { %9120 = vmatprep.subr.bf16.mxu0 %v16617_v4 }
 0xb1b   :  { %9121 = vmatpush1.bf16.msra.mxu0 %v19708_v15 }
 0xb1c   :  { %9122 = vmatprep.subr.bf16.mxu0 %v16623_v17 }
 0xb1f   :  { %9123 = vmatpush1.bf16.msra.mxu0 %v16621_v2 }
 0xb20   :  { %9124 = vmatprep.subr.bf16.mxu0 %v16629_v42 }
 0xb23   :  { %9125 = vmatpush1.bf16.msra.mxu0 %v16627_v63  ;;  %v19828_v63 = vld [vmem:[#allocation9 + $0xc4] ss:$24 sps:$4 sm:$0xff]  }
 0xb24   :  { %9126 = vmatprep.subr.bf16.mxu0 %v16635_v14  ;;  %v19830_v14 = vld [vmem:[#allocation9 + $0xc0] ss:$24 sps:$4 sm:$0xff]   ;;  %9063 = vmatprep.subr.bf16.mxu1 %v19828_v63 }
 0xb25   :  { %9064 = vmatpush1.bf16.msra.mxu1 %v19830_v14 }
 0xb26   :  { %9065 = vmatprep.subr.bf16.mxu1 %v19840_v12 }
 0xb27   :  { %9127 = vmatpush1.bf16.msra.mxu0 %v16633_v27 }
 0xb28   :  { %9810 = vmatprep.subr.bf16.mxu0 %v16641_v13 }
 0xb3c   :  { %v19786_v18 = vpop.f32.mrb[64].mxu1  ;;  %v19788_v62 = vpop.f32.mrb[80].mxu0 }
 0xb3d   :  { %v19800_v50 = vpop.f32.mrb[65].mxu1  ;;  %v7554_v22 = vpop.f32.mrb[81].mxu0 }
 0xb3e   :  { %v19810_v28 = vadd.f32 %v7554_v22, %v19784_v37  ;;  %v7483_v52 = vpop.f32.mrb[66].mxu1  ;;  %v7556_v19 = vpop.f32.mrb[82].mxu0 }
 0xb3f   :  { %v19815_v47 = vadd.f32 %v7483_v52, %v19793_v6  ;;  %v19818_v4 = vadd.f32 %v7556_v19, %v19798_v59  ;;  %v7485_v15 = vpop.f32.mrb[67].mxu1  ;;  %v7558_v17 = vpop.f32.mrb[83].mxu0 }
 0xb40   :  { %21758 = vst [vmem:[#allocation59_spill] sm:$0xff] %v19810_v28  ;;  %v19822_v2 = vadd.f32 %v7485_v15, %v19807_v56  ;;  %v19825_v42 = vadd.f32 %v7558_v17, %v19784_v37  ;;  %v19848_v28 = vld [vmem:[#allocation9 + $0xf0] ss:$24 sps:$4 sm:$0xff]  }
 0xb41   :  { %21759 = vst [vmem:[#allocation28_spill] sm:$0xff] %v19815_v47  ;;  %21760 = vst [vmem:[#allocation22_spill] sm:$0xff] %v19818_v4  ;;  %9066 = vmatpush1.bf16.msra.mxu1 %v19848_v28  ;;  %v19920_v4 = vld [vmem:[#allocation9 + $0x1b0] ss:$24 sps:$4 sm:$0xff]   ;;  %v19964_v47 = vld [vmem:[#allocation9 + $0x2d4] ss:$24 sps:$4 sm:$0xff]  }
 0xb42   :  { %21761 = vst [vmem:[#allocation60_spill] sm:$0xff] %v19822_v2  ;;  %21762 = vst [vmem:[#allocation71_spill] sm:$0xff] %v19825_v42  ;;  %v19961_v2 = vld [vmem:[#allocation9 + $0x2a0] ss:$24 sps:$4 sm:$0xff]  }
 0xb43   :  { %21792 = vst [vmem:[#allocation19_spill] sm:$0xff] %v19961_v2  ;;  %21793 = vst [vmem:[#allocation68_spill] sm:$0xff] %v19964_v47 }
 0xb44   :  { %v7489_v27 = vpop.f32.mrb[68].mxu1  ;;  %v7562_v13 = vpop.f32.mrb[84].mxu0 }
 0xb45   :  { %v19835_v36 = vadd.f32 %v7489_v27, %v19793_v6  ;;  %v19838_v7 = vadd.f32 %v7562_v13, %v19798_v59  ;;  %v7491_v44 = vpop.f32.mrb[69].mxu1  ;;  %v7564_v22 = vpop.f32.mrb[85].mxu0 }
 0xb46   :  { %v19843_v52 = vadd.f32 %v7491_v44, %v19807_v56  ;;  %v19846_v19 = vadd.f32 %v7564_v22, %v19784_v37  ;;  %v7493_v15 = vpop.f32.mrb[70].mxu1  ;;  %v7566_v17 = vpop.f32.mrb[86].mxu0 }
 0xb47   :  { %21763 = vst [vmem:[#allocation47_spill] sm:$0xff] %v19835_v36  ;;  %21764 = vst [vmem:[#allocation48_spill] sm:$0xff] %v19838_v7  ;;  %v19851_v27 = vadd.f32 %v7493_v15, %v19793_v6  ;;  %v19854_v13 = vadd.f32 %v7566_v17, %v19798_v59  ;;  %v7495_v42 = vpop.f32.mrb[71].mxu1  ;;  %v7568_v0 = vpop.f32.mrb[87].mxu0 }
 0xb48   :  { %21765 = vst [vmem:[#allocation61_spill] sm:$0xff] %v19843_v52  ;;  %21766 = vst [vmem:[#allocation62_spill] sm:$0xff] %v19846_v19  ;;  %v19858_v44 = vadd.f32 %v7495_v42, %v19807_v56  ;;  %v19861_v22 = vadd.f32 %v7568_v0, %v19784_v37  ;;  %v19864_v19 = vld [vmem:[#allocation9 + $0x124] ss:$24 sps:$4 sm:$0xff]   ;;  %v19884_v52 = vld [vmem:[#allocation9 + $0x150] ss:$24 sps:$4 sm:$0xff]  }
 0xb49   :  { %21767 = vst [vmem:[#allocation50_spill] sm:$0xff] %v19851_v27  ;;  %21768 = vst [vmem:[#allocation67_spill] sm:$0xff] %v19854_v13  ;;  %9067 = vmatprep.subr.bf16.mxu1 %v19864_v19 }
 0xb4a   :  { %21769 = vst [vmem:[#allocation21_spill] sm:$0xff] %v19858_v44  ;;  %21770 = vst [vmem:[#allocation72_spill] sm:$0xff] %v19861_v22  ;;  %9068 = vmatpush1.bf16.msra.mxu1 %v19866_v35  ;;  %v19876_v44 = vld [vmem:[#allocation9 + $0x154] ss:$24 sps:$4 sm:$0xff]  }
 0xb4b   :  { %9069 = vmatprep.subr.bf16.mxu1 %v19876_v44 }
 0xb4c   :  { %v7499_v15 = vpop.f32.mrb[72].mxu1  ;;  %v7572_v17 = vpop.f32.mrb[88].mxu0 }
 0xb4d   :  { %v19871_v13 = vadd.f32 %v7499_v15, %v19793_v6  ;;  %v19874_v42 = vadd.f32 %v7572_v17, %v19798_v59  ;;  %v7501_v0 = vpop.f32.mrb[73].mxu1  ;;  %v7574_v22 = vpop.f32.mrb[89].mxu0 }
 0xb4e   :  { %v19879_v27 = vadd.f32 %v7501_v0, %v19807_v56  ;;  %v19882_v9 = vadd.f32 %v7574_v22, %v19784_v37  ;;  %v7503_v16 = vpop.f32.mrb[74].mxu1  ;;  %v7576_v7 = vpop.f32.mrb[90].mxu0  ;;  %9070 = vmatpush1.bf16.msra.mxu1 %v19884_v52 }
 0xb4f   :  { %21771 = vst [vmem:[#allocation73_spill] sm:$0xff] %v19871_v13  ;;  %21772 = vst [vmem:[#allocation29_spill] sm:$0xff] %v19874_v42  ;;  %v19887_v15 = vadd.f32 %v7503_v16, %v19793_v6  ;;  %v19890_v17 = vadd.f32 %v7576_v7, %v19798_v59  ;;  %v7505_v42 = vpop.f32.mrb[75].mxu1  ;;  %v7578_v13 = vpop.f32.mrb[91].mxu0 }
 0xb50   :  { %21773 = vst [vmem:[#allocation31_spill] sm:$0xff] %v19879_v27  ;;  %21774 = vst [vmem:[#allocation20_spill] sm:$0xff] %v19882_v9  ;;  %v19894_v0 = vadd.f32 %v7505_v42, %v19807_v56  ;;  %v19897_v22 = vadd.f32 %v7578_v13, %v19784_v37  ;;  %v19900_v27 = vld [vmem:[#allocation9 + $0x184] ss:$24 sps:$4 sm:$0xff]   ;;  %v19902_v9 = vld [vmem:[#allocation9 + $0x180] ss:$24 sps:$4 sm:$0xff]  }
 0xb51   :  { %21775 = vst [vmem:[#allocation30_spill] sm:$0xff] %v19887_v15  ;;  %21776 = vst [vmem:[#allocation43_spill] sm:$0xff] %v19890_v17  ;;  %9071 = vmatprep.subr.bf16.mxu1 %v19900_v27  ;;  %v19912_v15 = vld [vmem:[#allocation9 + $0x1b4] ss:$24 sps:$4 sm:$0xff]  }
 0xb52   :  { %21777 = vst [vmem:[#allocation44_spill] sm:$0xff] %v19894_v0  ;;  %21778 = vst [vmem:[#allocation33_spill] sm:$0xff] %v19897_v22  ;;  %9072 = vmatpush1.bf16.msra.mxu1 %v19902_v9 }
 0xb53   :  { %9073 = vmatprep.subr.bf16.mxu1 %v19912_v15 }
 0xb54   :  { %v7509_v16 = vpop.f32.mrb[76].mxu1  ;;  %v7582_v7 = vpop.f32.mrb[92].mxu0 }
 0xb55   :  { %v19907_v17 = vadd.f32 %v7509_v16, %v19793_v6  ;;  %v19910_v42 = vadd.f32 %v7582_v7, %v19798_v59  ;;  %v7511_v13 = vpop.f32.mrb[77].mxu1  ;;  %v7584_v0 = vpop.f32.mrb[93].mxu0 }
 0xb56   :  { %v19915_v22 = vadd.f32 %v7511_v13, %v19807_v56  ;;  %v19918_v36 = vadd.f32 %v7584_v0, %v19784_v37  ;;  %v7513_v58 = vpop.f32.mrb[78].mxu1  ;;  %v7586_v61 = vpop.f32.mrb[94].mxu0  ;;  %9074 = vmatpush1.bf16.msra.mxu1 %v19920_v4  ;;  %v19935_v0 = vld [vmem:[#allocation9 + $0x1e4] ss:$24 sps:$4 sm:$0xff]  }
 0xb57   :  { %21779 = vst [vmem:[#allocation35_spill] sm:$0xff] %v19907_v17  ;;  %21780 = vst [vmem:[#allocation16_spill] sm:$0xff] %v19910_v42  ;;  %v19923_v16 = vadd.f32 %v7513_v58, %v19793_v6  ;;  %v19926_v7 = vadd.f32 %v7586_v61, %v19798_v59  ;;  %v7515_v42 = vpop.f32.mrb[79].mxu1  ;;  %v19928_v17 = vpop.f32.mrb[95].mxu0  ;;  %9075 = vmatprep.subr.bf16.mxu1 %v19935_v0  ;;  %v19941_v58 = vld [vmem:[#allocation9 + $0x214] ss:$24 sps:$4 sm:$0xff]  }
 0xb58   :  { %21781 = vst [vmem:[#allocation34_spill] sm:$0xff] %v19915_v22  ;;  %21782 = vst [vmem:[#allocation41_spill] sm:$0xff] %v19918_v36  ;;  %v19932_v13 = vadd.f32 %v7515_v42, %v19807_v56  ;;  %v19937_v22 = vld [vmem:[#allocation9 + $0x1e0] ss:$24 sps:$4 sm:$0xff]   ;;  %v19943_v61 = vld [vmem:[#allocation9 + $0x210] ss:$24 sps:$4 sm:$0xff]  }
 0xb59   :  { %21783 = vst [vmem:[#allocation42_spill] sm:$0xff] %v19923_v16  ;;  %21784 = vst [vmem:[#allocation36_spill] sm:$0xff] %v19926_v7  ;;  %v19947_v42 = vld [vmem:[#allocation9 + $0x240] ss:$24 sps:$4 sm:$0xff]   ;;  %v19949_v7 = vld [vmem:[#allocation9 + $0x244] ss:$24 sps:$4 sm:$0xff]  }
 0xb5a   :  { %21785 = vst [vmem:[#allocation38_spill] sm:$0xff] %v19932_v13  ;;  %9076 = vmatpush1.bf16.msra.mxu1 %v19937_v22  ;;  %21786 = vst [vmem:[#allocation15_spill] sm:$0xff] %v19943_v61  ;;  %v19951_v13 = vld [vmem:[#allocation9 + $0x274] ss:$24 sps:$4 sm:$0xff]   ;;  %v19955_v16 = vld [vmem:[#allocation9 + $0x270] ss:$24 sps:$4 sm:$0xff]  }
 0xb5b   :  { %9077 = vmatprep.subr.bf16.mxu1 %v19941_v58  ;;  %21787 = vst [vmem:[#allocation37_spill] sm:$0xff] %v19947_v42  ;;  %21788 = vst [vmem:[#allocation39_spill] sm:$0xff] %v19949_v7  ;;  %v19958_v36 = vld [vmem:[#allocation9 + $0x2a4] ss:$24 sps:$4 sm:$0xff]  }
 0xb5c   :  { %21789 = vst [vmem:[#allocation40_spill] sm:$0xff] %v19951_v13  ;;  %21790 = vst [vmem:[#allocation51_spill] sm:$0xff] %v19955_v16 }
 0xb5d   :  { %21791 = vst [vmem:[#allocation63_spill] sm:$0xff] %v19958_v36 }
 0xb5e   :  { %9078 = vmatpush1.bf16.msra.mxu1 %v19943_v61 }
 0xb5f   :  { %9079 = vmatprep.subr.bf16.mxu1 %v19949_v7 }
 0xb62   :  { %9080 = vmatpush1.bf16.msra.mxu1 %v19947_v42 }
 0xb63   :  { %9081 = vmatprep.subr.bf16.mxu1 %v19951_v13 }
 0xb66   :  { %9082 = vmatpush1.bf16.msra.mxu1 %v19955_v16  ;;  %v6954_v16 = vrot.slane %v19779_v3, %v21796_v23 }
 0xb67   :  { %9083 = vmatprep.subr.bf16.mxu1 %v19958_v36  ;;  %v21797_v36 = vsub.s32 5, %v21753_v5 }
 0xb69   :  { %v19980_v21 = vrot.slane %v19779_v3, %v21797_v36 }
 0xb6a   :  { %9084 = vmatpush1.bf16.msra.mxu1 %v19961_v2  ;;  %v7480_v2 = vadd.f32 %v19786_v18, %v19793_v6 }
 0xb6b   :  { %9085 = vmatprep.subr.bf16.mxu1 %v19964_v47  ;;  %v7482_v47 = vadd.f32 %v19800_v50, %v19807_v56 }
 0xb6e   :  { %9086 = vmatpush1.bf16.msra.mxu1 %v19967_v55 }
 0xb6f   :  { %9137 = vmatprep.subr.bf16.mxu1 %v19971_v43 }
 0xb7c   :  { %v7625_v55 = vpop.f32.mrb[80].mxu1  ;;  %v8336_v26 = vpop.f32.mrb[96].mxu0 }
 0xb7d   :  { %v19986_v13 = vadd.f32 %v7625_v55, %v6954_v16  ;;  %v8431_v43 = vadd.f32 %v8336_v26, %v7480_v2  ;;  %v7627_v42 = vpop.f32.mrb[81].mxu1  ;;  %v8338_v25 = vpop.f32.mrb[97].mxu0 }
 0xb7e   :  { %v19989_v23 = vadd.f32 %v7627_v42, %v19980_v21  ;;  %v8445_v5 = vadd.f32 %v8338_v25, %v7482_v47  ;;  %v7629_v29 = vpop.f32.mrb[82].mxu1  ;;  %v8340_v3 = vpop.f32.mrb[98].mxu0 }
 0xb7f   :  { %21798 = vst [vmem:[#allocation25_spill] sm:$0xff] %v19986_v13  ;;  %v19991_v36 = vadd.f32 %v7629_v29, %v6954_v16  ;;  %v7631_v7 = vpop.f32.mrb[83].mxu1  ;;  %v8341_v18 = vpop.f32.mrb[99].mxu0 }
 0xb80   :  { %21799 = vst [vmem:[#allocation66_spill] sm:$0xff] %v19989_v23  ;;  %v19994_v6 = vadd.f32 %v7631_v7, %v19980_v21 }
 0xb81   :  { %21800 = vst [vmem:[#allocation54_spill] sm:$0xff] %v19991_v36 }
 0xb82   :  { %21801 = vst [vmem:[#allocation14_spill] sm:$0xff] %v19994_v6 }
 0xb84   :  { %v7635_v50 = vpop.f32.mrb[84].mxu1 }
 0xb85   :  { %v19996_v56 = vadd.f32 %v7635_v50, %v6954_v16  ;;  %v7637_v55 = vpop.f32.mrb[85].mxu1 }
 0xb86   :  { %v19999_v26 = vadd.f32 %v7637_v55, %v19980_v21  ;;  %v7639_v2 = vpop.f32.mrb[86].mxu1 }
 0xb87   :  { %21802 = vst [vmem:[#allocation74_spill] sm:$0xff] %v19996_v56  ;;  %v20001_v42 = vadd.f32 %v7639_v2, %v6954_v16  ;;  %v7641_v25 = vpop.f32.mrb[87].mxu1  ;;  %v14833_v56 = vmul.f32 -1.442695, %v8431_v43 }
 0xb88   :  { %21803 = vst [vmem:[#allocation75_spill] sm:$0xff] %v19999_v26  ;;  %v20004_v47 = vadd.f32 %v7641_v25, %v19980_v21 }
 0xb89   :  { %21804 = vst [vmem:[#allocation76_spill] sm:$0xff] %v20001_v42  ;;  %17294 = vpow2.f32 %v14833_v56 }
 0xb8a   :  { %21805 = vst [vmem:[#allocation77_spill] sm:$0xff] %v20004_v47  ;;  %v14835_v47 = vmul.f32 -1.442695, %v8445_v5 }
 0xb8c   :  { %v7645_v29 = vpop.f32.mrb[88].mxu1  ;;  %17296 = vpow2.f32 %v14835_v47 }
 0xb8d   :  { %v20006_v3 = vadd.f32 %v7645_v29, %v6954_v16  ;;  %v7647_v18 = vpop.f32.mrb[89].mxu1 }
 0xb8e   :  { %v20009_v7 = vadd.f32 %v7647_v18, %v19980_v21  ;;  %v7649_v50 = vpop.f32.mrb[90].mxu1 }
 0xb8f   :  { %21806 = vst [vmem:[#allocation78_spill] sm:$0xff] %v20006_v3  ;;  %v20011_v23 = vadd.f32 %v7649_v50, %v6954_v16  ;;  %v7651_v13 = vpop.f32.mrb[91].mxu1  ;;  %v7589_v50 = vadd.f32 %v19928_v17, %v19784_v37 }
 0xb90   :  { %21807 = vst [vmem:[#allocation79_spill] sm:$0xff] %v20009_v7  ;;  %v20014_v55 = vadd.f32 %v7651_v13, %v19980_v21  ;;  %v20024_v13 = vld [vmem:[%s21401_s10] ss:$0 sm:$0xff] }
 0xb91   :  { %21808 = vst [vmem:[#allocation80_spill] sm:$0xff] %v20011_v23  ;;  %21812 = vst [vmem:[#allocation84_spill] sm:$0xff] %v20024_v13  ;;  %v7553_v23 = vadd.f32 %v19788_v62, %v19798_v59 }
 0xb92   :  { %21809 = vst [vmem:[#allocation81_spill] sm:$0xff] %v20014_v55 }
 0xb93   :  { %v17295_v18 = vpop.eup %17294 }
 0xb94   :  { %v7655_v2 = vpop.f32.mrb[92].mxu1  ;;  %v8435_v42 = vadd.f32 1.0, %v17295_v18 }
 0xb95   :  { %v20016_v6 = vadd.f32 %v7655_v2, %v6954_v16  ;;  %v7657_v36 = vpop.f32.mrb[93].mxu1 }
 0xb96   :  { %v20019_v25 = vadd.f32 %v7657_v36, %v19980_v21  ;;  %v7659_v29 = vpop.f32.mrb[94].mxu1  ;;  %17298 = vrcp.f32 %v8435_v42  ;;  %v17297_v7 = vpop.eup %17296 }
 0xb97   :  { %21810 = vst [vmem:[#allocation82_spill] sm:$0xff] %v20016_v6  ;;  %v7661_v26 = vpop.f32.mrb[95].mxu1  ;;  %v7660_v2 = vadd.f32 %v7659_v29, %v6954_v16  ;;  %v8449_v17 = vadd.f32 1.0, %v17297_v7 }
 0xb98   :  { %21811 = vst [vmem:[#allocation83_spill] sm:$0xff] %v20019_v25  ;;  %v21838_v39 = vld [vmem:[#allocation84_spill] sm:$0xff] }
 0xba0   :  { %v17299_v55 = vpop.eup %17298 }
 0xbbc   :  { %v8377_v36 = vpop.f32.mrb[96].mxu1 }
 0xbbd   :  { %v8459_v3 = vadd.f32 %v20024_v13, %v8377_v36  ;;  %v8418_v43 = vpop.f32.mrb[100].mxu0  ;;  %v8379_v56 = vpop.f32.mrb[97].mxu1 }
 0xbbe   :  { %v8452_v5 = vadd.f32 %v8418_v43, %v7660_v2  ;;  %v8438_v18 = vadd.f32 %v8379_v56, %v7589_v50  ;;  %v8381_v47 = vpop.f32.mrb[98].mxu1  ;;  %v8420_v42 = vpop.f32.mrb[101].mxu0 }
 0xbbf   :  { %v8460_v25 = vmul.f32 %v17299_v55, %v8459_v3  ;;  %v8382_v6 = vpop.f32.mrb[99].mxu1  ;;  %v8422_v61 = vpop.f32.mrb[102].mxu0  ;;  %v7662_v3 = vadd.f32 %v7661_v26, %v19980_v21  ;;  %v20054_v21 = vld [vmem:[#allocation9 + $0x44] ss:$24 sps:$4 sm:$0xff]  }
 0xbc0   :  { %v14834_v30 = vmul.f32 -1.442695, %v8438_v18  ;;  %v8423_v37 = vpop.f32.mrb[103].mxu0  ;;  %v14836_v29 = vmul.f32 -1.442695, %v8452_v5 }
 0xbc1   :  { %v8461_v16 = vadd.f32 %v8460_v25, %v7553_v23  ;;  %v20241_v26 = vld [vmem:[#allocation9 + $0x2dc] ss:$24 sps:$4 sm:$0xff]  }
 0xbc2   :  { %21833 = vst [vmem:[#allocation55_spill] sm:$0xff] %v20241_v26 }
 0xbc3   :  { %17300 = vtanh.f32 %v8461_v16  ;;  %v20046_v16 = vld [vmem:[#allocation9 + $0x10] ss:$24 sps:$4 sm:$0xff]  }
 0xbc4   :  { %17302 = vpow2.f32 %v14834_v30  ;;  %v20042_v30 = vld [vmem:[%s21402_s11] ss:$0 sm:$0xff] }
 0xbc5   :  { %17304 = vrcp.f32 %v8449_v17  ;;  %v8463_v23 = vadd.f32 %v20042_v30, %v8420_v42 }
 0xbc6   :  { %17306 = vpow2.f32 %v14836_v29 }
 0xbcd   :  { %v17301_v36 = vpop.eup %17300 }
 0xbce   :  { %v17303_v13 = vpop.eup %17302  ;;  %v8467_v2 = vsub.f32 0.0, %v17301_v36 }
 0xbcf   :  { %v17305_v50 = vpop.eup %17304  ;;  %v8442_v43 = vadd.f32 1.0, %v17303_v13 }
 0xbd0   :  { %v8468_v56 = vmul.f32 %v17305_v50, %v8467_v2  ;;  %v17307_v61 = vpop.eup %17306  ;;  %v20073_v2 = vld [vmem:[#allocation9 + $0x40] ss:$24 sps:$4 sm:$0xff]   ;;  %v20076_v50 = vld [vmem:[#allocation9 + $0x74] ss:$24 sps:$4 sm:$0xff]  }
 0xbd1   :  { %17308 = vrcp.f32 %v8442_v43  ;;  %v8456_v55 = vadd.f32 1.0, %v17307_v61  ;;  %v20081_v43 = vld [vmem:[#allocation9 + $0x70] ss:$24 sps:$4 sm:$0xff]   ;;  %v20200_v61 = vld [vmem:[#allocation9 + $0x18c] ss:$24 sps:$4 sm:$0xff]  }
 0xbd2   :  { %v8469_v62 = vadd.f32 %v17301_v36, %v8468_v56  ;;  %v20084_v56 = vld [vmem:[#allocation9 + $0xa4] ss:$24 sps:$4 sm:$0xff]   ;;  %v20244_v36 = vld [vmem:[#allocation9 + $0x2d8] ss:$24 sps:$4 sm:$0xff]  }
 0xbd3   :  { %21834 = vst [vmem:[#allocation56_spill] sm:$0xff] %v20244_v36 }
 0xbd4   :  { %v20033_v59 = vsel %vm1484_vm10, %v8469_v62, 0.0  ;;  %v20052_v42 = vpack.c.bf16 %v8469_v62, %v8469_v62  ;;  %v20089_v62 = vld [vmem:[#allocation9 + $0xa0] ss:$24 sps:$4 sm:$0xff]  }
 0xbd5   :  { %8475 = vst [vmem:[%s21403_s12] sm:$0xff] %v20033_v59 }
 0xbdb   :  { %v17309_v6 = vpop.eup %17308 }
 0xbdc   :  { %v8464_v7 = vmul.f32 %v17309_v6, %v8463_v23  ;;  %v20202_v23 = vld [vmem:[#allocation9 + $0x188] ss:$24 sps:$4 sm:$0xff]   ;;  %v20206_v6 = vld [vmem:[#allocation9 + $0x1bc] ss:$24 sps:$4 sm:$0xff]  }
 0xbde   :  { %v8465_v25 = vadd.f32 %v8464_v7, %v7662_v3  ;;  %v20208_v3 = vld [vmem:[#allocation9 + $0x1b8] ss:$24 sps:$4 sm:$0xff]   ;;  %v20212_v7 = vld [vmem:[#allocation9 + $0x1ec] ss:$24 sps:$4 sm:$0xff]  }
 0xbe0   :  { %17310 = vtanh.f32 %v8465_v25  ;;  %v20218_v25 = vld [vmem:[#allocation9 + $0x21c] ss:$24 sps:$4 sm:$0xff]  }
 0xbe1   :  { %17312 = vrcp.f32 %v8456_v55  ;;  %v20214_v55 = vld [vmem:[#allocation9 + $0x1e8] ss:$24 sps:$4 sm:$0xff]  }
 0xbea   :  { %v17311_v13 = vpop.eup %17310 }
 0xbeb   :  { %v8470_v5 = vsub.f32 0.0, %v17311_v13  ;;  %v17313_v18 = vpop.eup %17312 }
 0xbed   :  { %v8471_v47 = vmul.f32 %v17313_v18, %v8470_v5  ;;  %v20224_v5 = vld [vmem:[#allocation9 + $0x248] ss:$24 sps:$4 sm:$0xff]   ;;  %v20226_v18 = vld [vmem:[#allocation9 + $0x24c] ss:$24 sps:$4 sm:$0xff]  }
 0xbef   :  { %v8472_v37 = vadd.f32 %v17311_v13, %v8471_v47  ;;  %v20220_v13 = vld [vmem:[#allocation9 + $0x218] ss:$24 sps:$4 sm:$0xff]   ;;  %v20228_v47 = vld [vmem:[#allocation9 + $0x27c] ss:$24 sps:$4 sm:$0xff]  }
 0xbf1   :  { %v14934_v17 = vpack.c.bf16 %v8472_v37, %v8472_v37  ;;  %v20050_v29 = vsel %vm1490_vm8, %v8472_v37, 0.0  ;;  %v20232_v37 = vld [vmem:[#allocation9 + $0x278] ss:$24 sps:$4 sm:$0xff]  }
 0xbf2   :  { %8476 = vst [vmem:[%s21403_s12 + $0x78] sm:$0xff] %v20050_v29 }
 0xbf3   :  { %14935 = vmatprep.mubr.msk.bf16.mxu1 %vm18171_vm9, %v14934_v17  ;;  %14941 = vmatprep.mubr.msk.bf16.mxu0 %vm18171_vm9, %v14934_v17 }
 0xbf4   :  { %14938 = vmatmul.mubr.msk.bf16.vlgmr.msra.gmra.mrb[100].mxu1 %vm18185_vm11, %v20052_v42  ;;  %14944 = vmatmul.mubr.msk.bf16.vlgmr.msra.gmra.mrb[104].mxu0 %vm18185_vm11, %v20052_v42 }
 0xbf5   :  { %9138 = vmatpush1.bf16.msra.mxu1 %v20046_v16  ;;  %14947 = vmatprep.mubr.msk.bf16.mxu1 %vm18171_vm9, %v14934_v17  ;;  %v20235_v17 = vld [vmem:[#allocation9 + $0x2ac] ss:$24 sps:$4 sm:$0xff]  }
 0xbf6   :  { %9139 = vmatprep.subr.bf16.mxu1 %v20054_v21  ;;  %9811 = vmatpush1.bf16.msra.mxu0 %v19760_v10  ;;  %v20092_v10 = vld [vmem:[#allocation9 + $0xd4] ss:$24 sps:$4 sm:$0xff]  }
 0xbf7   :  { %9812 = vmatprep.subr.bf16.mxu0 %v19762_v34  ;;  %v20097_v34 = vld [vmem:[#allocation9 + $0xd0] ss:$24 sps:$4 sm:$0xff]  }
 0xbf9   :  { %9140 = vmatpush1.bf16.msra.mxu1 %v20073_v2 }
 0xbfa   :  { %9141 = vmatprep.subr.bf16.mxu1 %v20076_v50  ;;  %9813 = vmatpush1.bf16.msra.mxu0 %v19765_v38  ;;  %v21831_v38 = vld [vmem:[#allocation69_spill] sm:$0xff] }
 0xbfb   :  { %9814 = vmatprep.subr.bf16.mxu0 %v19769_v49  ;;  %v21832_v49 = vld [vmem:[#allocation49_spill] sm:$0xff] }
 0xbfd   :  { %9142 = vmatpush1.bf16.msra.mxu1 %v20081_v43 }
 0xbfe   :  { %9143 = vmatprep.subr.bf16.mxu1 %v20084_v56  ;;  %9815 = vmatpush1.bf16.msra.mxu0 %v19772_v20  ;;  %v20152_v20 = vld [vmem:[#allocation9 + $0x8] ss:$24 sps:$4 sm:$0xff]  }
 0xbff   :  { %9816 = vmatprep.subr.bf16.mxu0 %v19802_v51  ;;  %v20154_v51 = vld [vmem:[#allocation9 + $0xc] ss:$24 sps:$4 sm:$0xff]  }
 0xc01   :  { %9144 = vmatpush1.bf16.msra.mxu1 %v20089_v62 }
 0xc02   :  { %9145 = vmatprep.subr.bf16.mxu1 %v20092_v10  ;;  %9817 = vmatpush1.bf16.msra.mxu0 %v19812_v54  ;;  %v20160_v54 = vld [vmem:[#allocation9 + $0x38] ss:$24 sps:$4 sm:$0xff]  }
 0xc03   :  { %9818 = vmatprep.subr.bf16.mxu0 %v19828_v63  ;;  %v20166_v63 = vld [vmem:[#allocation9 + $0x68] ss:$24 sps:$4 sm:$0xff]  }
 0xc05   :  { %9146 = vmatpush1.bf16.msra.mxu1 %v20097_v34 }
 0xc06   :  { %9147 = vmatprep.subr.bf16.mxu1 %v19614_v40  ;;  %9819 = vmatpush1.bf16.msra.mxu0 %v19830_v14  ;;  %v21817_v40 = vld [vmem:[#allocation39_spill] sm:$0xff]  ;;  %v20169_v14 = vld [vmem:[#allocation9 + $0x9c] ss:$24 sps:$4 sm:$0xff]  }
 0xc07   :  { %9820 = vmatprep.subr.bf16.mxu0 %v19840_v12  ;;  %v20172_v12 = vld [vmem:[#allocation9 + $0x98] ss:$24 sps:$4 sm:$0xff]  }
 0xc09   :  { %9148 = vmatpush1.bf16.msra.mxu1 %v19626_v24  ;;  %v21818_v24 = vld [vmem:[#allocation24_spill] sm:$0xff] }
 0xc0a   :  { %9149 = vmatprep.subr.bf16.mxu1 %v19631_v41  ;;  %9821 = vmatpush1.bf16.msra.mxu0 %v19848_v28  ;;  %v21819_v41 = vld [vmem:[#allocation26_spill] sm:$0xff]  ;;  %v20156_v28 = vld [vmem:[#allocation9 + $0x3c] ss:$24 sps:$4 sm:$0xff]  }
 0xc0b   :  { %9822 = vmatprep.subr.bf16.mxu0 %v19864_v19  ;;  %v20178_v19 = vld [vmem:[#allocation9 + $0xc8] ss:$24 sps:$4 sm:$0xff]  }
 0xc0d   :  { %9150 = vmatpush1.bf16.msra.mxu1 %v19638_v45  ;;  %v21820_v45 = vld [vmem:[#allocation37_spill] sm:$0xff] }
 0xc0e   :  { %9151 = vmatprep.subr.bf16.mxu1 %v19643_v8  ;;  %9823 = vmatpush1.bf16.msra.mxu0 %v19866_v35  ;;  %v21816_v35 = vld [vmem:[#allocation15_spill] sm:$0xff]  ;;  %v21821_v8 = vld [vmem:[#allocation40_spill] sm:$0xff] }
 0xc0f   :  { %9824 = vmatprep.subr.bf16.mxu0 %v19876_v44  ;;  %v20184_v44 = vld [vmem:[#allocation9 + $0xf8] ss:$24 sps:$4 sm:$0xff]  }
 0xc11   :  { %9152 = vmatpush1.bf16.msra.mxu1 %v19654_v33  ;;  %v21822_v33 = vld [vmem:[#allocation45_spill] sm:$0xff] }
 0xc12   :  { %9153 = vmatprep.subr.bf16.mxu1 %v19659_v53  ;;  %9825 = vmatpush1.bf16.msra.mxu0 %v19884_v52  ;;  %v21823_v53 = vld [vmem:[#allocation46_spill] sm:$0xff] }
 0xc13   :  { %9826 = vmatprep.subr.bf16.mxu0 %v19900_v27  ;;  %v20175_v52 = vld [vmem:[#allocation9 + $0xcc] ss:$24 sps:$4 sm:$0xff]   ;;  %v20181_v27 = vld [vmem:[#allocation9 + $0xfc] ss:$24 sps:$4 sm:$0xff]  }
 0xc15   :  { %9154 = vmatpush1.bf16.msra.mxu1 %v19666_v57  ;;  %v21824_v57 = vld [vmem:[#allocation51_spill] sm:$0xff] }
 0xc16   :  { %9155 = vmatprep.subr.bf16.mxu1 %v19671_v48  ;;  %9827 = vmatpush1.bf16.msra.mxu0 %v19902_v9  ;;  %v21815_v9 = vld [vmem:[#allocation27_spill] sm:$0xff] }
 0xc17   :  { %9828 = vmatprep.subr.bf16.mxu0 %v19912_v15  ;;  %v21825_v48 = vld [vmem:[#allocation63_spill] sm:$0xff] }
 0xc18   :  { %v20187_v15 = vld [vmem:[#allocation9 + $0x12c] ss:$24 sps:$4 sm:$0xff]  }
 0xc19   :  { %9156 = vmatpush1.bf16.msra.mxu1 %v19678_v31  ;;  %v21826_v31 = vld [vmem:[#allocation23_spill] sm:$0xff] }
 0xc1a   :  { %9157 = vmatprep.subr.bf16.mxu1 %v19683_v11  ;;  %9829 = vmatpush1.bf16.msra.mxu0 %v19920_v4  ;;  %v21827_v11 = vld [vmem:[#allocation17_spill] sm:$0xff]  ;;  %v20163_v4 = vld [vmem:[#allocation9 + $0x6c] ss:$24 sps:$4 sm:$0xff]  }
 0xc1b   :  { %9830 = vmatprep.subr.bf16.mxu0 %v19935_v0  ;;  %v20194_v0 = vld [vmem:[#allocation9 + $0x15c] ss:$24 sps:$4 sm:$0xff]  }
 0xc1d   :  { %9158 = vmatpush1.bf16.msra.mxu1 %v19690_v1  ;;  %v21828_v1 = vld [vmem:[#allocation19_spill] sm:$0xff] }
 0xc1e   :  { %9159 = vmatprep.subr.bf16.mxu1 %v19695_v60  ;;  %9831 = vmatpush1.bf16.msra.mxu0 %v19937_v22  ;;  %v21829_v60 = vld [vmem:[#allocation68_spill] sm:$0xff]  ;;  %v20190_v22 = vld [vmem:[#allocation9 + $0x128] ss:$24 sps:$4 sm:$0xff]  }
 0xc1f   :  { %9832 = vmatprep.subr.bf16.mxu0 %v19941_v58  ;;  %v20196_v58 = vld [vmem:[#allocation9 + $0x158] ss:$24 sps:$4 sm:$0xff]  }
 0xc21   :  { %9160 = vmatpush1.bf16.msra.mxu1 %v19702_v46  ;;  %v21830_v46 = vld [vmem:[#allocation70_spill] sm:$0xff] }
 0xc22   :  { %9161 = vmatprep.subr.bf16.mxu1 %v21815_v9  ;;  %9833 = vmatpush1.bf16.msra.mxu0 %v21816_v35 }
 0xc23   :  { %9834 = vmatprep.subr.bf16.mxu0 %v21817_v40  ;;  %v21835_v40 = vld [vmem:[#allocation28_spill] sm:$0xff] }
 0xc25   :  { %9162 = vmatpush1.bf16.msra.mxu1 %v21818_v24 }
 0xc26   :  { %9163 = vmatprep.subr.bf16.mxu1 %v21819_v41  ;;  %9835 = vmatpush1.bf16.msra.mxu0 %v21820_v45 }
 0xc27   :  { %9836 = vmatprep.subr.bf16.mxu0 %v21821_v8  ;;  %v21836_v8 = vld [vmem:[#allocation60_spill] sm:$0xff] }
 0xc29   :  { %9164 = vmatpush1.bf16.msra.mxu1 %v21822_v33 }
 0xc2a   :  { %9165 = vmatprep.subr.bf16.mxu1 %v21823_v53  ;;  %9837 = vmatpush1.bf16.msra.mxu0 %v21824_v57  ;;  %v21837_v53 = vld [vmem:[#allocation41_spill] sm:$0xff] }
 0xc2b   :  { %9838 = vmatprep.subr.bf16.mxu0 %v21825_v48 }
 0xc2d   :  { %9166 = vmatpush1.bf16.msra.mxu1 %v21826_v31 }
 0xc2e   :  { %9167 = vmatprep.subr.bf16.mxu1 %v21827_v11  ;;  %9839 = vmatpush1.bf16.msra.mxu0 %v21828_v1 }
 0xc2f   :  { %9840 = vmatprep.subr.bf16.mxu0 %v21829_v60 }
 0xc31   :  { %9168 = vmatpush1.bf16.msra.mxu1 %v21830_v46 }
 0xc32   :  { %9841 = vmatpush1.bf16.msra.mxu0 %v21831_v38  ;;  %9851 = vmatprep.subr.bf16.mxu1 %v20154_v51 }
 0xc33   :  { %9892 = vmatprep.subr.bf16.mxu0 %v21832_v49 }
 0xc34   :  { %14950 = vmatmul.mubr.msk.bf16.vlgmr.msra.gmra.mrb[104].mxu1 %vm18185_vm11, %v20052_v42  ;;  %v20238_v42 = vld [vmem:[#allocation9 + $0x2a8] ss:$24 sps:$4 sm:$0xff]  }
 0xc35   :  { %9852 = vmatpush1.bf16.msra.mxu1 %v20152_v20 }
 0xc36   :  { %9853 = vmatprep.subr.bf16.mxu1 %v20156_v28 }
 0xc39   :  { %9854 = vmatpush1.bf16.msra.mxu1 %v20160_v54 }
 0xc3a   :  { %9855 = vmatprep.subr.bf16.mxu1 %v20163_v4 }
 0xc3d   :  { %9856 = vmatpush1.bf16.msra.mxu1 %v20166_v63 }
 0xc3e   :  { %9857 = vmatprep.subr.bf16.mxu1 %v20169_v14 }
 0xc41   :  { %9858 = vmatpush1.bf16.msra.mxu1 %v20172_v12 }
 0xc42   :  { %9859 = vmatprep.subr.bf16.mxu1 %v20175_v52 }
 0xc45   :  { %9860 = vmatpush1.bf16.msra.mxu1 %v20178_v19 }
 0xc46   :  { %9861 = vmatprep.subr.bf16.mxu1 %v20181_v27 }
 0xc49   :  { %9862 = vmatpush1.bf16.msra.mxu1 %v20184_v44 }
 0xc4a   :  { %9863 = vmatprep.subr.bf16.mxu1 %v20187_v15 }
 0xc4d   :  { %9864 = vmatpush1.bf16.msra.mxu1 %v20190_v22 }
 0xc4e   :  { %9865 = vmatprep.subr.bf16.mxu1 %v20194_v0 }
 0xc51   :  { %9866 = vmatpush1.bf16.msra.mxu1 %v20196_v58 }
 0xc52   :  { %9867 = vmatprep.subr.bf16.mxu1 %v20200_v61 }
 0xc55   :  { %9868 = vmatpush1.bf16.msra.mxu1 %v20202_v23 }
 0xc56   :  { %9869 = vmatprep.subr.bf16.mxu1 %v20206_v6 }
 0xc59   :  { %9870 = vmatpush1.bf16.msra.mxu1 %v20208_v3 }
 0xc5a   :  { %9871 = vmatprep.subr.bf16.mxu1 %v20212_v7 }
 0xc5d   :  { %9872 = vmatpush1.bf16.msra.mxu1 %v20214_v55 }
 0xc5e   :  { %9873 = vmatprep.subr.bf16.mxu1 %v20218_v25 }
 0xc61   :  { %9874 = vmatpush1.bf16.msra.mxu1 %v20220_v13 }
 0xc62   :  { %9875 = vmatprep.subr.bf16.mxu1 %v20226_v18 }
 0xc65   :  { %9876 = vmatpush1.bf16.msra.mxu1 %v20224_v5 }
 0xc66   :  { %9877 = vmatprep.subr.bf16.mxu1 %v20228_v47 }
 0xc69   :  { %9878 = vmatpush1.bf16.msra.mxu1 %v20232_v37 }
 0xc6a   :  { %9879 = vmatprep.subr.bf16.mxu1 %v20235_v17 }
 0xc6d   :  { %9880 = vmatpush1.bf16.msra.mxu1 %v20238_v42 }
 0xc6e   :  { %9881 = vmatprep.subr.bf16.mxu1 %v20241_v26  ;;  %v21839_v26 = vld [vmem:[#allocation22_spill] sm:$0xff] }
 0xc71   :  { %9882 = vmatpush1.bf16.msra.mxu1 %v20244_v36 }
 0xcc7   :  { %v9089_v9 = vpop.f32.mrb[100].mxu1  ;;  %v9130_v35 = vpop.f32.mrb[104].mxu0 }
 0xcc8   :  { %v9184_v24 = vadd.f32 %v9089_v9, %v21835_v40  ;;  %v9091_v41 = vpop.f32.mrb[101].mxu1  ;;  %v9132_v45 = vpop.f32.mrb[105].mxu0  ;;  %v9212_v9 = vadd.f32 %v21838_v39, %v9130_v35 }
 0xcc9   :  { %v9198_v33 = vadd.f32 %v9091_v41, %v21836_v8  ;;  %v9191_v57 = vadd.f32 %v9132_v45, %v21837_v53  ;;  %v9093_v48 = vpop.f32.mrb[102].mxu1  ;;  %v9134_v31 = vpop.f32.mrb[106].mxu0 }
 0xcca   :  { %v14951_v11 = vmul.f32 -1.442695, %v9184_v24  ;;  %v9094_v1 = vpop.f32.mrb[103].mxu1  ;;  %v9135_v60 = vpop.f32.mrb[107].mxu0 }
 0xccb   :  { %v14953_v46 = vmul.f32 -1.442695, %v9198_v33  ;;  %v14952_v45 = vmul.f32 -1.442695, %v9191_v57 }
 0xccc   :  { %17314 = vpow2.f32 %v14951_v11 }
 0xccd   :  { %17316 = vpow2.f32 %v14953_v46 }
 0xcd6   :  { %v17315_v38 = vpop.eup %17314 }
 0xcd7   :  { %v9188_v49 = vadd.f32 1.0, %v17315_v38  ;;  %v17317_v32 = vpop.eup %17316 }
 0xcd8   :  { %v9202_v8 = vadd.f32 1.0, %v17317_v32 }
 0xcd9   :  { %17318 = vrcp.f32 %v9188_v49 }
 0xce3   :  { %v17319_v40 = vpop.eup %17318 }
 0xce4   :  { %v9213_v36 = vmul.f32 %v17319_v40, %v9212_v9 }
 0xce6   :  { %v9214_v41 = vadd.f32 %v9213_v36, %v21839_v26  ;;  %v21841_v36 = vld [vmem:[#allocation82_spill] sm:$0xff] }
 0xce8   :  { %17320 = vtanh.f32 %v9214_v41 }
 0xce9   :  { %17322 = vrcp.f32 %v9202_v8  ;;  %v21842_v8 = vld [vmem:[#allocation83_spill] sm:$0xff] }
 0xcea   :  { %17324 = vpow2.f32 %v14952_v45 }
 0xcf2   :  { %v17321_v24 = vpop.eup %17320 }
 0xcf3   :  { %v9220_v53 = vsub.f32 %v20033_v59, %v17321_v24  ;;  %v17323_v33 = vpop.eup %17322 }
 0xcf4   :  { %v17325_v11 = vpop.eup %17324 }
 0xcf5   :  { %v9221_v48 = vmul.f32 %v17323_v33, %v9220_v53  ;;  %v9195_v26 = vadd.f32 1.0, %v17325_v11 }
 0xcf7   :  { %v9222_v31 = vadd.f32 %v17321_v24, %v9221_v48  ;;  %17326 = vrcp.f32 %v9195_v26 }
 0xcf9   :  { %v9228_v60 = vsel %vm2249_vm12, %v9222_v31, 0.0 }
 0xcfa   :  { %9229 = vst [vmem:[%s21403_s12 + $0x10] sm:$0xff] %v9228_v60 }
 0xd01   :  { %v17327_v49 = vpop.eup %17326 }
 0xd07   :  { %v9171_v32 = vpop.f32.mrb[104].mxu1 }
 0xd08   :  { %v9205_v35 = vadd.f32 %v9171_v32, %v21841_v36  ;;  %v9173_v57 = vpop.f32.mrb[105].mxu1  ;;  %v20266_v32 = vsel %vm2249_vm12, %v9222_v31, %v20033_v59  ;;  %v20290_v59 = vld [vmem:[#allocation9 + $0x104] ss:$24 sps:$4 sm:$0xff]   ;;  %v20323_v31 = vld [vmem:[#allocation9 + $0x1f0] ss:$24 sps:$4 sm:$0xff]  }
 0xd09   :  { %v9216_v46 = vadd.f32 %v20042_v30, %v9173_v57  ;;  %v9175_v38 = vpop.f32.mrb[106].mxu1 }
 0xd0a   :  { %v14954_v9 = vmul.f32 -1.442695, %v9205_v35  ;;  %v9176_v40 = vpop.f32.mrb[107].mxu1  ;;  %v9232_v38 = vpack.c.bf16 %v20266_v32, %v20266_v32 }
 0xd0b   :  { %v9217_v41 = vmul.f32 %v17327_v49, %v9216_v46  ;;  %v20326_v49 = vld [vmem:[#allocation9 + $0x224] ss:$24 sps:$4 sm:$0xff]   ;;  %v20332_v40 = vld [vmem:[#allocation9 + $0x254] ss:$24 sps:$4 sm:$0xff]  }
 0xd0c   :  { %17328 = vpow2.f32 %v14954_v9  ;;  %v20329_v9 = vld [vmem:[#allocation9 + $0x220] ss:$24 sps:$4 sm:$0xff]  }
 0xd0d   :  { %v9218_v45 = vadd.f32 %v9217_v41, %v21842_v8  ;;  %v20335_v41 = vld [vmem:[#allocation9 + $0x250] ss:$24 sps:$4 sm:$0xff]   ;;  %v20338_v8 = vld [vmem:[#allocation9 + $0x284] ss:$24 sps:$4 sm:$0xff]  }
 0xd0e   :  { %21844 = vst [vmem:[#allocation27_spill] sm:$0xff] %v20335_v41  ;;  %21845 = vst [vmem:[#allocation15_spill] sm:$0xff] %v20338_v8 }
 0xd0f   :  { %17330 = vtanh.f32 %v9218_v45  ;;  %v20341_v45 = vld [vmem:[#allocation9 + $0x280] ss:$24 sps:$4 sm:$0xff]  }
 0xd10   :  { %21846 = vst [vmem:[#allocation39_spill] sm:$0xff] %v20341_v45 }
 0xd16   :  { %v17329_v24 = vpop.eup %17328 }
 0xd17   :  { %v9209_v53 = vadd.f32 1.0, %v17329_v24  ;;  %v20344_v24 = vld [vmem:[#allocation9 + $0x2b4] ss:$24 sps:$4 sm:$0xff]  }
 0xd18   :  { %21847 = vst [vmem:[#allocation24_spill] sm:$0xff] %v20344_v24 }
 0xd19   :  { %17332 = vrcp.f32 %v9209_v53  ;;  %v17331_v33 = vpop.eup %17330  ;;  %v20347_v53 = vld [vmem:[#allocation9 + $0x2b0] ss:$24 sps:$4 sm:$0xff]  }
 0xd1a   :  { %v9223_v48 = vsub.f32 %v20050_v29, %v17331_v33  ;;  %21848 = vst [vmem:[#allocation26_spill] sm:$0xff] %v20347_v53 }
 0xd23   :  { %v17333_v11 = vpop.eup %17332 }
 0xd24   :  { %v9224_v60 = vmul.f32 %v17333_v11, %v9223_v48  ;;  %v20353_v48 = vld [vmem:[#allocation9 + $0x2e0] ss:$24 sps:$4 sm:$0xff]   ;;  %v20469_v11 = vld [vmem:[#allocation9 + $0x2a4] ss:$24 sps:$4 sm:$0xff]  }
 0xd25   :  { %21850 = vst [vmem:[#allocation40_spill] sm:$0xff] %v20353_v48  ;;  %21856 = vst [vmem:[#allocation63_spill] sm:$0xff] %v20469_v11 }
 0xd26   :  { %v9225_v26 = vadd.f32 %v17331_v33, %v9224_v60  ;;  %v20350_v33 = vld [vmem:[#allocation9 + $0x2e4] ss:$24 sps:$4 sm:$0xff]   ;;  %v20472_v60 = vld [vmem:[#allocation9 + $0x2a0] ss:$24 sps:$4 sm:$0xff]  }
 0xd27   :  { %21849 = vst [vmem:[#allocation37_spill] sm:$0xff] %v20350_v33  ;;  %21857 = vst [vmem:[#allocation23_spill] sm:$0xff] %v20472_v60 }
 0xd28   :  { %v20271_v35 = vsel %vm2255_vm13, %v9225_v26, %v20050_v29  ;;  %v9230_v57 = vsel %vm2255_vm13, %v9225_v26, 0.0  ;;  %v20296_v29 = vld [vmem:[#allocation9 + $0x134] ss:$24 sps:$4 sm:$0xff]  }
 0xd29   :  { %9231 = vst [vmem:[%s21403_s12 + $0x68] sm:$0xff] %v9230_v57  ;;  %v9233_v46 = vpack.c.bf16 %v20271_v35, %v20271_v35  ;;  %v20475_v26 = vld [vmem:[#allocation9 + $0x2d4] ss:$24 sps:$4 sm:$0xff]   ;;  %v20478_v57 = vld [vmem:[#allocation9 + $0x2d0] ss:$24 sps:$4 sm:$0xff]  }
 0xd2a   :  { %21858 = vst [vmem:[#allocation17_spill] sm:$0xff] %v20475_v26  ;;  %21859 = vst [vmem:[#allocation19_spill] sm:$0xff] %v20478_v57 }
 0xd2b   :  { %9842 = vmatprep.mubr.bf16.mxu0 %v9233_v46  ;;  %9883 = vmatprep.mubr.bf16.mxu1 %v9233_v46 }
 0xd2c   :  { %9843 = vmatmul.mubr.bf16.vlgmr.msra.gmra.mrb[108].mxu0 %v9232_v38  ;;  %9884 = vmatmul.mubr.bf16.vlgmr.msra.gmra.mrb[108].mxu1 %v9232_v38 }
 0xd2d   :  { %9893 = vmatpush1.bf16.msra.mxu0 %v20046_v16  ;;  %9924 = vmatprep.mubr.bf16.mxu0 %v9233_v46  ;;  %v20293_v16 = vld [vmem:[#allocation9 + $0x100] ss:$24 sps:$4 sm:$0xff]   ;;  %v20482_v46 = vld [vmem:[#allocation9 + $0x14] ss:$24 sps:$4 sm:$0xff]  }
 0xd2e   :  { %9894 = vmatprep.subr.bf16.mxu0 %v20054_v21  ;;  %v20299_v21 = vld [vmem:[#allocation9 + $0x130] ss:$24 sps:$4 sm:$0xff]   ;;  %21860 = vst [vmem:[#allocation68_spill] sm:$0xff] %v20482_v46 }
 0xd31   :  { %9895 = vmatpush1.bf16.msra.mxu0 %v20073_v2  ;;  %v20302_v2 = vld [vmem:[#allocation9 + $0x164] ss:$24 sps:$4 sm:$0xff]  }
 0xd32   :  { %9896 = vmatprep.subr.bf16.mxu0 %v20076_v50  ;;  %v20305_v50 = vld [vmem:[#allocation9 + $0x160] ss:$24 sps:$4 sm:$0xff]  }
 0xd35   :  { %9897 = vmatpush1.bf16.msra.mxu0 %v20081_v43  ;;  %v20308_v43 = vld [vmem:[#allocation9 + $0x194] ss:$24 sps:$4 sm:$0xff]  }
 0xd36   :  { %9898 = vmatprep.subr.bf16.mxu0 %v20084_v56  ;;  %v20311_v56 = vld [vmem:[#allocation9 + $0x190] ss:$24 sps:$4 sm:$0xff]  }
 0xd39   :  { %9899 = vmatpush1.bf16.msra.mxu0 %v20089_v62  ;;  %v20314_v62 = vld [vmem:[#allocation9 + $0x1c4] ss:$24 sps:$4 sm:$0xff]  }
 0xd3a   :  { %9900 = vmatprep.subr.bf16.mxu0 %v20092_v10  ;;  %v20317_v10 = vld [vmem:[#allocation9 + $0x1c0] ss:$24 sps:$4 sm:$0xff]  }
 0xd3d   :  { %9901 = vmatpush1.bf16.msra.mxu0 %v20097_v34  ;;  %v20320_v34 = vld [vmem:[#allocation9 + $0x1f4] ss:$24 sps:$4 sm:$0xff]  }
 0xd3e   :  { %9902 = vmatprep.subr.bf16.mxu0 %v20290_v59 }
 0xd41   :  { %9903 = vmatpush1.bf16.msra.mxu0 %v20293_v16 }
 0xd42   :  { %9904 = vmatprep.subr.bf16.mxu0 %v20296_v29 }
 0xd45   :  { %9905 = vmatpush1.bf16.msra.mxu0 %v20299_v21 }
 0xd46   :  { %9906 = vmatprep.subr.bf16.mxu0 %v20302_v2 }
 0xd49   :  { %9907 = vmatpush1.bf16.msra.mxu0 %v20305_v50 }
 0xd4a   :  { %9908 = vmatprep.subr.bf16.mxu0 %v20308_v43 }
 0xd4d   :  { %9909 = vmatpush1.bf16.msra.mxu0 %v20311_v56 }
 0xd4e   :  { %9910 = vmatprep.subr.bf16.mxu0 %v20314_v62 }
 0xd51   :  { %9911 = vmatpush1.bf16.msra.mxu0 %v20317_v10 }
 0xd52   :  { %9912 = vmatprep.subr.bf16.mxu0 %v20320_v34 }
 0xd55   :  { %9913 = vmatpush1.bf16.msra.mxu0 %v20323_v31 }
 0xd56   :  { %9914 = vmatprep.subr.bf16.mxu0 %v20326_v49 }
 0xd59   :  { %9915 = vmatpush1.bf16.msra.mxu0 %v20329_v9 }
 0xd5a   :  { %9916 = vmatprep.subr.bf16.mxu0 %v20332_v40 }
 0xd5d   :  { %9917 = vmatpush1.bf16.msra.mxu0 %v20335_v41  ;;  %v21864_v41 = vld [vmem:[#allocation48_spill] sm:$0xff] }
 0xd5e   :  { %9918 = vmatprep.subr.bf16.mxu0 %v20338_v8 }
 0xd61   :  { %9919 = vmatpush1.bf16.msra.mxu0 %v20341_v45 }
 0xd62   :  { %9920 = vmatprep.subr.bf16.mxu0 %v20344_v24 }
 0xd65   :  { %9921 = vmatpush1.bf16.msra.mxu0 %v20347_v53  ;;  %v21863_v53 = vld [vmem:[#allocation33_spill] sm:$0xff] }
 0xd66   :  { %9922 = vmatprep.subr.bf16.mxu0 %v20350_v33 }
 0xd69   :  { %9923 = vmatpush1.bf16.msra.mxu0 %v20353_v48  ;;  %v21862_v48 = vld [vmem:[#allocation61_spill] sm:$0xff] }
 0xd6a   :  { %10606 = vmatprep.subr.bf16.mxu0 %v20154_v51  ;;  %v20385_v51 = vld [vmem:[#allocation9] ss:$24 sps:$4 sm:$0xff]  }
 0xd6c   :  { %9925 = vmatmul.mubr.bf16.vlgmr.msra.gmra.mrb[112].mxu0 %v9232_v38 }
 0xd6d   :  { %10607 = vmatpush1.bf16.msra.mxu0 %v20152_v20  ;;  %v16785_v20 = vld [vmem:[#allocation9 + $0x4] ss:$24 sps:$4 sm:$0xff]  }
 0xd6e   :  { %10608 = vmatprep.subr.bf16.mxu0 %v20156_v28  ;;  %10565 = vmatprep.subr.bf16.mxu1 %v16785_v20  ;;  %v20389_v28 = vld [vmem:[#allocation9 + $0x34] ss:$24 sps:$4 sm:$0xff]  }
 0xd6f   :  { %10566 = vmatpush1.bf16.msra.mxu1 %v20385_v51 }
 0xd70   :  { %10567 = vmatprep.subr.bf16.mxu1 %v20389_v28 }
 0xd71   :  { %10609 = vmatpush1.bf16.msra.mxu0 %v20160_v54  ;;  %v20392_v54 = vld [vmem:[#allocation9 + $0x30] ss:$24 sps:$4 sm:$0xff]  }
 0xd72   :  { %10610 = vmatprep.subr.bf16.mxu0 %v20163_v4  ;;  %v21851_v4 = vld [vmem:[#allocation55_spill] sm:$0xff] }
 0xd73   :  { %10568 = vmatpush1.bf16.msra.mxu1 %v20392_v54 }
 0xd75   :  { %10611 = vmatpush1.bf16.msra.mxu0 %v20166_v63  ;;  %v20397_v63 = vld [vmem:[#allocation9 + $0x64] ss:$24 sps:$4 sm:$0xff]  }
 0xd76   :  { %10612 = vmatprep.subr.bf16.mxu0 %v20169_v14  ;;  %v21852_v14 = vld [vmem:[#allocation56_spill] sm:$0xff]  ;;  %10569 = vmatprep.subr.bf16.mxu1 %v20397_v63 }
 0xd79   :  { %10613 = vmatpush1.bf16.msra.mxu0 %v20172_v12  ;;  %v20400_v12 = vld [vmem:[#allocation9 + $0x60] ss:$24 sps:$4 sm:$0xff]  }
 0xd7a   :  { %10614 = vmatprep.subr.bf16.mxu0 %v20175_v52  ;;  %10570 = vmatpush1.bf16.msra.mxu1 %v20400_v12  ;;  %v20404_v52 = vld [vmem:[#allocation9 + $0x90] ss:$24 sps:$4 sm:$0xff]  }
 0xd7d   :  { %10615 = vmatpush1.bf16.msra.mxu0 %v20178_v19  ;;  %v20406_v19 = vld [vmem:[#allocation9 + $0x94] ss:$24 sps:$4 sm:$0xff]  }
 0xd7e   :  { %10616 = vmatprep.subr.bf16.mxu0 %v20181_v27  ;;  %v20408_v27 = vld [vmem:[#allocation9 + $0xc4] ss:$24 sps:$4 sm:$0xff]   ;;  %10571 = vmatprep.subr.bf16.mxu1 %v20406_v19 }
 0xd7f   :  { %10572 = vmatpush1.bf16.msra.mxu1 %v20404_v52 }
 0xd80   :  { %10573 = vmatprep.subr.bf16.mxu1 %v20408_v27 }
 0xd81   :  { %10617 = vmatpush1.bf16.msra.mxu0 %v20184_v44  ;;  %v20412_v44 = vld [vmem:[#allocation9 + $0xc0] ss:$24 sps:$4 sm:$0xff]  }
 0xd82   :  { %10618 = vmatprep.subr.bf16.mxu0 %v20187_v15  ;;  %v20415_v15 = vld [vmem:[#allocation9 + $0xf4] ss:$24 sps:$4 sm:$0xff]  }
 0xd83   :  { %10574 = vmatpush1.bf16.msra.mxu1 %v20412_v44 }
 0xd84   :  { %10575 = vmatprep.subr.bf16.mxu1 %v20415_v15 }
 0xd85   :  { %10619 = vmatpush1.bf16.msra.mxu0 %v20190_v22  ;;  %v20418_v22 = vld [vmem:[#allocation9 + $0xf0] ss:$24 sps:$4 sm:$0xff]  }
 0xd86   :  { %10620 = vmatprep.subr.bf16.mxu0 %v20194_v0  ;;  %v20421_v0 = vld [vmem:[#allocation9 + $0x124] ss:$24 sps:$4 sm:$0xff]  }
 0xd87   :  { %10576 = vmatpush1.bf16.msra.mxu1 %v20418_v22 }
 0xd88   :  { %10577 = vmatprep.subr.bf16.mxu1 %v20421_v0 }
 0xd89   :  { %10621 = vmatpush1.bf16.msra.mxu0 %v20196_v58  ;;  %v20424_v58 = vld [vmem:[#allocation9 + $0x120] ss:$24 sps:$4 sm:$0xff]  }
 0xd8a   :  { %10622 = vmatprep.subr.bf16.mxu0 %v20200_v61  ;;  %v20428_v61 = vld [vmem:[#allocation9 + $0x154] ss:$24 sps:$4 sm:$0xff]  }
 0xd8b   :  { %10578 = vmatpush1.bf16.msra.mxu1 %v20424_v58 }
 0xd8c   :  { %10579 = vmatprep.subr.bf16.mxu1 %v20428_v61 }
 0xd8d   :  { %10623 = vmatpush1.bf16.msra.mxu0 %v20202_v23  ;;  %v20430_v23 = vld [vmem:[#allocation9 + $0x150] ss:$24 sps:$4 sm:$0xff]  }
 0xd8e   :  { %10624 = vmatprep.subr.bf16.mxu0 %v20206_v6  ;;  %v20434_v6 = vld [vmem:[#allocation9 + $0x184] ss:$24 sps:$4 sm:$0xff]  }
 0xd8f   :  { %10580 = vmatpush1.bf16.msra.mxu1 %v20430_v23 }
 0xd90   :  { %10581 = vmatprep.subr.bf16.mxu1 %v20434_v6 }
 0xd91   :  { %10625 = vmatpush1.bf16.msra.mxu0 %v20208_v3  ;;  %v20436_v3 = vld [vmem:[#allocation9 + $0x180] ss:$24 sps:$4 sm:$0xff]  }
 0xd92   :  { %10626 = vmatprep.subr.bf16.mxu0 %v20212_v7  ;;  %v20440_v7 = vld [vmem:[#allocation9 + $0x1b4] ss:$24 sps:$4 sm:$0xff]  }
 0xd93   :  { %10582 = vmatpush1.bf16.msra.mxu1 %v20436_v3 }
 0xd94   :  { %10583 = vmatprep.subr.bf16.mxu1 %v20440_v7 }
 0xd95   :  { %10627 = vmatpush1.bf16.msra.mxu0 %v20214_v55  ;;  %v20442_v55 = vld [vmem:[#allocation9 + $0x1b0] ss:$24 sps:$4 sm:$0xff]  }
 0xd96   :  { %10628 = vmatprep.subr.bf16.mxu0 %v20218_v25  ;;  %v20446_v25 = vld [vmem:[#allocation9 + $0x1e4] ss:$24 sps:$4 sm:$0xff]  }
 0xd97   :  { %10584 = vmatpush1.bf16.msra.mxu1 %v20442_v55 }
 0xd98   :  { %10585 = vmatprep.subr.bf16.mxu1 %v20446_v25 }
 0xd99   :  { %10629 = vmatpush1.bf16.msra.mxu0 %v20220_v13  ;;  %v20448_v13 = vld [vmem:[#allocation9 + $0x1e0] ss:$24 sps:$4 sm:$0xff]  }
 0xd9a   :  { %10630 = vmatprep.subr.bf16.mxu0 %v20226_v18  ;;  %v20454_v18 = vld [vmem:[#allocation9 + $0x210] ss:$24 sps:$4 sm:$0xff]  }
 0xd9b   :  { %10586 = vmatpush1.bf16.msra.mxu1 %v20448_v13 }
 0xd9d   :  { %10631 = vmatpush1.bf16.msra.mxu0 %v20224_v5  ;;  %v20452_v5 = vld [vmem:[#allocation9 + $0x214] ss:$24 sps:$4 sm:$0xff]  }
 0xd9e   :  { %10632 = vmatprep.subr.bf16.mxu0 %v20228_v47  ;;  %10587 = vmatprep.subr.bf16.mxu1 %v20452_v5  ;;  %v20458_v47 = vld [vmem:[#allocation9 + $0x240] ss:$24 sps:$4 sm:$0xff]  }
 0xd9f   :  { %10588 = vmatpush1.bf16.msra.mxu1 %v20454_v18  ;;  %21853 = vst [vmem:[#allocation45_spill] sm:$0xff] %v20458_v47 }
 0xda1   :  { %10633 = vmatpush1.bf16.msra.mxu0 %v20232_v37  ;;  %v20460_v37 = vld [vmem:[#allocation9 + $0x244] ss:$24 sps:$4 sm:$0xff]  }
 0xda2   :  { %10634 = vmatprep.subr.bf16.mxu0 %v20235_v17  ;;  %v20462_v17 = vld [vmem:[#allocation9 + $0x274] ss:$24 sps:$4 sm:$0xff]   ;;  %10589 = vmatprep.subr.bf16.mxu1 %v20460_v37 }
 0xda3   :  { %21854 = vst [vmem:[#allocation46_spill] sm:$0xff] %v20462_v17  ;;  %10590 = vmatpush1.bf16.msra.mxu1 %v20458_v47 }
 0xda4   :  { %10591 = vmatprep.subr.bf16.mxu1 %v20462_v17 }
 0xda5   :  { %10635 = vmatpush1.bf16.msra.mxu0 %v20238_v42  ;;  %v20466_v42 = vld [vmem:[#allocation9 + $0x270] ss:$24 sps:$4 sm:$0xff]  }
 0xda6   :  { %10636 = vmatprep.subr.bf16.mxu0 %v21851_v4  ;;  %21855 = vst [vmem:[#allocation51_spill] sm:$0xff] %v20466_v42  ;;  %v21861_v4 = vld [vmem:[#allocation47_spill] sm:$0xff] }
 0xda7   :  { %10592 = vmatpush1.bf16.msra.mxu1 %v20466_v42 }
 0xda8   :  { %10593 = vmatprep.subr.bf16.mxu1 %v20469_v11 }
 0xda9   :  { %10637 = vmatpush1.bf16.msra.mxu0 %v21852_v14 }
 0xdaa   :  { %11320 = vmatprep.subr.bf16.mxu0 %v16785_v20 }
 0xdab   :  { %10594 = vmatpush1.bf16.msra.mxu1 %v20472_v60 }
 0xdac   :  { %10595 = vmatprep.subr.bf16.mxu1 %v20475_v26 }
 0xdaf   :  { %10596 = vmatpush1.bf16.msra.mxu1 %v20478_v57 }
 0xdb0   :  { %10647 = vmatprep.subr.bf16.mxu1 %v20482_v46 }
 0xdff   :  { %v9844_v38 = vpop.f32.mrb[108].mxu0  ;;  %v9885_v20 = vpop.f32.mrb[108].mxu1 }
 0xe00   :  { %v9939_v14 = vadd.f32 %v9844_v38, %v21861_v4  ;;  %v9846_v1 = vpop.f32.mrb[109].mxu0  ;;  %v9887_v36 = vpop.f32.mrb[109].mxu1  ;;  %v9967_v38 = vadd.f32 %v21838_v39, %v9885_v20 }
 0xe01   :  { %v9953_v33 = vadd.f32 %v9846_v1, %v21862_v48  ;;  %v9946_v60 = vadd.f32 %v9887_v36, %v21863_v53  ;;  %v9848_v11 = vpop.f32.mrb[110].mxu0  ;;  %v9889_v42 = vpop.f32.mrb[110].mxu1 }
 0xe02   :  { %v15051_v24 = vmul.f32 -1.442695, %v9939_v14  ;;  %v9849_v26 = vpop.f32.mrb[111].mxu0  ;;  %v9890_v45 = vpop.f32.mrb[111].mxu1 }
 0xe03   :  { %v15053_v57 = vmul.f32 -1.442695, %v9953_v33  ;;  %v15052_v36 = vmul.f32 -1.442695, %v9946_v60 }
 0xe04   :  { %17334 = vpow2.f32 %v15051_v24 }
 0xe05   :  { %17336 = vpow2.f32 %v15053_v57 }
 0xe0e   :  { %v17335_v17 = vpop.eup %17334 }
 0xe0f   :  { %v9943_v47 = vadd.f32 1.0, %v17335_v17  ;;  %v17337_v46 = vpop.eup %17336 }
 0xe10   :  { %v9957_v48 = vadd.f32 1.0, %v17337_v46 }
 0xe11   :  { %17338 = vrcp.f32 %v9943_v47 }
 0xe1b   :  { %v17339_v4 = vpop.eup %17338 }
 0xe1c   :  { %v9968_v8 = vmul.f32 %v17339_v4, %v9967_v38 }
 0xe1e   :  { %v9969_v1 = vadd.f32 %v9968_v8, %v21864_v41  ;;  %v21866_v8 = vld [vmem:[#allocation80_spill] sm:$0xff] }
 0xe20   :  { %17340 = vtanh.f32 %v9969_v1  ;;  %v21867_v1 = vld [vmem:[#allocation81_spill] sm:$0xff] }
 0xe21   :  { %17342 = vrcp.f32 %v9957_v48 }
 0xe22   :  { %17344 = vpow2.f32 %v15052_v36 }
 0xe2a   :  { %v17341_v53 = vpop.eup %17340 }
 0xe2b   :  { %v9975_v45 = vsub.f32 %v20266_v32, %v17341_v53  ;;  %v17343_v24 = vpop.eup %17342 }
 0xe2c   :  { %v17345_v42 = vpop.eup %17344 }
 0xe2d   :  { %v9976_v33 = vmul.f32 %v17343_v24, %v9975_v45  ;;  %v9950_v39 = vadd.f32 1.0, %v17345_v42 }
 0xe2f   :  { %v9977_v17 = vadd.f32 %v17341_v53, %v9976_v33  ;;  %17346 = vrcp.f32 %v9950_v39 }
 0xe31   :  { %v9983_v11 = vsel %vm3016_vm14, %v9977_v17, 0.0 }
 0xe32   :  { %9984 = vst [vmem:[%s21403_s12 + $0x20] sm:$0xff] %v9983_v11 }
 0xe39   :  { %v17347_v20 = vpop.eup %17346 }
 0xe3f   :  { %v9926_v41 = vpop.f32.mrb[112].mxu0 }
 0xe40   :  { %v9960_v60 = vadd.f32 %v9926_v41, %v21866_v8  ;;  %v9928_v26 = vpop.f32.mrb[113].mxu0 }
 0xe41   :  { %v9971_v57 = vadd.f32 %v20042_v30, %v9928_v26  ;;  %v9930_v46 = vpop.f32.mrb[114].mxu0  ;;  %v20503_v30 = vsel %vm3016_vm14, %v9977_v17, %v20266_v32  ;;  %v20517_v26 = vld [vmem:[#allocation9 + $0x10] ss:$24 sps:$4 sm:$0xff]   ;;  %v20523_v17 = vld [vmem:[#allocation9 + $0x44] ss:$24 sps:$4 sm:$0xff]  }
 0xe42   :  { %v15054_v14 = vmul.f32 -1.442695, %v9960_v60  ;;  %v9931_v38 = vpop.f32.mrb[115].mxu0  ;;  %v20521_v32 = vpack.c.bf16 %v20503_v30, %v20503_v30  ;;  %v20536_v46 = vld [vmem:[#allocation9 + $0x70] ss:$24 sps:$4 sm:$0xff]  }
 0xe43   :  { %v9972_v4 = vmul.f32 %v17347_v20, %v9971_v57  ;;  %v20531_v57 = vld [vmem:[#allocation9 + $0x74] ss:$24 sps:$4 sm:$0xff]   ;;  %v20539_v20 = vld [vmem:[#allocation9 + $0xa4] ss:$24 sps:$4 sm:$0xff]  }
 0xe44   :  { %17348 = vpow2.f32 %v15054_v14  ;;  %v20544_v14 = vld [vmem:[#allocation9 + $0xa0] ss:$24 sps:$4 sm:$0xff]   ;;  %v20671_v38 = vld [vmem:[#allocation9 + $0x21c] ss:$24 sps:$4 sm:$0xff]  }
 0xe45   :  { %v9973_v48 = vadd.f32 %v9972_v4, %v21867_v1  ;;  %v20673_v4 = vld [vmem:[#allocation9 + $0x218] ss:$24 sps:$4 sm:$0xff]   ;;  %v20677_v1 = vld [vmem:[#allocation9 + $0x248] ss:$24 sps:$4 sm:$0xff]  }
 0xe47   :  { %17350 = vtanh.f32 %v9973_v48  ;;  %v20679_v48 = vld [vmem:[#allocation9 + $0x24c] ss:$24 sps:$4 sm:$0xff]  }
 0xe4e   :  { %v17349_v36 = vpop.eup %17348 }
 0xe4f   :  { %v9964_v53 = vadd.f32 1.0, %v17349_v36  ;;  %v20681_v36 = vld [vmem:[#allocation9 + $0x27c] ss:$24 sps:$4 sm:$0xff]  }
 0xe51   :  { %17352 = vrcp.f32 %v9964_v53  ;;  %v17351_v45 = vpop.eup %17350  ;;  %v20685_v53 = vld [vmem:[#allocation9 + $0x278] ss:$24 sps:$4 sm:$0xff]  }
 0xe52   :  { %v9978_v24 = vsub.f32 %v20271_v35, %v17351_v45 }
 0xe5b   :  { %v17353_v33 = vpop.eup %17352 }
 0xe5c   :  { %v9979_v42 = vmul.f32 %v17353_v33, %v9978_v24  ;;  %v20691_v24 = vld [vmem:[#allocation9 + $0x2a8] ss:$24 sps:$4 sm:$0xff]   ;;  %v20694_v33 = vld [vmem:[#allocation9 + $0x2dc] ss:$24 sps:$4 sm:$0xff]  }
 0xe5e   :  { %v9980_v11 = vadd.f32 %v17351_v45, %v9979_v42  ;;  %v20688_v45 = vld [vmem:[#allocation9 + $0x2ac] ss:$24 sps:$4 sm:$0xff]   ;;  %v20697_v42 = vld [vmem:[#allocation9 + $0x2d8] ss:$24 sps:$4 sm:$0xff]  }
 0xe60   :  { %v20508_v41 = vsel %vm3022_vm15, %v9980_v11, %v20271_v35  ;;  %v9985_v8 = vsel %vm3022_vm15, %v9980_v11, 0.0  ;;  %v20528_v35 = vld [vmem:[#allocation9 + $0x40] ss:$24 sps:$4 sm:$0xff]  }
 0xe61   :  { %9986 = vst [vmem:[%s21403_s12 + $0x58] sm:$0xff] %v9985_v8  ;;  %v9988_v60 = vpack.c.bf16 %v20508_v41, %v20508_v41 }
 0xe63   :  { %10597 = vmatprep.mubr.bf16.mxu1 %v9988_v60  ;;  %10638 = vmatprep.mubr.bf16.mxu0 %v9988_v60 }
 0xe64   :  { %10598 = vmatmul.mubr.bf16.vlgmr.msra.gmra.mrb[112].mxu1 %v20521_v32  ;;  %10639 = vmatmul.mubr.bf16.vlgmr.msra.gmra.mrb[116].mxu0 %v20521_v32 }
 0xe65   :  { %10648 = vmatpush1.bf16.msra.mxu1 %v20517_v26  ;;  %10679 = vmatprep.mubr.bf16.mxu1 %v9988_v60  ;;  %v21884_v60 = vld [vmem:[#allocation50_spill] sm:$0xff] }
 0xe66   :  { %10649 = vmatprep.subr.bf16.mxu1 %v20523_v17  ;;  %11321 = vmatpush1.bf16.msra.mxu0 %v20385_v51  ;;  %v20547_v51 = vld [vmem:[#allocation9 + $0xd4] ss:$24 sps:$4 sm:$0xff]  }
 0xe67   :  { %11322 = vmatprep.subr.bf16.mxu0 %v20389_v28  ;;  %v20552_v28 = vld [vmem:[#allocation9 + $0xd0] ss:$24 sps:$4 sm:$0xff]  }
 0xe69   :  { %10650 = vmatpush1.bf16.msra.mxu1 %v20528_v35 }
 0xe6a   :  { %10651 = vmatprep.subr.bf16.mxu1 %v20531_v57  ;;  %11323 = vmatpush1.bf16.msra.mxu0 %v20392_v54  ;;  %v20605_v54 = vld [vmem:[#allocation9 + $0xc] ss:$24 sps:$4 sm:$0xff]  }
 0xe6b   :  { %11324 = vmatprep.subr.bf16.mxu0 %v20397_v63  ;;  %v20607_v63 = vld [vmem:[#allocation9 + $0x8] ss:$24 sps:$4 sm:$0xff]  }
 0xe6d   :  { %10652 = vmatpush1.bf16.msra.mxu1 %v20536_v46 }
 0xe6e   :  { %10653 = vmatprep.subr.bf16.mxu1 %v20539_v20  ;;  %11325 = vmatpush1.bf16.msra.mxu0 %v20400_v12  ;;  %v20611_v12 = vld [vmem:[#allocation9 + $0x3c] ss:$24 sps:$4 sm:$0xff]  }
 0xe6f   :  { %11326 = vmatprep.subr.bf16.mxu0 %v20406_v19  ;;  %v20617_v19 = vld [vmem:[#allocation9 + $0x6c] ss:$24 sps:$4 sm:$0xff]  }
 0xe71   :  { %10654 = vmatpush1.bf16.msra.mxu1 %v20544_v14 }
 0xe72   :  { %10655 = vmatprep.subr.bf16.mxu1 %v20547_v51  ;;  %11327 = vmatpush1.bf16.msra.mxu0 %v20404_v52  ;;  %v20613_v52 = vld [vmem:[#allocation9 + $0x38] ss:$24 sps:$4 sm:$0xff]  }
 0xe73   :  { %11328 = vmatprep.subr.bf16.mxu0 %v20408_v27  ;;  %v20619_v27 = vld [vmem:[#allocation9 + $0x68] ss:$24 sps:$4 sm:$0xff]  }
 0xe75   :  { %10656 = vmatpush1.bf16.msra.mxu1 %v20552_v28 }
 0xe76   :  { %10657 = vmatprep.subr.bf16.mxu1 %v20290_v59  ;;  %11329 = vmatpush1.bf16.msra.mxu0 %v20412_v44  ;;  %v21869_v59 = vld [vmem:[#allocation27_spill] sm:$0xff]  ;;  %v20623_v44 = vld [vmem:[#allocation9 + $0x98] ss:$24 sps:$4 sm:$0xff]  }
 0xe77   :  { %11330 = vmatprep.subr.bf16.mxu0 %v20415_v15  ;;  %v20625_v15 = vld [vmem:[#allocation9 + $0x9c] ss:$24 sps:$4 sm:$0xff]  }
 0xe79   :  { %10658 = vmatpush1.bf16.msra.mxu1 %v20293_v16  ;;  %v21870_v16 = vld [vmem:[#allocation15_spill] sm:$0xff] }
 0xe7a   :  { %10659 = vmatprep.subr.bf16.mxu1 %v20296_v29  ;;  %11331 = vmatpush1.bf16.msra.mxu0 %v20418_v22  ;;  %v21871_v29 = vld [vmem:[#allocation45_spill] sm:$0xff]  ;;  %v20627_v22 = vld [vmem:[#allocation9 + $0xcc] ss:$24 sps:$4 sm:$0xff]  }
 0xe7b   :  { %11332 = vmatprep.subr.bf16.mxu0 %v20421_v0  ;;  %v20631_v0 = vld [vmem:[#allocation9 + $0xc8] ss:$24 sps:$4 sm:$0xff]  }
 0xe7d   :  { %10660 = vmatpush1.bf16.msra.mxu1 %v20299_v21  ;;  %v21872_v21 = vld [vmem:[#allocation46_spill] sm:$0xff] }
 0xe7e   :  { %10661 = vmatprep.subr.bf16.mxu1 %v20302_v2  ;;  %11333 = vmatpush1.bf16.msra.mxu0 %v20424_v58  ;;  %v21873_v2 = vld [vmem:[#allocation39_spill] sm:$0xff]  ;;  %v20634_v58 = vld [vmem:[#allocation9 + $0xfc] ss:$24 sps:$4 sm:$0xff]  }
 0xe7f   :  { %11334 = vmatprep.subr.bf16.mxu0 %v20428_v61  ;;  %v20637_v61 = vld [vmem:[#allocation9 + $0xf8] ss:$24 sps:$4 sm:$0xff]  }
 0xe81   :  { %10662 = vmatpush1.bf16.msra.mxu1 %v20305_v50  ;;  %v21874_v50 = vld [vmem:[#allocation24_spill] sm:$0xff] }
 0xe82   :  { %10663 = vmatprep.subr.bf16.mxu1 %v20308_v43  ;;  %11335 = vmatpush1.bf16.msra.mxu0 %v20430_v23  ;;  %v21875_v43 = vld [vmem:[#allocation51_spill] sm:$0xff] }
 0xe83   :  { %11336 = vmatprep.subr.bf16.mxu0 %v20434_v6  ;;  %v20640_v23 = vld [vmem:[#allocation9 + $0x12c] ss:$24 sps:$4 sm:$0xff]   ;;  %v20643_v6 = vld [vmem:[#allocation9 + $0x128] ss:$24 sps:$4 sm:$0xff]  }
 0xe85   :  { %10664 = vmatpush1.bf16.msra.mxu1 %v20311_v56  ;;  %v21876_v56 = vld [vmem:[#allocation63_spill] sm:$0xff] }
 0xe86   :  { %10665 = vmatprep.subr.bf16.mxu1 %v20314_v62  ;;  %11337 = vmatpush1.bf16.msra.mxu0 %v20436_v3  ;;  %v21877_v62 = vld [vmem:[#allocation26_spill] sm:$0xff]  ;;  %v20647_v3 = vld [vmem:[#allocation9 + $0x15c] ss:$24 sps:$4 sm:$0xff]  }
 0xe87   :  { %11338 = vmatprep.subr.bf16.mxu0 %v20440_v7  ;;  %v20649_v7 = vld [vmem:[#allocation9 + $0x158] ss:$24 sps:$4 sm:$0xff]  }
 0xe89   :  { %10666 = vmatpush1.bf16.msra.mxu1 %v20317_v10  ;;  %v21878_v10 = vld [vmem:[#allocation37_spill] sm:$0xff] }
 0xe8a   :  { %10667 = vmatprep.subr.bf16.mxu1 %v20320_v34  ;;  %11339 = vmatpush1.bf16.msra.mxu0 %v20442_v55  ;;  %v21879_v34 = vld [vmem:[#allocation23_spill] sm:$0xff] }
 0xe8b   :  { %11340 = vmatprep.subr.bf16.mxu0 %v20446_v25  ;;  %v20653_v55 = vld [vmem:[#allocation9 + $0x18c] ss:$24 sps:$4 sm:$0xff]   ;;  %v20655_v25 = vld [vmem:[#allocation9 + $0x188] ss:$24 sps:$4 sm:$0xff]  }
 0xe8d   :  { %10668 = vmatpush1.bf16.msra.mxu1 %v20323_v31  ;;  %v21880_v31 = vld [vmem:[#allocation17_spill] sm:$0xff] }
 0xe8e   :  { %10669 = vmatprep.subr.bf16.mxu1 %v20326_v49  ;;  %11341 = vmatpush1.bf16.msra.mxu0 %v20448_v13  ;;  %v21881_v49 = vld [vmem:[#allocation40_spill] sm:$0xff] }
 0xe8f   :  { %11342 = vmatprep.subr.bf16.mxu0 %v20452_v5  ;;  %v20659_v13 = vld [vmem:[#allocation9 + $0x1bc] ss:$24 sps:$4 sm:$0xff]   ;;  %v20661_v5 = vld [vmem:[#allocation9 + $0x1b8] ss:$24 sps:$4 sm:$0xff]  }
 0xe91   :  { %10670 = vmatpush1.bf16.msra.mxu1 %v20329_v9  ;;  %v21882_v9 = vld [vmem:[#allocation19_spill] sm:$0xff] }
 0xe92   :  { %10671 = vmatprep.subr.bf16.mxu1 %v20332_v40  ;;  %11343 = vmatpush1.bf16.msra.mxu0 %v20454_v18  ;;  %v21883_v40 = vld [vmem:[#allocation68_spill] sm:$0xff]  ;;  %v20665_v18 = vld [vmem:[#allocation9 + $0x1ec] ss:$24 sps:$4 sm:$0xff]  }
 0xe93   :  { %11344 = vmatprep.subr.bf16.mxu0 %v20460_v37  ;;  %v20667_v37 = vld [vmem:[#allocation9 + $0x1e8] ss:$24 sps:$4 sm:$0xff]  }
 0xe95   :  { %10672 = vmatpush1.bf16.msra.mxu1 %v21869_v59 }
 0xe96   :  { %10673 = vmatprep.subr.bf16.mxu1 %v21870_v16  ;;  %11345 = vmatpush1.bf16.msra.mxu0 %v21871_v29  ;;  %v21885_v29 = vld [vmem:[#allocation21_spill] sm:$0xff] }
 0xe97   :  { %11346 = vmatprep.subr.bf16.mxu0 %v21872_v21 }
 0xe99   :  { %10674 = vmatpush1.bf16.msra.mxu1 %v21873_v2  ;;  %v21886_v2 = vld [vmem:[#allocation20_spill] sm:$0xff] }
 0xe9a   :  { %10675 = vmatprep.subr.bf16.mxu1 %v21874_v50  ;;  %11347 = vmatpush1.bf16.msra.mxu0 %v21875_v43 }
 0xe9b   :  { %11348 = vmatprep.subr.bf16.mxu0 %v21876_v56 }
 0xe9d   :  { %10676 = vmatpush1.bf16.msra.mxu1 %v21877_v62 }
 0xe9e   :  { %10677 = vmatprep.subr.bf16.mxu1 %v21878_v10  ;;  %11349 = vmatpush1.bf16.msra.mxu0 %v21879_v34 }
 0xe9f   :  { %11350 = vmatprep.subr.bf16.mxu0 %v21880_v31 }
 0xea1   :  { %10678 = vmatpush1.bf16.msra.mxu1 %v21881_v49 }
 0xea2   :  { %11351 = vmatpush1.bf16.msra.mxu0 %v21882_v9  ;;  %11361 = vmatprep.subr.bf16.mxu1 %v20605_v54 }
 0xea3   :  { %11402 = vmatprep.subr.bf16.mxu0 %v21883_v40 }
 0xea4   :  { %10680 = vmatmul.mubr.bf16.vlgmr.msra.gmra.mrb[116].mxu1 %v20521_v32 }
 0xea5   :  { %11362 = vmatpush1.bf16.msra.mxu1 %v20607_v63 }
 0xea6   :  { %11363 = vmatprep.subr.bf16.mxu1 %v20611_v12 }
 0xea9   :  { %11364 = vmatpush1.bf16.msra.mxu1 %v20613_v52 }
 0xeaa   :  { %11365 = vmatprep.subr.bf16.mxu1 %v20617_v19 }
 0xead   :  { %11366 = vmatpush1.bf16.msra.mxu1 %v20619_v27 }
 0xeae   :  { %11367 = vmatprep.subr.bf16.mxu1 %v20625_v15 }
 0xeb1   :  { %11368 = vmatpush1.bf16.msra.mxu1 %v20623_v44 }
 0xeb2   :  { %11369 = vmatprep.subr.bf16.mxu1 %v20627_v22 }
 0xeb5   :  { %11370 = vmatpush1.bf16.msra.mxu1 %v20631_v0 }
 0xeb6   :  { %11371 = vmatprep.subr.bf16.mxu1 %v20634_v58 }
 0xeb9   :  { %11372 = vmatpush1.bf16.msra.mxu1 %v20637_v61 }
 0xeba   :  { %11373 = vmatprep.subr.bf16.mxu1 %v20640_v23 }
 0xebd   :  { %11374 = vmatpush1.bf16.msra.mxu1 %v20643_v6 }
 0xebe   :  { %11375 = vmatprep.subr.bf16.mxu1 %v20647_v3 }
 0xec1   :  { %11376 = vmatpush1.bf16.msra.mxu1 %v20649_v7 }
 0xec2   :  { %11377 = vmatprep.subr.bf16.mxu1 %v20653_v55 }
 0xec5   :  { %11378 = vmatpush1.bf16.msra.mxu1 %v20655_v25 }
 0xec6   :  { %11379 = vmatprep.subr.bf16.mxu1 %v20659_v13 }
 0xec9   :  { %11380 = vmatpush1.bf16.msra.mxu1 %v20661_v5 }
 0xeca   :  { %11381 = vmatprep.subr.bf16.mxu1 %v20665_v18 }
 0xecd   :  { %11382 = vmatpush1.bf16.msra.mxu1 %v20667_v37 }
 0xece   :  { %11383 = vmatprep.subr.bf16.mxu1 %v20671_v38 }
 0xed1   :  { %11384 = vmatpush1.bf16.msra.mxu1 %v20673_v4 }
 0xed2   :  { %11385 = vmatprep.subr.bf16.mxu1 %v20679_v48 }
 0xed5   :  { %11386 = vmatpush1.bf16.msra.mxu1 %v20677_v1 }
 0xed6   :  { %11387 = vmatprep.subr.bf16.mxu1 %v20681_v36 }
 0xed9   :  { %11388 = vmatpush1.bf16.msra.mxu1 %v20685_v53 }
 0xeda   :  { %11389 = vmatprep.subr.bf16.mxu1 %v20688_v45 }
 0xedd   :  { %11390 = vmatpush1.bf16.msra.mxu1 %v20691_v24 }
 0xede   :  { %11391 = vmatprep.subr.bf16.mxu1 %v20694_v33 }
 0xee1   :  { %11392 = vmatpush1.bf16.msra.mxu1 %v20697_v42 }
 0xf37   :  { %v10599_v11 = vpop.f32.mrb[112].mxu1  ;;  %v10640_v8 = vpop.f32.mrb[116].mxu0 }
 0xf38   :  { %v10694_v32 = vadd.f32 %v10599_v11, %v21884_v60  ;;  %v10601_v59 = vpop.f32.mrb[113].mxu1  ;;  %v10642_v16 = vpop.f32.mrb[117].mxu0  ;;  %v20707_v11 = vld [vmem:[%s21401_s10] ss:$0 sm:$0xff] }
 0xf39   :  { %v10708_v21 = vadd.f32 %v10601_v59, %v21885_v29  ;;  %v10701_v50 = vadd.f32 %v10642_v16, %v21886_v2  ;;  %v10603_v43 = vpop.f32.mrb[114].mxu1  ;;  %v10644_v56 = vpop.f32.mrb[118].mxu0  ;;  %v10722_v60 = vadd.f32 %v20707_v11, %v10640_v8  ;;  %v21887_v29 = vld [vmem:[#allocation67_spill] sm:$0xff] }
 0xf3a   :  { %v15151_v62 = vmul.f32 -1.442695, %v10694_v32  ;;  %v10604_v10 = vpop.f32.mrb[115].mxu1  ;;  %v10645_v34 = vpop.f32.mrb[119].mxu0 }
 0xf3b   :  { %v15153_v31 = vmul.f32 -1.442695, %v10708_v21  ;;  %v15152_v21 = vmul.f32 -1.442695, %v10701_v50 }
 0xf3c   :  { %17354 = vpow2.f32 %v15151_v62 }
 0xf3d   :  { %17356 = vpow2.f32 %v15153_v31 }
 0xf46   :  { %v17355_v49 = vpop.eup %17354 }
 0xf47   :  { %v10698_v9 = vadd.f32 1.0, %v17355_v49  ;;  %v17357_v40 = vpop.eup %17356  ;;  %v20991_v49 = vld [vmem:[#allocation9 + $0x40] ss:$24 sps:$4 sm:$0xff]  }
 0xf48   :  { %v10712_v2 = vadd.f32 1.0, %v17357_v40 }
 0xf49   :  { %17358 = vrcp.f32 %v10698_v9 }
 0xf53   :  { %v17359_v59 = vpop.eup %17358 }
 0xf54   :  { %v10723_v16 = vmul.f32 %v17359_v59, %v10722_v60  ;;  %v21889_v60 = vld [vmem:[#allocation78_spill] sm:$0xff] }
 0xf56   :  { %v10724_v32 = vadd.f32 %v10723_v16, %v21887_v29  ;;  %v20721_v16 = vld [vmem:[%s21402_s11] ss:$0 sm:$0xff] }
 0xf58   :  { %17360 = vtanh.f32 %v10724_v32 }
 0xf59   :  { %17362 = vrcp.f32 %v10712_v2 }
 0xf5a   :  { %17364 = vpow2.f32 %v15152_v21 }
 0xf62   :  { %v17361_v43 = vpop.eup %17360 }
 0xf63   :  { %v10730_v56 = vsub.f32 %v20503_v30, %v17361_v43  ;;  %v17363_v62 = vpop.eup %17362 }
 0xf64   :  { %v17365_v31 = vpop.eup %17364 }
 0xf65   :  { %v10731_v10 = vmul.f32 %v17363_v62, %v10730_v56  ;;  %v10705_v8 = vadd.f32 1.0, %v17365_v31  ;;  %v21890_v62 = vld [vmem:[#allocation79_spill] sm:$0xff] }
 0xf67   :  { %v10732_v34 = vadd.f32 %v17361_v43, %v10731_v10  ;;  %17366 = vrcp.f32 %v10705_v8 }
 0xf69   :  { %v10738_v9 = vsel %vm3783_vm0, %v10732_v34, 0.0 }
 0xf6a   :  { %10739 = vst [vmem:[%s21403_s12 + $0x30] sm:$0xff] %v10738_v9 }
 0xf71   :  { %v17367_v2 = vpop.eup %17366 }
 0xf77   :  { %v10681_v40 = vpop.f32.mrb[116].mxu1 }
 0xf78   :  { %v10715_v50 = vadd.f32 %v10681_v40, %v21889_v60  ;;  %v10683_v59 = vpop.f32.mrb[117].mxu1 }
 0xf79   :  { %v10726_v29 = vadd.f32 %v20721_v16, %v10683_v59  ;;  %v10685_v32 = vpop.f32.mrb[118].mxu1  ;;  %v20729_v59 = vsel %vm3783_vm0, %v10732_v34, %v20503_v30  ;;  %v20753_v30 = vld [vmem:[#allocation9 + $0x104] ss:$24 sps:$4 sm:$0xff]  }
 0xf7a   :  { %v15154_v21 = vmul.f32 -1.442695, %v10715_v50  ;;  %v10686_v43 = vpop.f32.mrb[119].mxu1  ;;  %v20789_v34 = vld [vmem:[#allocation9 + $0x224] ss:$24 sps:$4 sm:$0xff]  }
 0xf7b   :  { %v10727_v56 = vmul.f32 %v17367_v2, %v10726_v29  ;;  %v10742_v2 = vpack.c.bf16 %v20729_v59, %v20729_v59  ;;  %v20795_v43 = vld [vmem:[#allocation9 + $0x254] ss:$24 sps:$4 sm:$0xff]   ;;  %v20986_v50 = vld [vmem:[#allocation9 + $0x44] ss:$24 sps:$4 sm:$0xff]  }
 0xf7c   :  { %17368 = vpow2.f32 %v15154_v21  ;;  %v20792_v21 = vld [vmem:[#allocation9 + $0x220] ss:$24 sps:$4 sm:$0xff]  }
 0xf7d   :  { %v10728_v10 = vadd.f32 %v10727_v56, %v21890_v62  ;;  %v20798_v56 = vld [vmem:[#allocation9 + $0x250] ss:$24 sps:$4 sm:$0xff]   ;;  %v20801_v62 = vld [vmem:[#allocation9 + $0x284] ss:$24 sps:$4 sm:$0xff]  }
 0xf7e   :  { %21892 = vst [vmem:[#allocation70_spill] sm:$0xff] %v20798_v56  ;;  %21893 = vst [vmem:[#allocation69_spill] sm:$0xff] %v20801_v62 }
 0xf7f   :  { %17370 = vtanh.f32 %v10728_v10  ;;  %v20804_v10 = vld [vmem:[#allocation9 + $0x280] ss:$24 sps:$4 sm:$0xff]  }
 0xf80   :  { %21894 = vst [vmem:[#allocation49_spill] sm:$0xff] %v20804_v10 }
 0xf86   :  { %v17369_v31 = vpop.eup %17368 }
 0xf87   :  { %v10719_v9 = vadd.f32 1.0, %v17369_v31  ;;  %v20807_v31 = vld [vmem:[#allocation9 + $0x2b4] ss:$24 sps:$4 sm:$0xff]  }
 0xf88   :  { %21895 = vst [vmem:[#allocation28_spill] sm:$0xff] %v20807_v31 }
 0xf89   :  { %17372 = vrcp.f32 %v10719_v9  ;;  %v17371_v8 = vpop.eup %17370  ;;  %v20810_v9 = vld [vmem:[#allocation9 + $0x2b0] ss:$24 sps:$4 sm:$0xff]  }
 0xf8a   :  { %v10733_v40 = vsub.f32 %v20508_v41, %v17371_v8  ;;  %21896 = vst [vmem:[#allocation60_spill] sm:$0xff] %v20810_v9 }
 0xf93   :  { %v17373_v60 = vpop.eup %17372 }
 0xf94   :  { %v10734_v47 = vmul.f32 %v17373_v60, %v10733_v40  ;;  %v20816_v40 = vld [vmem:[#allocation9 + $0x2e0] ss:$24 sps:$4 sm:$0xff]   ;;  %v20945_v60 = vld [vmem:[#allocation9 + $0x14] ss:$24 sps:$4 sm:$0xff]  }
 0xf95   :  { %21898 = vst [vmem:[#allocation84_spill] sm:$0xff] %v20816_v40  ;;  %21908 = vst [vmem:[#allocation80_spill] sm:$0xff] %v20945_v60 }
 0xf96   :  { %v10735_v39 = vadd.f32 %v17371_v8, %v10734_v47  ;;  %v20813_v8 = vld [vmem:[#allocation9 + $0x2e4] ss:$24 sps:$4 sm:$0xff]  }
 0xf97   :  { %21897 = vst [vmem:[#allocation41_spill] sm:$0xff] %v20813_v8 }
 0xf98   :  { %v20734_v29 = vsel %vm3789_vm1, %v10735_v39, %v20508_v41  ;;  %v10740_v32 = vsel %vm3789_vm1, %v10735_v39, 0.0  ;;  %v20756_v39 = vld [vmem:[#allocation9 + $0x100] ss:$24 sps:$4 sm:$0xff]   ;;  %v20759_v41 = vld [vmem:[#allocation9 + $0x134] ss:$24 sps:$4 sm:$0xff]  }
 0xf99   :  { %10741 = vst [vmem:[%s21403_s12 + $0x48] sm:$0xff] %v10740_v32  ;;  %v10743_v47 = vpack.c.bf16 %v20734_v29, %v20734_v29 }
 0xf9b   :  { %11352 = vmatprep.mubr.bf16.mxu0 %v10743_v47  ;;  %11393 = vmatprep.mubr.bf16.mxu1 %v10743_v47 }
 0xf9c   :  { %11353 = vmatmul.mubr.bf16.vlgmr.msra.gmra.mrb[120].mxu0 %v10742_v2  ;;  %11394 = vmatmul.mubr.bf16.vlgmr.msra.gmra.mrb[120].mxu1 %v10742_v2 }
 0xf9d   :  { %11403 = vmatpush1.bf16.msra.mxu0 %v20517_v26  ;;  %11434 = vmatprep.mubr.bf16.mxu0 %v10743_v47  ;;  %v20762_v26 = vld [vmem:[#allocation9 + $0x130] ss:$24 sps:$4 sm:$0xff]  }
 0xf9e   :  { %11404 = vmatprep.subr.bf16.mxu0 %v20523_v17  ;;  %v20765_v17 = vld [vmem:[#allocation9 + $0x164] ss:$24 sps:$4 sm:$0xff]  }
 0xfa1   :  { %11405 = vmatpush1.bf16.msra.mxu0 %v20528_v35  ;;  %v20768_v35 = vld [vmem:[#allocation9 + $0x160] ss:$24 sps:$4 sm:$0xff]  }
 0xfa2   :  { %11406 = vmatprep.subr.bf16.mxu0 %v20531_v57  ;;  %v20771_v57 = vld [vmem:[#allocation9 + $0x194] ss:$24 sps:$4 sm:$0xff]  }
 0xfa5   :  { %11407 = vmatpush1.bf16.msra.mxu0 %v20536_v46  ;;  %v20774_v46 = vld [vmem:[#allocation9 + $0x190] ss:$24 sps:$4 sm:$0xff]  }
 0xfa6   :  { %11408 = vmatprep.subr.bf16.mxu0 %v20539_v20  ;;  %v20777_v20 = vld [vmem:[#allocation9 + $0x1c4] ss:$24 sps:$4 sm:$0xff]  }
 0xfa9   :  { %11409 = vmatpush1.bf16.msra.mxu0 %v20544_v14  ;;  %v20780_v14 = vld [vmem:[#allocation9 + $0x1c0] ss:$24 sps:$4 sm:$0xff]  }
 0xfaa   :  { %11410 = vmatprep.subr.bf16.mxu0 %v20547_v51  ;;  %v20783_v51 = vld [vmem:[#allocation9 + $0x1f4] ss:$24 sps:$4 sm:$0xff]  }
 0xfad   :  { %11411 = vmatpush1.bf16.msra.mxu0 %v20552_v28  ;;  %v20786_v28 = vld [vmem:[#allocation9 + $0x1f0] ss:$24 sps:$4 sm:$0xff]  }
 0xfae   :  { %11412 = vmatprep.subr.bf16.mxu0 %v20753_v30 }
 0xfb1   :  { %11413 = vmatpush1.bf16.msra.mxu0 %v20756_v39 }
 0xfb2   :  { %11414 = vmatprep.subr.bf16.mxu0 %v20759_v41 }
 0xfb5   :  { %11415 = vmatpush1.bf16.msra.mxu0 %v20762_v26 }
 0xfb6   :  { %11416 = vmatprep.subr.bf16.mxu0 %v20765_v17 }
 0xfb9   :  { %11417 = vmatpush1.bf16.msra.mxu0 %v20768_v35 }
 0xfba   :  { %11418 = vmatprep.subr.bf16.mxu0 %v20771_v57 }
 0xfbd   :  { %11419 = vmatpush1.bf16.msra.mxu0 %v20774_v46 }
 0xfbe   :  { %11420 = vmatprep.subr.bf16.mxu0 %v20777_v20 }
 0xfc1   :  { %11421 = vmatpush1.bf16.msra.mxu0 %v20780_v14 }
 0xfc2   :  { %11422 = vmatprep.subr.bf16.mxu0 %v20783_v51 }
 0xfc5   :  { %11423 = vmatpush1.bf16.msra.mxu0 %v20786_v28 }
 0xfc6   :  { %11424 = vmatprep.subr.bf16.mxu0 %v20789_v34 }
 0xfc9   :  { %11425 = vmatpush1.bf16.msra.mxu0 %v20792_v21 }
 0xfca   :  { %11426 = vmatprep.subr.bf16.mxu0 %v20795_v43 }
 0xfcd   :  { %11427 = vmatpush1.bf16.msra.mxu0 %v20798_v56 }
 0xfce   :  { %11428 = vmatprep.subr.bf16.mxu0 %v20801_v62 }
 0xfd1   :  { %11429 = vmatpush1.bf16.msra.mxu0 %v20804_v10 }
 0xfd2   :  { %11430 = vmatprep.subr.bf16.mxu0 %v20807_v31 }
 0xfd5   :  { %11431 = vmatpush1.bf16.msra.mxu0 %v20810_v9  ;;  %v21910_v9 = vld [vmem:[#allocation31_spill] sm:$0xff] }
 0xfd6   :  { %11432 = vmatprep.subr.bf16.mxu0 %v20813_v8 }
 0xfd9   :  { %11433 = vmatpush1.bf16.msra.mxu0 %v20816_v40 }
 0xfda   :  { %12116 = vmatprep.subr.bf16.mxu0 %v20605_v54  ;;  %v16929_v54 = vld [vmem:[#allocation9 + $0x4] ss:$24 sps:$4 sm:$0xff]  }
 0xfdb   :  { %12075 = vmatprep.subr.bf16.mxu1 %v16929_v54 }
 0xfdc   :  { %11435 = vmatmul.mubr.bf16.vlgmr.msra.gmra.mrb[124].mxu0 %v10742_v2  ;;  %v21909_v2 = vld [vmem:[#allocation73_spill] sm:$0xff] }
 0xfdd   :  { %12117 = vmatpush1.bf16.msra.mxu0 %v20607_v63  ;;  %v20848_v63 = vld [vmem:[#allocation9] ss:$24 sps:$4 sm:$0xff]  }
 0xfde   :  { %12118 = vmatprep.subr.bf16.mxu0 %v20611_v12  ;;  %12076 = vmatpush1.bf16.msra.mxu1 %v20848_v63  ;;  %v20852_v12 = vld [vmem:[#allocation9 + $0x34] ss:$24 sps:$4 sm:$0xff]  }
 0xfdf   :  { %12077 = vmatprep.subr.bf16.mxu1 %v20852_v12 }
 0xfe1   :  { %12119 = vmatpush1.bf16.msra.mxu0 %v20613_v52  ;;  %v20855_v52 = vld [vmem:[#allocation9 + $0x30] ss:$24 sps:$4 sm:$0xff]  }
 0xfe2   :  { %12120 = vmatprep.subr.bf16.mxu0 %v20617_v19  ;;  %12078 = vmatpush1.bf16.msra.mxu1 %v20855_v52  ;;  %v20860_v19 = vld [vmem:[#allocation9 + $0x64] ss:$24 sps:$4 sm:$0xff]  }
 0xfe3   :  { %12079 = vmatprep.subr.bf16.mxu1 %v20860_v19 }
 0xfe5   :  { %12121 = vmatpush1.bf16.msra.mxu0 %v20619_v27  ;;  %v20863_v27 = vld [vmem:[#allocation9 + $0x60] ss:$24 sps:$4 sm:$0xff]  }
 0xfe6   :  { %12122 = vmatprep.subr.bf16.mxu0 %v20625_v15  ;;  %12080 = vmatpush1.bf16.msra.mxu1 %v20863_v27  ;;  %v20869_v15 = vld [vmem:[#allocation9 + $0x94] ss:$24 sps:$4 sm:$0xff]  }
 0xfe7   :  { %12081 = vmatprep.subr.bf16.mxu1 %v20869_v15 }
 0xfe9   :  { %12123 = vmatpush1.bf16.msra.mxu0 %v20623_v44  ;;  %v20867_v44 = vld [vmem:[#allocation9 + $0x90] ss:$24 sps:$4 sm:$0xff]  }
 0xfea   :  { %12124 = vmatprep.subr.bf16.mxu0 %v20627_v22  ;;  %v20871_v22 = vld [vmem:[#allocation9 + $0xc4] ss:$24 sps:$4 sm:$0xff]   ;;  %12082 = vmatpush1.bf16.msra.mxu1 %v20867_v44 }
 0xfeb   :  { %12083 = vmatprep.subr.bf16.mxu1 %v20871_v22 }
 0xfed   :  { %12125 = vmatpush1.bf16.msra.mxu0 %v20631_v0  ;;  %v20875_v0 = vld [vmem:[#allocation9 + $0xc0] ss:$24 sps:$4 sm:$0xff]  }
 0xfee   :  { %12126 = vmatprep.subr.bf16.mxu0 %v20634_v58  ;;  %v20878_v58 = vld [vmem:[#allocation9 + $0xf4] ss:$24 sps:$4 sm:$0xff]   ;;  %12084 = vmatpush1.bf16.msra.mxu1 %v20875_v0 }
 0xfef   :  { %12085 = vmatprep.subr.bf16.mxu1 %v20878_v58 }
 0xff1   :  { %12127 = vmatpush1.bf16.msra.mxu0 %v20637_v61  ;;  %v20881_v61 = vld [vmem:[#allocation9 + $0xf0] ss:$24 sps:$4 sm:$0xff]  }
 0xff2   :  { %12128 = vmatprep.subr.bf16.mxu0 %v20640_v23  ;;  %v20884_v23 = vld [vmem:[#allocation9 + $0x124] ss:$24 sps:$4 sm:$0xff]   ;;  %12086 = vmatpush1.bf16.msra.mxu1 %v20881_v61 }
 0xff3   :  { %12087 = vmatprep.subr.bf16.mxu1 %v20884_v23 }
 0xff5   :  { %12129 = vmatpush1.bf16.msra.mxu0 %v20643_v6  ;;  %v20887_v6 = vld [vmem:[#allocation9 + $0x120] ss:$24 sps:$4 sm:$0xff]  }
 0xff6   :  { %12130 = vmatprep.subr.bf16.mxu0 %v20647_v3  ;;  %12088 = vmatpush1.bf16.msra.mxu1 %v20887_v6  ;;  %v20891_v3 = vld [vmem:[#allocation9 + $0x154] ss:$24 sps:$4 sm:$0xff]  }
 0xff7   :  { %12089 = vmatprep.subr.bf16.mxu1 %v20891_v3 }
 0xff9   :  { %12131 = vmatpush1.bf16.msra.mxu0 %v20649_v7  ;;  %v20893_v7 = vld [vmem:[#allocation9 + $0x150] ss:$24 sps:$4 sm:$0xff]  }
 0xffa   :  { %12132 = vmatprep.subr.bf16.mxu0 %v20653_v55  ;;  %12090 = vmatpush1.bf16.msra.mxu1 %v20893_v7  ;;  %v20897_v55 = vld [vmem:[#allocation9 + $0x184] ss:$24 sps:$4 sm:$0xff]  }
 0xffb   :  { %12091 = vmatprep.subr.bf16.mxu1 %v20897_v55 }
 0xffd   :  { %12133 = vmatpush1.bf16.msra.mxu0 %v20655_v25  ;;  %v20899_v25 = vld [vmem:[#allocation9 + $0x180] ss:$24 sps:$4 sm:$0xff]  }
 0xffe   :  { %12134 = vmatprep.subr.bf16.mxu0 %v20659_v13  ;;  %12092 = vmatpush1.bf16.msra.mxu1 %v20899_v25  ;;  %v20903_v13 = vld [vmem:[#allocation9 + $0x1b4] ss:$24 sps:$4 sm:$0xff]  }
 0xfff   :  { %12093 = vmatprep.subr.bf16.mxu1 %v20903_v13 }
0x1001   :  { %12135 = vmatpush1.bf16.msra.mxu0 %v20661_v5  ;;  %v20905_v5 = vld [vmem:[#allocation9 + $0x1b0] ss:$24 sps:$4 sm:$0xff]  }
0x1002   :  { %12136 = vmatprep.subr.bf16.mxu0 %v20665_v18  ;;  %12094 = vmatpush1.bf16.msra.mxu1 %v20905_v5  ;;  %v20909_v18 = vld [vmem:[#allocation9 + $0x1e4] ss:$24 sps:$4 sm:$0xff]  }
0x1003   :  { %12095 = vmatprep.subr.bf16.mxu1 %v20909_v18 }
0x1005   :  { %12137 = vmatpush1.bf16.msra.mxu0 %v20667_v37  ;;  %v20911_v37 = vld [vmem:[#allocation9 + $0x1e0] ss:$24 sps:$4 sm:$0xff]  }
0x1006   :  { %12138 = vmatprep.subr.bf16.mxu0 %v20671_v38  ;;  %12096 = vmatpush1.bf16.msra.mxu1 %v20911_v37  ;;  %v20915_v38 = vld [vmem:[#allocation9 + $0x214] ss:$24 sps:$4 sm:$0xff]  }
0x1007   :  { %12097 = vmatprep.subr.bf16.mxu1 %v20915_v38 }
0x1009   :  { %12139 = vmatpush1.bf16.msra.mxu0 %v20673_v4  ;;  %v20917_v4 = vld [vmem:[#allocation9 + $0x210] ss:$24 sps:$4 sm:$0xff]  }
0x100a   :  { %12140 = vmatprep.subr.bf16.mxu0 %v20679_v48  ;;  %21899 = vst [vmem:[#allocation22_spill] sm:$0xff] %v20917_v4  ;;  %12098 = vmatpush1.bf16.msra.mxu1 %v20917_v4  ;;  %v20923_v48 = vld [vmem:[#allocation9 + $0x244] ss:$24 sps:$4 sm:$0xff]  }
0x100b   :  { %21901 = vst [vmem:[#allocation83_spill] sm:$0xff] %v20923_v48  ;;  %12099 = vmatprep.subr.bf16.mxu1 %v20923_v48  ;;  %v21912_v4 = vld [vmem:[#allocation29_spill] sm:$0xff] }
0x100d   :  { %12141 = vmatpush1.bf16.msra.mxu0 %v20677_v1  ;;  %v20921_v1 = vld [vmem:[#allocation9 + $0x240] ss:$24 sps:$4 sm:$0xff]  }
0x100e   :  { %12142 = vmatprep.subr.bf16.mxu0 %v20681_v36  ;;  %21900 = vst [vmem:[#allocation82_spill] sm:$0xff] %v20921_v1  ;;  %v20925_v36 = vld [vmem:[#allocation9 + $0x274] ss:$24 sps:$4 sm:$0xff]   ;;  %12100 = vmatpush1.bf16.msra.mxu1 %v20921_v1 }
0x100f   :  { %21902 = vst [vmem:[#allocation55_spill] sm:$0xff] %v20925_v36  ;;  %12101 = vmatprep.subr.bf16.mxu1 %v20925_v36 }
0x1011   :  { %12143 = vmatpush1.bf16.msra.mxu0 %v20685_v53  ;;  %v20929_v53 = vld [vmem:[#allocation9 + $0x270] ss:$24 sps:$4 sm:$0xff]  }
0x1012   :  { %12144 = vmatprep.subr.bf16.mxu0 %v20688_v45  ;;  %21903 = vst [vmem:[#allocation56_spill] sm:$0xff] %v20929_v53  ;;  %v20932_v45 = vld [vmem:[#allocation9 + $0x2a4] ss:$24 sps:$4 sm:$0xff]   ;;  %12102 = vmatpush1.bf16.msra.mxu1 %v20929_v53  ;;  %v21911_v53 = vld [vmem:[#allocation72_spill] sm:$0xff] }
0x1013   :  { %21904 = vst [vmem:[#allocation47_spill] sm:$0xff] %v20932_v45  ;;  %12103 = vmatprep.subr.bf16.mxu1 %v20932_v45 }
0x1015   :  { %12145 = vmatpush1.bf16.msra.mxu0 %v20691_v24  ;;  %v20935_v24 = vld [vmem:[#allocation9 + $0x2a0] ss:$24 sps:$4 sm:$0xff]  }
0x1016   :  { %12146 = vmatprep.subr.bf16.mxu0 %v20694_v33  ;;  %21905 = vst [vmem:[#allocation61_spill] sm:$0xff] %v20935_v24  ;;  %v20938_v33 = vld [vmem:[#allocation9 + $0x2d4] ss:$24 sps:$4 sm:$0xff]   ;;  %12104 = vmatpush1.bf16.msra.mxu1 %v20935_v24 }
0x1017   :  { %21906 = vst [vmem:[#allocation33_spill] sm:$0xff] %v20938_v33  ;;  %12105 = vmatprep.subr.bf16.mxu1 %v20938_v33 }
0x1019   :  { %12147 = vmatpush1.bf16.msra.mxu0 %v20697_v42  ;;  %v20941_v42 = vld [vmem:[#allocation9 + $0x2d0] ss:$24 sps:$4 sm:$0xff]  }
0x101a   :  { %12830 = vmatprep.subr.bf16.mxu0 %v16929_v54  ;;  %21907 = vst [vmem:[#allocation48_spill] sm:$0xff] %v20941_v42  ;;  %12106 = vmatpush1.bf16.msra.mxu1 %v20941_v42 }
0x101b   :  { %12157 = vmatprep.subr.bf16.mxu1 %v20945_v60 }
0x106f   :  { %v11354_v32 = vpop.f32.mrb[120].mxu0  ;;  %v11395_v47 = vpop.f32.mrb[120].mxu1 }
0x1070   :  { %v11449_v54 = vadd.f32 %v11354_v32, %v21909_v2  ;;  %v11356_v40 = vpop.f32.mrb[121].mxu0  ;;  %v11397_v8 = vpop.f32.mrb[121].mxu1  ;;  %v11477_v32 = vadd.f32 %v20707_v11, %v11395_v47 }
0x1071   :  { %v11463_v45 = vadd.f32 %v11356_v40, %v21910_v9  ;;  %v11456_v24 = vadd.f32 %v11397_v8, %v21911_v53  ;;  %v11358_v31 = vpop.f32.mrb[122].mxu0  ;;  %v11399_v10 = vpop.f32.mrb[122].mxu1 }
0x1072   :  { %v15251_v36 = vmul.f32 -1.442695, %v11449_v54  ;;  %v11359_v33 = vpop.f32.mrb[123].mxu0  ;;  %v11400_v1 = vpop.f32.mrb[123].mxu1 }
0x1073   :  { %v15253_v42 = vmul.f32 -1.442695, %v11463_v45  ;;  %v15252_v10 = vmul.f32 -1.442695, %v11456_v24  ;;  %v21913_v45 = vld [vmem:[#allocation76_spill] sm:$0xff] }
0x1074   :  { %17374 = vpow2.f32 %v15251_v36 }
0x1075   :  { %17376 = vpow2.f32 %v15253_v42 }
0x107e   :  { %v17375_v62 = vpop.eup %17374 }
0x107f   :  { %v11453_v56 = vadd.f32 1.0, %v17375_v62  ;;  %v17377_v60 = vpop.eup %17376 }
0x1080   :  { %v11467_v40 = vadd.f32 1.0, %v17377_v60 }
0x1081   :  { %17378 = vrcp.f32 %v11453_v56 }
0x108b   :  { %v17379_v2 = vpop.eup %17378 }
0x108c   :  { %v11478_v48 = vmul.f32 %v17379_v2, %v11477_v32 }
0x108e   :  { %v11479_v9 = vadd.f32 %v11478_v48, %v21912_v4 }
0x1090   :  { %17380 = vtanh.f32 %v11479_v9  ;;  %v21914_v9 = vld [vmem:[#allocation77_spill] sm:$0xff] }
0x1091   :  { %17382 = vrcp.f32 %v11467_v40 }
0x1092   :  { %17384 = vpow2.f32 %v15252_v10 }
0x109a   :  { %v17381_v31 = vpop.eup %17380 }
0x109b   :  { %v11485_v8 = vsub.f32 %v20729_v59, %v17381_v31  ;;  %v17383_v1 = vpop.eup %17382 }
0x109c   :  { %v17385_v53 = vpop.eup %17384 }
0x109d   :  { %v11486_v36 = vmul.f32 %v17383_v1, %v11485_v8  ;;  %v11460_v4 = vadd.f32 1.0, %v17385_v53 }
0x109f   :  { %v11487_v62 = vadd.f32 %v17381_v31, %v11486_v36  ;;  %17386 = vrcp.f32 %v11460_v4 }
0x10a1   :  { %v11493_v56 = vsel %vm3789_vm1, %v11487_v62, 0.0  ;;  %v20966_v4 = vsel %vm3789_vm1, %v11487_v62, %v20729_v59  ;;  %v20999_v62 = vld [vmem:[#allocation9 + $0x70] ss:$24 sps:$4 sm:$0xff]  }
0x10a2   :  { %11494 = vst [vmem:[%s21403_s12 + $0x40] sm:$0xff] %v11493_v56  ;;  %v20984_v59 = vpack.c.bf16 %v20966_v4, %v20966_v4 }
0x10a9   :  { %v17387_v47 = vpop.eup %17386 }
0x10af   :  { %v11436_v48 = vpop.f32.mrb[124].mxu0 }
0x10b0   :  { %v11470_v24 = vadd.f32 %v11436_v48, %v21913_v45  ;;  %v11438_v33 = vpop.f32.mrb[125].mxu0 }
0x10b1   :  { %v11481_v42 = vadd.f32 %v20721_v16, %v11438_v33  ;;  %v11440_v60 = vpop.f32.mrb[126].mxu0  ;;  %v20980_v33 = vld [vmem:[#allocation9 + $0x10] ss:$24 sps:$4 sm:$0xff]  }
0x10b2   :  { %v15254_v54 = vmul.f32 -1.442695, %v11470_v24  ;;  %v11441_v32 = vpop.f32.mrb[127].mxu0  ;;  %v21007_v60 = vld [vmem:[#allocation9 + $0xa0] ss:$24 sps:$4 sm:$0xff]  }
0x10b3   :  { %v11482_v2 = vmul.f32 %v17387_v47, %v11481_v42  ;;  %v21002_v42 = vld [vmem:[#allocation9 + $0xa4] ss:$24 sps:$4 sm:$0xff]  }
0x10b4   :  { %17388 = vpow2.f32 %v15254_v54  ;;  %v21122_v47 = vld [vmem:[#allocation9 + $0x1bc] ss:$24 sps:$4 sm:$0xff]   ;;  %v21124_v54 = vld [vmem:[#allocation9 + $0x1b8] ss:$24 sps:$4 sm:$0xff]   ;;  %v21128_v32 = vld [vmem:[#allocation9 + $0x1ec] ss:$24 sps:$4 sm:$0xff]  }
0x10b5   :  { %v11483_v40 = vadd.f32 %v11482_v2, %v21914_v9  ;;  %v21130_v2 = vld [vmem:[#allocation9 + $0x1e8] ss:$24 sps:$4 sm:$0xff]   ;;  %v21134_v9 = vld [vmem:[#allocation9 + $0x21c] ss:$24 sps:$4 sm:$0xff]  }
0x10b7   :  { %17390 = vtanh.f32 %v11483_v40  ;;  %v21136_v40 = vld [vmem:[#allocation9 + $0x218] ss:$24 sps:$4 sm:$0xff]  }
0x10be   :  { %v17389_v10 = vpop.eup %17388 }
0x10bf   :  { %v11474_v31 = vadd.f32 1.0, %v17389_v10  ;;  %v21140_v10 = vld [vmem:[#allocation9 + $0x248] ss:$24 sps:$4 sm:$0xff]  }
0x10c1   :  { %17392 = vrcp.f32 %v11474_v31  ;;  %v17391_v8 = vpop.eup %17390  ;;  %v21142_v31 = vld [vmem:[#allocation9 + $0x24c] ss:$24 sps:$4 sm:$0xff]  }
0x10c2   :  { %v11488_v1 = vsub.f32 %v20734_v29, %v17391_v8 }
0x10cb   :  { %v17393_v36 = vpop.eup %17392 }
0x10cc   :  { %v11489_v53 = vmul.f32 %v17393_v36, %v11488_v1  ;;  %v21148_v1 = vld [vmem:[#allocation9 + $0x278] ss:$24 sps:$4 sm:$0xff]   ;;  %v21151_v36 = vld [vmem:[#allocation9 + $0x2ac] ss:$24 sps:$4 sm:$0xff]  }
0x10ce   :  { %v11490_v56 = vadd.f32 %v17391_v8, %v11489_v53  ;;  %v21144_v8 = vld [vmem:[#allocation9 + $0x27c] ss:$24 sps:$4 sm:$0xff]   ;;  %v21154_v53 = vld [vmem:[#allocation9 + $0x2a8] ss:$24 sps:$4 sm:$0xff]  }
0x10d0   :  { %v20971_v48 = vsel %vm3783_vm0, %v11490_v56, %v20734_v29  ;;  %v11495_v45 = vsel %vm3783_vm0, %v11490_v56, 0.0  ;;  %v20994_v29 = vld [vmem:[#allocation9 + $0x74] ss:$24 sps:$4 sm:$0xff]  }
0x10d1   :  { %11496 = vst [vmem:[%s21403_s12 + $0x38] sm:$0xff] %v11495_v45  ;;  %v11498_v24 = vpack.c.bf16 %v20971_v48, %v20971_v48  ;;  %v21157_v56 = vld [vmem:[#allocation9 + $0x2dc] ss:$24 sps:$4 sm:$0xff]   ;;  %v21160_v45 = vld [vmem:[#allocation9 + $0x2d8] ss:$24 sps:$4 sm:$0xff]  }
0x10d2   :  { %21932 = vst [vmem:[#allocation81_spill] sm:$0xff] %v21157_v56  ;;  %21933 = vst [vmem:[#allocation27_spill] sm:$0xff] %v21160_v45 }
0x10d3   :  { %12107 = vmatprep.mubr.bf16.mxu1 %v11498_v24  ;;  %12148 = vmatprep.mubr.bf16.mxu0 %v11498_v24 }
0x10d4   :  { %12108 = vmatmul.mubr.bf16.vlgmr.msra.gmra.mrb[124].mxu1 %v20984_v59  ;;  %12149 = vmatmul.mubr.bf16.vlgmr.msra.gmra.mrb[128].mxu0 %v20984_v59 }
0x10d5   :  { %12158 = vmatpush1.bf16.msra.mxu1 %v20980_v33  ;;  %12189 = vmatprep.mubr.bf16.mxu1 %v11498_v24 }
0x10d6   :  { %12159 = vmatprep.subr.bf16.mxu1 %v20986_v50  ;;  %12831 = vmatpush1.bf16.msra.mxu0 %v20848_v63  ;;  %v21010_v63 = vld [vmem:[#allocation9 + $0xd4] ss:$24 sps:$4 sm:$0xff]  }
0x10d7   :  { %12832 = vmatprep.subr.bf16.mxu0 %v20852_v12  ;;  %v21015_v12 = vld [vmem:[#allocation9 + $0xd0] ss:$24 sps:$4 sm:$0xff]  }
0x10d9   :  { %12160 = vmatpush1.bf16.msra.mxu1 %v20991_v49 }
0x10da   :  { %12161 = vmatprep.subr.bf16.mxu1 %v20994_v29  ;;  %12833 = vmatpush1.bf16.msra.mxu0 %v20855_v52  ;;  %v21930_v52 = vld [vmem:[#allocation48_spill] sm:$0xff] }
0x10db   :  { %12834 = vmatprep.subr.bf16.mxu0 %v20860_v19  ;;  %v21931_v19 = vld [vmem:[#allocation80_spill] sm:$0xff] }
0x10dd   :  { %12162 = vmatpush1.bf16.msra.mxu1 %v20999_v62 }
0x10de   :  { %12163 = vmatprep.subr.bf16.mxu1 %v21002_v42  ;;  %12835 = vmatpush1.bf16.msra.mxu0 %v20863_v27  ;;  %v21068_v27 = vld [vmem:[#allocation9 + $0xc] ss:$24 sps:$4 sm:$0xff]  }
0x10df   :  { %12836 = vmatprep.subr.bf16.mxu0 %v20869_v15  ;;  %v21074_v15 = vld [vmem:[#allocation9 + $0x3c] ss:$24 sps:$4 sm:$0xff]  }
0x10e1   :  { %12164 = vmatpush1.bf16.msra.mxu1 %v21007_v60 }
0x10e2   :  { %12165 = vmatprep.subr.bf16.mxu1 %v21010_v63  ;;  %12837 = vmatpush1.bf16.msra.mxu0 %v20867_v44  ;;  %v21070_v44 = vld [vmem:[#allocation9 + $0x8] ss:$24 sps:$4 sm:$0xff]  }
0x10e3   :  { %12838 = vmatprep.subr.bf16.mxu0 %v20871_v22  ;;  %v21076_v22 = vld [vmem:[#allocation9 + $0x38] ss:$24 sps:$4 sm:$0xff]  }
0x10e5   :  { %12166 = vmatpush1.bf16.msra.mxu1 %v21015_v12 }
0x10e6   :  { %12167 = vmatprep.subr.bf16.mxu1 %v20753_v30  ;;  %12839 = vmatpush1.bf16.msra.mxu0 %v20875_v0  ;;  %v21915_v30 = vld [vmem:[#allocation22_spill] sm:$0xff] }
0x10e7   :  { %12840 = vmatprep.subr.bf16.mxu0 %v20878_v58  ;;  %v21080_v0 = vld [vmem:[#allocation9 + $0x6c] ss:$24 sps:$4 sm:$0xff]   ;;  %v21082_v58 = vld [vmem:[#allocation9 + $0x68] ss:$24 sps:$4 sm:$0xff]  }
0x10e9   :  { %12168 = vmatpush1.bf16.msra.mxu1 %v20756_v39  ;;  %v21916_v39 = vld [vmem:[#allocation83_spill] sm:$0xff] }
0x10ea   :  { %12169 = vmatprep.subr.bf16.mxu1 %v20759_v41  ;;  %12841 = vmatpush1.bf16.msra.mxu0 %v20881_v61  ;;  %v21917_v41 = vld [vmem:[#allocation70_spill] sm:$0xff]  ;;  %v21086_v61 = vld [vmem:[#allocation9 + $0x98] ss:$24 sps:$4 sm:$0xff]  }
0x10eb   :  { %12842 = vmatprep.subr.bf16.mxu0 %v20884_v23  ;;  %v21088_v23 = vld [vmem:[#allocation9 + $0x9c] ss:$24 sps:$4 sm:$0xff]  }
0x10ed   :  { %12170 = vmatpush1.bf16.msra.mxu1 %v20762_v26  ;;  %v21918_v26 = vld [vmem:[#allocation69_spill] sm:$0xff] }
0x10ee   :  { %12171 = vmatprep.subr.bf16.mxu1 %v20765_v17  ;;  %12843 = vmatpush1.bf16.msra.mxu0 %v20887_v6  ;;  %v21919_v17 = vld [vmem:[#allocation82_spill] sm:$0xff] }
0x10ef   :  { %12844 = vmatprep.subr.bf16.mxu0 %v20891_v3  ;;  %v21090_v6 = vld [vmem:[#allocation9 + $0xcc] ss:$24 sps:$4 sm:$0xff]   ;;  %v21094_v3 = vld [vmem:[#allocation9 + $0xc8] ss:$24 sps:$4 sm:$0xff]  }
0x10f1   :  { %12172 = vmatpush1.bf16.msra.mxu1 %v20768_v35  ;;  %v21920_v35 = vld [vmem:[#allocation55_spill] sm:$0xff] }
0x10f2   :  { %12173 = vmatprep.subr.bf16.mxu1 %v20771_v57  ;;  %12845 = vmatpush1.bf16.msra.mxu0 %v20893_v7  ;;  %v21921_v57 = vld [vmem:[#allocation49_spill] sm:$0xff] }
0x10f3   :  { %12846 = vmatprep.subr.bf16.mxu0 %v20897_v55  ;;  %v21097_v7 = vld [vmem:[#allocation9 + $0xfc] ss:$24 sps:$4 sm:$0xff]   ;;  %v21100_v55 = vld [vmem:[#allocation9 + $0xf8] ss:$24 sps:$4 sm:$0xff]  }
0x10f5   :  { %12174 = vmatpush1.bf16.msra.mxu1 %v20774_v46  ;;  %v21922_v46 = vld [vmem:[#allocation28_spill] sm:$0xff] }
0x10f6   :  { %12175 = vmatprep.subr.bf16.mxu1 %v20777_v20  ;;  %12847 = vmatpush1.bf16.msra.mxu0 %v20899_v25  ;;  %v21923_v20 = vld [vmem:[#allocation56_spill] sm:$0xff]  ;;  %v21103_v25 = vld [vmem:[#allocation9 + $0x12c] ss:$24 sps:$4 sm:$0xff]  }
0x10f7   :  { %12848 = vmatprep.subr.bf16.mxu0 %v20903_v13  ;;  %v21106_v13 = vld [vmem:[#allocation9 + $0x128] ss:$24 sps:$4 sm:$0xff]  }
0x10f9   :  { %12176 = vmatpush1.bf16.msra.mxu1 %v20780_v14  ;;  %v21924_v14 = vld [vmem:[#allocation47_spill] sm:$0xff] }
0x10fa   :  { %12177 = vmatprep.subr.bf16.mxu1 %v20783_v51  ;;  %12849 = vmatpush1.bf16.msra.mxu0 %v20905_v5  ;;  %v21925_v51 = vld [vmem:[#allocation60_spill] sm:$0xff] }
0x10fb   :  { %12850 = vmatprep.subr.bf16.mxu0 %v20909_v18  ;;  %v21110_v5 = vld [vmem:[#allocation9 + $0x15c] ss:$24 sps:$4 sm:$0xff]   ;;  %v21112_v18 = vld [vmem:[#allocation9 + $0x158] ss:$24 sps:$4 sm:$0xff]  }
0x10fd   :  { %12178 = vmatpush1.bf16.msra.mxu1 %v20786_v28  ;;  %v21926_v28 = vld [vmem:[#allocation41_spill] sm:$0xff] }
0x10fe   :  { %12179 = vmatprep.subr.bf16.mxu1 %v20789_v34  ;;  %12851 = vmatpush1.bf16.msra.mxu0 %v20911_v37  ;;  %v21927_v34 = vld [vmem:[#allocation61_spill] sm:$0xff]  ;;  %v21116_v37 = vld [vmem:[#allocation9 + $0x18c] ss:$24 sps:$4 sm:$0xff]  }
0x10ff   :  { %12852 = vmatprep.subr.bf16.mxu0 %v20915_v38  ;;  %v21118_v38 = vld [vmem:[#allocation9 + $0x188] ss:$24 sps:$4 sm:$0xff]  }
0x1101   :  { %12180 = vmatpush1.bf16.msra.mxu1 %v20792_v21  ;;  %v21928_v21 = vld [vmem:[#allocation33_spill] sm:$0xff] }
0x1102   :  { %12181 = vmatprep.subr.bf16.mxu1 %v20795_v43  ;;  %12853 = vmatpush1.bf16.msra.mxu0 %v21915_v30  ;;  %v21929_v43 = vld [vmem:[#allocation84_spill] sm:$0xff]  ;;  %v21934_v30 = vld [vmem:[#allocation30_spill] sm:$0xff] }
0x1103   :  { %12854 = vmatprep.subr.bf16.mxu0 %v21916_v39 }
0x1105   :  { %12182 = vmatpush1.bf16.msra.mxu1 %v21917_v41 }
0x1106   :  { %12183 = vmatprep.subr.bf16.mxu1 %v21918_v26  ;;  %12855 = vmatpush1.bf16.msra.mxu0 %v21919_v17  ;;  %v21935_v17 = vld [vmem:[#allocation44_spill] sm:$0xff] }
0x1107   :  { %12856 = vmatprep.subr.bf16.mxu0 %v21920_v35 }
0x1109   :  { %12184 = vmatpush1.bf16.msra.mxu1 %v21921_v57  ;;  %v21936_v57 = vld [vmem:[#allocation62_spill] sm:$0xff] }
0x110a   :  { %12185 = vmatprep.subr.bf16.mxu1 %v21922_v46  ;;  %12857 = vmatpush1.bf16.msra.mxu0 %v21923_v20 }
0x110b   :  { %12858 = vmatprep.subr.bf16.mxu0 %v21924_v14 }
0x110d   :  { %12186 = vmatpush1.bf16.msra.mxu1 %v21925_v51 }
0x110e   :  { %12187 = vmatprep.subr.bf16.mxu1 %v21926_v28  ;;  %12859 = vmatpush1.bf16.msra.mxu0 %v21927_v34 }
0x110f   :  { %12860 = vmatprep.subr.bf16.mxu0 %v21928_v21 }
0x1111   :  { %12188 = vmatpush1.bf16.msra.mxu1 %v21929_v43 }
0x1112   :  { %12861 = vmatpush1.bf16.msra.mxu0 %v21930_v52  ;;  %12871 = vmatprep.subr.bf16.mxu1 %v21068_v27 }
0x1113   :  { %12912 = vmatprep.subr.bf16.mxu0 %v21931_v19 }
0x1114   :  { %12190 = vmatmul.mubr.bf16.vlgmr.msra.gmra.mrb[128].mxu1 %v20984_v59 }
0x1115   :  { %12872 = vmatpush1.bf16.msra.mxu1 %v21070_v44 }
0x1116   :  { %12873 = vmatprep.subr.bf16.mxu1 %v21074_v15 }
0x1119   :  { %12874 = vmatpush1.bf16.msra.mxu1 %v21076_v22 }
0x111a   :  { %12875 = vmatprep.subr.bf16.mxu1 %v21080_v0 }
0x111d   :  { %12876 = vmatpush1.bf16.msra.mxu1 %v21082_v58 }
0x111e   :  { %12877 = vmatprep.subr.bf16.mxu1 %v21088_v23 }
0x1121   :  { %12878 = vmatpush1.bf16.msra.mxu1 %v21086_v61 }
0x1122   :  { %12879 = vmatprep.subr.bf16.mxu1 %v21090_v6 }
0x1125   :  { %12880 = vmatpush1.bf16.msra.mxu1 %v21094_v3 }
0x1126   :  { %12881 = vmatprep.subr.bf16.mxu1 %v21097_v7 }
0x1129   :  { %12882 = vmatpush1.bf16.msra.mxu1 %v21100_v55 }
0x112a   :  { %12883 = vmatprep.subr.bf16.mxu1 %v21103_v25 }
0x112d   :  { %12884 = vmatpush1.bf16.msra.mxu1 %v21106_v13 }
0x112e   :  { %12885 = vmatprep.subr.bf16.mxu1 %v21110_v5 }
0x1131   :  { %12886 = vmatpush1.bf16.msra.mxu1 %v21112_v18 }
0x1132   :  { %12887 = vmatprep.subr.bf16.mxu1 %v21116_v37 }
0x1135   :  { %12888 = vmatpush1.bf16.msra.mxu1 %v21118_v38 }
0x1136   :  { %12889 = vmatprep.subr.bf16.mxu1 %v21122_v47 }
0x1139   :  { %12890 = vmatpush1.bf16.msra.mxu1 %v21124_v54 }
0x113a   :  { %12891 = vmatprep.subr.bf16.mxu1 %v21128_v32 }
0x113d   :  { %12892 = vmatpush1.bf16.msra.mxu1 %v21130_v2 }
0x113e   :  { %12893 = vmatprep.subr.bf16.mxu1 %v21134_v9 }
0x1141   :  { %12894 = vmatpush1.bf16.msra.mxu1 %v21136_v40 }
0x1142   :  { %12895 = vmatprep.subr.bf16.mxu1 %v21142_v31 }
0x1145   :  { %12896 = vmatpush1.bf16.msra.mxu1 %v21140_v10 }
0x1146   :  { %12897 = vmatprep.subr.bf16.mxu1 %v21144_v8 }
0x1149   :  { %12898 = vmatpush1.bf16.msra.mxu1 %v21148_v1 }
0x114a   :  { %12899 = vmatprep.subr.bf16.mxu1 %v21151_v36 }
0x114d   :  { %12900 = vmatpush1.bf16.msra.mxu1 %v21154_v53 }
0x114e   :  { %12901 = vmatprep.subr.bf16.mxu1 %v21157_v56  ;;  %v21937_v56 = vld [vmem:[#allocation43_spill] sm:$0xff] }
0x1151   :  { %12902 = vmatpush1.bf16.msra.mxu1 %v21160_v45 }
0x11a7   :  { %v12109_v24 = vpop.f32.mrb[124].mxu1  ;;  %v12150_v59 = vpop.f32.mrb[128].mxu0 }
0x11a8   :  { %v12204_v39 = vadd.f32 %v12109_v24, %v21934_v30  ;;  %v12111_v41 = vpop.f32.mrb[125].mxu1  ;;  %v12152_v26 = vpop.f32.mrb[129].mxu0  ;;  %v12232_v24 = vadd.f32 %v20707_v11, %v12150_v59 }
0x11a9   :  { %v12218_v35 = vadd.f32 %v12111_v41, %v21935_v17  ;;  %v12211_v46 = vadd.f32 %v12152_v26, %v21936_v57  ;;  %v12113_v20 = vpop.f32.mrb[126].mxu1  ;;  %v12154_v14 = vpop.f32.mrb[130].mxu0 }
0x11aa   :  { %v15351_v51 = vmul.f32 -1.442695, %v12204_v39  ;;  %v12114_v28 = vpop.f32.mrb[127].mxu1  ;;  %v12155_v34 = vpop.f32.mrb[131].mxu0 }
0x11ab   :  { %v15353_v21 = vmul.f32 -1.442695, %v12218_v35  ;;  %v15352_v26 = vmul.f32 -1.442695, %v12211_v46 }
0x11ac   :  { %17394 = vpow2.f32 %v15351_v51 }
0x11ad   :  { %17396 = vpow2.f32 %v15353_v21 }
0x11b6   :  { %v17395_v43 = vpop.eup %17394 }
0x11b7   :  { %v12208_v52 = vadd.f32 1.0, %v17395_v43  ;;  %v17397_v19 = vpop.eup %17396 }
0x11b8   :  { %v12222_v17 = vadd.f32 1.0, %v17397_v19 }
0x11b9   :  { %17398 = vrcp.f32 %v12208_v52 }
0x11c3   :  { %v17399_v30 = vpop.eup %17398 }
0x11c4   :  { %v12233_v45 = vmul.f32 %v17399_v30, %v12232_v24 }
0x11c6   :  { %v12234_v41 = vadd.f32 %v12233_v45, %v21937_v56  ;;  %v21939_v45 = vld [vmem:[#allocation74_spill] sm:$0xff] }
0x11c8   :  { %17400 = vtanh.f32 %v12234_v41  ;;  %v21940_v41 = vld [vmem:[#allocation75_spill] sm:$0xff] }
0x11c9   :  { %17402 = vrcp.f32 %v12222_v17 }
0x11ca   :  { %17404 = vpow2.f32 %v15352_v26 }
0x11d2   :  { %v17401_v39 = vpop.eup %17400 }
0x11d3   :  { %v12240_v57 = vsub.f32 %v20966_v4, %v17401_v39  ;;  %v17403_v35 = vpop.eup %17402 }
0x11d4   :  { %v17405_v51 = vpop.eup %17404 }
0x11d5   :  { %v12241_v20 = vmul.f32 %v17403_v35, %v12240_v57  ;;  %v12215_v11 = vadd.f32 1.0, %v17405_v51 }
0x11d7   :  { %v12242_v14 = vadd.f32 %v17401_v39, %v12241_v20  ;;  %17406 = vrcp.f32 %v12215_v11 }
0x11d9   :  { %v12248_v34 = vsel %vm3022_vm15, %v12242_v14, 0.0 }
0x11da   :  { %12249 = vst [vmem:[%s21403_s12 + $0x50] sm:$0xff] %v12248_v34 }
0x11e1   :  { %v17407_v52 = vpop.eup %17406 }
0x11e7   :  { %v12191_v56 = vpop.f32.mrb[128].mxu1 }
0x11e8   :  { %v12225_v59 = vadd.f32 %v12191_v56, %v21939_v45  ;;  %v12193_v46 = vpop.f32.mrb[129].mxu1 }
0x11e9   :  { %v12236_v21 = vadd.f32 %v20721_v16, %v12193_v46  ;;  %v12195_v43 = vpop.f32.mrb[130].mxu1  ;;  %v21182_v16 = vsel %vm3022_vm15, %v12242_v14, %v20966_v4  ;;  %v21206_v4 = vld [vmem:[#allocation9 + $0x104] ss:$24 sps:$4 sm:$0xff]   ;;  %v21239_v14 = vld [vmem:[#allocation9 + $0x1f0] ss:$24 sps:$4 sm:$0xff]  }
0x11ea   :  { %v15354_v19 = vmul.f32 -1.442695, %v12225_v59  ;;  %v12196_v24 = vpop.f32.mrb[131].mxu1  ;;  %v12252_v28 = vpack.c.bf16 %v21182_v16, %v21182_v16  ;;  %v21242_v46 = vld [vmem:[#allocation9 + $0x224] ss:$24 sps:$4 sm:$0xff]  }
0x11eb   :  { %v12237_v30 = vmul.f32 %v17407_v52, %v12236_v21  ;;  %v21245_v21 = vld [vmem:[#allocation9 + $0x220] ss:$24 sps:$4 sm:$0xff]   ;;  %v21248_v43 = vld [vmem:[#allocation9 + $0x254] ss:$24 sps:$4 sm:$0xff]   ;;  %v21251_v52 = vld [vmem:[#allocation9 + $0x250] ss:$24 sps:$4 sm:$0xff]  }
0x11ec   :  { %17408 = vpow2.f32 %v15354_v19  ;;  %v21254_v19 = vld [vmem:[#allocation9 + $0x284] ss:$24 sps:$4 sm:$0xff]   ;;  %v21257_v24 = vld [vmem:[#allocation9 + $0x280] ss:$24 sps:$4 sm:$0xff]  }
0x11ed   :  { %v12238_v17 = vadd.f32 %v12237_v30, %v21940_v41  ;;  %v21260_v30 = vld [vmem:[#allocation9 + $0x2b4] ss:$24 sps:$4 sm:$0xff]   ;;  %v21263_v41 = vld [vmem:[#allocation9 + $0x2b0] ss:$24 sps:$4 sm:$0xff]  }
0x11ef   :  { %17410 = vtanh.f32 %v12238_v17  ;;  %v21266_v17 = vld [vmem:[#allocation9 + $0x2e4] ss:$24 sps:$4 sm:$0xff]  }
0x11f6   :  { %v17409_v26 = vpop.eup %17408 }
0x11f7   :  { %v12229_v39 = vadd.f32 1.0, %v17409_v26  ;;  %v21269_v26 = vld [vmem:[#allocation9 + $0x2e0] ss:$24 sps:$4 sm:$0xff]  }
0x11f9   :  { %17412 = vrcp.f32 %v12229_v39  ;;  %v17411_v57 = vpop.eup %17410  ;;  %v17115_v39 = vld [vmem:[#allocation9 + $0x2a4] ss:$24 sps:$4 sm:$0xff]  }
0x11fa   :  { %v12243_v35 = vsub.f32 %v20971_v48, %v17411_v57 }
0x1203   :  { %v17413_v20 = vpop.eup %17412 }
0x1204   :  { %v12244_v51 = vmul.f32 %v17413_v20, %v12243_v35  ;;  %v17118_v35 = vld [vmem:[#allocation9 + $0x2d4] ss:$24 sps:$4 sm:$0xff]   ;;  %v17116_v20 = vld [vmem:[#allocation9 + $0x2d0] ss:$24 sps:$4 sm:$0xff]  }
0x1206   :  { %v12245_v34 = vadd.f32 %v17411_v57, %v12244_v51  ;;  %v17113_v57 = vld [vmem:[#allocation9 + $0x2a0] ss:$24 sps:$4 sm:$0xff]   ;;  %v17121_v51 = vld [vmem:[#allocation9 + $0x14] ss:$24 sps:$4 sm:$0xff]  }
0x1208   :  { %v21187_v56 = vsel %vm3016_vm14, %v12245_v34, %v20971_v48  ;;  %v12250_v45 = vsel %vm3016_vm14, %v12245_v34, 0.0  ;;  %v21209_v48 = vld [vmem:[#allocation9 + $0x100] ss:$24 sps:$4 sm:$0xff]  }
0x1209   :  { %12251 = vst [vmem:[%s21403_s12 + $0x28] sm:$0xff] %v12250_v45  ;;  %v12253_v59 = vpack.c.bf16 %v21187_v56, %v21187_v56  ;;  %v21944_v45 = vld [vmem:[#allocation35_spill] sm:$0xff] }
0x120b   :  { %12862 = vmatprep.mubr.bf16.mxu0 %v12253_v59  ;;  %12903 = vmatprep.mubr.bf16.mxu1 %v12253_v59 }
0x120c   :  { %12863 = vmatmul.mubr.bf16.vlgmr.msra.gmra.mrb[132].mxu0 %v12252_v28  ;;  %12904 = vmatmul.mubr.bf16.vlgmr.msra.gmra.mrb[132].mxu1 %v12252_v28 }
0x120d   :  { %12913 = vmatpush1.bf16.msra.mxu0 %v20980_v33  ;;  %12944 = vmatprep.mubr.bf16.mxu0 %v12253_v59  ;;  %v21212_v33 = vld [vmem:[#allocation9 + $0x134] ss:$24 sps:$4 sm:$0xff]  }
0x120e   :  { %12914 = vmatprep.subr.bf16.mxu0 %v20986_v50  ;;  %v21215_v50 = vld [vmem:[#allocation9 + $0x130] ss:$24 sps:$4 sm:$0xff]  }
0x1211   :  { %12915 = vmatpush1.bf16.msra.mxu0 %v20991_v49  ;;  %v21218_v49 = vld [vmem:[#allocation9 + $0x164] ss:$24 sps:$4 sm:$0xff]  }
0x1212   :  { %12916 = vmatprep.subr.bf16.mxu0 %v20994_v29  ;;  %v21221_v29 = vld [vmem:[#allocation9 + $0x160] ss:$24 sps:$4 sm:$0xff]  }
0x1215   :  { %12917 = vmatpush1.bf16.msra.mxu0 %v20999_v62  ;;  %v21224_v62 = vld [vmem:[#allocation9 + $0x194] ss:$24 sps:$4 sm:$0xff]  }
0x1216   :  { %12918 = vmatprep.subr.bf16.mxu0 %v21002_v42  ;;  %v21227_v42 = vld [vmem:[#allocation9 + $0x190] ss:$24 sps:$4 sm:$0xff]  }
0x1219   :  { %12919 = vmatpush1.bf16.msra.mxu0 %v21007_v60  ;;  %v21230_v60 = vld [vmem:[#allocation9 + $0x1c4] ss:$24 sps:$4 sm:$0xff]  }
0x121a   :  { %12920 = vmatprep.subr.bf16.mxu0 %v21010_v63  ;;  %v21233_v63 = vld [vmem:[#allocation9 + $0x1c0] ss:$24 sps:$4 sm:$0xff]  }
0x121d   :  { %12921 = vmatpush1.bf16.msra.mxu0 %v21015_v12  ;;  %v21236_v12 = vld [vmem:[#allocation9 + $0x1f4] ss:$24 sps:$4 sm:$0xff]  }
0x121e   :  { %12922 = vmatprep.subr.bf16.mxu0 %v21206_v4 }
0x1221   :  { %12923 = vmatpush1.bf16.msra.mxu0 %v21209_v48 }
0x1222   :  { %12924 = vmatprep.subr.bf16.mxu0 %v21212_v33 }
0x1225   :  { %12925 = vmatpush1.bf16.msra.mxu0 %v21215_v50 }
0x1226   :  { %12926 = vmatprep.subr.bf16.mxu0 %v21218_v49 }
0x1229   :  { %12927 = vmatpush1.bf16.msra.mxu0 %v21221_v29 }
0x122a   :  { %12928 = vmatprep.subr.bf16.mxu0 %v21224_v62 }
0x122d   :  { %12929 = vmatpush1.bf16.msra.mxu0 %v21227_v42 }
0x122e   :  { %12930 = vmatprep.subr.bf16.mxu0 %v21230_v60 }
0x1231   :  { %12931 = vmatpush1.bf16.msra.mxu0 %v21233_v63 }
0x1232   :  { %12932 = vmatprep.subr.bf16.mxu0 %v21236_v12 }
0x1235   :  { %12933 = vmatpush1.bf16.msra.mxu0 %v21239_v14 }
0x1236   :  { %12934 = vmatprep.subr.bf16.mxu0 %v21242_v46 }
0x1239   :  { %12935 = vmatpush1.bf16.msra.mxu0 %v21245_v21 }
0x123a   :  { %12936 = vmatprep.subr.bf16.mxu0 %v21248_v43 }
0x123d   :  { %12937 = vmatpush1.bf16.msra.mxu0 %v21251_v52 }
0x123e   :  { %12938 = vmatprep.subr.bf16.mxu0 %v21254_v19 }
0x1241   :  { %12939 = vmatpush1.bf16.msra.mxu0 %v21257_v24 }
0x1242   :  { %12940 = vmatprep.subr.bf16.mxu0 %v21260_v30 }
0x1245   :  { %12941 = vmatpush1.bf16.msra.mxu0 %v21263_v41 }
0x1246   :  { %12942 = vmatprep.subr.bf16.mxu0 %v21266_v17 }
0x1249   :  { %12943 = vmatpush1.bf16.msra.mxu0 %v21269_v26 }
0x124a   :  { %13626 = vmatprep.subr.bf16.mxu0 %v21068_v27  ;;  %v17073_v27 = vld [vmem:[#allocation9 + $0x4] ss:$24 sps:$4 sm:$0xff]  }
0x124b   :  { %13585 = vmatprep.subr.bf16.mxu1 %v17073_v27 }
0x124c   :  { %12945 = vmatmul.mubr.bf16.vlgmr.msra.gmra.mrb[136].mxu0 %v12252_v28 }
0x124d   :  { %13627 = vmatpush1.bf16.msra.mxu0 %v21070_v44  ;;  %v17071_v44 = vld [vmem:[#allocation9] ss:$24 sps:$4 sm:$0xff]  }
0x124e   :  { %13628 = vmatprep.subr.bf16.mxu0 %v21074_v15  ;;  %13586 = vmatpush1.bf16.msra.mxu1 %v17071_v44  ;;  %v17076_v15 = vld [vmem:[#allocation9 + $0x34] ss:$24 sps:$4 sm:$0xff]   ;;  %v21945_v44 = vld [vmem:[#allocation34_spill] sm:$0xff] }
0x124f   :  { %13587 = vmatprep.subr.bf16.mxu1 %v17076_v15 }
0x1251   :  { %13629 = vmatpush1.bf16.msra.mxu0 %v21076_v22  ;;  %v17074_v22 = vld [vmem:[#allocation9 + $0x30] ss:$24 sps:$4 sm:$0xff]  }
0x1252   :  { %13630 = vmatprep.subr.bf16.mxu0 %v21080_v0  ;;  %v21942_v0 = vld [vmem:[#allocation81_spill] sm:$0xff]  ;;  %13588 = vmatpush1.bf16.msra.mxu1 %v17074_v22  ;;  %v21946_v22 = vld [vmem:[#allocation71_spill] sm:$0xff] }
0x1255   :  { %13631 = vmatpush1.bf16.msra.mxu0 %v21082_v58  ;;  %v17079_v58 = vld [vmem:[#allocation9 + $0x64] ss:$24 sps:$4 sm:$0xff]  }
0x1256   :  { %13632 = vmatprep.subr.bf16.mxu0 %v21088_v23  ;;  %v17077_v23 = vld [vmem:[#allocation9 + $0x60] ss:$24 sps:$4 sm:$0xff]   ;;  %13589 = vmatprep.subr.bf16.mxu1 %v17079_v58 }
0x1257   :  { %13590 = vmatpush1.bf16.msra.mxu1 %v17077_v23 }
0x1259   :  { %13633 = vmatpush1.bf16.msra.mxu0 %v21086_v61  ;;  %v21943_v61 = vld [vmem:[#allocation27_spill] sm:$0xff] }
0x125a   :  { %13634 = vmatprep.subr.bf16.mxu0 %v21090_v6  ;;  %v17082_v6 = vld [vmem:[#allocation9 + $0x94] ss:$24 sps:$4 sm:$0xff]  }
0x125b   :  { %13591 = vmatprep.subr.bf16.mxu1 %v17082_v6 }
0x125d   :  { %13635 = vmatpush1.bf16.msra.mxu0 %v21094_v3  ;;  %v17080_v3 = vld [vmem:[#allocation9 + $0x90] ss:$24 sps:$4 sm:$0xff]  }
0x125e   :  { %13636 = vmatprep.subr.bf16.mxu0 %v21097_v7  ;;  %v17085_v7 = vld [vmem:[#allocation9 + $0xc4] ss:$24 sps:$4 sm:$0xff]   ;;  %13592 = vmatpush1.bf16.msra.mxu1 %v17080_v3 }
0x125f   :  { %13593 = vmatprep.subr.bf16.mxu1 %v17085_v7 }
0x1261   :  { %13637 = vmatpush1.bf16.msra.mxu0 %v21100_v55  ;;  %v17083_v55 = vld [vmem:[#allocation9 + $0xc0] ss:$24 sps:$4 sm:$0xff]  }
0x1262   :  { %13638 = vmatprep.subr.bf16.mxu0 %v21103_v25  ;;  %v17088_v25 = vld [vmem:[#allocation9 + $0xf4] ss:$24 sps:$4 sm:$0xff]   ;;  %13594 = vmatpush1.bf16.msra.mxu1 %v17083_v55 }
0x1263   :  { %13595 = vmatprep.subr.bf16.mxu1 %v17088_v25 }
0x1265   :  { %13639 = vmatpush1.bf16.msra.mxu0 %v21106_v13  ;;  %v17086_v13 = vld [vmem:[#allocation9 + $0xf0] ss:$24 sps:$4 sm:$0xff]  }
0x1266   :  { %13640 = vmatprep.subr.bf16.mxu0 %v21110_v5  ;;  %v17091_v5 = vld [vmem:[#allocation9 + $0x124] ss:$24 sps:$4 sm:$0xff]   ;;  %13596 = vmatpush1.bf16.msra.mxu1 %v17086_v13 }
0x1267   :  { %13597 = vmatprep.subr.bf16.mxu1 %v17091_v5  ;;  %v21311_v5 = vld [vmem:[%s21401_s10] ss:$0 sm:$0xff] }
0x1269   :  { %13641 = vmatpush1.bf16.msra.mxu0 %v21112_v18  ;;  %v17089_v18 = vld [vmem:[#allocation9 + $0x120] ss:$24 sps:$4 sm:$0xff]  }
0x126a   :  { %13642 = vmatprep.subr.bf16.mxu0 %v21116_v37  ;;  %13598 = vmatpush1.bf16.msra.mxu1 %v17089_v18  ;;  %v17094_v37 = vld [vmem:[#allocation9 + $0x154] ss:$24 sps:$4 sm:$0xff]  }
0x126b   :  { %13599 = vmatprep.subr.bf16.mxu1 %v17094_v37 }
0x126d   :  { %13643 = vmatpush1.bf16.msra.mxu0 %v21118_v38  ;;  %v17092_v38 = vld [vmem:[#allocation9 + $0x150] ss:$24 sps:$4 sm:$0xff]  }
0x126e   :  { %13644 = vmatprep.subr.bf16.mxu0 %v21122_v47  ;;  %13600 = vmatpush1.bf16.msra.mxu1 %v17092_v38  ;;  %v17097_v47 = vld [vmem:[#allocation9 + $0x184] ss:$24 sps:$4 sm:$0xff]  }
0x126f   :  { %13601 = vmatprep.subr.bf16.mxu1 %v17097_v47  ;;  %v21947_v47 = vld [vmem:[#allocation16_spill] sm:$0xff] }
0x1271   :  { %13645 = vmatpush1.bf16.msra.mxu0 %v21124_v54  ;;  %v17095_v54 = vld [vmem:[#allocation9 + $0x180] ss:$24 sps:$4 sm:$0xff]  }
0x1272   :  { %13646 = vmatprep.subr.bf16.mxu0 %v21128_v32  ;;  %13602 = vmatpush1.bf16.msra.mxu1 %v17095_v54  ;;  %v17100_v32 = vld [vmem:[#allocation9 + $0x1b4] ss:$24 sps:$4 sm:$0xff]  }
0x1273   :  { %13603 = vmatprep.subr.bf16.mxu1 %v17100_v32 }
0x1275   :  { %13647 = vmatpush1.bf16.msra.mxu0 %v21130_v2  ;;  %v17098_v2 = vld [vmem:[#allocation9 + $0x1b0] ss:$24 sps:$4 sm:$0xff]  }
0x1276   :  { %13648 = vmatprep.subr.bf16.mxu0 %v21134_v9  ;;  %13604 = vmatpush1.bf16.msra.mxu1 %v17098_v2  ;;  %v17103_v9 = vld [vmem:[#allocation9 + $0x1e4] ss:$24 sps:$4 sm:$0xff]  }
0x1277   :  { %13605 = vmatprep.subr.bf16.mxu1 %v17103_v9 }
0x1279   :  { %13649 = vmatpush1.bf16.msra.mxu0 %v21136_v40  ;;  %v17101_v40 = vld [vmem:[#allocation9 + $0x1e0] ss:$24 sps:$4 sm:$0xff]  }
0x127a   :  { %13650 = vmatprep.subr.bf16.mxu0 %v21142_v31  ;;  %13606 = vmatpush1.bf16.msra.mxu1 %v17101_v40  ;;  %v17104_v31 = vld [vmem:[#allocation9 + $0x210] ss:$24 sps:$4 sm:$0xff]  }
0x127d   :  { %13651 = vmatpush1.bf16.msra.mxu0 %v21140_v10  ;;  %v17106_v10 = vld [vmem:[#allocation9 + $0x214] ss:$24 sps:$4 sm:$0xff]  }
0x127e   :  { %13652 = vmatprep.subr.bf16.mxu0 %v21144_v8  ;;  %13607 = vmatprep.subr.bf16.mxu1 %v17106_v10  ;;  %v17107_v8 = vld [vmem:[#allocation9 + $0x240] ss:$24 sps:$4 sm:$0xff]  }
0x127f   :  { %13608 = vmatpush1.bf16.msra.mxu1 %v17104_v31 }
0x1281   :  { %13653 = vmatpush1.bf16.msra.mxu0 %v21148_v1  ;;  %v17109_v1 = vld [vmem:[#allocation9 + $0x244] ss:$24 sps:$4 sm:$0xff]  }
0x1282   :  { %13654 = vmatprep.subr.bf16.mxu0 %v21151_v36  ;;  %v17112_v36 = vld [vmem:[#allocation9 + $0x274] ss:$24 sps:$4 sm:$0xff]   ;;  %13609 = vmatprep.subr.bf16.mxu1 %v17109_v1 }
0x1283   :  { %13610 = vmatpush1.bf16.msra.mxu1 %v17107_v8 }
0x1284   :  { %13611 = vmatprep.subr.bf16.mxu1 %v17112_v36 }
0x1285   :  { %13655 = vmatpush1.bf16.msra.mxu0 %v21154_v53  ;;  %v17110_v53 = vld [vmem:[#allocation9 + $0x270] ss:$24 sps:$4 sm:$0xff]  }
0x1286   :  { %13656 = vmatprep.subr.bf16.mxu0 %v21942_v0 }
0x1287   :  { %13612 = vmatpush1.bf16.msra.mxu1 %v17110_v53 }
0x1288   :  { %13613 = vmatprep.subr.bf16.mxu1 %v17115_v39 }
0x1289   :  { %13657 = vmatpush1.bf16.msra.mxu0 %v21943_v61 }
0x128b   :  { %13614 = vmatpush1.bf16.msra.mxu1 %v17113_v57 }
0x128c   :  { %13615 = vmatprep.subr.bf16.mxu1 %v17118_v35  ;;  %v21949_v35 = vld [vmem:[#allocation54_spill] sm:$0xff] }
0x128f   :  { %13616 = vmatpush1.bf16.msra.mxu1 %v17116_v20 }
0x1290   :  { %13667 = vmatprep.subr.bf16.mxu1 %v17121_v51 }
0x12df   :  { %v12864_v34 = vpop.f32.mrb[132].mxu0  ;;  %v12905_v11 = vpop.f32.mrb[132].mxu1 }
0x12e0   :  { %v12959_v59 = vadd.f32 %v12864_v34, %v21944_v45  ;;  %v12866_v28 = vpop.f32.mrb[133].mxu0  ;;  %v12907_v27 = vpop.f32.mrb[133].mxu1  ;;  %v12987_v18 = vadd.f32 %v21311_v5, %v12905_v11  ;;  %v21325_v34 = vld [vmem:[%s21402_s11] ss:$0 sm:$0xff] }
0x12e1   :  { %v12973_v15 = vadd.f32 %v12866_v28, %v21945_v44  ;;  %v12966_v0 = vadd.f32 %v12907_v27, %v21946_v22  ;;  %v12868_v58 = vpop.f32.mrb[134].mxu0  ;;  %v12909_v61 = vpop.f32.mrb[134].mxu1 }
0x12e2   :  { %v15451_v23 = vmul.f32 -1.442695, %v12959_v59  ;;  %v12869_v6 = vpop.f32.mrb[135].mxu0  ;;  %v12910_v3 = vpop.f32.mrb[135].mxu1 }
0x12e3   :  { %v15453_v7 = vmul.f32 -1.442695, %v12973_v15  ;;  %v15452_v2 = vmul.f32 -1.442695, %v12966_v0  ;;  %v21950_v15 = vld [vmem:[#allocation14_spill] sm:$0xff] }
0x12e4   :  { %17414 = vpow2.f32 %v15451_v23 }
0x12e5   :  { %17416 = vpow2.f32 %v15453_v7 }
0x12ee   :  { %v17415_v55 = vpop.eup %17414 }
0x12ef   :  { %v12963_v25 = vadd.f32 1.0, %v17415_v55  ;;  %v17417_v13 = vpop.eup %17416 }
0x12f0   :  { %v12977_v32 = vadd.f32 1.0, %v17417_v13 }
0x12f1   :  { %17418 = vrcp.f32 %v12963_v25 }
0x12fb   :  { %v17419_v37 = vpop.eup %17418 }
0x12fc   :  { %v12988_v38 = vmul.f32 %v17419_v37, %v12987_v18 }
0x12fe   :  { %v12989_v54 = vadd.f32 %v12988_v38, %v21947_v47  ;;  %v17119_v38 = vld [vmem:[#allocation9 + $0x10] ss:$24 sps:$4 sm:$0xff]   ;;  %v17124_v47 = vld [vmem:[#allocation9 + $0x44] ss:$24 sps:$4 sm:$0xff]  }
0x1300   :  { %17420 = vtanh.f32 %v12989_v54  ;;  %v17127_v54 = vld [vmem:[#allocation9 + $0x74] ss:$24 sps:$4 sm:$0xff]  }
0x1301   :  { %17422 = vrcp.f32 %v12977_v32  ;;  %v17125_v32 = vld [vmem:[#allocation9 + $0x70] ss:$24 sps:$4 sm:$0xff]  }
0x1302   :  { %17424 = vpow2.f32 %v15452_v2  ;;  %v17130_v2 = vld [vmem:[#allocation9 + $0xa4] ss:$24 sps:$4 sm:$0xff]  }
0x130a   :  { %v17421_v9 = vpop.eup %17420 }
0x130b   :  { %v12995_v40 = vsub.f32 %v21182_v16, %v17421_v9  ;;  %v17423_v10 = vpop.eup %17422 }
0x130c   :  { %v17425_v1 = vpop.eup %17424 }
0x130d   :  { %v12996_v31 = vmul.f32 %v17423_v10, %v12995_v40  ;;  %v12970_v39 = vadd.f32 1.0, %v17425_v1  ;;  %v17133_v40 = vld [vmem:[#allocation9 + $0xd4] ss:$24 sps:$4 sm:$0xff]   ;;  %v17131_v10 = vld [vmem:[#allocation9 + $0xd0] ss:$24 sps:$4 sm:$0xff]  }
0x130f   :  { %v12997_v8 = vadd.f32 %v17421_v9, %v12996_v31  ;;  %17426 = vrcp.f32 %v12970_v39  ;;  %v17128_v9 = vld [vmem:[#allocation9 + $0xa0] ss:$24 sps:$4 sm:$0xff]   ;;  %v21955_v31 = vld [vmem:[#allocation36_spill] sm:$0xff] }
0x1311   :  { %v13003_v53 = vsel %vm2255_vm13, %v12997_v8, 0.0  ;;  %v21333_v55 = vsel %vm2255_vm13, %v12997_v8, %v21182_v16 }
0x1312   :  { %13004 = vst [vmem:[%s21403_s12 + $0x60] sm:$0xff] %v13003_v53  ;;  %v13007_v16 = vpack.c.bf16 %v21333_v55, %v21333_v55 }
0x1319   :  { %v17427_v59 = vpop.eup %17426 }
0x131f   :  { %v12946_v57 = vpop.f32.mrb[136].mxu0 }
0x1320   :  { %v12980_v20 = vadd.f32 %v12946_v57, %v21949_v35  ;;  %v12948_v51 = vpop.f32.mrb[137].mxu0 }
0x1321   :  { %v12991_v11 = vadd.f32 %v21325_v34, %v12948_v51  ;;  %v12950_v45 = vpop.f32.mrb[138].mxu0 }
0x1322   :  { %v15454_v28 = vmul.f32 -1.442695, %v12980_v20  ;;  %v12951_v27 = vpop.f32.mrb[139].mxu0 }
0x1323   :  { %v12992_v44 = vmul.f32 %v17427_v59, %v12991_v11 }
0x1324   :  { %17428 = vpow2.f32 %v15454_v28  ;;  %v21957_v28 = vld [vmem:[#allocation25_spill] sm:$0xff] }
0x1325   :  { %v12993_v22 = vadd.f32 %v12992_v44, %v21950_v15 }
0x1327   :  { %17430 = vtanh.f32 %v12993_v22 }
0x132e   :  { %v17429_v0 = vpop.eup %17428 }
0x132f   :  { %v12984_v58 = vadd.f32 1.0, %v17429_v0 }
0x1331   :  { %17432 = vrcp.f32 %v12984_v58  ;;  %v17431_v61 = vpop.eup %17430 }
0x1332   :  { %v12998_v23 = vsub.f32 %v21187_v56, %v17431_v61 }
0x133b   :  { %v17433_v6 = vpop.eup %17432 }
0x133c   :  { %v12999_v3 = vmul.f32 %v17433_v6, %v12998_v23  ;;  %v21958_v6 = vld [vmem:[#allocation66_spill] sm:$0xff] }
0x133e   :  { %v13000_v7 = vadd.f32 %v17431_v61, %v12999_v3 }
0x1340   :  { %v21338_v13 = vsel %vm2249_vm12, %v13000_v7, %v21187_v56  ;;  %v13005_v18 = vsel %vm2249_vm12, %v13000_v7, 0.0  ;;  %v17122_v56 = vld [vmem:[#allocation9 + $0x40] ss:$24 sps:$4 sm:$0xff]  }
0x1341   :  { %13006 = vst [vmem:[%s21403_s12 + $0x18] sm:$0xff] %v13005_v18  ;;  %v13008_v37 = vpack.c.bf16 %v21338_v13, %v21338_v13 }
0x1343   :  { %13617 = vmatprep.mubr.bf16.mxu1 %v13008_v37  ;;  %13658 = vmatprep.mubr.bf16.mxu0 %v13008_v37 }
0x1344   :  { %13618 = vmatmul.mubr.bf16.vlgmr.msra.gmra.mrb[136].mxu1 %v13007_v16  ;;  %13659 = vmatmul.mubr.bf16.vlgmr.msra.gmra.mrb[140].mxu0 %v13007_v16 }
0x1345   :  { %13668 = vmatpush1.bf16.msra.mxu1 %v17119_v38  ;;  %13699 = vmatprep.mubr.bf16.mxu1 %v13008_v37 }
0x1346   :  { %13669 = vmatprep.subr.bf16.mxu1 %v17124_v47 }
0x1349   :  { %13670 = vmatpush1.bf16.msra.mxu1 %v17122_v56 }
0x134a   :  { %13671 = vmatprep.subr.bf16.mxu1 %v17127_v54 }
0x134d   :  { %13672 = vmatpush1.bf16.msra.mxu1 %v17125_v32 }
0x134e   :  { %13673 = vmatprep.subr.bf16.mxu1 %v17130_v2 }
0x1351   :  { %13674 = vmatpush1.bf16.msra.mxu1 %v17128_v9 }
0x1352   :  { %13675 = vmatprep.subr.bf16.mxu1 %v17133_v40 }
0x1355   :  { %13676 = vmatpush1.bf16.msra.mxu1 %v17131_v10 }
0x1356   :  { %13677 = vmatprep.subr.bf16.mxu1 %v21206_v4 }
0x1359   :  { %13678 = vmatpush1.bf16.msra.mxu1 %v21209_v48 }
0x135a   :  { %13679 = vmatprep.subr.bf16.mxu1 %v21212_v33  ;;  %v21952_v33 = vld [vmem:[#allocation42_spill] sm:$0xff] }
0x135d   :  { %13680 = vmatpush1.bf16.msra.mxu1 %v21215_v50 }
0x135e   :  { %13681 = vmatprep.subr.bf16.mxu1 %v21218_v49 }
0x1361   :  { %13682 = vmatpush1.bf16.msra.mxu1 %v21221_v29 }
0x1362   :  { %13683 = vmatprep.subr.bf16.mxu1 %v21224_v62  ;;  %v21953_v62 = vld [vmem:[#allocation38_spill] sm:$0xff] }
0x1365   :  { %13684 = vmatpush1.bf16.msra.mxu1 %v21227_v42 }
0x1366   :  { %13685 = vmatprep.subr.bf16.mxu1 %v21230_v60  ;;  %v21954_v60 = vld [vmem:[#allocation59_spill] sm:$0xff] }
0x1369   :  { %13686 = vmatpush1.bf16.msra.mxu1 %v21233_v63 }
0x136a   :  { %13687 = vmatprep.subr.bf16.mxu1 %v21236_v12 }
0x136d   :  { %13688 = vmatpush1.bf16.msra.mxu1 %v21239_v14 }
0x136e   :  { %13689 = vmatprep.subr.bf16.mxu1 %v21242_v46 }
0x1371   :  { %13690 = vmatpush1.bf16.msra.mxu1 %v21245_v21 }
0x1372   :  { %13691 = vmatprep.subr.bf16.mxu1 %v21248_v43 }
0x1375   :  { %13692 = vmatpush1.bf16.msra.mxu1 %v21251_v52 }
0x1376   :  { %13693 = vmatprep.subr.bf16.mxu1 %v21254_v19 }
0x1379   :  { %13694 = vmatpush1.bf16.msra.mxu1 %v21257_v24 }
0x137a   :  { %13695 = vmatprep.subr.bf16.mxu1 %v21260_v30 }
0x137d   :  { %13696 = vmatpush1.bf16.msra.mxu1 %v21263_v41 }
0x137e   :  { %13697 = vmatprep.subr.bf16.mxu1 %v21266_v17 }
0x1381   :  { %13698 = vmatpush1.bf16.msra.mxu1 %v21269_v26 }
0x1384   :  { %13700 = vmatmul.mubr.bf16.vlgmr.msra.gmra.mrb[140].mxu1 %v13007_v16 }
0x1417   :  { %v13619_v4 = vpop.f32.mrb[136].mxu1  ;;  %v13660_v48 = vpop.f32.mrb[140].mxu0 }
0x1418   :  { %v13714_v50 = vadd.f32 %v13619_v4, %v21952_v33  ;;  %v13621_v49 = vpop.f32.mrb[137].mxu1  ;;  %v13662_v29 = vpop.f32.mrb[141].mxu0  ;;  %v13742_v41 = vadd.f32 %v21311_v5, %v13660_v48 }
0x1419   :  { %v13728_v42 = vadd.f32 %v13621_v49, %v21953_v62  ;;  %v13721_v63 = vadd.f32 %v13662_v29, %v21954_v60  ;;  %v13623_v12 = vpop.f32.mrb[138].mxu1  ;;  %v13664_v14 = vpop.f32.mrb[142].mxu0 }
0x141a   :  { %v15551_v46 = vmul.f32 -1.442695, %v13714_v50  ;;  %v13624_v21 = vpop.f32.mrb[139].mxu1  ;;  %v13665_v43 = vpop.f32.mrb[143].mxu0 }
0x141b   :  { %v15553_v52 = vmul.f32 -1.442695, %v13728_v42  ;;  %v15552_v36 = vmul.f32 -1.442695, %v13721_v63 }
0x141c   :  { %17434 = vpow2.f32 %v15551_v46 }
0x141d   :  { %17436 = vpow2.f32 %v15553_v52 }
0x1426   :  { %v17435_v19 = vpop.eup %17434 }
0x1427   :  { %v13718_v24 = vadd.f32 1.0, %v17435_v19  ;;  %v17437_v30 = vpop.eup %17436 }
0x1428   :  { %v13732_v1 = vadd.f32 1.0, %v17437_v30 }
0x1429   :  { %17438 = vrcp.f32 %v13718_v24 }
0x1433   :  { %v17439_v17 = vpop.eup %17438 }
0x1434   :  { %v13743_v26 = vmul.f32 %v17439_v17, %v13742_v41 }
0x1436   :  { %v13744_v8 = vadd.f32 %v13743_v26, %v21955_v31 }
0x1438   :  { %17440 = vtanh.f32 %v13744_v8 }
0x1439   :  { %17442 = vrcp.f32 %v13732_v1 }
0x143a   :  { %17444 = vpow2.f32 %v15552_v36 }
0x1442   :  { %v17441_v53 = vpop.eup %17440 }
0x1443   :  { %v13750_v39 = vsub.f32 %v21333_v55, %v17441_v53  ;;  %v17443_v57 = vpop.eup %17442 }
0x1444   :  { %v17445_v51 = vpop.eup %17444 }
0x1445   :  { %v13751_v35 = vmul.f32 %v17443_v57, %v13750_v39  ;;  %v13725_v5 = vadd.f32 1.0, %v17445_v51 }
0x1447   :  { %v13752_v20 = vadd.f32 %v17441_v53, %v13751_v35  ;;  %17446 = vrcp.f32 %v13725_v5 }
0x1449   :  { %v13756_v45 = vsel %vm1490_vm8, %v13752_v20, 0.0 }
0x144a   :  { %13757 = vst [vmem:[%s21403_s12 + $0x70] sm:$0xff] %v13756_v45 }
0x1451   :  { %v17447_v0 = vpop.eup %17446 }
0x1457   :  { %v13701_v59 = vpop.f32.mrb[140].mxu1 }
0x1458   :  { %v13735_v27 = vadd.f32 %v13701_v59, %v21957_v28  ;;  %v13703_v44 = vpop.f32.mrb[141].mxu1 }
0x1459   :  { %v13746_v15 = vadd.f32 %v21325_v34, %v13703_v44  ;;  %v13705_v22 = vpop.f32.mrb[142].mxu1 }
0x145a   :  { %v15554_v58 = vmul.f32 -1.442695, %v13735_v27  ;;  %v13706_v61 = vpop.f32.mrb[143].mxu1 }
0x145b   :  { %v13747_v23 = vmul.f32 %v17447_v0, %v13746_v15 }
0x145c   :  { %17448 = vpow2.f32 %v15554_v58 }
0x145d   :  { %v13748_v3 = vadd.f32 %v13747_v23, %v21958_v6 }
0x145f   :  { %17450 = vtanh.f32 %v13748_v3 }
0x1466   :  { %v17449_v7 = vpop.eup %17448 }
0x1467   :  { %v13739_v55 = vadd.f32 1.0, %v17449_v7 }
0x1469   :  { %17452 = vrcp.f32 %v13739_v55  ;;  %v17451_v25 = vpop.eup %17450 }
0x146a   :  { %v13753_v18 = vsub.f32 %v21338_v13, %v17451_v25 }
0x1473   :  { %v17453_v37 = vpop.eup %17452 }
0x1474   :  { %v13754_v38 = vmul.f32 %v17453_v37, %v13753_v18 }
0x1476   :  { %v13755_v16 = vadd.f32 %v17451_v25, %v13754_v38 }
0x1478   :  { %v13758_v34 = vsel %vm1484_vm10, %v13755_v16, 0.0 }
0x1479   :  { %13759 = vst [vmem:[%s21403_s12 + $0x8] sm:$0xff] %v13758_v34 }
0x147a   :  { %13764 = vsyncpa [#allocation5], 1 }
0x147b   :  { %13765 = vsyncpa [#allocation7], 1 }
0x147c   :  { %13766 = vsyncpa [#allocation10], 1 }

</bundles_post_ra>
